<compile_context>
chip_gen: v7x
topology: tpu7x:2x2x1
jax: 0.10.0
libtpu: 0.0.40
codegen_flags: <defaults>
</compile_context>

<pallas_src>
import math

import jax
import jax.numpy as jnp
from jax.experimental import pallas as pl
from jax.experimental.pallas import tpu as pltpu


def _round_up(x, m):
    return (x + m - 1) // m * m


def _timestep_embedder_kernel(t_ref, freqs_ref, w1_ref, b1_ref, w2_ref,
                              b2_ref, out_ref, h_ref):
    # t_ref:     (tile_n, 1)      f32   row block of timesteps
    # freqs_ref: (1, half)        f32   resident
    # w1_ref:    (2*half, h_pad)  f32   resident (kept f32 for precision)
    # b1_ref:    (1, h_pad)       f32   resident
    # w2_ref:    (h_pad, tile_h)  wdt   column tile (pipelined)
    # b2_ref:    (1, tile_h)      f32   column tile
    # out_ref:   (tile_n, tile_h) out dtype
    # h_ref:     (tile_n, h_pad)  wdt   scratch: SiLU(emb @ W1 + b1), reused
    #                                   across the column (j) grid axis.

    @pl.when(pl.program_id(1) == 0)
    def _compute_hidden():
        args = t_ref[...] * freqs_ref[...]                # (tile_n, half) f32
        # half is lane-aligned (128) for the default freq size, so the concat
        # is pure lane placement feeding one K = 2*half MXU contraction.
        emb = jnp.concatenate([jnp.cos(args), jnp.sin(args)], axis=-1)
        h = (jnp.dot(emb, w1_ref[...], preferred_element_type=jnp.float32)
             + b1_ref[...])
        h = h * jax.nn.sigmoid(h)                          # SiLU in f32
        h_ref[...] = h.astype(h_ref.dtype)

    out = (jnp.dot(h_ref[...], w2_ref[...],
                   preferred_element_type=jnp.float32) + b2_ref[...])
    out_ref[...] = out.astype(out_ref.dtype)


def timestep_embedder_forward(t, params, frequency_embedding_size=256,
                              max_period=10000, *, tile_n=256, tile_h=512,
                              weight_dtype=jnp.bfloat16,
                              out_dtype=jnp.float32):
    """t: (N,) float timesteps -> (N, hidden_size) embedding (out_dtype)."""
    assert frequency_embedding_size % 2 == 0, (
        "odd frequency_embedding_size not supported")      # see TODO above
    half = frequency_embedding_size // 2

    w1 = jnp.asarray(params["w1"], jnp.float32)            # (freq, H)
    b1 = jnp.asarray(params["b1"], jnp.float32).reshape(1, -1)
    w2 = jnp.asarray(params["w2"], jnp.float32)            # (H, H)
    b2 = jnp.asarray(params["b2"], jnp.float32).reshape(1, -1)
    hidden = w2.shape[1]

    # Lane-dense output: pad hidden to a multiple of 128 (real DiT hidden
    # sizes already are; this guards small demo sizes).
    h_pad = _round_up(hidden, 128)
    if h_pad != hidden:
        pc = h_pad - hidden
        w1 = jnp.pad(w1, ((0, 0), (0, pc)))
        b1 = jnp.pad(b1, ((0, 0), (0, pc)))
        w2 = jnp.pad(w2, ((0, pc), (0, pc)))
        b2 = jnp.pad(b2, ((0, 0), (0, pc)))

    # First GEMM stays f32 (precision, tiny W1); only h / W2 are bf16.
    w2 = w2.astype(weight_dtype)

    freqs = jnp.exp(-math.log(max_period)
                    * jnp.arange(half, dtype=jnp.float32) / half
                    ).reshape(1, half)

    # Row tiling: at least 128 rows per tile.
    n = t.shape[0]
    tile_n = max(128, min(_round_up(tile_n, 128), _round_up(n, 128)))
    n_pad = _round_up(n, tile_n)
    num_rows = n_pad // tile_n
    t2d = jnp.zeros((n_pad, 1), jnp.float32).at[:n, 0].set(
        t.astype(jnp.float32))

    # Hidden-column tiling of the second GEMM: largest 128-multiple divisor
    # of h_pad that is <= the request.
    wsize = jnp.dtype(weight_dtype).itemsize
    tile_h = max(128, min(_round_up(tile_h, 128), h_pad))
    while h_pad % tile_h != 0:
        tile_h -= 128
    # If several row blocks reuse W2, keep it fully resident (a single HBM
    # read) instead of re-streaming its column tiles once per row block.
    if num_rows > 1 and 2 * h_pad * h_pad * wsize <= (24 << 20):
        tile_h = h_pad
    num_cols = h_pad // tile_h

    out_isize = jnp.dtype(out_dtype).itemsize

    def _vmem_limit(single_buffer):
        res_bufs = 1 if single_buffer else 2
        resident = res_bufs * 4 * (freqs.size + w1.size + b1.size)
        w2_bufs = 1 if (single_buffer and num_cols == 1) else 2
        w2_bytes = w2_bufs * h_pad * tile_h * wsize
        io = 2 * (tile_n * 4 + tile_h * 4 + tile_n * tile_h * out_isize)
        scratch = tile_n * h_pad * wsize
        needed = resident + w2_bytes + io + scratch + (4 << 20)
        try:
            cap = pltpu.get_tpu_info().vmem_capacity_bytes
        except Exception:
            cap = 64 << 20                    # conservative (v7x per-core)
        budget = max(32 << 20, cap - (16 << 20))
        return int(min(max(needed, 32 << 20), budget))

    def _call(single_buffer):
        res_kw = ({"pipeline_mode": pl.Buffered(1)} if single_buffer else {})

        def resident(shape):
            return pl.BlockSpec(shape, lambda *_: (0,) * len(shape), **res_kw)

        # W2 is logically resident when it is a single column block.
        w2_kw = res_kw if num_cols == 1 else {}
        in_specs = [
            pl.BlockSpec((tile_n, 1), lambda i, j: (i, 0)),           # t
            resident((1, half)),                                      # freqs
            resident((2 * half, h_pad)),                              # W1 f32
            resident((1, h_pad)),                                     # b1
            pl.BlockSpec((h_pad, tile_h), lambda i, j: (0, j), **w2_kw),
            pl.BlockSpec((1, tile_h), lambda i, j: (0, j)),           # b2
        ]
        out_spec = pl.BlockSpec((tile_n, tile_h), lambda i, j: (i, j))
        return pl.pallas_call(
            _timestep_embedder_kernel,
            out_shape=jax.ShapeDtypeStruct((n_pad, h_pad), out_dtype),
            grid=(num_rows, num_cols),
            in_specs=in_specs,
            out_specs=out_spec,
            scratch_shapes=[pltpu.VMEM((tile_n, h_pad), weight_dtype)],
            compiler_params=pltpu.CompilerParams(
                # Row axis sharded across cores; column axis carries the h
                # scratch so it must stay "arbitrary".
                dimension_semantics=("parallel", "arbitrary"),
                vmem_limit_bytes=_vmem_limit(single_buffer)),
        )(t2d, freqs, w1, b1, w2, b2)

    try:
        out = _call(True)
    except Exception:
        # This JAX build may reject single-buffered (pl.Buffered(1)) specs;
        # retry with default double-buffered pipelining.
        out = _call(False)

    return out[:n, :hidden]


def init_params(key, hidden_size, frequency_embedding_size=256):
    """PyTorch-like Linear init; weights stored as (in_features, out_features)."""
    k1, k2, k3, k4 = jax.random.split(key, 4)
    s1 = 1.0 / math.sqrt(frequency_embedding_size)
    s2 = 1.0 / math.sqrt(hidden_size)
    w1 = jax.random.uniform(k1, (frequency_embedding_size, hidden_size),
                            jnp.float32, -s1, s1)
    b1 = jax.random.uniform(k2, (hidden_size,), jnp.float32, -s1, s1)
    w2 = jax.random.uniform(k3, (hidden_size, hidden_size),
                            jnp.float32, -s2, s2)
    b2 = jax.random.uniform(k4, (hidden_size,), jnp.float32, -s2, s2)
    return {"w1": w1, "b1": b1, "w2": w2, "b2": b2}


def reference_forward(t, params, frequency_embedding_size=256, max_period=10000):
    """Pure-f32 reference matching the PyTorch module."""
    half = frequency_embedding_size // 2
    freqs = jnp.exp(-math.log(max_period)
                    * jnp.arange(half, dtype=jnp.float32) / half)
    args = t.astype(jnp.float32)[:, None] * freqs[None]
    emb = jnp.concatenate([jnp.cos(args), jnp.sin(args)], axis=-1)
    h = emb @ params["w1"] + params["b1"]
    h = h * jax.nn.sigmoid(h)
    return h @ params["w2"] + params["b2"]


def reference_forward_mixed(t, params, frequency_embedding_size=256,
                            max_period=10000, weight_dtype=jnp.bfloat16):
    """Plain-JAX reference with the kernel's precision scheme
    (f32 first GEMM / SiLU, bf16 h and W2, f32 accumulation)."""
    half = frequency_embedding_size // 2
    freqs = jnp.exp(-math.log(max_period)
                    * jnp.arange(half, dtype=jnp.float32) / half)
    args = t.astype(jnp.float32)[:, None] * freqs[None]
    emb = jnp.concatenate([jnp.cos(args), jnp.sin(args)], axis=-1)
    h = emb @ params["w1"] + params["b1"]
    h = (h * jax.nn.sigmoid(h)).astype(weight_dtype)
    return (jnp.dot(h, params["w2"].astype(weight_dtype),
                    preferred_element_type=jnp.float32) + params["b2"])


if __name__ == "__main__":
    FREQ = 256
    key = jax.random.PRNGKey(0)
    kp, kt = jax.random.split(key)

    # Case 1: lane-aligned hidden with 2 column tiles of W2 (exercises the
    # pipelined second GEMM and the h-scratch reuse across the j axis).
    N, HIDDEN = 16, 256
    params = init_params(kp, HIDDEN, FREQ)
    t = jax.random.uniform(kt, (N,), jnp.float32, 0.0, 1000.0)

    out = timestep_embedder_forward(t, params, FREQ, tile_h=128)
    out = jax.block_until_ready(out)
    assert out.shape == (N, HIDDEN)

    # Tight check vs a plain-JAX reference using the same precision scheme.
    ref_mixed = reference_forward_mixed(t, params, FREQ)
    err_mixed = float(jnp.max(jnp.abs(out - ref_mixed)))
    assert jnp.allclose(out, ref_mixed, atol=2e-3, rtol=2e-3), err_mixed

    # Check vs the pure-f32 PyTorch-equivalent reference (only h/W2 are bf16).
    ref_f32 = reference_forward(t, params, FREQ)
    err_f32 = float(jnp.max(jnp.abs(out - ref_f32)))
    assert jnp.allclose(out, ref_f32, atol=1e-2, rtol=1e-2), err_f32

    # Case 2: non-lane-multiple hidden (exercises zero padding) with a single
    # resident W2 column block.
    HIDDEN2 = 96
    params2 = init_params(jax.random.PRNGKey(1), HIDDEN2, FREQ)
    out2 = timestep_embedder_forward(t, params2, FREQ)
    out2 = jax.block_until_ready(out2)
    assert out2.shape == (N, HIDDEN2)
    ref2 = reference_forward(t, params2, FREQ)
    err2 = float(jnp.max(jnp.abs(out2 - ref2)))
    assert jnp.allclose(out2, ref2, atol=1e-2, rtol=1e-2), err2

    print("KERNEL_OK")
</pallas_src>

<mosaic_0001>
module attributes {stable_mosaic.version = 11 : i64} {
  func.func @_timestep_embedder_kernel(%arg0: i32, %arg1: i32, %arg2: memref<128x1xf32, #tpu.memory_space<vmem>>, %arg3: memref<1x128xf32, #tpu.memory_space<vmem>>, %arg4: memref<256x256xf32, #tpu.memory_space<vmem>>, %arg5: memref<1x256xf32, #tpu.memory_space<vmem>>, %arg6: memref<256x128xbf16, #tpu.memory_space<vmem>>, %arg7: memref<1x128xf32, #tpu.memory_space<vmem>>, %arg8: memref<128x128xf32, #tpu.memory_space<vmem>>, %arg9: memref<128x256xbf16, #tpu.memory_space<vmem>>) attributes {dimension_semantics = [#tpu.dimension_semantics<parallel>, #tpu.dimension_semantics<arbitrary>], iteration_bounds = array<i64: 1, 2>, scalar_prefetch = 0 : i64, scratch_operands = 1 : i64, tpu.core_type = #tpu.core_type<tc>, window_params = [{transform_indices = @transform_0, window_bounds = array<i64: 128, 1>}, {pipeline_mode = #tpu.pipeline_mode<synchronous>, transform_indices = @transform_1, window_bounds = array<i64: 1, 128>}, {pipeline_mode = #tpu.pipeline_mode<synchronous>, transform_indices = @transform_2, window_bounds = array<i64: 256, 256>}, {pipeline_mode = #tpu.pipeline_mode<synchronous>, transform_indices = @transform_3, window_bounds = array<i64: 1, 256>}, {transform_indices = @transform_4, window_bounds = array<i64: 256, 128>}, {transform_indices = @transform_5, window_bounds = array<i64: 1, 128>}, {transform_indices = @transform_6, window_bounds = array<i64: 128, 128>}]} {
    %c0_i32 = arith.constant 0 : i32
    %0 = arith.cmpi eq, %arg1, %c0_i32 : i32
    %1 = arith.extui %0 : i1 to i32
    %c0_i32_0 = arith.constant 0 : i32
    %2 = arith.cmpi ne, %1, %c0_i32_0 : i32
    scf.if %2 {
      %c0_8 = arith.constant 0 : index
      %c0_9 = arith.constant 0 : index
      %10 = vector.load %arg2[%c0_8, %c0_9] : memref<128x1xf32, #tpu.memory_space<vmem>>, vector<128x1xf32>
      %c0_10 = arith.constant 0 : index
      %c0_11 = arith.constant 0 : index
      %11 = vector.load %arg3[%c0_10, %c0_11] : memref<1x128xf32, #tpu.memory_space<vmem>>, vector<1x128xf32>
      %12 = vector.broadcast %10 : vector<128x1xf32> to vector<128x128xf32>
      %13 = vector.broadcast %11 : vector<1x128xf32> to vector<128x128xf32>
      %14 = arith.mulf %12, %13 : vector<128x128xf32>
      %15 = math.cos %14 : vector<128x128xf32>
      %16 = math.sin %14 : vector<128x128xf32>
      %17 = tpu.concatenate %15, %16 in 1 : vector<128x128xf32>, vector<128x128xf32> -> vector<128x256xf32>
      %c0_12 = arith.constant 0 : index
      %c0_13 = arith.constant 0 : index
      %18 = vector.load %arg4[%c0_12, %c0_13] : memref<256x256xf32, #tpu.memory_space<vmem>>, vector<256x256xf32>
      %cst_14 = arith.constant dense<0.000000e+00> : vector<128x256xf32>
      %19 = tpu.matmul %17, %18, %cst_14 {dimension_numbers = #tpu.dot_dimension_numbers<[1], [0], [0], [1], [0, 0, 1, 1], [], []>} : vector<128x256xf32>, vector<256x256xf32>, vector<128x256xf32> -> vector<128x256xf32>
      %c0_15 = arith.constant 0 : index
      %c0_16 = arith.constant 0 : index
      %20 = vector.load %arg5[%c0_15, %c0_16] : memref<1x256xf32, #tpu.memory_space<vmem>>, vector<1x256xf32>
      %21 = vector.broadcast %20 : vector<1x256xf32> to vector<128x256xf32>
      %22 = arith.addf %19, %21 : vector<128x256xf32>
      %23 = arith.negf %22 : vector<128x256xf32>
      %24 = math.exp %23 : vector<128x256xf32>
      %cst_17 = arith.constant 1.000000e+00 : f32
      %25 = vector.broadcast %cst_17 : f32 to vector<128x256xf32>
      %26 = arith.addf %25, %24 : vector<128x256xf32>
      %27 = arith.divf %25, %26 : vector<128x256xf32>
      %28 = arith.mulf %22, %27 : vector<128x256xf32>
      %29 = arith.truncf %28 : vector<128x256xf32> to vector<128x256xbf16>
      %c0_18 = arith.constant 0 : index
      %c0_19 = arith.constant 0 : index
      %30 = vector.load %arg9[%c0_18, %c0_19] : memref<128x256xbf16, #tpu.memory_space<vmem>>, vector<128x256xbf16>
      tpu.vector_store %arg9[%c0_18, %c0_19], %29 {strides = array<i32>} : memref<128x256xbf16, #tpu.memory_space<vmem>>, vector<128x256xbf16>,
    } else {
    }
    %c0 = arith.constant 0 : index
    %c0_1 = arith.constant 0 : index
    %3 = vector.load %arg9[%c0, %c0_1] : memref<128x256xbf16, #tpu.memory_space<vmem>>, vector<128x256xbf16>
    %c0_2 = arith.constant 0 : index
    %c0_3 = arith.constant 0 : index
    %4 = vector.load %arg6[%c0_2, %c0_3] : memref<256x128xbf16, #tpu.memory_space<vmem>>, vector<256x128xbf16>
    %cst = arith.constant dense<0.000000e+00> : vector<128x128xf32>
    %5 = tpu.matmul %3, %4, %cst {dimension_numbers = #tpu.dot_dimension_numbers<[1], [0], [0], [1], [0, 0, 1, 1], [], []>} : vector<128x256xbf16>, vector<256x128xbf16>, vector<128x128xf32> -> vector<128x128xf32>
    %c0_4 = arith.constant 0 : index
    %c0_5 = arith.constant 0 : index
    %6 = vector.load %arg7[%c0_4, %c0_5] : memref<1x128xf32, #tpu.memory_space<vmem>>, vector<1x128xf32>
    %7 = vector.broadcast %6 : vector<1x128xf32> to vector<128x128xf32>
    %8 = arith.addf %5, %7 : vector<128x128xf32>
    %c0_6 = arith.constant 0 : index
    %c0_7 = arith.constant 0 : index
    %9 = vector.load %arg8[%c0_6, %c0_7] : memref<128x128xf32, #tpu.memory_space<vmem>>, vector<128x128xf32>
    tpu.vector_store %arg8[%c0_6, %c0_7], %8 {strides = array<i32>} : memref<128x128xf32, #tpu.memory_space<vmem>>, vector<128x128xf32>,
    return
  }
  func.func @transform_0(%arg0: i32, %arg1: i32) -> (i32, i32) {
    %c0_i32 = arith.constant 0 : i32
    %c0_i32_0 = arith.constant 0 : i32
    return %arg0, %c0_i32 : i32, i32
  }
  func.func @transform_1(%arg0: i32, %arg1: i32) -> (i32, i32) {
    %c0_i32 = arith.constant 0 : i32
    %c0_i32_0 = arith.constant 0 : i32
    %c0_i32_1 = arith.constant 0 : i32
    return %c0_i32, %c0_i32_0 : i32, i32
  }
  func.func @transform_2(%arg0: i32, %arg1: i32) -> (i32, i32) {
    %c0_i32 = arith.constant 0 : i32
    %c0_i32_0 = arith.constant 0 : i32
    %c0_i32_1 = arith.constant 0 : i32
    return %c0_i32, %c0_i32_0 : i32, i32
  }
  func.func @transform_3(%arg0: i32, %arg1: i32) -> (i32, i32) {
    %c0_i32 = arith.constant 0 : i32
    %c0_i32_0 = arith.constant 0 : i32
    %c0_i32_1 = arith.constant 0 : i32
    return %c0_i32, %c0_i32_0 : i32, i32
  }
  func.func @transform_4(%arg0: i32, %arg1: i32) -> (i32, i32) {
    %c0_i32 = arith.constant 0 : i32
    %c0_i32_0 = arith.constant 0 : i32
    return %c0_i32, %arg1 : i32, i32
  }
  func.func @transform_5(%arg0: i32, %arg1: i32) -> (i32, i32) {
    %c0_i32 = arith.constant 0 : i32
    %c0_i32_0 = arith.constant 0 : i32
    return %c0_i32, %arg1 : i32, i32
  }
  func.func @transform_6(%arg0: i32, %arg1: i32) -> (i32, i32) {
    %c0_i32 = arith.constant 0 : i32
    return %arg0, %arg1 : i32, i32
  }
}

module attributes {stable_mosaic.version = 11 : i64} {
  func.func @_timestep_embedder_kernel(%arg0: i32, %arg1: i32, %arg2: memref<128x1xf32, #tpu.memory_space<vmem>>, %arg3: memref<1x128xf32, #tpu.memory_space<vmem>>, %arg4: memref<256x256xf32, #tpu.memory_space<vmem>>, %arg5: memref<1x256xf32, #tpu.memory_space<vmem>>, %arg6: memref<256x128xbf16, #tpu.memory_space<vmem>>, %arg7: memref<1x128xf32, #tpu.memory_space<vmem>>, %arg8: memref<128x128xf32, #tpu.memory_space<vmem>>, %arg9: memref<128x256xbf16, #tpu.memory_space<vmem>>) attributes {dimension_semantics = [#tpu.dimension_semantics<parallel>, #tpu.dimension_semantics<arbitrary>], iteration_bounds = array<i64: 1, 2>, scalar_prefetch = 0 : i64, scratch_operands = 1 : i64, tpu.core_type = #tpu.core_type<tc>, window_params = [{transform_indices = @transform_0, window_bounds = array<i64: 128, 1>}, {pipeline_mode = #tpu.pipeline_mode<synchronous>, transform_indices = @transform_1, window_bounds = array<i64: 1, 128>}, {pipeline_mode = #tpu.pipeline_mode<synchronous>, transform_indices = @transform_2, window_bounds = array<i64: 256, 256>}, {pipeline_mode = #tpu.pipeline_mode<synchronous>, transform_indices = @transform_3, window_bounds = array<i64: 1, 256>}, {transform_indices = @transform_4, window_bounds = array<i64: 256, 128>}, {transform_indices = @transform_5, window_bounds = array<i64: 1, 128>}, {transform_indices = @transform_6, window_bounds = array<i64: 128, 128>}]} {
    %c0_i32 = arith.constant 0 : i32
    %0 = arith.cmpi eq, %arg1, %c0_i32 : i32
    %1 = arith.extui %0 : i1 to i32
    %c0_i32_0 = arith.constant 0 : i32
    %2 = arith.cmpi ne, %1, %c0_i32_0 : i32
    scf.if %2 {
      %c0_8 = arith.constant 0 : index
      %c0_9 = arith.constant 0 : index
      %10 = vector.load %arg2[%c0_8, %c0_9] : memref<128x1xf32, #tpu.memory_space<vmem>>, vector<128x1xf32>
      %c0_10 = arith.constant 0 : index
      %c0_11 = arith.constant 0 : index
      %11 = vector.load %arg3[%c0_10, %c0_11] : memref<1x128xf32, #tpu.memory_space<vmem>>, vector<1x128xf32>
      %12 = vector.broadcast %10 : vector<128x1xf32> to vector<128x128xf32>
      %13 = vector.broadcast %11 : vector<1x128xf32> to vector<128x128xf32>
      %14 = arith.mulf %12, %13 : vector<128x128xf32>
      %15 = math.cos %14 : vector<128x128xf32>
      %16 = math.sin %14 : vector<128x128xf32>
      %17 = tpu.concatenate %15, %16 in 1 : vector<128x128xf32>, vector<128x128xf32> -> vector<128x256xf32>
      %c0_12 = arith.constant 0 : index
      %c0_13 = arith.constant 0 : index
      %18 = vector.load %arg4[%c0_12, %c0_13] : memref<256x256xf32, #tpu.memory_space<vmem>>, vector<256x256xf32>
      %cst_14 = arith.constant dense<0.000000e+00> : vector<128x256xf32>
      %19 = tpu.matmul %17, %18, %cst_14 {dimension_numbers = #tpu.dot_dimension_numbers<[1], [0], [0], [1], [0, 0, 1, 1], [], []>} : vector<128x256xf32>, vector<256x256xf32>, vector<128x256xf32> -> vector<128x256xf32>
      %c0_15 = arith.constant 0 : index
      %c0_16 = arith.constant 0 : index
      %20 = vector.load %arg5[%c0_15, %c0_16] : memref<1x256xf32, #tpu.memory_space<vmem>>, vector<1x256xf32>
      %21 = vector.broadcast %20 : vector<1x256xf32> to vector<128x256xf32>
      %22 = arith.addf %19, %21 : vector<128x256xf32>
      %23 = arith.negf %22 : vector<128x256xf32>
      %24 = math.exp %23 : vector<128x256xf32>
      %cst_17 = arith.constant 1.000000e+00 : f32
      %25 = vector.broadcast %cst_17 : f32 to vector<128x256xf32>
      %26 = arith.addf %25, %24 : vector<128x256xf32>
      %27 = arith.divf %25, %26 : vector<128x256xf32>
      %28 = arith.mulf %22, %27 : vector<128x256xf32>
      %29 = arith.truncf %28 : vector<128x256xf32> to vector<128x256xbf16>
      %c0_18 = arith.constant 0 : index
      %c0_19 = arith.constant 0 : index
      %30 = vector.load %arg9[%c0_18, %c0_19] : memref<128x256xbf16, #tpu.memory_space<vmem>>, vector<128x256xbf16>
      tpu.vector_store %arg9[%c0_18, %c0_19], %29 {strides = array<i32>} : memref<128x256xbf16, #tpu.memory_space<vmem>>, vector<128x256xbf16>,
    } else {
    }
    %c0 = arith.constant 0 : index
    %c0_1 = arith.constant 0 : index
    %3 = vector.load %arg9[%c0, %c0_1] : memref<128x256xbf16, #tpu.memory_space<vmem>>, vector<128x256xbf16>
    %c0_2 = arith.constant 0 : index
    %c0_3 = arith.constant 0 : index
    %4 = vector.load %arg6[%c0_2, %c0_3] : memref<256x128xbf16, #tpu.memory_space<vmem>>, vector<256x128xbf16>
    %cst = arith.constant dense<0.000000e+00> : vector<128x128xf32>
    %5 = tpu.matmul %3, %4, %cst {dimension_numbers = #tpu.dot_dimension_numbers<[1], [0], [0], [1], [0, 0, 1, 1], [], []>} : vector<128x256xbf16>, vector<256x128xbf16>, vector<128x128xf32> -> vector<128x128xf32>
    %c0_4 = arith.constant 0 : index
    %c0_5 = arith.constant 0 : index
    %6 = vector.load %arg7[%c0_4, %c0_5] : memref<1x128xf32, #tpu.memory_space<vmem>>, vector<1x128xf32>
    %7 = vector.broadcast %6 : vector<1x128xf32> to vector<128x128xf32>
    %8 = arith.addf %5, %7 : vector<128x128xf32>
    %c0_6 = arith.constant 0 : index
    %c0_7 = arith.constant 0 : index
    %9 = vector.load %arg8[%c0_6, %c0_7] : memref<128x128xf32, #tpu.memory_space<vmem>>, vector<128x128xf32>
    tpu.vector_store %arg8[%c0_6, %c0_7], %8 {strides = array<i32>} : memref<128x128xf32, #tpu.memory_space<vmem>>, vector<128x128xf32>,
    return
  }
  func.func @transform_0(%arg0: i32, %arg1: i32) -> (i32, i32) {
    %c0_i32 = arith.constant 0 : i32
    %c0_i32_0 = arith.constant 0 : i32
    return %arg0, %c0_i32 : i32, i32
  }
  func.func @transform_1(%arg0: i32, %arg1: i32) -> (i32, i32) {
    %c0_i32 = arith.constant 0 : i32
    %c0_i32_0 = arith.constant 0 : i32
    %c0_i32_1 = arith.constant 0 : i32
    return %c0_i32, %c0_i32_0 : i32, i32
  }
  func.func @transform_2(%arg0: i32, %arg1: i32) -> (i32, i32) {
    %c0_i32 = arith.constant 0 : i32
    %c0_i32_0 = arith.constant 0 : i32
    %c0_i32_1 = arith.constant 0 : i32
    return %c0_i32, %c0_i32_0 : i32, i32
  }
  func.func @transform_3(%arg0: i32, %arg1: i32) -> (i32, i32) {
    %c0_i32 = arith.constant 0 : i32
    %c0_i32_0 = arith.constant 0 : i32
    %c0_i32_1 = arith.constant 0 : i32
    return %c0_i32, %c0_i32_0 : i32, i32
  }
  func.func @transform_4(%arg0: i32, %arg1: i32) -> (i32, i32) {
    %c0_i32 = arith.constant 0 : i32
    %c0_i32_0 = arith.constant 0 : i32
    return %c0_i32, %arg1 : i32, i32
  }
  func.func @transform_5(%arg0: i32, %arg1: i32) -> (i32, i32) {
    %c0_i32 = arith.constant 0 : i32
    %c0_i32_0 = arith.constant 0 : i32
    return %c0_i32, %arg1 : i32, i32
  }
  func.func @transform_6(%arg0: i32, %arg1: i32) -> (i32, i32) {
    %c0_i32 = arith.constant 0 : i32
    return %arg0, %arg1 : i32, i32
  }
}

</mosaic_0001>

<bundles_post_ra>
// kernel: tpu_custom_call.1
= control target key start
LH: loop header
LB: loop body
LE: loop exit
PB: predicated region body
PF: predicated region fallthrough
CT: control target
= control target key end

     0   :  { %11 = vsyncpa [#allocation4], 0  ;;  %s7793_s0 = inlined_call_operand.vmem [shape: f32[128,1], index: 0, kind: input, shape index: {}]   ;;  %s7794_s1 = inlined_call_operand.vmem [shape: f32[1,128], index: 1, kind: input, shape index: {}]   ;;  %s7795_s2 = inlined_call_operand.hbm [shape: f32[256,256], index: 2, kind: input, shape index: {}]   ;;  %s7796_s3 = inlined_call_operand.vmem [shape: f32[1,256], index: 3, kind: input, shape index: {}]   ;;  %s7797_s4 = inlined_call_operand.hbm [shape: bf16[256,256], index: 4, kind: input, shape index: {}]   ;;  %s7798_s5 = inlined_call_operand.vmem [shape: f32[1,256], index: 5, kind: input, shape index: {}]   ;;  %s7799_s6 = inlined_call_operand.hbm [shape: f32[128,256], index: 6, kind: output, shape index: {}]  }
   0x1   :  { %12 = vsyncpa [#allocation7], 0 }
   0x2   :  { %14 = vsyncpa [#allocation7 + $0x1], 0 }
   0x3   :  { %15 = vsyncpa [#allocation5], 0 }
   0x4   :  { %17 = vsyncpa [#allocation5 + $0x1], 0  ;;  %s5596_s21 = smov 0   ;;  %s5598_s22 = smov 0  }
   0x5   :  { %s5600_s23 = smov 0   ;;  %s5602_s24 = smov 0  }
   0x6   :  { %s5604_s25 = smov 0   ;;  %s5606_s26 = smov 0  }
   0x7 LB: > { %7891 = sst [smem:[#allocation12_spill]] %s5541_s26  ;;  %s4663_s27 = sadd.s32 4294967295, %s5541_s26   ;;  %s5541_s26 = sphi %s5606_s26, %s23_s26   ;;  %s5537_s25 = sphi %s5604_s25, %s8071_s25   ;;  %s5533_s24 = sphi %s5602_s24, %s8070_s24   ;;  %s5529_s23 = sphi %s5600_s23, %s8069_s23   ;;  %s5525_s22 = sphi %s5598_s22, %s8068_s22   ;;  %s5521_s21 = sphi %s5596_s21, %s8067_s21  }
   0x8   : > { %s4664_s28 = sadd.s32 4294967294, %s5541_s26   ;;  %p138_p0 = scmp.ne.s32.totalorder %s5529_s23, %s5525_s22 }
   0x9   : > { %p139_p1 = scmp.eq.s32.totalorder %s5541_s26, 0  ;;  %p144_p2 = scmp.ne.s32.totalorder %s5525_s22, %s5521_s21 }
   0xa   : > { %p5633_p3 = scmp.eq.s32.totalorder %s4663_s27, 0  ;;  %p196_p5 = scmp.eq.s32.totalorder %s4663_s27, 1 }
   0xb   : > { %p5637_p4 = por %p139_p1, %p138_p0  ;;  %p202_p7 = scmp.eq.s32.totalorder %s4664_s28, 1 }
   0xc   : > { %s7892_s29 = scalar_select %p5633_p3, 1, 0 }
   0xd   : > { %p5643_p6 = por %p5633_p3, %p144_p2  ;;  %p5647_p8 = por %p196_p5, %p138_p0 }
   0xe   : > { %p4665_p9 = scmp.ge.s32.totalorder %s5541_s26, 1  ;;  %p5652_p10 = por %p202_p7, %p144_p2 }
   0xf   : > { %s7894_s7 = scalar_select %p5643_p6, 1, 0 }
  0x10   : > { %s7895_s8 = scalar_select %p5647_p8, 1, 0 }
  0x11   : > { %s7896_s9 = scalar_select %p5652_p10, 1, 0 }
  0x12   : > { %p209_p11 = scmp.lt.s32.totalorder %s5541_s26, 3  ;;  %s5543_s11 = smov [#allocation3]  }
  0x13   : > { %7897 = sst [smem:[#allocation13_spill]] %s7896_s9  ;;  %s233_s12 = sshll.u32 %s5543_s11, 4  ;;  %s5661_s12 = int_to_ptr.vmem [resolvable:$true] %s233_s12 }
  0x14   : > { %p5657_p12 = pnand %p4665_p9, %p209_p11  ;;  %p5119_p1 = scmp.lt.s32.totalorder %s5541_s26, 2 }
  0x15   : > { %s32_s15 = sadd.s32 1, %s5537_s25  ;;  %s5397_s18 = scalar_lea.hbm %s7795_s2, 8192 }
  0x16   : > { %s7898_s10 = scalar_select %p5657_p12, 1, 0 }
  0x17   : > { %p5106_p13 = pneg %p5657_p12  ;;  %p5675_p2 = pnand %p5119_p1, %p5637_p4 }
  0x18   : > { %p5398_p7 = scmp.ne.s32.totalorder %s7795_s2, %s5397_s18  ;;  %p5404_p4 = scmp.lt.u32.totalorder %s5397_s18, %s7795_s2 }
  0x19   : > { %p5669_p5 = pnand %p5106_p13, %p5633_p3 }
  0x1a   : > { %s7900_s14 = scalar_select %p5675_p2, 1, 0 }
  0x1b   : > { %p5399_p9 = pneg %p5669_p5 }
  0x1d   : > { %p5400_p11 = pnand %p5399_p9, %p5398_p7 }
  0x1f   : > { %p5401_p13 = pneg %p5400_p11 }
  0x21   : > { %p5406_p1 = pnand %p5404_p4, %p5401_p13 }
  0x23   : > { %5409 = shalt.err (!%p5406_p1)
}
  0x24   : > { %s5410_s30 = scalar_lea.vmem %s5661_s12, 8192  ;;  %p5418_p6 = scmp.lt.s32.totalorder %s5661_s12, %s5661_s12 }
  0x25   : > { %p5411_p0 = scmp.ne.s32.totalorder %s5661_s12, %s5410_s30  ;;  %p5419_p3 = scmp.lt.s32.totalorder %s5410_s30, %s5410_s30 }
  0x27   : > { %p5413_p10 = pnand %p5411_p0, %p5399_p9  ;;  %p5420_p12 = por %p5419_p3, %p5418_p6 }
  0x29   : > { %p5414_p8 = pneg %p5413_p10 }
  0x2b   : > { %p5421_p2 = pnand %p5420_p12, %p5414_p8 }
  0x2d   : > { %5424 = shalt.err (!%p5421_p2)
}
  0x2e   : > { %s5544_s11 = smov 256   ;;  %s5545_s16 = smov 16  }
  0x2f   : > { %5109 = dma.hbm_to_vmem [thread:$0]  (!%p5669_p5), %s7795_s2, 8192, %s5661_s12, [#allocation4], %s5544_s11, %s5544_s11, %s5545_s16  }
  0x30   : > { %p33_p10 = scmp.ge.s32.totalorder %s32_s15, 2  ;;  %s131_s19 = sadd.s32 1, %s5529_s23 }
  0x31   : > { %s250_s20 = sand.u32 1, %s5529_s23   ;;  %s4670_s30 = sshll.u32 %s5537_s25, 6 }
  0x32   : > { %s8073_s15 = smov (%p33_p10, %s32_s15), 0  ;;  %s4669_s27 = sshll.u32 %s250_s20, 7 }
  0x33   : > { %s128_s28 = ssub.s32 %s5537_s25, %s8073_s15  ;;  %s5711_s13 = scalar_lea.hbm %s7797_s4, %s4670_s30 }
  0x34   : > { %p129_p3 = scmp.eq.s32.totalorder %s128_s28, 0  ;;  %s254_s12 = scalar_lea.vmem [#allocation6], %s4669_s27 }
  0x35   : > { %s260_s11 = sshll.u32 %s254_s12, 4  ;;  %s5718_s17 = scalar_lea.sflag [#allocation7], %s250_s20  ;;  %s5716_s11 = int_to_ptr.vmem [resolvable:$true] %s260_s11 }
  0x36   : > { %s5714_s16 = scalar_select %p129_p3, %s5529_s23, %s131_s19  }
  0x37   : > { %s5425_s18 = scalar_lea.hbm %s5711_s13, 2048  ;;  %p7901_p8 = scmp.ne.s32.totalorder %s7900_s14, 0 }
  0x38   : > { %p5426_p6 = scmp.ne.s32.totalorder %s5711_s13, %s5425_s18  ;;  %s5430_s28 = scalar_lea.hbm %s7797_s4, 4096 }
  0x39   : > { %p5427_p12 = pneg %p7901_p8  ;;  %p5431_p2 = scmp.lt.u32.totalorder %s5711_s13, %s7797_s4 }
  0x3a   : > { %p5432_p7 = scmp.lt.u32.totalorder %s5430_s28, %s5425_s18  ;;  %p5434_p11 = scmp.lt.u32.totalorder %s5425_s18, %s5711_s13 }
  0x3b   : > { %p5428_p0 = pnand %p5427_p12, %p5426_p6 }
  0x3c   : > { %p5433_p9 = por %p5432_p7, %p5431_p2 }
  0x3d   : > { %p5429_p5 = pneg %p5428_p0 }
  0x3e   : > { %p5435_p13 = por %p5434_p11, %p5433_p9 }
  0x40   : > { %p5436_p4 = pnand %p5435_p13, %p5429_p5 }
  0x42   : > { %5439 = shalt.err (!%p5436_p4)
}
  0x43   : > { %s5440_s19 = scalar_lea.vmem %s5716_s11, 2048  ;;  %s5546_s20 = smov [#allocation6]  }
  0x44   : > { %p5441_p1 = scmp.ne.s32.totalorder %s5716_s11, %s5440_s19  ;;  %s5445_s12 = sshll.u32 %s5546_s20, 4  ;;  %s5446_s12 = int_to_ptr.vmem [resolvable:$false] %s5445_s12 }
  0x45   : > { %s5447_s26 = scalar_lea.vmem %s5446_s12, 4096  ;;  %p5448_p6 = scmp.lt.s32.totalorder %s5716_s11, %s5446_s12 }
  0x46   : > { %p5443_p10 = pnand %p5441_p1, %p5427_p12  ;;  %p5449_p0 = scmp.lt.s32.totalorder %s5447_s26, %s5440_s19 }
  0x48   : > { %p5444_p3 = pneg %p5443_p10  ;;  %p5450_p2 = por %p5449_p0, %p5448_p6 }
  0x4a   : > { %p5451_p7 = pnand %p5450_p2, %p5444_p3 }
  0x4c   : > { %5454 = shalt.err (!%p5451_p7)
}
  0x4d   : > { %s5547_s18 = smov 128   ;;  %s5548_s9 = smov 64  }
  0x4e   : > { %s5549_s28 = smov 4   ;;  %p7902_p12 = scmp.ne.s32.totalorder %s7898_s10, 0 }
  0x4f   : > { %5113 = dma.hbm_to_vmem [thread:$0]  (!%p7901_p8), %s5711_s13, 2048, %s5716_s11, %s5718_s17, %s5547_s18, %s5548_s9, %s5549_s28  }
  0x50   : > { %278 = sbr.rel (%p7902_p12) target bundleno = 1227 (0x4cb), region = 44  ;;  %p7903_p5 = scmp.ne.s32.totalorder (!%p7902_p12), %s7892_s29, 0 }
  0x57   : > { %5508 = dma.done.wait (%p7903_p5), [#allocation4], 8192  }
  0x58   : > { %5510 = vsyncadd (%p7903_p5), [#allocation4], 4294959104  ;;  %s5753_s27 = sand.u32 1, %s5525_s22   ;;  %p7904_p8 = scmp.ne.s32.totalorder %s7894_s7, 0 }
  0x59   : > { %s4673_s30 = sshll.u32 %s5753_s27, 7  ;;  %s285_s19 = scalar_lea.sflag [#allocation7], %s5753_s27 }
  0x5a   : > { %s5757_s20 = scalar_lea.vmem [#allocation6], %s4673_s30 }
  0x5b   : > { %5512 = dma.done.wait (%p7904_p8), %s285_s19, 2048  }
  0x5c   : > { %5514 = vsyncadd (%p7904_p8), %s285_s19, 4294965248  ;;  %p331_p9 = scmp.lt.s32.totalorder %s5533_s24, 1  ;;  %s5771_s11 = scalar_lea.vmem [#allocation8], %s4673_s30 }
  0x5d   : > { %p4675_p11 = scmp.ne.s32.totalorder %s5533_s24, 0 }
  0x5e   : > { %s5765_s29 = scalar_select %p331_p9, %s5533_s24, 1 }
  0x5f   : > { %339 = sbr.rel (%p4675_p11) target bundleno = 935 (0x3a7), region = 56 }
  0x60   : > { %s333_s13 = scalar_lea.vmem %s7798_s5, %s5765_s29 }
  0x66   : > { %v341_v0 = vld [vmem:[%s7793_s0 + $0x8] sm:$0xff]  ;;  %v340_v1 = vld [vmem:[%s7793_s0] sm:$0xff]  ;;  %v5550_v2 = vmov 0   ;;  %v350_v5 = vld [vmem:[%s7793_s0 + $0x50] sm:$0xff]  ;;  %v7819_v39 = vmov 683565275  }
  0x67   : > { %5187 = vset.pattern.permute.xlu1 %v5550_v2  ;;  %5186 = vset.pattern.permute.xlu0 %v5550_v2  ;;  %v349_v3 = vld [vmem:[%s7793_s0 + $0x48] sm:$0xff]  ;;  %v348_v4 = vld [vmem:[%s7793_s0 + $0x40] sm:$0xff]  ;;  %v342_v6 = vld [vmem:[%s7793_s0 + $0x10] sm:$0xff]  ;;  %v7825_v41 = vmov 2475754826  }
  0x68   : > { %364 = vperm.xlu1 %5187, %v341_v0   ;;  %359 = vperm.xlu0 %5186, %v340_v1   ;;  %v351_v7 = vld [vmem:[%s7793_s0 + $0x58] sm:$0xff]  ;;  %v352_v9 = vld [vmem:[%s7793_s0 + $0x60] sm:$0xff]  ;;  %v353_v11 = vld [vmem:[%s7793_s0 + $0x68] sm:$0xff]  ;;  %v7816_v43 = vmov 2131351028  }
  0x69   : > { %v343_v8 = vld [vmem:[%s7793_s0 + $0x18] sm:$0xff]  ;;  %v344_v10 = vld [vmem:[%s7793_s0 + $0x20] sm:$0xff]  ;;  %v345_v12 = vld [vmem:[%s7793_s0 + $0x28] sm:$0xff]  ;;  %v7837_v45 = vmov 2102212464  }
  0x6a   : > { %v354_v13 = vld [vmem:[%s7793_s0 + $0x70] sm:$0xff]  ;;  %v355_v15 = vld [vmem:[%s7793_s0 + $0x78] sm:$0xff]  ;;  %v5825_v17 = vld [vmem:[%s7794_s1] ss:$0 sm:$0xff]  ;;  %v7839_v47 = vmov 920167782  }
  0x6b   : > { %v346_v14 = vld [vmem:[%s7793_s0 + $0x30] sm:$0xff]  ;;  %v347_v16 = vld [vmem:[%s7793_s0 + $0x38] sm:$0xff]  ;;  %v7814_v55 = vmov 1326507024  }
  0x6c   : > { %404 = vperm.xlu1 %5187, %v349_v3   ;;  %399 = vperm.xlu0 %5186, %v348_v4  }
  0x70   : > { %409 = vperm.xlu1 %5187, %v350_v5   ;;  %369 = vperm.xlu0 %5186, %v342_v6  }
  0x74   : > { %414 = vperm.xlu1 %5187, %v351_v7   ;;  %374 = vperm.xlu0 %5186, %v343_v8  }
  0x78   : > { %419 = vperm.xlu1 %5187, %v352_v9   ;;  %379 = vperm.xlu0 %5186, %v344_v10  }
  0x7c   : > { %424 = vperm.xlu1 %5187, %v353_v11   ;;  %384 = vperm.xlu0 %5186, %v345_v12  }
  0x80   : > { %429 = vperm.xlu1 %5187, %v354_v13   ;;  %389 = vperm.xlu0 %5186, %v346_v14  }
  0x84   : > { %434 = vperm.xlu1 %5187, %v355_v15   ;;  %394 = vperm.xlu0 %5186, %v347_v16  }
  0xe7   : > { %v365_v18 = vpop.permute.xlu1 %364  ;;  %v360_v21 = vpop.permute.xlu0 %359 }
  0xe8   : > { %v5828_v19 = vmul.f32 %v5825_v17, %v365_v18  ;;  %v5832_v24 = vmul.f32 %v5825_v17, %v360_v21 }
  0xea   : > { %7905 = vst [vmem:[#allocation14_spill] sm:$0xff] %v5828_v19  ;;  %v565_v20 = vand.u32 2139095040, %v5828_v19  ;;  %v7813_v27 = vand.u32 2147483647, %v5828_v19  ;;  %v462_v29 = vand.u32 2139095040, %v5832_v24 }
  0xeb   : > { %v405_v22 = vpop.permute.xlu1 %404  ;;  %v400_v34 = vpop.permute.xlu0 %399 }
  0xec   : > { %v566_v23 = vshrl.u32 %v565_v20, 23  ;;  %v5835_v25 = vmul.f32 %v5825_v17, %v405_v22  ;;  %v569_v32 = vand.u32 8388607, %v7813_v27  ;;  %v463_v36 = vshrl.u32 %v462_v29, 23 }
  0xed   : > { %v5848_v49 = vmul.f32 %v5825_v17, %v400_v34 }
  0xee   : > { %v4681_v26 = vadd.s32 4294967169, %v566_v23  ;;  %v1389_v30 = vand.u32 2139095040, %v5835_v25  ;;  %v570_v50 = vor.u32 8388608, %v569_v32  ;;  %v4677_v57 = vadd.s32 4294967169, %v463_v36 }
  0xef   : > { %7906 = vst [vmem:[#allocation15_spill] sm:$0xff] %v5848_v49  ;;  %v7812_v4 = vand.u32 2147483647, %v5835_v25  ;;  %v410_v23 = vpop.permute.xlu1 %409 }
  0xf0   : > { %v572_v28 = vadd.s32 1, %v4681_v26  ;;  %v1390_v37 = vshrl.u32 %v1389_v30, 23  ;;  %v610_v10 = vshll.u32 %v570_v50, 8  ;;  %v469_v30 = vadd.s32 1, %v4677_v57 }
  0xf2   : > { %vm573_vm0 = vcmp.gt.s32.totalorder %v572_v28, 0  ;;  %v4713_v58 = vadd.s32 4294967169, %v1390_v37  ;;  %vm470_vm8 = vcmp.gt.s32.totalorder %v469_v30, 0 }
  0xf3   : > { %v574_v31 = vsel %vm573_vm0, %v572_v28, 0  ;;  %v1286_v28 = vand.u32 2139095040, %v5848_v49 }
  0xf4   : > { %v576_v33 = vand.u32 31, %v574_v31  ;;  %v575_v35 = vshrl.u32 %v574_v31, 5  ;;  %v1396_v7 = vadd.s32 1, %v4713_v58  ;;  %v1393_v31 = vand.u32 8388607, %v7812_v4 }
  0xf6   : > { %v577_v38 = vsub.s32 32, %v576_v33  ;;  %v579_v40 = vshll.u32 %v7819_v39, %v576_v33  ;;  %v582_v42 = vshll.u32 %v7825_v41, %v576_v33  ;;  %v585_v44 = vshll.u32 %v7816_v43, %v576_v33 }
  0xf7   : > { %v588_v46 = vshll.u32 %v7837_v45, %v576_v33  ;;  %v591_v48 = vshll.u32 %v7839_v47, %v576_v33  ;;  %vm594_vm1 = vcmp.lt.s32.totalorder %v575_v35, 1  ;;  %vm597_vm2 = vcmp.lt.s32.totalorder %v575_v35, 4 }
  0xf8   : > { %v580_v51 = vshrl.u32 %v7825_v41, %v577_v38  ;;  %v583_v52 = vshrl.u32 %v7816_v43, %v577_v38  ;;  %v586_v53 = vshrl.u32 %v7837_v45, %v577_v38  ;;  %v589_v54 = vshrl.u32 %v7839_v47, %v577_v38 }
  0xf9   : > { %v592_v56 = vshrl.u32 %v7814_v55, %v577_v38  ;;  %v578_v62 = vshrl.u32 %v7819_v39, %v577_v38  ;;  %vm596_vm3 = vcmp.lt.s32.totalorder %v575_v35, 3  ;;  %vm595_vm4 = vcmp.lt.s32.totalorder %v575_v35, 2 }
  0xfa   : > { %v581_v59 = vor.u32 %v580_v51, %v579_v40  ;;  %v584_v60 = vor.u32 %v583_v52, %v582_v42  ;;  %v587_v61 = vor.u32 %v586_v53, %v585_v44  ;;  %v590_v63 = vor.u32 %v589_v54, %v588_v46 }
  0xfb   : > { %v593_v0 = vor.u32 %v592_v56, %v591_v48  ;;  %vm1397_vm5 = vcmp.gt.s32.totalorder %v1396_v7, 0  ;;  %v5876_v35 = vmul.f32 %v5825_v17, %v410_v23  ;;  %v1394_v56 = vor.u32 8388608, %v1393_v31 }
  0xfc   : > { %v599_v1 = vsel %vm597_vm2, %v587_v61, 2102212464  ;;  %v602_v2 = vsel %vm594_vm1, %v581_v59, %v584_v60  ;;  %v606_v3 = vsel %vm594_vm1, %v584_v60, %v587_v61  ;;  %v603_v5 = vsel %vm597_vm2, %v590_v63, 920167782 }
  0xfd   : > { %v607_v6 = vsel %vm597_vm2, %v593_v0, 1326507024  ;;  %v604_v8 = vsel %vm596_vm3, %v587_v61, %v603_v5  ;;  %v598_v11 = vsel %vm594_vm1, %v578_v62, %v581_v59  ;;  %v600_v12 = vsel %vm596_vm3, %v584_v60, %v599_v1  ;;  %7907 = vst [vmem:[#allocation16_spill] sm:$0xff] %v5876_v35 }
  0xfe   : > { %v608_v9 = vsel %vm596_vm3, %v590_v63, %v607_v6  ;;  %v605_v13 = vsel %vm595_vm4, %v602_v2, %v604_v8  ;;  %v601_v21 = vsel %vm595_vm4, %v598_v11, %v600_v12  ;;  %v1398_v22 = vsel %vm1397_vm5, %v1396_v7, 0 }
  0xff   : > { %v609_v14 = vsel %vm595_vm4, %v606_v3, %v608_v9  ;;  %v5863_v18 = vmul.u32.u64.low %v610_v10, %v605_v13  ;;  %v5864_v20 = vmul.u32.u64.high %v610_v10, %v605_v13, %v5863_v18  ;;  %v1400_v26 = vand.u32 31, %v1398_v22 }
 0x100   : > { %v5860_v15 = vmul.u32.u64.low %v610_v10, %v609_v14  ;;  %v5861_v16 = vmul.u32.u64.high %v610_v10, %v609_v14, %v5860_v15  ;;  %v617_v32 = vmul.u32 %v610_v10, %v601_v21  ;;  %v5873_v33 = vshrl.u32 %v1398_v22, 5 }
 0x101   : > { %v620_v29 = vadd.s32 1, %v5864_v20  ;;  %v1401_v34 = vsub.s32 32, %v1400_v26  ;;  %v1403_v37 = vshll.u32 %v7819_v39, %v1400_v26  ;;  %v1406_v38 = vshll.u32 %v7825_v41, %v1400_v26 }
 0x102   : > { %vm619_vm6 = vc.u32 %v5861_v16, %v5863_v18  ;;  %v1409_v40 = vshll.u32 %v7816_v43, %v1400_v26  ;;  %v1412_v48 = vshll.u32 %v7837_v45, %v1400_v26  ;;  %v1415_v52 = vshll.u32 %v7839_v47, %v1400_v26 }
 0x103   : > { %v621_v36 = vsel %vm619_vm6, %v620_v29, %v5864_v20  ;;  %v1404_v44 = vshrl.u32 %v7825_v41, %v1401_v34  ;;  %v1407_v46 = vshrl.u32 %v7816_v43, %v1401_v34  ;;  %v1410_v50 = vshrl.u32 %v7837_v45, %v1401_v34  ;;  %v370_v20 = vpop.permute.xlu0 %369 }
 0x104   : > { %v622_v42 = vadd.s32 %v621_v36, %v617_v32  ;;  %v1413_v51 = vshrl.u32 %v7839_v47, %v1401_v34  ;;  %v1416_v53 = vshrl.u32 %v7814_v55, %v1401_v34  ;;  %vm1418_vm7 = vcmp.lt.s32.totalorder %v5873_v33, 1 }
 0x105   : > { %v1405_v57 = vor.u32 %v1404_v44, %v1403_v37  ;;  %v1408_v58 = vor.u32 %v1407_v46, %v1406_v38  ;;  %v1411_v59 = vor.u32 %v1410_v50, %v1409_v40  ;;  %vm1421_vm9 = vcmp.lt.s32.totalorder %v5873_v33, 4  ;;  %v415_v40 = vpop.permute.xlu1 %414 }
 0x106   : > { %v623_v54 = vadd.s32 536870912, %v622_v42  ;;  %v1414_v60 = vor.u32 %v1413_v51, %v1412_v48  ;;  %v1417_v61 = vor.u32 %v1416_v53, %v1415_v52  ;;  %vm1420_vm10 = vcmp.lt.s32.totalorder %v5873_v33, 3 }
 0x107   : > { %v1426_v63 = vsel %vm1418_vm7, %v1405_v57, %v1408_v58  ;;  %v1430_v1 = vsel %vm1418_vm7, %v1408_v58, %v1411_v59  ;;  %vm1419_vm11 = vcmp.lt.s32.totalorder %v5873_v33, 2  ;;  %v1434_v6 = vshll.u32 %v1394_v56, 8 }
 0x108   : > { %v5890_v62 = vshrl.u32 %v623_v54, 30  ;;  %v1427_v0 = vsel %vm1421_vm9, %v1414_v60, 920167782  ;;  %v1431_v2 = vsel %vm1421_vm9, %v1417_v61, 1326507024  ;;  %v1287_v12 = vshrl.u32 %v1286_v28, 23 }
 0x109   : > { %v1428_v3 = vsel %vm1420_vm10, %v1411_v59, %v1427_v0  ;;  %v1432_v5 = vsel %vm1420_vm10, %v1414_v60, %v1431_v2  ;;  %v471_v13 = vsel %vm470_vm8, %v469_v30, 0  ;;  %v1423_v21 = vsel %vm1421_vm9, %v1411_v59, 2102212464 }
 0x10a   : > { %7908 = vst [vmem:[#allocation17_spill] sm:$0xff] %v5890_v62  ;;  %v1429_v7 = vsel %vm1419_vm11, %v1426_v63, %v1428_v3  ;;  %v1433_v8 = vsel %vm1419_vm11, %v1430_v1, %v1432_v5  ;;  %v625_v9 = vshll.u32 %v5890_v62, 30  ;;  %v1492_v22 = vand.u32 2139095040, %v5876_v35 }
 0x10b   : > { %v5912_v10 = vmul.u32.u64.low %v1434_v6, %v1433_v8  ;;  %v5913_v11 = vmul.u32.u64.high %v1434_v6, %v1433_v8, %v5912_v10  ;;  %v5916_v14 = vmul.u32.u64.low %v1434_v6, %v1429_v7  ;;  %v5917_v15 = vmul.u32.u64.high %v1434_v6, %v1429_v7, %v5916_v14 }
 0x10c   : > { %v1402_v23 = vshrl.u32 %v7819_v39, %v1401_v34  ;;  %v5924_v26 = vsub.s32 %v622_v42, %v625_v9  ;;  %v5926_v29 = vand.u32 31, %v471_v13  ;;  %v4709_v31 = vadd.s32 4294967169, %v1287_v12 }
 0x10d   : > { %v5929_v28 = vmul.f32 %v5825_v17, %v370_v20  ;;  %v1424_v32 = vsel %vm1420_vm10, %v1408_v58, %v1423_v21  ;;  %v7810_v36 = vand.u32 2147483647, %v5876_v35  ;;  %v1493_v37 = vshrl.u32 %v1492_v22, 23 }
 0x10e   : > { %v1422_v30 = vsel %vm1418_vm7, %v1402_v23, %v1405_v57  ;;  %v1444_v38 = vadd.s32 1, %v5917_v15  ;;  %vm1443_vm12 = vc.u32 %v5913_v11, %v5916_v14  ;;  %v628_v42 = vsub.s32 0, %v5924_v26 }
 0x10f   : > { %7909 = vst [vmem:[#allocation18_spill] sm:$0xff] %v5929_v28  ;;  %v4717_v34 = vadd.s32 4294967169, %v1493_v37  ;;  %v5941_v44 = vsub.s32 32, %v5926_v29  ;;  %v1425_v46 = vsel %vm1419_vm11, %v1422_v30, %v1424_v32  ;;  %v1293_v48 = vadd.s32 1, %v4709_v31 }
 0x110   : > { %v1496_v50 = vand.u32 8388607, %v7810_v36  ;;  %v668_v52 = vand.u32 2139095040, %v5929_v28  ;;  %v1445_v53 = vsel %vm1443_vm12, %v1444_v38, %v5917_v15  ;;  %v5950_v54 = vmul.f32 %v5825_v17, %v415_v40 }
 0x111   : > { %v1499_v51 = vadd.s32 1, %v4717_v34  ;;  %v1441_v56 = vmul.u32 %v1434_v6, %v1425_v46  ;;  %v4682_v57 = vmin.u32 %v628_v42, %v5924_v26  ;;  %v486_v33 = vshrl.u32 %v7839_v47, %v5941_v44 }
 0x112   : > { %7910 = vst [vmem:[#allocation19_spill] sm:$0xff] %v5950_v54  ;;  %vm1294_vm14 = vcmp.gt.s32.totalorder %v1293_v48, 0  ;;  %v7811_v58 = vand.u32 2147483647, %v5929_v28  ;;  %v1497_v60 = vor.u32 8388608, %v1496_v50  ;;  %v669_v63 = vshrl.u32 %v668_v52, 23 }
 0x113   : > { %vm1500_vm13 = vcmp.gt.s32.totalorder %v1499_v51, 0  ;;  %v5956_v59 = vadd.s32 %v1445_v53, %v1441_v56  ;;  %v485_v0 = vshll.u32 %v7837_v45, %v5926_v29  ;;  %v1595_v1 = vand.u32 2139095040, %v5950_v54 }
 0x114   : > { %v1501_v61 = vsel %vm1500_vm13, %v1499_v51, 0  ;;  %v5961_v2 = vshrl.u32 %v471_v13, 5  ;;  %v5965_v3 = vshll.u32 %v7839_v47, %v5926_v29  ;;  %v5969_v5 = vshrl.u32 %v7814_v55, %v5941_v44 }
 0x115   : > { %v1503_v6 = vand.u32 31, %v1501_v61  ;;  %v630_v7 = vclz %v4682_v57  ;;  %v5971_v8 = vor.u32 %v486_v33, %v485_v0  ;;  %v5973_v9 = vsel %vm1294_vm14, %v1293_v48, 0 }
 0x116   : > { %v5977_v10 = vand.u32 8388607, %v7811_v58  ;;  %v1447_v12 = vadd.s32 536870912, %v5956_v59  ;;  %v5980_v15 = vshll.u32 %v1497_v60, 8  ;;  %v4685_v20 = vadd.s32 4294967169, %v669_v63 }
 0x117   : > { %v1504_v13 = vsub.s32 32, %v1503_v6  ;;  %v1502_v21 = vshrl.u32 %v1501_v61, 5  ;;  %v1506_v22 = vshll.u32 %v7819_v39, %v1503_v6  ;;  %v1509_v23 = vshll.u32 %v7825_v41, %v1503_v6 }
 0x118   : > { %v1596_v31 = vshrl.u32 %v1595_v1, 23  ;;  %v1512_v37 = vshll.u32 %v7816_v43, %v1503_v6  ;;  %v4683_v34 = vadd.s32 4294967294, %v630_v7  ;;  %v1515_v40 = vshll.u32 %v7837_v45, %v1503_v6 }
 0x119   : > { %v1507_v30 = vshrl.u32 %v7825_v41, %v1504_v13  ;;  %v1510_v32 = vshrl.u32 %v7816_v43, %v1504_v13  ;;  %v1513_v38 = vshrl.u32 %v7837_v45, %v1504_v13  ;;  %v1516_v42 = vshrl.u32 %v7839_v47, %v1504_v13 }
 0x11a   : > { %v1518_v46 = vshll.u32 %v7839_v47, %v1503_v6  ;;  %vm494_vm15 = vcmp.lt.s32.totalorder %v5961_v2, 4  ;;  %v1519_v52 = vshrl.u32 %v7814_v55, %v1504_v13  ;;  %v5993_v53 = vshrl.u32 %v1447_v12, 30 }
 0x11b   : > { %v1508_v48 = vor.u32 %v1507_v30, %v1506_v22  ;;  %v1511_v50 = vor.u32 %v1510_v32, %v1509_v23  ;;  %v1514_v51 = vor.u32 %v1513_v38, %v1512_v37  ;;  %v1517_v56 = vor.u32 %v1516_v42, %v1515_v40 }
 0x11c   : > { %7911 = vst [vmem:[#allocation20_spill] sm:$0xff] %v5993_v53  ;;  %v673_v57 = vor.u32 8388608, %v5977_v10  ;;  %v7809_v33 = vand.u32 2147483647, %v5950_v54  ;;  %v1520_v60 = vor.u32 %v1519_v52, %v1518_v46  ;;  %vm1521_vm0 = vcmp.lt.s32.totalorder %v1502_v21, 1 }
 0x11d   : > { %v675_v61 = vadd.s32 1, %v4685_v20  ;;  %v4721_v63 = vadd.s32 4294967169, %v1596_v31  ;;  %vm4684_vm1 = vcmp.lt.s32.totalorder %v4683_v34, 0  ;;  %vm1523_vm2 = vcmp.lt.s32.totalorder %v1502_v21, 3 }
 0x11e   : > { %vm1524_vm3 = vcmp.lt.s32.totalorder %v1502_v21, 4  ;;  %v1529_v0 = vsel %vm1521_vm0, %v1508_v48, %v1511_v50  ;;  %v1533_v7 = vsel %vm1521_vm0, %v1511_v50, %v1514_v51  ;;  %v1449_v22 = vshll.u32 %v5993_v53, 30 }
 0x11f   : > { %v1526_v1 = vsel %vm1524_vm3, %v1514_v51, 2102212464  ;;  %v1530_v6 = vsel %vm1524_vm3, %v1517_v56, 920167782  ;;  %v1534_v12 = vsel %vm1524_vm3, %v1520_v60, 1326507024  ;;  %v1505_v10 = vshrl.u32 %v7819_v39, %v1504_v13 }
 0x120   : > { %vm1522_vm4 = vcmp.lt.s32.totalorder %v1502_v21, 2  ;;  %v1531_v23 = vsel %vm1523_vm2, %v1514_v51, %v1530_v6  ;;  %v1535_v31 = vsel %vm1523_vm2, %v1517_v56, %v1534_v12  ;;  %vm676_vm5 = vcmp.gt.s32.totalorder %v675_v61, 0 }
 0x121   : > { %v1532_v20 = vsel %vm1522_vm4, %v1529_v0, %v1531_v23  ;;  %v1602_v30 = vadd.s32 1, %v4721_v63  ;;  %v6005_v32 = vsel %vm4684_vm1, 0, %v4683_v34  ;;  %v1525_v37 = vsel %vm1521_vm0, %v1505_v10, %v1508_v48 }
 0x122   : > { %v1527_v38 = vsel %vm1523_vm2, %v1511_v50, %v1526_v1  ;;  %v1536_v40 = vsel %vm1522_vm4, %v1533_v7, %v1535_v31  ;;  %v6015_v46 = vmul.u32.u64.low %v5980_v15, %v1532_v20  ;;  %v6016_v51 = vmul.u32.u64.high %v5980_v15, %v1532_v20, %v6015_v46 }
 0x123   : > { %v6011_v13 = vmul.u32.u64.low %v5980_v15, %v1536_v40  ;;  %v6012_v42 = vmul.u32.u64.high %v5980_v15, %v1536_v40, %v6011_v13  ;;  %v6024_v34 = vsel %vm494_vm15, %v5971_v8, 920167782  ;;  %v6027_v48 = vsub.s32 %v5956_v59, %v1449_v22 }
 0x124   : > { %7912 = vst [vmem:[#allocation21_spill] sm:$0xff] %v6024_v34  ;;  %v677_v50 = vsel %vm676_vm5, %v675_v61, 0  ;;  %v6031_v56 = vadd.s32 %v5863_v18, %v5861_v16  ;;  %v1528_v60 = vsel %vm1522_vm4, %v1525_v37, %v1527_v38  ;;  %vm1603_vm6 = vcmp.gt.s32.totalorder %v1602_v30, 0 }
 0x125   : > { %v679_v63 = vand.u32 31, %v677_v50  ;;  %v6036_v1 = vand.u32 31, %v5973_v9  ;;  %v6038_v6 = vshll.u32 %v673_v57, 8  ;;  %v6042_v59 = vand.u32 8388607, %v7809_v33 }
 0x126   : > { %v638_v61 = vsub.s32 4294967266, %v6005_v32  ;;  %vm1546_vm7 = vc.u32 %v6012_v42, %v6015_v46  ;;  %v1547_v16 = vadd.s32 1, %v6016_v51  ;;  %v1452_v21 = vsub.s32 0, %v6027_v48 }
 0x127   : > { %7913 = vst [vmem:[#allocation22_spill] sm:$0xff] %v6036_v1  ;;  %v680_v18 = vsub.s32 32, %v679_v63  ;;  %v1544_v7 = vmul.u32 %v5980_v15, %v1528_v60  ;;  %v682_v12 = vshll.u32 %v7819_v39, %v679_v63  ;;  %v1604_v57 = vsel %vm1603_vm6, %v1602_v30, 0 }
 0x128   : > { %v1548_v22 = vsel %vm1546_vm7, %v1547_v16, %v6016_v51  ;;  %v685_v23 = vshll.u32 %v7825_v41, %v679_v63  ;;  %v678_v37 = vshrl.u32 %v677_v50, 5  ;;  %v688_v38 = vshll.u32 %v7816_v43, %v679_v63 }
 0x129   : > { %v683_v10 = vshrl.u32 %v7825_v41, %v680_v18  ;;  %v686_v20 = vshrl.u32 %v7816_v43, %v680_v18  ;;  %v1549_v31 = vadd.s32 %v1548_v22, %v1544_v7  ;;  %v689_v40 = vshrl.u32 %v7837_v45, %v680_v18 }
 0x12a   : > { %v691_v15 = vshll.u32 %v7837_v45, %v679_v63  ;;  %v692_v30 = vshrl.u32 %v7839_v47, %v680_v18  ;;  %v4714_v51 = vmin.u32 %v1452_v21, %v6027_v48  ;;  %v1606_v36 = vand.u32 31, %v1604_v57 }
 0x12b   : > { %v684_v13 = vor.u32 %v683_v10, %v682_v12  ;;  %v687_v33 = vor.u32 %v686_v20, %v685_v23  ;;  %v1550_v60 = vadd.s32 536870912, %v1549_v31  ;;  %v690_v16 = vor.u32 %v689_v40, %v688_v38 }
 0x12c   : > { %v681_v58 = vshrl.u32 %v7819_v39, %v680_v18  ;;  %v693_v4 = vor.u32 %v692_v30, %v691_v15  ;;  %v694_v50 = vshll.u32 %v7839_v47, %v679_v63  ;;  %v695_v7 = vshrl.u32 %v7814_v55, %v680_v18 }
 0x12d   : > { %v6063_v22 = vshrl.u32 %v1550_v60, 30  ;;  %vm697_vm8 = vcmp.lt.s32.totalorder %v678_v37, 1  ;;  %vm699_vm9 = vcmp.lt.s32.totalorder %v678_v37, 3  ;;  %vm700_vm10 = vcmp.lt.s32.totalorder %v678_v37, 4 }
 0x12e   : > { %v696_v12 = vor.u32 %v695_v7, %v694_v50  ;;  %v701_v10 = vsel %vm697_vm8, %v681_v58, %v684_v13  ;;  %v702_v23 = vsel %vm700_vm10, %v690_v16, 2102212464  ;;  %v705_v20 = vsel %vm697_vm8, %v684_v13, %v687_v33 }
 0x12f   : > { %7914 = vst [vmem:[#allocation23_spill] sm:$0xff] %v6063_v22  ;;  %v1454_v21 = vclz %v4714_v51  ;;  %v1552_v38 = vshll.u32 %v6063_v22, 30  ;;  %v703_v40 = vsel %vm699_vm9, %v687_v33, %v702_v23  ;;  %v706_v27 = vsel %vm700_vm10, %v693_v4, 920167782 }
 0x130   : > { %vm698_vm11 = vcmp.lt.s32.totalorder %v678_v37, 2  ;;  %v707_v63 = vsel %vm699_vm9, %v690_v16, %v706_v27  ;;  %v709_v15 = vsel %vm697_vm8, %v687_v33, %v690_v16  ;;  %v710_v18 = vsel %vm700_vm10, %v696_v12, 1326507024 }
 0x131   : > { %v6068_v30 = vsub.s32 %v1549_v31, %v1552_v38  ;;  %v704_v60 = vsel %vm698_vm11, %v701_v10, %v703_v40  ;;  %v708_v0 = vsel %vm698_vm11, %v705_v20, %v707_v63  ;;  %v711_v50 = vsel %vm699_vm9, %v693_v4, %v710_v18 }
 0x132   : > { %v712_v58 = vsel %vm698_vm11, %v709_v15, %v711_v50  ;;  %v6072_v13 = vmul.u32.u64.low %v6038_v6, %v708_v0  ;;  %v6073_v51 = vmul.u32.u64.high %v6038_v6, %v708_v0, %v6072_v13  ;;  %v1607_v7 = vsub.s32 32, %v1606_v36 }
 0x133   : > { %v639_v23 = vadd.s32 127, %v638_v61  ;;  %v6077_v52 = vmul.u32.u64.low %v6038_v6, %v712_v58  ;;  %v6078_v55 = vmul.u32.u64.high %v6038_v6, %v712_v58, %v6077_v52  ;;  %v1600_v27 = vor.u32 8388608, %v6042_v59 }
 0x134   : > { %v4715_v33 = vadd.s32 4294967294, %v1454_v21  ;;  %v6081_v31 = vshrl.u32 %v1604_v57, 5  ;;  %v1610_v37 = vshrl.u32 %v7825_v41, %v1607_v7  ;;  %v1613_v4 = vshrl.u32 %v7816_v43, %v1607_v7 }
 0x135   : > { %v720_v16 = vmul.u32 %v6038_v6, %v704_v60  ;;  %v1609_v0 = vshll.u32 %v7819_v39, %v1606_v36  ;;  %v1612_v12 = vshll.u32 %v7825_v41, %v1606_v36  ;;  %v1616_v61 = vshrl.u32 %v7837_v45, %v1607_v7 }
 0x136   : > { %v1555_v10 = vsub.s32 0, %v6068_v30  ;;  %v723_v52 = vadd.s32 1, %v6073_v51  ;;  %v1618_v59 = vshll.u32 %v7837_v45, %v1606_v36  ;;  %v1619_v57 = vshrl.u32 %v7839_v47, %v1607_v7 }
 0x137   : > { %vm722_vm12 = vc.u32 %v6078_v55, %v6072_v13  ;;  %v1611_v20 = vor.u32 %v1610_v37, %v1609_v0  ;;  %v1614_v21 = vor.u32 %v1613_v4, %v1612_v12  ;;  %v1615_v6 = vshll.u32 %v7816_v43, %v1606_v36  ;;  %v375_v0 = vpop.permute.xlu0 %374 }
 0x138   : > { %v724_v38 = vsel %vm722_vm12, %v723_v52, %v6073_v51  ;;  %v1620_v40 = vor.u32 %v1619_v57, %v1618_v59  ;;  %v1621_v63 = vshll.u32 %v7839_v47, %v1606_v36  ;;  %v7915_v15 = vmov 1326507024  }
 0x139   : > { %v1622_v18 = vshrl.u32 %v7915_v15, %v1607_v7  ;;  %v7916_v60 = vor.u32 %v5969_v5, %v5965_v3  ;;  %v6107_v58 = vsub.s32 32, %v6036_v1  ;;  %v725_v37 = vadd.s32 %v724_v38, %v720_v16 }
 0x13a   : > { %v1617_v4 = vor.u32 %v1616_v61, %v1615_v6  ;;  %v7918_v51 = vsub.s32 32, %v6005_v32  ;;  %v640_v36 = vshll.u32 %v639_v23, 23  ;;  %v1640_v59 = vshll.u32 %v1600_v27, 8 }
 0x13b   : > { %v6104_v50 = vsel %vm494_vm15, %v7916_v60, 1326507024  ;;  %7917 = vst [vmem:[#allocation24_spill] sm:$0xff] %v6107_v58  ;;  %v1623_v52 = vor.u32 %v1622_v18, %v1621_v63  ;;  %v4718_v57 = vmin.u32 %v1555_v10, %v6068_v30  ;;  %v726_v3 = vadd.s32 536870912, %v725_v37 }
 0x13c   : > { %v636_v12 = vshrl.u32 %v6031_v56, %v7918_v51  ;;  %vm1624_vm13 = vcmp.lt.s32.totalorder %v6081_v31, 1  ;;  %vm1627_vm14 = vcmp.lt.s32.totalorder %v6081_v31, 4  ;;  %vm4716_vm0 = vcmp.lt.s32.totalorder %v4715_v33, 0 }
 0x13d   : > { %v1632_v5 = vsel %vm1624_vm13, %v1611_v20, %v1614_v21  ;;  %v1633_v16 = vsel %vm1627_vm14, %v1620_v40, 920167782  ;;  %v6118_v61 = vmul.f32 %v5825_v17, %v375_v0  ;;  %v6120_v6 = vshrl.u32 %v726_v3, 30 }
 0x13e   : > { %v1608_v56 = vshrl.u32 %v7819_v39, %v1607_v7  ;;  %vm1626_vm1 = vcmp.lt.s32.totalorder %v6081_v31, 3  ;;  %v1629_v23 = vsel %vm1627_vm14, %v1617_v4, 2102212464  ;;  %vm1625_vm2 = vcmp.lt.s32.totalorder %v6081_v31, 2 }
 0x13f   : > { %7919 = vst [vmem:[#allocation25_spill] sm:$0xff] %v6118_v61  ;;  %7920 = vst [vmem:[#allocation26_spill] sm:$0xff] %v6120_v6  ;;  %v1634_v27 = vsel %vm1626_vm1, %v1617_v4, %v1633_v16  ;;  %v1636_v10 = vsel %vm1624_vm13, %v1614_v21, %v1617_v4  ;;  %v1637_v38 = vsel %vm1627_vm14, %v1623_v52, 1326507024  ;;  %v1557_v63 = vclz %v4718_v57 }
 0x140   : > { %v728_v18 = vshll.u32 %v6120_v6, 30  ;;  %v1628_v60 = vsel %vm1624_vm13, %v1608_v56, %v1611_v20  ;;  %v1635_v0 = vsel %vm1625_vm2, %v1632_v5, %v1634_v27  ;;  %v1630_v7 = vsel %vm1626_vm1, %v1614_v21, %v1629_v23  ;;  %v3774_v23 = vld [vmem:[#allocation3 + $0x18] sm:$0xff] }
 0x141   : > { %v1638_v51 = vsel %vm1626_vm1, %v1620_v40, %v1637_v38  ;;  %v6132_v3 = vmul.u32.u64.low %v1640_v59, %v1635_v0  ;;  %v6133_v43 = vmul.u32.u64.high %v1640_v59, %v1635_v0, %v6132_v3  ;;  %v635_v16 = vshll.u32 %v5924_v26, %v6005_v32  ;;  %v3772_v40 = vld [vmem:[#allocation3 + $0x8] sm:$0xff] }
 0x142   : > { %v641_v4 = vor.u32 4788187, %v640_v36  ;;  %v6139_v52 = vshrl.u32 %v5973_v9, 5  ;;  %v1639_v57 = vsel %vm1625_vm2, %v1636_v10, %v1638_v51  ;;  %v1457_v20 = vsel %vm4716_vm0, 0, %v4715_v33 }
 0x143   : > { %v6144_v56 = vmul.u32.u64.low %v1640_v59, %v1639_v57  ;;  %v6145_v5 = vmul.u32.u64.high %v1640_v59, %v1639_v57, %v6144_v56  ;;  %v771_v21 = vand.u32 2139095040, %v6118_v61  ;;  %v637_v27 = vor.u32 %v636_v12, %v635_v16 }
 0x144   : > { %7921 = vst [vmem:[#allocation27_spill] sm:$0xff] %v6139_v52  ;;  %v1309_v26 = vshll.u32 %v7837_v45, %v6036_v1  ;;  %v6150_v32 = vsub.s32 %v725_v37, %v728_v18  ;;  %v1631_v9 = vsel %vm1625_vm2, %v1628_v60, %v1630_v7  ;;  %v1310_v36 = vshrl.u32 %v7839_v47, %v6107_v58 }
 0x145   : > { %v4719_v33 = vadd.s32 4294967294, %v1557_v63  ;;  %v1650_v10 = vadd.s32 1, %v6133_v43  ;;  %v772_v38 = vshrl.u32 %v771_v21, 23  ;;  %v642_v0 = vand.u32 2147483647, %v641_v4  ;;  %v420_v21 = vpop.permute.xlu1 %419 }
 0x146   : > { %v1458_v51 = vsub.s32 32, %v1457_v20  ;;  %v1462_v57 = vsub.s32 4294967266, %v1457_v20  ;;  %v4922_v56 = vpack.c.bf16 %v3774_v23, %v3772_v40  ;;  %v1647_v12 = vmul.u32 %v1640_v59, %v1631_v9 }
 0x147   : > { %vm1649_vm3 = vc.u32 %v6145_v5, %v6132_v3  ;;  %v7818_v37 = vand.u32 2147483647, %v6118_v61  ;;  %v4689_v18 = vadd.s32 4294967169, %v772_v38  ;;  %v644_v31 = vcvt.s32.f32 %v637_v27 }
 0x148   : > { %v1442_v60 = vadd.s32 %v5916_v14, %v5913_v11  ;;  %v731_v63 = vsub.s32 0, %v6150_v32  ;;  %v1651_v7 = vsel %vm1649_vm3, %v1650_v10, %v6133_v43  ;;  %4923 = vmatprep.subr.bf16.mxu0 %v4922_v56  ;;  %4986 = vmatprep.subr.bf16.mxu1 %v4922_v56  ;;  %v6166_v16 = vshrl.u32 %v7915_v15, %v6107_v58 }
 0x149   : > { %vm4720_vm4 = vcmp.lt.s32.totalorder %v4719_v33, 0  ;;  %v1652_v59 = vadd.s32 %v1651_v7, %v1647_v12  ;;  %v778_v4 = vadd.s32 1, %v4689_v18  ;;  %v6168_v40 = vmul.f32 %v644_v31, %v642_v0 }
 0x14a   : > { %v1460_v23 = vshrl.u32 %v1442_v60, %v1458_v51  ;;  %v1463_v27 = vadd.s32 127, %v1462_v57  ;;  %v6172_v11 = vshll.u32 %v7839_v47, %v6036_v1  ;;  %v1459_v43 = vshll.u32 %v6027_v48, %v1457_v20 }
 0x14b   : > { %v1653_v14 = vadd.s32 536870912, %v1652_v59  ;;  %v775_v9 = vand.u32 8388607, %v7818_v37  ;;  %vm779_vm5 = vcmp.gt.s32.totalorder %v778_v4, 0  ;;  %v6177_v10 = vsel %vm4720_vm4, 0, %v4719_v33 }
 0x14c   : > { %v4686_v38 = vmin.u32 %v731_v63, %v6150_v32  ;;  %v780_v56 = vsel %vm779_vm5, %v778_v4, 0  ;;  %v6181_v0 = vmul.f32 %v5825_v17, %v420_v21  ;;  %v6183_v51 = vor.u32 %v1310_v36, %v1309_v26 }
 0x14d   : > { %v6187_v12 = vshrl.u32 %v1653_v14, 30  ;;  %v782_v48 = vand.u32 31, %v780_v56  ;;  %v6190_v18 = vor.u32 %v1460_v23, %v1459_v43  ;;  %v1464_v33 = vshll.u32 %v1463_v27, 23 }
 0x14e   : > { %7922 = vst [vmem:[#allocation28_spill] sm:$0xff] %v6183_v51  ;;  %v6194_v31 = vadd.s32 %v6015_v46, %v6012_v42  ;;  %v1565_v60 = vsub.s32 4294967266, %v6177_v10  ;;  %v776_v36 = vor.u32 8388608, %v775_v9  ;;  %v733_v7 = vclz %v4686_v38 }
 0x14f   : > { %7923 = vst [vmem:[#allocation29_spill] sm:$0xff] %v6187_v12  ;;  %v1655_v26 = vshll.u32 %v6187_v12, 30  ;;  %v783_v63 = vsub.s32 32, %v782_v48  ;;  %v781_v4 = vshrl.u32 %v780_v56, 5  ;;  %v1698_v14 = vand.u32 2139095040, %v6181_v0 }
 0x150   : > { %v785_v23 = vshll.u32 %v7819_v39, %v782_v48  ;;  %v788_v43 = vshll.u32 %v7825_v41, %v782_v48  ;;  %v7924_v42 = vmov 2131351028   ;;  %v794_v9 = vshll.u32 %v7837_v45, %v782_v48 }
 0x151   : > { %v786_v27 = vshrl.u32 %v7825_v41, %v783_v63  ;;  %v789_v46 = vshrl.u32 %v7924_v42, %v783_v63  ;;  %v791_v37 = vshll.u32 %v7924_v42, %v782_v48  ;;  %v792_v57 = vshrl.u32 %v7837_v45, %v783_v63 }
 0x152   : > { %v795_v38 = vshrl.u32 %v7839_v47, %v783_v63  ;;  %v6208_v56 = vor.u32 4788187, %v1464_v33  ;;  %v6210_v20 = vsub.s32 %v1652_v59, %v1655_v26  ;;  %v1561_v12 = vsub.s32 32, %v6177_v10 }
 0x153   : > { %v787_v21 = vor.u32 %v786_v27, %v785_v23  ;;  %v790_v39 = vor.u32 %v789_v46, %v788_v43  ;;  %v1566_v22 = vadd.s32 127, %v1565_v60  ;;  %v793_v41 = vor.u32 %v792_v57, %v791_v37  ;;  %v380_v46 = vpop.permute.xlu0 %379 }
 0x154   : > { %v796_v6 = vor.u32 %v795_v38, %v794_v9  ;;  %v797_v53 = vshll.u32 %v7839_v47, %v782_v48  ;;  %v798_v1 = vshrl.u32 %v7915_v15, %v783_v63  ;;  %v816_v58 = vshll.u32 %v776_v36, 8 }
 0x155   : > { %v1699_v49 = vshrl.u32 %v1698_v14, 23  ;;  %v4687_v45 = vadd.s32 4294967294, %v733_v7  ;;  %vm800_vm6 = vcmp.lt.s32.totalorder %v781_v4, 1  ;;  %vm803_vm7 = vcmp.lt.s32.totalorder %v781_v4, 4 }
 0x156   : > { %v7925_v33 = vand.u32 2147483647, %v6181_v0  ;;  %v1658_v26 = vsub.s32 0, %v6210_v20  ;;  %v799_v23 = vor.u32 %v798_v1, %v797_v53  ;;  %v805_v27 = vsel %vm803_vm7, %v793_v41, 2102212464 }
 0x157   : > { %v808_v60 = vsel %vm800_vm6, %v787_v21, %v790_v39  ;;  %vm564_vm8 = vcmp.lt.s32.totalorder %v5828_v19, 0  ;;  %vm1318_vm9 = vcmp.lt.s32.totalorder %v6139_v52, 4  ;;  %v7926_v37 = vmov 683565275  }
 0x158   : > { %v1702_v59 = vand.u32 8388607, %v7925_v33  ;;  %v784_v57 = vshrl.u32 %v7926_v37, %v783_v63  ;;  %vm802_vm10 = vcmp.lt.s32.totalorder %v781_v4, 3  ;;  %v809_v48 = vsel %vm803_vm7, %v796_v6, 920167782 }
 0x159   : > { %v812_v36 = vsel %vm800_vm6, %v790_v39, %v793_v41  ;;  %vm801_vm11 = vcmp.lt.s32.totalorder %v781_v4, 2  ;;  %v810_v7 = vsel %vm802_vm10, %v793_v41, %v809_v48  ;;  %v813_v14 = vsel %vm803_vm7, %v799_v23, 1326507024 }
 0x15a   : > { %v4725_v43 = vadd.s32 4294967169, %v1699_v49  ;;  %v804_v53 = vsel %vm800_vm6, %v784_v57, %v787_v21  ;;  %v806_v1 = vsel %vm802_vm10, %v790_v39, %v805_v27  ;;  %v811_v9 = vsel %vm801_vm11, %v808_v60, %v810_v7 }
 0x15b   : > { %v814_v38 = vsel %vm802_vm10, %v796_v6, %v813_v14  ;;  %v4722_v33 = vmin.u32 %v1658_v26, %v6210_v20  ;;  %v6227_v63 = vmul.u32.u64.low %v816_v58, %v811_v9  ;;  %v6228_v62 = vmul.u32.u64.high %v816_v58, %v811_v9, %v6227_v63 }
 0x15c   : > { %v815_v47 = vsel %vm801_vm11, %v812_v36, %v814_v38  ;;  %vm4688_vm12 = vcmp.lt.s32.totalorder %v4687_v45, 0  ;;  %v6235_v49 = vmul.f32 %v5825_v17, %v380_v46  ;;  %v1466_v39 = vand.u32 2147483647, %v6208_v56 }
 0x15d   : > { %v6231_v34 = vmul.u32.u64.low %v816_v58, %v815_v47  ;;  %v6232_v41 = vmul.u32.u64.high %v816_v58, %v815_v47, %v6231_v34  ;;  %v1468_v21 = vcvt.s32.f32 %v6190_v18  ;;  %v807_v6 = vsel %vm801_vm11, %v804_v53, %v806_v1 }
 0x15e   : > { %7927 = vst [vmem:[#allocation30_spill] sm:$0xff] %v6235_v49  ;;  %v1705_v26 = vadd.s32 1, %v4725_v43  ;;  %v1562_v23 = vshll.u32 %v6068_v30, %v6177_v10  ;;  %v1563_v27 = vshrl.u32 %v6194_v31, %v1561_v12  ;;  %v1567_v60 = vshll.u32 %v1566_v22, 23 }
 0x15f   : > { %v1703_v57 = vor.u32 8388608, %v1702_v59  ;;  %v6243_v48 = vsel %vm4688_vm12, 0, %v4687_v45  ;;  %v1660_v47 = vclz %v4722_v33  ;;  %v826_v17 = vadd.s32 1, %v6228_v62 }
 0x160   : > { %vm1706_vm13 = vcmp.gt.s32.totalorder %v1705_v26, 0  ;;  %v823_v34 = vmul.u32 %v816_v58, %v807_v6  ;;  %vm825_vm14 = vc.u32 %v6232_v41, %v6227_v63  ;;  %v874_v4 = vand.u32 2139095040, %v6235_v49 }
 0x161   : > { %v1707_v18 = vsel %vm1706_vm13, %v1705_v26, 0  ;;  %v7928_v30 = vxor.u32 2147483648, %v6168_v40  ;;  %v6259_v45 = vsel %vm1318_vm9, %v6183_v51, 920167782  ;;  %v7931_v58 = vor.u32 %v6166_v16, %v6172_v11 }
 0x162   : > { %7930 = vst [vmem:[#allocation32_spill] sm:$0xff] %v6259_v45  ;;  %v827_v12 = vsel %vm825_vm14, %v826_v17, %v6228_v62  ;;  %v6269_v31 = vmul.f32 %v1468_v21, %v1466_v39  ;;  %v6271_v56 = vor.u32 %v1563_v27, %v1562_v23  ;;  %v1709_v59 = vand.u32 31, %v1707_v18 }
 0x163   : > { %v6254_v22 = vsel %vm564_vm8, %v7928_v30, %v6168_v40  ;;  %v6266_v10 = vsel %vm1318_vm9, %v7931_v58, 1326507024  ;;  %v828_v40 = vadd.s32 %v827_v12, %v823_v34  ;;  %v6273_v36 = vor.u32 4788187, %v1567_v60 }
 0x164   : > { %7929 = vst [vmem:[#allocation31_spill] sm:$0xff] %v6254_v22  ;;  %7932 = vst [vmem:[#allocation33_spill] sm:$0xff] %v6266_v10  ;;  %v741_v7 = vsub.s32 4294967266, %v6243_v48  ;;  %v6276_v14 = vadd.s32 4294967294, %v1660_v47  ;;  %v1710_v43 = vsub.s32 32, %v1709_v59  ;;  %v6279_v46 = vshll.u32 %v1703_v57, 8 }
 0x165   : > { %v829_v11 = vadd.s32 536870912, %v828_v40  ;;  %v875_v53 = vshrl.u32 %v874_v4, 23  ;;  %v1708_v62 = vshrl.u32 %v1707_v18, 5  ;;  %v1712_v1 = vshll.u32 %v7926_v37, %v1709_v59 }
 0x166   : > { %v7933_v9 = vmov 2475754826   ;;  %v1718_v33 = vshll.u32 %v7924_v42, %v1709_v59  ;;  %v1716_v6 = vshrl.u32 %v7924_v42, %v1710_v43  ;;  %v7935_v26 = vmov 2102212464  }
 0x167   : > { %v1715_v38 = vshll.u32 %v7933_v9, %v1709_v59  ;;  %v6284_v39 = vshrl.u32 %v829_v11, 30  ;;  %v1713_v21 = vshrl.u32 %v7933_v9, %v1710_v43  ;;  %v1721_v23 = vshll.u32 %v7935_v26, %v1709_v59 }
 0x168   : > { %v1719_v27 = vshrl.u32 %v7935_v26, %v1710_v43  ;;  %v7936_v60 = vmov 920167782   ;;  %v1725_v17 = vshrl.u32 %v7915_v15, %v1710_v43  ;;  %v4693_v30 = vadd.s32 4294967169, %v875_v53 }
 0x169   : > { %7934 = vst [vmem:[#allocation34_spill] sm:$0xff] %v6284_v39  ;;  %v1722_v57 = vshrl.u32 %v7936_v60, %v1710_v43  ;;  %v1724_v47 = vshll.u32 %v7936_v60, %v1709_v59  ;;  %v831_v34 = vshll.u32 %v6284_v39, 30  ;;  %v1714_v18 = vor.u32 %v1713_v21, %v1712_v1 }
 0x16a   : > { %v1717_v4 = vor.u32 %v1716_v6, %v1715_v38  ;;  %v1720_v58 = vor.u32 %v1719_v27, %v1718_v33  ;;  %vm1727_vm0 = vcmp.lt.s32.totalorder %v1708_v62, 1  ;;  %v1711_v51 = vshrl.u32 %v7926_v37, %v1710_v43 }
 0x16b   : > { %v1723_v12 = vor.u32 %v1722_v57, %v1721_v23  ;;  %v1726_v11 = vor.u32 %v1725_v17, %v1724_v47  ;;  %v6294_v16 = vsub.s32 %v828_v40, %v831_v34  ;;  %vm1730_vm1 = vcmp.lt.s32.totalorder %v1708_v62, 4 }
 0x16c   : > { %v1735_v10 = vsel %vm1727_vm0, %v1714_v18, %v1717_v4  ;;  %vm1729_vm2 = vcmp.lt.s32.totalorder %v1708_v62, 3  ;;  %v1732_v45 = vsel %vm1730_vm1, %v1720_v58, 2102212464  ;;  %v1739_v52 = vsel %vm1727_vm0, %v1717_v4, %v1720_v58 }
 0x16d   : > { %v1736_v59 = vsel %vm1730_vm1, %v1723_v12, 920167782  ;;  %vm1728_vm3 = vcmp.lt.s32.totalorder %v1708_v62, 2  ;;  %v1731_v22 = vsel %vm1727_vm0, %v1711_v51, %v1714_v18  ;;  %v1740_v1 = vsel %vm1730_vm1, %v1726_v11, 1326507024  ;;  %v425_v62 = vpop.permute.xlu1 %424 }
 0x16e   : > { %v1737_v39 = vsel %vm1729_vm2, %v1720_v58, %v1736_v59  ;;  %v1733_v38 = vsel %vm1729_vm2, %v1717_v4, %v1732_v45  ;;  %v1741_v33 = vsel %vm1729_vm2, %v1723_v12, %v1740_v1  ;;  %v881_v21 = vadd.s32 1, %v4693_v30 }
 0x16f   : > { %v1738_v53 = vsel %vm1728_vm3, %v1735_v10, %v1737_v39  ;;  %v834_v40 = vsub.s32 0, %v6294_v16  ;;  %v1742_v6 = vsel %vm1728_vm3, %v1739_v52, %v1741_v33  ;;  %v737_v45 = vsub.s32 32, %v6243_v48 }
 0x170   : > { %v6301_v43 = vmul.u32.u64.low %v6279_v46, %v1738_v53  ;;  %v6302_v23 = vmul.u32.u64.high %v6279_v46, %v1738_v53, %v6301_v43  ;;  %v6307_v51 = vmul.u32.u64.low %v6279_v46, %v1742_v6  ;;  %v6308_v57 = vmul.u32.u64.high %v6279_v46, %v1742_v6, %v6307_v51 }
 0x171   : > { %vm882_vm4 = vcmp.gt.s32.totalorder %v881_v21, 0  ;;  %v742_v10 = vadd.s32 127, %v741_v7  ;;  %v1734_v39 = vsel %vm1728_vm3, %v1731_v22, %v1733_v38  ;;  %v721_v52 = vadd.s32 %v6072_v13, %v6078_v55 }
 0x172   : > { %v883_v47 = vsel %vm882_vm4, %v881_v21, 0  ;;  %vm4724_vm5 = vcmp.lt.s32.totalorder %v6276_v14, 0  ;;  %v7937_v17 = vand.u32 2147483647, %v6235_v49  ;;  %v4690_v58 = vmin.u32 %v834_v40, %v6294_v16  ;;  %v3782_v49 = vld [vmem:[#allocation3 + $0x58] sm:$0xff] }
 0x173   : > { %v885_v18 = vand.u32 31, %v883_v47  ;;  %v1753_v7 = vadd.s32 1, %v6302_v23  ;;  %v738_v22 = vshll.u32 %v6150_v32, %v6243_v48  ;;  %v1750_v55 = vmul.u32 %v6279_v46, %v1734_v39  ;;  %v6334_v32 = vld [vmem:[%s7794_s1] ss:$0 sm:$0xff] }
 0x174   : > { %v878_v34 = vand.u32 8388607, %v7937_v17  ;;  %vm1752_vm6 = vc.u32 %v6308_v57, %v6301_v43  ;;  %v739_v12 = vshrl.u32 %v721_v52, %v737_v45  ;;  %v743_v11 = vshll.u32 %v742_v10, 23 }
 0x175   : > { %v886_v13 = vsub.s32 32, %v885_v18  ;;  %v6327_v59 = vsel %vm4724_vm5, 0, %v6276_v14  ;;  %v1754_v1 = vsel %vm1752_vm6, %v1753_v7, %v6302_v23  ;;  %v6337_v48 = vmul.f32 %v6334_v32, %v425_v62 }
 0x176   : > { %v1755_v38 = vadd.s32 %v1754_v1, %v1750_v55  ;;  %v879_v53 = vor.u32 8388608, %v878_v34  ;;  %v836_v46 = vclz %v4690_v58  ;;  %v888_v21 = vshll.u32 %v7926_v37, %v885_v18 }
 0x177   : > { %v889_v33 = vshrl.u32 %v7933_v9, %v886_v13  ;;  %7938 = vst [vmem:[#allocation35_spill] sm:$0xff] %v6337_v48  ;;  %v891_v14 = vshll.u32 %v7933_v9, %v885_v18  ;;  %v892_v40 = vshrl.u32 %v7924_v42, %v886_v13  ;;  %v884_v23 = vshrl.u32 %v883_v47, 5 }
 0x178   : > { %v1756_v6 = vadd.s32 536870912, %v1755_v38  ;;  %v894_v51 = vshll.u32 %v7924_v42, %v885_v18  ;;  %v895_v45 = vshrl.u32 %v7935_v26, %v886_v13  ;;  %v897_v52 = vshll.u32 %v7935_v26, %v885_v18 }
 0x179   : > { %v890_v10 = vor.u32 %v889_v33, %v888_v21  ;;  %v893_v39 = vor.u32 %v892_v40, %v891_v14  ;;  %v898_v17 = vshrl.u32 %v7936_v60, %v886_v13  ;;  %v900_v7 = vshll.u32 %v7936_v60, %v885_v18  ;;  %v385_v18 = vpop.permute.xlu0 %384 }
 0x17a   : > { %v6346_v34 = vshrl.u32 %v1756_v6, 30  ;;  %v896_v58 = vor.u32 %v895_v45, %v894_v51  ;;  %v901_v62 = vshrl.u32 %v7915_v15, %v886_v13  ;;  %v6350_v55 = vor.u32 %v739_v12, %v738_v22 }
 0x17b   : > { %v6352_v47 = vor.u32 4788187, %v743_v11  ;;  %v4691_v1 = vadd.s32 4294967294, %v836_v46  ;;  %v899_v27 = vor.u32 %v898_v17, %v897_v52  ;;  %v1668_v33 = vsub.s32 4294967266, %v6327_v59 }
 0x17c   : > { %7939 = vst [vmem:[#allocation36_spill] sm:$0xff] %v6346_v34  ;;  %v902_v21 = vor.u32 %v901_v62, %v900_v7  ;;  %v919_v14 = vshll.u32 %v879_v53, 8  ;;  %v1801_v40 = vand.u32 2139095040, %v6337_v48  ;;  %v1758_v6 = vshll.u32 %v6346_v34, 30 }
 0x17d   : > { %v887_v51 = vshrl.u32 %v7926_v37, %v886_v13  ;;  %vm903_vm7 = vcmp.lt.s32.totalorder %v884_v23, 1  ;;  %vm906_vm10 = vcmp.lt.s32.totalorder %v884_v23, 4  ;;  %vm905_vm11 = vcmp.lt.s32.totalorder %v884_v23, 3 }
 0x17e   : > { %v908_v22 = vsel %vm906_vm10, %v896_v58, 2102212464  ;;  %v911_v12 = vsel %vm903_vm7, %v890_v10, %v893_v39  ;;  %v912_v11 = vsel %vm906_vm10, %v899_v27, 920167782  ;;  %vm4692_vm12 = vcmp.lt.s32.totalorder %v4691_v1, 0 }
 0x17f   : > { %vm904_vm13 = vcmp.lt.s32.totalorder %v884_v23, 2  ;;  %v913_v46 = vsel %vm905_vm11, %v896_v58, %v912_v11  ;;  %v915_v45 = vsel %vm903_vm7, %v893_v39, %v896_v58  ;;  %v907_v52 = vsel %vm903_vm7, %v887_v51, %v890_v10 }
 0x180   : > { %v914_v53 = vsel %vm904_vm13, %v911_v12, %v913_v46  ;;  %v916_v17 = vsel %vm906_vm10, %v902_v21, 1326507024  ;;  %v6360_v7 = vmul.f32 %v6334_v32, %v385_v18  ;;  %v909_v62 = vsel %vm905_vm11, %v893_v39, %v908_v22  ;;  %v3773_v39 = vld [vmem:[#allocation3 + $0x10] sm:$0xff]  ;;  %v3776_v46 = vld [vmem:[#allocation3 + $0x28] sm:$0xff] }
 0x181   : > { %v917_v13 = vsel %vm905_vm11, %v899_v27, %v916_v17  ;;  %v6362_v30 = vmul.u32.u64.low %v919_v14, %v914_v53  ;;  %v6363_v4 = vmul.u32.u64.high %v919_v14, %v914_v53, %v6362_v30  ;;  %v6366_v34 = vsel %vm4692_vm12, 0, %v4691_v1  ;;  %v3771_v27 = vld [vmem:[#allocation3] sm:$0xff] }
 0x182   : > { %v6368_v19 = vsub.s32 %v1755_v38, %v1758_v6  ;;  %v918_v11 = vsel %vm904_vm13, %v915_v45, %v917_v13  ;;  %v1802_v58 = vshrl.u32 %v1801_v40, 23  ;;  %v1648_v10 = vadd.s32 %v6132_v3, %v6145_v5  ;;  %v3778_v45 = vld [vmem:[#allocation3 + $0x38] sm:$0xff] }
 0x183   : > { %v1664_v21 = vsub.s32 32, %v6327_v59  ;;  %v6374_v51 = vmul.u32.u64.low %v919_v14, %v918_v11  ;;  %v6375_v18 = vmul.u32.u64.high %v919_v14, %v918_v11, %v6374_v51  ;;  %v7940_v22 = vand.u32 2147483647, %v6273_v36 }
 0x184   : > { %v7941_v1 = vcvt.s32.f32 %v6271_v56  ;;  %v1669_v38 = vadd.s32 127, %v1668_v33  ;;  %v910_v6 = vsel %vm904_vm13, %v907_v52, %v909_v62  ;;  %v4729_v40 = vadd.s32 4294967169, %v1802_v58 }
 0x185   : > { %v745_v3 = vand.u32 2147483647, %v6352_v47  ;;  %v747_v5 = vcvt.s32.f32 %v6350_v55  ;;  %v844_v53 = vsub.s32 4294967266, %v6366_v34  ;;  %v929_v17 = vadd.s32 1, %v6363_v4 }
 0x186   : > { %v6381_v12 = vmul.f32 %v7941_v1, %v7940_v22  ;;  %v1761_v36 = vsub.s32 0, %v6368_v19  ;;  %v1808_v13 = vadd.s32 1, %v4729_v40  ;;  %v977_v56 = vand.u32 2139095040, %v6360_v7 }
 0x187   : > { %v4924_v11 = vpack.c.bf16 %v3773_v39, %v3771_v27  ;;  %v1666_v33 = vshrl.u32 %v1648_v10, %v1664_v21  ;;  %v926_v23 = vmul.u32 %v919_v14, %v910_v6  ;;  %vm928_vm14 = vc.u32 %v6375_v18, %v6362_v30 }
 0x188   : > { %v4926_v52 = vpack.c.bf16 %v3778_v45, %v3776_v46  ;;  %v1670_v62 = vshll.u32 %v1669_v38, 23  ;;  %v930_v47 = vsel %vm928_vm14, %v929_v17, %v6363_v4  ;;  %v7852_v55 = vand.u32 2147483647, %v6337_v48  ;;  %v3780_v48 = vld [vmem:[#allocation3 + $0x48] sm:$0xff] }
 0x189   : > { %vm1809_vm0 = vcmp.gt.s32.totalorder %v1808_v13, 0  ;;  %4925 = vmatpush1.bf16.msra.mxu0 %v4924_v11  ;;  %5002 = vmatpush1.bf16.msra.mxu1 %v4924_v11  ;;  %v840_v58 = vsub.s32 32, %v6366_v34  ;;  %v6395_v51 = vadd.s32 127, %v844_v53  ;;  %v931_v22 = vadd.s32 %v930_v47, %v926_v23 }
 0x18a   : > { %v1810_v27 = vsel %vm1809_vm0, %v1808_v13, 0  ;;  %4927 = vmatprep.subr.bf16.mxu0 %v4926_v52  ;;  %4987 = vmatprep.subr.bf16.mxu1 %v4926_v52  ;;  %v1665_v10 = vshll.u32 %v6210_v20, %v6327_v59  ;;  %v4726_v4 = vmin.u32 %v1761_v36, %v6368_v19  ;;  %v978_v21 = vshrl.u32 %v977_v56, 23 }
 0x18b   : > { %v6401_v39 = vmul.f32 %v747_v5, %v745_v3  ;;  %v824_v1 = vadd.s32 %v6227_v63, %v6232_v41  ;;  %v932_v38 = vadd.s32 536870912, %v931_v22  ;;  %v1812_v6 = vand.u32 31, %v1810_v27 }
 0x18c   : > { %v6405_v40 = vor.u32 %v1666_v33, %v1665_v10  ;;  %v6407_v46 = vor.u32 4788187, %v1670_v62  ;;  %v1805_v20 = vand.u32 8388607, %v7852_v55  ;;  %v846_v3 = vshll.u32 %v6395_v51, 23  ;;  %v3777_v10 = vld [vmem:[#allocation3 + $0x30] sm:$0xff] }
 0x18d   : > { %v6413_v59 = vshrl.u32 %v824_v1, %v840_v58  ;;  %v6416_v5 = vshrl.u32 %v932_v38, 30  ;;  %v1813_v53 = vsub.s32 32, %v1812_v6  ;;  %v1763_v63 = vclz %v4726_v4 }
 0x18e   : > { %v1811_v41 = vshrl.u32 %v1810_v27, 5  ;;  %v1815_v17 = vshll.u32 %v7926_v37, %v1812_v6  ;;  %v4697_v36 = vadd.s32 4294967169, %v978_v21  ;;  %v1818_v11 = vshll.u32 %v7933_v9, %v1812_v6 }
 0x18f   : > { %7942 = vst [vmem:[#allocation37_spill] sm:$0xff] %v6416_v5  ;;  %v934_v13 = vshll.u32 %v6416_v5, 30  ;;  %v1816_v56 = vshrl.u32 %v7933_v9, %v1813_v53  ;;  %v1819_v33 = vshrl.u32 %v7924_v42, %v1813_v53  ;;  %v1821_v23 = vshll.u32 %v7924_v42, %v1812_v6 }
 0x190   : > { %v1822_v52 = vshrl.u32 %v7935_v26, %v1813_v53  ;;  %v1824_v62 = vshll.u32 %v7935_v26, %v1812_v6  ;;  %v1825_v47 = vshrl.u32 %v7936_v60, %v1813_v53  ;;  %v1806_v58 = vor.u32 8388608, %v1805_v20 }
 0x191   : > { %v1817_v51 = vor.u32 %v1816_v56, %v1815_v17  ;;  %v1820_v27 = vor.u32 %v1819_v33, %v1818_v11  ;;  %v1827_v1 = vshll.u32 %v7936_v60, %v1812_v6  ;;  %v1828_v38 = vshrl.u32 %v7915_v15, %v1813_v53 }
 0x192   : > { %v1823_v4 = vor.u32 %v1822_v52, %v1821_v23  ;;  %v1826_v21 = vor.u32 %v1825_v47, %v1824_v62  ;;  %vm1388_vm1 = vcmp.lt.s32.totalorder %v5835_v25, 0  ;;  %vm1491_vm2 = vcmp.lt.s32.totalorder %v5876_v35, 0 }
 0x193   : > { %v4727_v55 = vadd.s32 4294967294, %v1763_v63  ;;  %v6432_v45 = vsub.s32 %v931_v22, %v934_v13  ;;  %vm1830_vm3 = vcmp.lt.s32.totalorder %v1811_v41, 1  ;;  %v984_v14 = vadd.s32 1, %v4697_v36  ;;  %v3775_v36 = vld [vmem:[#allocation3 + $0x20] sm:$0xff] }
 0x194   : > { %v1814_v20 = vshrl.u32 %v7926_v37, %v1813_v53  ;;  %v1829_v17 = vor.u32 %v1828_v38, %v1827_v1  ;;  %vm1833_vm4 = vcmp.lt.s32.totalorder %v1811_v41, 4  ;;  %v1838_v56 = vsel %vm1830_vm3, %v1817_v51, %v1820_v27 }
 0x195   : > { %vm1832_vm5 = vcmp.lt.s32.totalorder %v1811_v41, 3  ;;  %v1835_v11 = vsel %vm1833_vm4, %v1823_v4, 2102212464  ;;  %v1839_v33 = vsel %vm1833_vm4, %v1826_v21, 920167782  ;;  %v1842_v6 = vsel %vm1830_vm3, %v1820_v27, %v1823_v4 }
 0x196   : > { %vm1831_vm6 = vcmp.lt.s32.totalorder %v1811_v41, 2  ;;  %v1840_v23 = vsel %vm1832_vm5, %v1823_v4, %v1839_v33  ;;  %v1843_v52 = vsel %vm1833_vm4, %v1829_v17, 1326507024  ;;  %v1846_v62 = vshll.u32 %v1806_v58, 8 }
 0x197   : > { %v937_v47 = vsub.s32 0, %v6432_v45  ;;  %v1834_v63 = vsel %vm1830_vm3, %v1814_v20, %v1817_v51  ;;  %v1841_v22 = vsel %vm1831_vm6, %v1838_v56, %v1840_v23  ;;  %v1844_v13 = vsel %vm1832_vm5, %v1826_v21, %v1843_v52 }
 0x198   : > { %v1836_v53 = vsel %vm1832_vm5, %v1820_v27, %v1835_v11  ;;  %v1845_v1 = vsel %vm1831_vm6, %v1842_v6, %v1844_v13  ;;  %v6438_v38 = vmul.u32.u64.low %v1846_v62, %v1841_v22  ;;  %v6439_v5 = vmul.u32.u64.high %v1846_v62, %v1841_v22, %v6438_v38 }
 0x199   : > { %vm4728_vm7 = vcmp.lt.s32.totalorder %v4727_v55, 0  ;;  %v6442_v4 = vmul.u32.u64.low %v1846_v62, %v1845_v1  ;;  %v6443_v58 = vmul.u32.u64.high %v1846_v62, %v1845_v1, %v6442_v4  ;;  %vm985_vm10 = vcmp.gt.s32.totalorder %v984_v14, 0 }
 0x19a   : > { %v6445_v51 = vor.u32 4788187, %v846_v3  ;;  %v7943_v21 = vand.u32 2147483647, %v6360_v7  ;;  %v986_v17 = vsel %vm985_vm10, %v984_v14, 0  ;;  %v4928_v27 = vpack.c.bf16 %v3777_v10, %v3775_v36 }
 0x19b   : > { %v4694_v56 = vmin.u32 %v937_v47, %v6432_v45  ;;  %v1837_v11 = vsel %vm1831_vm6, %v1834_v63, %v1836_v53  ;;  %v988_v33 = vand.u32 31, %v986_v17  ;;  %v4930_v6 = vpack.c.bf16 %v3782_v49, %v3780_v48 }
 0x19c   : > { %v981_v20 = vand.u32 8388607, %v7943_v21  ;;  %v7944_v23 = vxor.u32 2147483648, %v6269_v31  ;;  %v7946_v3 = vxor.u32 2147483648, %v6381_v12  ;;  %v6465_v10 = vsel %vm4728_vm7, 0, %v4727_v55  ;;  %4929 = vmatpush1.bf16.msra.mxu0 %v4928_v27  ;;  %5003 = vmatpush1.bf16.msra.mxu1 %v4928_v27 }
 0x19d   : > { %v1856_v41 = vadd.s32 1, %v6439_v5  ;;  %v7948_v47 = vshll.u32 %v6294_v16, %v6366_v34  ;;  %4931 = vmatprep.subr.bf16.mxu0 %v4930_v6  ;;  %4988 = vmatprep.subr.bf16.mxu1 %v4930_v6  ;;  %v1853_v55 = vmul.u32 %v1846_v62, %v1837_v11  ;;  %vm1855_vm11 = vc.u32 %v6443_v58, %v6438_v38 }
 0x19e   : > { %v6456_v52 = vsel %vm1388_vm1, %v7944_v23, %v6269_v31  ;;  %v6463_v14 = vsel %vm1491_vm2, %v7946_v3, %v6381_v12  ;;  %v989_v22 = vsub.s32 32, %v988_v33  ;;  %v939_v36 = vclz %v4694_v56  ;;  %v430_v23 = vpop.permute.xlu1 %429  ;;  %v390_v3 = vpop.permute.xlu0 %389 }
 0x19f   : > { %7945 = vst [vmem:[#allocation38_spill] sm:$0xff] %v6456_v52  ;;  %7947 = vst [vmem:[#allocation39_spill] sm:$0xff] %v6463_v14  ;;  %v6475_v63 = vor.u32 %v6413_v59, %v7948_v47  ;;  %v1857_v53 = vsel %vm1855_vm11, %v1856_v41, %v6439_v5  ;;  %v982_v1 = vor.u32 8388608, %v981_v20  ;;  %v1771_v16 = vsub.s32 4294967266, %v6465_v10 }
 0x1a0   : > { %v1858_v34 = vadd.s32 %v1857_v53, %v1853_v55  ;;  %v992_v59 = vshrl.u32 %v7933_v9, %v989_v22  ;;  %v995_v4 = vshrl.u32 %v7924_v42, %v989_v22  ;;  %v991_v21 = vshll.u32 %v7926_v37, %v988_v33 }
 0x1a1   : > { %v994_v62 = vshll.u32 %v7933_v9, %v988_v33  ;;  %v997_v27 = vshll.u32 %v7924_v42, %v988_v33  ;;  %v998_v11 = vshrl.u32 %v7935_v26, %v989_v22  ;;  %v987_v56 = vshrl.u32 %v986_v17, 5 }
 0x1a2   : > { %v1859_v6 = vadd.s32 536870912, %v1858_v34  ;;  %v1000_v5 = vshll.u32 %v7935_v26, %v988_v33  ;;  %v1001_v20 = vshrl.u32 %v7936_v60, %v989_v22  ;;  %v4695_v41 = vadd.s32 4294967294, %v939_v36 }
 0x1a3   : > { %v993_v47 = vor.u32 %v992_v59, %v991_v21  ;;  %v996_v55 = vor.u32 %v995_v4, %v994_v62  ;;  %v999_v53 = vor.u32 %v998_v11, %v997_v27  ;;  %v1003_v12 = vshll.u32 %v7936_v60, %v988_v33 }
 0x1a4   : > { %v6491_v49 = vshrl.u32 %v1859_v6, 30  ;;  %v1002_v13 = vor.u32 %v1001_v20, %v1000_v5  ;;  %v1004_v31 = vshrl.u32 %v7915_v15, %v989_v22  ;;  %v990_v48 = vshrl.u32 %v7926_v37, %v989_v22 }
 0x1a5   : > { %v1022_v17 = vshll.u32 %v982_v1, 8  ;;  %v6497_v14 = vmul.f32 %v6334_v32, %v430_v23  ;;  %v6500_v35 = vmul.f32 %v6334_v32, %v390_v3  ;;  %vm1006_vm12 = vcmp.lt.s32.totalorder %v987_v56, 1 }
 0x1a6   : > { %7949 = vst [vmem:[#allocation40_spill] sm:$0xff] %v6491_v49  ;;  %v1861_v36 = vshll.u32 %v6491_v49, 30  ;;  %v1005_v59 = vor.u32 %v1004_v31, %v1003_v12  ;;  %vm1009_vm13 = vcmp.lt.s32.totalorder %v987_v56, 4  ;;  %vm1008_vm14 = vcmp.lt.s32.totalorder %v987_v56, 3 }
 0x1a7   : > { %v1011_v4 = vsel %vm1009_vm13, %v999_v53, 2102212464  ;;  %v1014_v21 = vsel %vm1006_vm12, %v993_v47, %v996_v55  ;;  %v1015_v33 = vsel %vm1009_vm13, %v1002_v13, 920167782  ;;  %vm4696_vm0 = vcmp.lt.s32.totalorder %v4695_v41, 0 }
 0x1a8   : > { %vm1007_vm3 = vcmp.lt.s32.totalorder %v987_v56, 2  ;;  %v1016_v62 = vsel %vm1008_vm14, %v999_v53, %v1015_v33  ;;  %v1018_v22 = vsel %vm1006_vm12, %v996_v55, %v999_v53  ;;  %v6503_v1 = vsub.s32 %v1858_v34, %v1861_v36 }
 0x1a9   : > { %v1010_v27 = vsel %vm1006_vm12, %v990_v48, %v993_v47  ;;  %v1017_v11 = vsel %vm1007_vm3, %v1014_v21, %v1016_v62  ;;  %v1019_v6 = vsel %vm1009_vm13, %v1005_v59, 1326507024  ;;  %v1012_v5 = vsel %vm1008_vm14, %v996_v55, %v1011_v4 }
 0x1aa   : > { %v1020_v20 = vsel %vm1008_vm14, %v1002_v13, %v1019_v6  ;;  %v6506_v23 = vmul.u32.u64.low %v1022_v17, %v1017_v11  ;;  %v6507_v31 = vmul.u32.u64.high %v1022_v17, %v1017_v11, %v6506_v23  ;;  %v1751_v12 = vadd.s32 %v6301_v43, %v6308_v57 }
 0x1ab   : > { %v1772_v3 = vadd.s32 127, %v1771_v16  ;;  %v1021_v49 = vsel %vm1007_vm3, %v1018_v22, %v1020_v20  ;;  %v1904_v53 = vand.u32 2139095040, %v6497_v14  ;;  %vm667_vm4 = vcmp.lt.s32.totalorder %v5929_v28, 0 }
 0x1ac   : > { %v850_v48 = vcvt.s32.f32 %v6475_v63  ;;  %v942_v34 = vsel %vm4696_vm0, 0, %v4695_v41  ;;  %v6517_v47 = vmul.u32.u64.low %v1022_v17, %v1021_v49  ;;  %v6518_v13 = vmul.u32.u64.high %v1022_v17, %v1021_v49, %v6517_v47 }
 0x1ad   : > { %vm7888_vm5 = vcmp.lt.s32.totalorder %v5950_v54, 0  ;;  %v1864_v55 = vsub.s32 0, %v6503_v1  ;;  %v1013_v43 = vsel %vm1007_vm3, %v1010_v27, %v1012_v5  ;;  %v1905_v57 = vshrl.u32 %v1904_v53, 23 }
 0x1ae   : > { %v1080_v16 = vand.u32 2139095040, %v6500_v35  ;;  %v7950_v36 = vand.u32 2147483647, %v6407_v46  ;;  %v7951_v59 = vcvt.s32.f32 %v6405_v40  ;;  %vm7889_vm6 = vcmp.lt.s32.totalorder %v6118_v61, 0 }
 0x1af   : > { %v7952_v63 = vand.u32 2147483647, %v6445_v51  ;;  %v7953_v41 = vsub.s32 32, %v6465_v10  ;;  %v1032_v33 = vadd.s32 1, %v6507_v31  ;;  %v1773_v56 = vshll.u32 %v1772_v3, 23 }
 0x1b0   : > { %v1675_v4 = vmul.f32 %v7951_v59, %v7950_v36  ;;  %v7863_v62 = vand.u32 2147483647, %v6497_v14  ;;  %v4733_v22 = vadd.s32 4294967169, %v1905_v57  ;;  %v1081_v27 = vshrl.u32 %v1080_v16, 23 }
 0x1b1   : > { %v851_v49 = vmul.f32 %v850_v48, %v7952_v63  ;;  %v1769_v21 = vshrl.u32 %v1751_v12, %v7953_v41  ;;  %v943_v11 = vsub.s32 32, %v942_v34  ;;  %v947_v46 = vsub.s32 4294967266, %v942_v34 }
 0x1b2   : > { %v1029_v6 = vmul.u32 %v1022_v17, %v1013_v43  ;;  %vm1031_vm7 = vc.u32 %v6518_v13, %v6506_v23  ;;  %v1768_v40 = vshll.u32 %v6368_v19, %v6465_v10  ;;  %v4730_v51 = vmin.u32 %v1864_v55, %v6503_v1 }
 0x1b3   : > { %v1033_v5 = vsel %vm1031_vm7, %v1032_v33, %v6507_v31  ;;  %v1911_v20 = vadd.s32 1, %v4733_v22  ;;  %v1676_v12 = vxor.u32 2147483648, %v1675_v4  ;;  %v927_v3 = vadd.s32 %v6362_v30, %v6375_v18  ;;  %v435_v33 = vpop.permute.xlu1 %434 }
 0x1b4   : > { %v1034_v53 = vadd.s32 %v1033_v5, %v1029_v6  ;;  %v4701_v48 = vadd.s32 4294967169, %v1081_v27  ;;  %v852_v47 = vxor.u32 2147483648, %v851_v49  ;;  %v6543_v57 = vor.u32 %v1769_v21, %v1768_v40 }
 0x1b5   : > { %v6545_v17 = vor.u32 4788187, %v1773_v56  ;;  %vm1912_vm10 = vcmp.gt.s32.totalorder %v1911_v20, 0  ;;  %v945_v43 = vshrl.u32 %v927_v3, %v943_v11  ;;  %v6547_v16 = vadd.s32 127, %v947_v46 }
 0x1b6   : > { %v1035_v19 = vadd.s32 536870912, %v1034_v53  ;;  %v1908_v10 = vand.u32 8388607, %v7863_v62  ;;  %v7954_v31 = vxor.u32 2147483648, %v6401_v39  ;;  %v1866_v18 = vclz %v4730_v51 }
 0x1b7   : > { %v1913_v55 = vsel %vm1912_vm10, %v1911_v20, 0  ;;  %v7864_v36 = vand.u32 2147483647, %v6500_v35  ;;  %v6561_v59 = vsel %vm7888_vm5, %v1676_v12, %v1675_v4  ;;  %v944_v63 = vshll.u32 %v6432_v45, %v942_v34 }
 0x1b8   : > { %v6556_v30 = vsel %vm667_vm4, %v7954_v31, %v6401_v39  ;;  %7956 = vst [vmem:[#allocation42_spill] sm:$0xff] %v6561_v59  ;;  %v6564_v41 = vshrl.u32 %v1035_v19, 30  ;;  %v1087_v21 = vadd.s32 1, %v4701_v48  ;;  %v6568_v56 = vsel %vm7889_vm6, %v852_v47, %v851_v49 }
 0x1b9   : > { %7955 = vst [vmem:[#allocation41_spill] sm:$0xff] %v6556_v30  ;;  %7958 = vst [vmem:[#allocation44_spill] sm:$0xff] %v6568_v56  ;;  %v1775_v39 = vand.u32 2147483647, %v6545_v17  ;;  %v1777_v22 = vcvt.s32.f32 %v6543_v57  ;;  %v1915_v27 = vand.u32 31, %v1913_v55  ;;  %v6572_v11 = vor.u32 %v945_v43, %v944_v63 }
 0x1ba   : > { %7957 = vst [vmem:[#allocation43_spill] sm:$0xff] %v6564_v41  ;;  %v949_v4 = vshll.u32 %v6547_v16, 23  ;;  %v1037_v46 = vshll.u32 %v6564_v41, 30  ;;  %v1909_v45 = vor.u32 8388608, %v1908_v10  ;;  %v4731_v34 = vadd.s32 4294967294, %v1866_v18 }
 0x1bb   : > { %v1916_v6 = vsub.s32 32, %v1915_v27  ;;  %v1084_v40 = vand.u32 8388607, %v7864_v36  ;;  %v6579_v49 = vmul.f32 %v6334_v32, %v435_v33  ;;  %v1914_v51 = vshrl.u32 %v1913_v55, 5 }
 0x1bc   : > { %v1918_v5 = vshll.u32 %v7926_v37, %v1915_v27  ;;  %v1921_v20 = vshll.u32 %v7933_v9, %v1915_v27  ;;  %vm1088_vm11 = vcmp.gt.s32.totalorder %v1087_v21, 0  ;;  %v1924_v48 = vshll.u32 %v7924_v42, %v1915_v27 }
 0x1bd   : > { %7959 = vst [vmem:[#allocation45_spill] sm:$0xff] %v6579_v49  ;;  %v1919_v12 = vshrl.u32 %v7933_v9, %v1916_v6  ;;  %v1922_v3 = vshrl.u32 %v7924_v42, %v1916_v6  ;;  %v1925_v47 = vshrl.u32 %v7935_v26, %v1916_v6  ;;  %v6587_v57 = vsub.s32 %v1034_v53, %v1037_v46 }
 0x1be   : > { %v1927_v17 = vshll.u32 %v7935_v26, %v1915_v27  ;;  %v1928_v43 = vshrl.u32 %v7936_v60, %v1916_v6  ;;  %v1930_v16 = vshll.u32 %v7936_v60, %v1915_v27  ;;  %v1931_v18 = vshrl.u32 %v7915_v15, %v1916_v6 }
 0x1bf   : > { %v1920_v19 = vor.u32 %v1919_v12, %v1918_v5  ;;  %v1923_v10 = vor.u32 %v1922_v3, %v1921_v20  ;;  %v1926_v31 = vor.u32 %v1925_v47, %v1924_v48  ;;  %vm4732_vm12 = vcmp.lt.s32.totalorder %v4731_v34, 0 }
 0x1c0   : > { %v1929_v55 = vor.u32 %v1928_v43, %v1927_v17  ;;  %v1949_v63 = vshll.u32 %v1909_v45, 8  ;;  %v1085_v33 = vor.u32 8388608, %v1084_v40  ;;  %v1932_v62 = vor.u32 %v1931_v18, %v1930_v16 }
 0x1c1   : > { %vm1933_vm13 = vcmp.lt.s32.totalorder %v1914_v51, 1  ;;  %vm1936_vm14 = vcmp.lt.s32.totalorder %v1914_v51, 4  ;;  %v1089_v53 = vsel %vm1088_vm11, %v1087_v21, 0  ;;  %v1040_v46 = vsub.s32 0, %v6587_v57 }
 0x1c2   : > { %v1917_v36 = vshrl.u32 %v7926_v37, %v1916_v6  ;;  %v1938_v41 = vsel %vm1936_vm14, %v1926_v31, 2102212464  ;;  %v1941_v27 = vsel %vm1933_vm13, %v1920_v19, %v1923_v10  ;;  %vm1935_vm0 = vcmp.lt.s32.totalorder %v1914_v51, 3 }
 0x1c3   : > { %v1942_v5 = vsel %vm1936_vm14, %v1929_v55, 920167782  ;;  %v1945_v20 = vsel %vm1933_vm13, %v1923_v10, %v1926_v31  ;;  %v1946_v12 = vsel %vm1936_vm14, %v1932_v62, 1326507024  ;;  %vm1934_vm3 = vcmp.lt.s32.totalorder %v1914_v51, 2 }
 0x1c4   : > { %v1937_v3 = vsel %vm1933_vm13, %v1917_v36, %v1920_v19  ;;  %v1939_v48 = vsel %vm1935_vm0, %v1923_v10, %v1938_v41  ;;  %v1943_v45 = vsel %vm1935_vm0, %v1926_v31, %v1942_v5  ;;  %v6597_v40 = vsel %vm4732_vm12, 0, %v4731_v34 }
 0x1c5   : > { %v1944_v47 = vsel %vm1934_vm3, %v1941_v27, %v1943_v45  ;;  %v1947_v17 = vsel %vm1935_vm0, %v1929_v55, %v1946_v12  ;;  %v2007_v21 = vand.u32 2139095040, %v6579_v49  ;;  %v4698_v43 = vmin.u32 %v1040_v46, %v6587_v57 }
 0x1c6   : > { %v1948_v6 = vsel %vm1934_vm3, %v1945_v20, %v1947_v17  ;;  %v6601_v16 = vmul.u32.u64.low %v1949_v63, %v1944_v47  ;;  %v6602_v18 = vmul.u32.u64.high %v1949_v63, %v1944_v47, %v6601_v16  ;;  %v1940_v59 = vsel %vm1934_vm3, %v1937_v3, %v1939_v48 }
 0x1c7   : > { %v6605_v62 = vmul.u32.u64.low %v1949_v63, %v1948_v6  ;;  %v6606_v51 = vmul.u32.u64.high %v1949_v63, %v1948_v6, %v6605_v62  ;;  %v1091_v36 = vand.u32 31, %v1089_v53  ;;  %v6608_v41 = vmul.f32 %v1777_v22, %v1775_v39 }
 0x1c8   : > { %v6610_v34 = vor.u32 4788187, %v949_v4  ;;  %v6615_v10 = vadd.s32 %v6438_v38, %v6443_v58  ;;  %v1874_v31 = vsub.s32 4294967266, %v6597_v40  ;;  %v6618_v46 = vshll.u32 %v1085_v33, 8 }
 0x1c9   : > { %v1092_v55 = vsub.s32 32, %v1091_v36  ;;  %v1042_v5 = vclz %v4698_v43  ;;  %v1956_v20 = vmul.u32 %v1949_v63, %v1940_v59  ;;  %v1959_v39 = vadd.s32 1, %v6602_v18 }
 0x1ca   : > { %v2008_v22 = vshrl.u32 %v2007_v21, 23  ;;  %vm1958_vm7 = vc.u32 %v6606_v51, %v6601_v16  ;;  %v1090_v4 = vshrl.u32 %v1089_v53, 5  ;;  %v1094_v12 = vshll.u32 %v7926_v37, %v1091_v36 }
 0x1cb   : > { %v1095_v38 = vshrl.u32 %v7933_v9, %v1092_v55  ;;  %v1960_v58 = vsel %vm1958_vm7, %v1959_v39, %v6602_v18  ;;  %v1097_v33 = vshll.u32 %v7933_v9, %v1091_v36  ;;  %v1098_v3 = vshrl.u32 %v7924_v42, %v1092_v55 }
 0x1cc   : > { %v1100_v48 = vshll.u32 %v7924_v42, %v1091_v36  ;;  %v1961_v59 = vadd.s32 %v1960_v58, %v1956_v20  ;;  %v1101_v63 = vshrl.u32 %v7935_v26, %v1092_v55  ;;  %v1103_v45 = vshll.u32 %v7935_v26, %v1091_v36 }
 0x1cd   : > { %v1104_v47 = vshrl.u32 %v7936_v60, %v1092_v55  ;;  %v1870_v53 = vsub.s32 32, %v6597_v40  ;;  %v1096_v17 = vor.u32 %v1095_v38, %v1094_v12  ;;  %v1099_v21 = vor.u32 %v1098_v3, %v1097_v33 }
 0x1ce   : > { %v1106_v43 = vshll.u32 %v7936_v60, %v1091_v36  ;;  %v1962_v6 = vadd.s32 536870912, %v1961_v59  ;;  %v1102_v18 = vor.u32 %v1101_v63, %v1100_v48  ;;  %v1107_v39 = vshrl.u32 %v7915_v15, %v1092_v55 }
 0x1cf   : > { %v1105_v62 = vor.u32 %v1104_v47, %v1103_v45  ;;  %v1875_v19 = vadd.s32 127, %v1874_v31  ;;  %v4699_v27 = vadd.s32 4294967294, %v1042_v5  ;;  %vm1112_vm10 = vcmp.lt.s32.totalorder %v1090_v4, 4 }
 0x1d0   : > { %v4737_v20 = vadd.s32 4294967169, %v2008_v22  ;;  %v6636_v58 = vshrl.u32 %v1962_v6, 30  ;;  %v1108_v54 = vor.u32 %v1107_v39, %v1106_v43  ;;  %vm1109_vm11 = vcmp.lt.s32.totalorder %v1090_v4, 1  ;;  %v3779_v6 = vld [vmem:[#allocation3 + $0x40] sm:$0xff]  ;;  %v3781_v39 = vld [vmem:[#allocation3 + $0x50] sm:$0xff] }
 0x1d1   : > { %v1114_v56 = vsel %vm1112_vm10, %v1102_v18, 2102212464  ;;  %v1093_v12 = vshrl.u32 %v7926_v37, %v1092_v55  ;;  %vm1111_vm12 = vcmp.lt.s32.totalorder %v1090_v4, 3  ;;  %v1117_v38 = vsel %vm1109_vm11, %v1096_v17, %v1099_v21 }
 0x1d2   : > { %7960 = vst [vmem:[#allocation46_spill] sm:$0xff] %v6636_v58  ;;  %v1118_v36 = vsel %vm1112_vm10, %v1105_v62, 920167782  ;;  %v1964_v33 = vshll.u32 %v6636_v58, 30  ;;  %vm1110_vm13 = vcmp.lt.s32.totalorder %v1090_v4, 2  ;;  %v1121_v31 = vsel %vm1109_vm11, %v1099_v21, %v1102_v18 }
 0x1d3   : > { %v1119_v3 = vsel %vm1111_vm12, %v1102_v18, %v1118_v36  ;;  %v1113_v5 = vsel %vm1109_vm11, %v1093_v12, %v1096_v17  ;;  %v1115_v48 = vsel %vm1111_vm12, %v1099_v21, %v1114_v56  ;;  %v1122_v63 = vsel %vm1112_vm10, %v1108_v54, 1326507024  ;;  %v395_v12 = vpop.permute.xlu0 %394  ;;  %v3786_v36 = vld [vmem:[#allocation3 + $0x78] sm:$0xff] }
 0x1d4   : > { %v1120_v22 = vsel %vm1110_vm13, %v1117_v38, %v1119_v3  ;;  %v6644_v45 = vsub.s32 %v1961_v59, %v1964_v33  ;;  %v1123_v47 = vsel %vm1111_vm12, %v1105_v62, %v1122_v63  ;;  %v7961_v56 = vand.u32 2147483647, %v6579_v49  ;;  %v3784_v38 = vld [vmem:[#allocation3 + $0x68] sm:$0xff] }
 0x1d5   : > { %v6647_v55 = vmul.u32.u64.low %v6618_v46, %v1120_v22  ;;  %v6648_v43 = vmul.u32.u64.high %v6618_v46, %v1120_v22, %v6647_v55  ;;  %v1124_v18 = vsel %vm1110_vm13, %v1121_v31, %v1123_v47  ;;  %v2014_v21 = vadd.s32 1, %v4737_v20 }
 0x1d6   : > { %v2011_v17 = vand.u32 8388607, %v7961_v56  ;;  %vm4700_vm14 = vcmp.lt.s32.totalorder %v4699_v27, 0  ;;  %v1967_v54 = vsub.s32 0, %v6644_v45  ;;  %v1872_v33 = vshrl.u32 %v6615_v10, %v1870_v53 }
 0x1d7   : > { %v6657_v59 = vmul.u32.u64.low %v6618_v46, %v1124_v18  ;;  %v6658_v62 = vmul.u32.u64.high %v6618_v46, %v1124_v18, %v6657_v59  ;;  %v1116_v3 = vsel %vm1110_vm13, %v1113_v5, %v1115_v48  ;;  %vm2015_vm0 = vcmp.gt.s32.totalorder %v2014_v21, 0 }
 0x1d8   : > { %v4932_v31 = vpack.c.bf16 %v3781_v39, %v3779_v6  ;;  %v1876_v22 = vshll.u32 %v1875_v19, 23  ;;  %v4734_v63 = vmin.u32 %v1967_v54, %v6644_v45  ;;  %v1135_v20 = vadd.s32 1, %v6648_v43 }
 0x1d9   : > { %v2016_v47 = vsel %vm2015_vm0, %v2014_v21, 0  ;;  %v6665_v56 = vsel %vm4700_vm14, 0, %v4699_v27  ;;  %v6668_v59 = vmul.f32 %v6334_v32, %v395_v12  ;;  %v4934_v58 = vpack.c.bf16 %v3786_v36, %v3784_v38 }
 0x1da   : > { %v2018_v18 = vand.u32 31, %v2016_v47  ;;  %4933 = vmatpush1.bf16.msra.mxu0 %v4932_v31  ;;  %5004 = vmatpush1.bf16.msra.mxu1 %v4932_v31  ;;  %v1871_v10 = vshll.u32 %v6503_v1, %v6597_v40  ;;  %v6674_v19 = vadd.s32 %v6506_v23, %v6518_v13  ;;  %v1132_v4 = vmul.u32 %v6618_v46, %v1116_v3 }
 0x1db   : > { %7962 = vst [vmem:[#allocation47_spill] sm:$0xff] %v6668_v59  ;;  %vm1134_vm3 = vc.u32 %v6658_v62, %v6647_v55  ;;  %v1969_v27 = vclz %v4734_v63  ;;  %v2012_v32 = vor.u32 8388608, %v2011_v17  ;;  %4935 = vmatprep.subr.bf16.mxu0 %v4934_v58  ;;  %4989 = vmatprep.subr.bf16.mxu1 %v4934_v58  ;;  %v6682_v6 = vor.u32 4788187, %v1876_v22 }
 0x1dc   : > { %v1136_v53 = vsel %vm1134_vm3, %v1135_v20, %v6648_v43  ;;  %v2019_v5 = vsub.s32 32, %v2018_v18  ;;  %v6680_v48 = vor.u32 %v1872_v33, %v1871_v10  ;;  %v1050_v1 = vsub.s32 4294967266, %v6665_v56 }
 0x1dd   : > { %v1137_v23 = vadd.s32 %v1136_v53, %v1132_v4  ;;  %v1183_v39 = vand.u32 2139095040, %v6668_v59  ;;  %v2021_v17 = vshll.u32 %v7926_v37, %v2018_v18  ;;  %v2024_v58 = vshll.u32 %v7933_v9, %v2018_v18 }
 0x1de   : > { %v2022_v13 = vshrl.u32 %v7933_v9, %v2019_v5  ;;  %v2025_v40 = vshrl.u32 %v7924_v42, %v2019_v5  ;;  %v2028_v46 = vshrl.u32 %v7935_v26, %v2019_v5  ;;  %v2031_v21 = vshrl.u32 %v7936_v60, %v2019_v5 }
 0x1df   : > { %v1138_v43 = vadd.s32 536870912, %v1137_v23  ;;  %v4735_v54 = vadd.s32 4294967294, %v1969_v27  ;;  %v2017_v12 = vshrl.u32 %v2016_v47, 5  ;;  %v2027_v38 = vshll.u32 %v7924_v42, %v2018_v18 }
 0x1e0   : > { %v2030_v36 = vshll.u32 %v7935_v26, %v2018_v18  ;;  %v1046_v33 = vsub.s32 32, %v6665_v56  ;;  %v2023_v31 = vor.u32 %v2022_v13, %v2021_v17  ;;  %v2026_v22 = vor.u32 %v2025_v40, %v2024_v58 }
 0x1e1   : > { %v6695_v3 = vshrl.u32 %v1138_v43, 30  ;;  %v2029_v63 = vor.u32 %v2028_v46, %v2027_v38  ;;  %v2033_v10 = vshll.u32 %v7936_v60, %v2018_v18  ;;  %v2034_v4 = vshrl.u32 %v7915_v15, %v2019_v5 }
 0x1e2   : > { %v2032_v20 = vor.u32 %v2031_v21, %v2030_v36  ;;  %v6699_v53 = vadd.s32 127, %v1050_v1  ;;  %v6702_v27 = vshll.u32 %v2012_v32, 8  ;;  %vm4736_vm7 = vcmp.lt.s32.totalorder %v4735_v54, 0 }
 0x1e3   : > { %7963 = vst [vmem:[#allocation48_spill] sm:$0xff] %v6695_v3  ;;  %v1140_v47 = vshll.u32 %v6695_v3, 30  ;;  %v2035_v61 = vor.u32 %v2034_v4, %v2033_v10  ;;  %vm2036_vm10 = vcmp.lt.s32.totalorder %v2017_v12, 1  ;;  %v1184_v43 = vshrl.u32 %v1183_v39, 23  ;;  %v3785_v3 = vld [vmem:[#allocation3 + $0x70] sm:$0xff] }
 0x1e4   : > { %v2020_v40 = vshrl.u32 %v7926_v37, %v2019_v5  ;;  %vm2039_vm11 = vcmp.lt.s32.totalorder %v2017_v12, 4  ;;  %v2044_v18 = vsel %vm2036_vm10, %v2023_v31, %v2026_v22  ;;  %v2048_v1 = vsel %vm2036_vm10, %v2026_v22, %v2029_v63 }
 0x1e5   : > { %v6705_v13 = vsub.s32 %v1137_v23, %v1140_v47  ;;  %v2041_v46 = vsel %vm2039_vm11, %v2029_v63, 2102212464  ;;  %v2045_v17 = vsel %vm2039_vm11, %v2032_v20, 920167782  ;;  %v2049_v58 = vsel %vm2039_vm11, %v2035_v61, 1326507024 }
 0x1e6   : > { %v6708_v21 = vsel %vm4736_vm7, 0, %v4735_v54  ;;  %vm2037_vm12 = vcmp.lt.s32.totalorder %v2017_v12, 2  ;;  %vm2038_vm13 = vcmp.lt.s32.totalorder %v2017_v12, 3  ;;  %v2040_v38 = vsel %vm2036_vm10, %v2020_v40, %v2023_v31  ;;  %v3783_v23 = vld [vmem:[#allocation3 + $0x60] sm:$0xff]  ;;  %v3788_v61 = vld [vmem:[#allocation3 + $0x88] sm:$0xff]  ;;  %v3790_v54 = vld [vmem:[#allocation3 + $0x98] sm:$0xff] }
 0x1e7   : > { %v1143_v32 = vsub.s32 0, %v6705_v13  ;;  %v2046_v36 = vsel %vm2038_vm13, %v2029_v63, %v2045_v17  ;;  %v2050_v10 = vsel %vm2038_vm13, %v2032_v20, %v2049_v58  ;;  %v4705_v39 = vadd.s32 4294967169, %v1184_v43  ;;  %v3787_v20 = vld [vmem:[#allocation3 + $0x80] sm:$0xff]  ;;  %v3789_v43 = vld [vmem:[#allocation3 + $0x90] sm:$0xff]  ;;  %v3792_v58 = vld [vmem:[#allocation3 + $0xa8] sm:$0xff] }
 0x1e8   : > { %v2042_v5 = vsel %vm2038_vm13, %v2026_v22, %v2041_v46  ;;  %v2047_v47 = vsel %vm2037_vm12, %v2044_v18, %v2046_v36  ;;  %v2051_v49 = vsel %vm2037_vm12, %v2048_v1, %v2050_v10  ;;  %v1047_v22 = vshll.u32 %v6587_v57, %v6665_v56 }
 0x1e9   : > { %v4702_v4 = vmin.u32 %v1143_v32, %v6705_v13  ;;  %v6715_v30 = vmul.u32.u64.low %v6702_v27, %v2051_v49  ;;  %v6716_v28 = vmul.u32.u64.high %v6702_v27, %v2051_v49, %v6715_v30  ;;  %v1048_v40 = vshrl.u32 %v6674_v19, %v1046_v33  ;;  %v3794_v32 = vld [vmem:[#allocation3 + $0xb8] sm:$0xff] }
 0x1ea   : > { %v6719_v31 = vmul.u32.u64.low %v6702_v27, %v2047_v47  ;;  %v6720_v63 = vmul.u32.u64.high %v6702_v27, %v2047_v47, %v6719_v31  ;;  %v1190_v46 = vadd.s32 1, %v4705_v39  ;;  %v1052_v17 = vshll.u32 %v6699_v53, 23  ;;  %v3791_v39 = vld [vmem:[#allocation3 + $0xa0] sm:$0xff] }
 0x1eb   : > { %v1145_v18 = vclz %v4702_v4  ;;  %v2043_v1 = vsel %vm2037_vm12, %v2040_v38, %v2042_v5  ;;  %v4936_v49 = vpack.c.bf16 %v3785_v3, %v3783_v23  ;;  %v4938_v30 = vpack.c.bf16 %v3790_v54, %v3788_v61  ;;  %v3793_v23 = vld [vmem:[#allocation3 + $0xb0] sm:$0xff] }
 0x1ec   : > { %v1977_v36 = vsub.s32 4294967266, %v6708_v21  ;;  %v7964_v10 = vand.u32 2147483647, %v6668_v59  ;;  %vm1191_vm14 = vcmp.gt.s32.totalorder %v1190_v46, 0  ;;  %v4940_v57 = vpack.c.bf16 %v3789_v43, %v3787_v20  ;;  %v3796_v20 = vld [vmem:[#allocation3 + $0xc8] sm:$0xff] }
 0x1ed   : > { %v4703_v56 = vadd.s32 4294967294, %v1145_v18  ;;  %vm2061_vm0 = vc.u32 %v6716_v28, %v6719_v31  ;;  %v2062_v19 = vadd.s32 1, %v6720_v63  ;;  %v1192_v12 = vsel %vm1191_vm14, %v1190_v46, 0  ;;  %4937 = vmatpush1.bf16.msra.mxu0 %v4936_v49  ;;  %5005 = vmatpush1.bf16.msra.mxu1 %v4936_v49 }
 0x1ee   : > { %v6731_v47 = vand.u32 8388607, %v7964_v10  ;;  %v2059_v3 = vmul.u32 %v6702_v27, %v2043_v1  ;;  %v1194_v53 = vand.u32 31, %v1192_v12  ;;  %4939 = vmatprep.subr.bf16.mxu0 %v4938_v30  ;;  %4990 = vmatprep.subr.bf16.mxu1 %v4938_v30  ;;  %v4942_v38 = vpack.c.bf16 %v3794_v32, %v3792_v58  ;;  %v3798_v27 = vld [vmem:[#allocation3 + $0xd8] sm:$0xff]  ;;  %v3795_v30 = vld [vmem:[#allocation3 + $0xc0] sm:$0xff]  ;;  %v3797_v58 = vld [vmem:[#allocation3 + $0xd0] sm:$0xff] }
 0x1ef   : > { %v6738_v4 = vor.u32 %v1048_v40, %v1047_v22  ;;  %v6740_v5 = vor.u32 4788187, %v1052_v17  ;;  %v1957_v61 = vadd.s32 %v6601_v16, %v6606_v51  ;;  %v2063_v54 = vsel %vm2061_vm0, %v2062_v19, %v6720_v63 }
 0x1f0   : > { %v1973_v43 = vsub.s32 32, %v6708_v21  ;;  %v2064_v46 = vadd.s32 %v2063_v54, %v2059_v3  ;;  %v1188_v22 = vor.u32 8388608, %v6731_v47  ;;  %v6752_v40 = vadd.s32 127, %v1977_v36 }
 0x1f1   : > { %vm4704_vm3 = vcmp.lt.s32.totalorder %v4703_v56, 0  ;;  %v1195_v17 = vsub.s32 32, %v1194_v53  ;;  %4941 = vmatpush1.bf16.msra.mxu0 %v4940_v57  ;;  %5006 = vmatpush1.bf16.msra.mxu1 %v4940_v57  ;;  %v4944_v16 = vpack.c.bf16 %v3793_v23, %v3791_v39  ;;  %v1197_v63 = vshll.u32 %v7926_v37, %v1194_v53 }
 0x1f2   : > { %v2065_v51 = vadd.s32 536870912, %v2064_v46  ;;  %v1200_v1 = vshll.u32 %v7933_v9, %v1194_v53  ;;  %4943 = vmatprep.subr.bf16.mxu0 %v4942_v38  ;;  %4991 = vmatprep.subr.bf16.mxu1 %v4942_v38  ;;  %v4946_v49 = vpack.c.bf16 %v3798_v27, %v3796_v20  ;;  %v1203_v10 = vshll.u32 %v7924_v42, %v1194_v53 }
 0x1f3   : > { %v1198_v32 = vshrl.u32 %v7933_v9, %v1195_v17  ;;  %v1201_v36 = vshrl.u32 %v7924_v42, %v1195_v17  ;;  %v1204_v47 = vshrl.u32 %v7935_v26, %v1195_v17  ;;  %v1193_v19 = vshrl.u32 %v1192_v12, 5 }
 0x1f4   : > { %v6760_v57 = vshrl.u32 %v2065_v51, 30  ;;  %v1206_v3 = vshll.u32 %v7935_v26, %v1194_v53  ;;  %v1207_v39 = vshrl.u32 %v7936_v60, %v1195_v17  ;;  %v4948_v20 = vpack.c.bf16 %v3797_v58, %v3795_v30  ;;  %v3799_v30 = vld [vmem:[#allocation3 + $0xe0] sm:$0xff] }
 0x1f5   : > { %v1199_v23 = vor.u32 %v1198_v32, %v1197_v63  ;;  %v1202_v38 = vor.u32 %v1201_v36, %v1200_v1  ;;  %v1205_v54 = vor.u32 %v1204_v47, %v1203_v10  ;;  %4945 = vmatpush1.bf16.msra.mxu0 %v4944_v16  ;;  %v1975_v27 = vshrl.u32 %v1957_v61, %v1973_v43  ;;  %v3801_v10 = vld [vmem:[#allocation3 + $0xf0] sm:$0xff]  ;;  %v3804_v47 = vld [vmem:[#allocation3 + $0x108] sm:$0xff] }
 0x1f6   : > { %v1979_v33 = vshll.u32 %v6752_v40, 23  ;;  %v2067_v18 = vshll.u32 %v6760_v57, 30  ;;  %v1208_v59 = vor.u32 %v1207_v39, %v1206_v3  ;;  %4947 = vmatprep.subr.bf16.mxu0 %v4946_v49  ;;  %5007 = vmatpush1.bf16.msra.mxu1 %v4944_v16  ;;  %v6767_v51 = vsel %vm4704_vm3, 0, %v4703_v56  ;;  %v3806_v3 = vld [vmem:[#allocation3 + $0x118] sm:$0xff] }
 0x1f7   : > { %v1209_v12 = vshll.u32 %v7936_v60, %v1194_v53  ;;  %v1210_v52 = vshrl.u32 %v7915_v15, %v1195_v17  ;;  %v6771_v63 = vshll.u32 %v1188_v22, 8  ;;  %4992 = vmatprep.subr.bf16.mxu1 %v4946_v49  ;;  %vm1212_vm7 = vcmp.lt.s32.totalorder %v1193_v19, 1 }
 0x1f8   : > { %v6773_v1 = vsub.s32 %v2064_v46, %v2067_v18  ;;  %vm1214_vm10 = vcmp.lt.s32.totalorder %v1193_v19, 3  ;;  %vm1215_vm11 = vcmp.lt.s32.totalorder %v1193_v19, 4  ;;  %v1220_v40 = vsel %vm1212_vm7, %v1199_v23, %v1202_v38  ;;  %v3800_v18 = vld [vmem:[#allocation3 + $0xe8] sm:$0xff]  ;;  %v3802_v46 = vld [vmem:[#allocation3 + $0xf8] sm:$0xff] }
 0x1f9   : > { %v1211_v61 = vor.u32 %v1210_v52, %v1209_v12  ;;  %v1217_v43 = vsel %vm1215_vm11, %v1205_v54, 2102212464  ;;  %v1221_v56 = vsel %vm1215_vm11, %v1208_v59, 920167782  ;;  %4949 = vmatpush1.bf16.msra.mxu0 %v4948_v20  ;;  %v1196_v15 = vshrl.u32 %v7926_v37, %v1195_v17 }
 0x1fa   : > { %v2070_v60 = vsub.s32 0, %v6773_v1  ;;  %vm1213_vm12 = vcmp.lt.s32.totalorder %v1193_v19, 2  ;;  %v1222_v53 = vsel %vm1214_vm10, %v1205_v54, %v1221_v56  ;;  %5008 = vmatpush1.bf16.msra.mxu1 %v4948_v20  ;;  %v1153_v22 = vsub.s32 4294967266, %v6767_v51 }
 0x1fb   : > { %v1223_v52 = vsel %vm1213_vm12, %v1220_v40, %v1222_v53  ;;  %v1224_v16 = vsel %vm1212_vm7, %v1202_v38, %v1205_v54  ;;  %v1225_v49 = vsel %vm1215_vm11, %v1211_v61, 1326507024  ;;  %v1216_v32 = vsel %vm1212_vm7, %v1196_v15, %v1199_v23 }
 0x1fc   : > { %v4738_v58 = vmin.u32 %v2070_v60, %v6773_v1  ;;  %v1218_v17 = vsel %vm1214_vm10, %v1202_v38, %v1217_v43  ;;  %v1226_v36 = vsel %vm1214_vm10, %v1208_v59, %v1225_v49  ;;  %v4950_v54 = vpack.c.bf16 %v3802_v46, %v3800_v18  ;;  %v3803_v38 = vld [vmem:[#allocation3 + $0x100] sm:$0xff]  ;;  %v3805_v59 = vld [vmem:[#allocation3 + $0x110] sm:$0xff] }
 0x1fd   : > { %v1227_v39 = vsel %vm1213_vm12, %v1224_v16, %v1226_v36  ;;  %v6791_v20 = vmul.u32.u64.low %v6771_v63, %v1223_v52  ;;  %v6792_v12 = vmul.u32.u64.high %v6771_v63, %v1223_v52, %v6791_v20  ;;  %v1149_v61 = vsub.s32 32, %v6767_v51  ;;  %v3808_v52 = vld [vmem:[#allocation3 + $0x128] sm:$0xff]  ;;  %v3810_v16 = vld [vmem:[#allocation3 + $0x138] sm:$0xff] }
 0x1fe   : > { %v2072_v40 = vclz %v4738_v58  ;;  %v6797_v23 = vmul.u32.u64.low %v6771_v63, %v1227_v39  ;;  %v6798_v56 = vmul.u32.u64.high %v6771_v63, %v1227_v39, %v6797_v23  ;;  %v1154_v43 = vadd.s32 127, %v1153_v22  ;;  %4951 = vmatprep.subr.bf16.mxu0 %v4950_v54  ;;  %4993 = vmatprep.subr.bf16.mxu1 %v4950_v54  ;;  %v3814_v36 = vld [vmem:[#allocation3 + $0x158] sm:$0xff] }
 0x1ff   : > { %v1219_v60 = vsel %vm1213_vm12, %v1216_v32, %v1218_v17  ;;  %v4952_v15 = vpack.c.bf16 %v3801_v10, %v3799_v30  ;;  %v4954_v53 = vpack.c.bf16 %v3806_v3, %v3804_v47  ;;  %v1878_v18 = vand.u32 2147483647, %v6682_v6  ;;  %v3811_v23 = vld [vmem:[#allocation3 + $0x140] sm:$0xff] }
 0x200   : > { %v1054_v46 = vand.u32 2147483647, %v6740_v5  ;;  %v1056_v49 = vcvt.s32.f32 %v6738_v4  ;;  %v1133_v58 = vadd.s32 %v6647_v55, %v6658_v62  ;;  %v7965_v22 = vshll.u32 %v6644_v45, %v6708_v21  ;;  %v3807_v62 = vld [vmem:[#allocation3 + $0x120] sm:$0xff]  ;;  %v3809_v45 = vld [vmem:[#allocation3 + $0x130] sm:$0xff] }
 0x201   : > { %v6811_v32 = vor.u32 4788187, %v1979_v33  ;;  %v1238_v30 = vadd.s32 1, %v6792_v12  ;;  %4953 = vmatpush1.bf16.msra.mxu0 %v4952_v15  ;;  %5009 = vmatpush1.bf16.msra.mxu1 %v4952_v15  ;;  %v4956_v17 = vpack.c.bf16 %v3805_v59, %v3803_v38  ;;  %v4739_v6 = vadd.s32 4294967294, %v2072_v40 }
 0x202   : > { %v6809_v19 = vor.u32 %v1975_v27, %v7965_v22  ;;  %v1235_v5 = vmul.u32 %v6771_v63, %v1219_v60  ;;  %vm1237_vm13 = vc.u32 %v6798_v56, %v6791_v20  ;;  %4955 = vmatprep.subr.bf16.mxu0 %v4954_v53  ;;  %4994 = vmatprep.subr.bf16.mxu1 %v4954_v53  ;;  %v1155_v4 = vshll.u32 %v1154_v43, 23  ;;  %v3812_v27 = vld [vmem:[#allocation3 + $0x148] sm:$0xff]  ;;  %v3813_v43 = vld [vmem:[#allocation3 + $0x150] sm:$0xff]  ;;  %v3818_v60 = vld [vmem:[#allocation3 + $0x178] sm:$0xff] }
 0x203   : > { %v4958_v55 = vpack.c.bf16 %v3810_v16, %v3808_v52  ;;  %v1151_v21 = vshrl.u32 %v1133_v58, %v1149_v61  ;;  %v1239_v33 = vsel %vm1237_vm13, %v1238_v30, %v6792_v12  ;;  %v459_v10 = vand.u32 2147483647, %v5832_v24  ;;  %v3815_v52 = vld [vmem:[#allocation3 + $0x160] sm:$0xff]  ;;  %v3817_v16 = vld [vmem:[#allocation3 + $0x170] sm:$0xff] }
 0x204   : > { %v1779_v47 = vxor.u32 2147483648, %v6608_v41  ;;  %v7966_v63 = vand.u32 2147483647, %v6610_v34  ;;  %v7967_v3 = vcvt.s32.f32 %v6572_v11  ;;  %v7968_v54 = vcvt.s32.f32 %v6680_v48  ;;  %v3816_v11 = vld [vmem:[#allocation3 + $0x168] sm:$0xff] }
 0x205   : > { %v1240_v61 = vadd.s32 %v1239_v33, %v1235_v5  ;;  %v6830_v38 = vmul.f32 %v1056_v49, %v1054_v46  ;;  %v1983_v12 = vcvt.s32.f32 %v6809_v19  ;;  %v1150_v59 = vshll.u32 %v6705_v13, %v6767_v51  ;;  %4957 = vmatpush1.bf16.msra.mxu0 %v4956_v17  ;;  %5010 = vmatpush1.bf16.msra.mxu1 %v4956_v17  ;;  %v3820_v51 = vld [vmem:[#allocation3 + $0x188] sm:$0xff]  ;;  %v3822_v49 = vld [vmem:[#allocation3 + $0x198] sm:$0xff]  ;;  %v3827_v19 = vld [vmem:[#allocation3 + $0x1c0] sm:$0xff] }
 0x206   : > { %v6824_v39 = vmul.f32 %v7967_v3, %v7966_v63  ;;  %v6828_v40 = vmul.f32 %v7968_v54, %v1878_v18  ;;  %v4960_v34 = vpack.c.bf16 %v3809_v45, %v3807_v62  ;;  %v1981_v15 = vand.u32 2147483647, %v6811_v32  ;;  %4959 = vmatprep.subr.bf16.mxu0 %v4958_v55  ;;  %4995 = vmatprep.subr.bf16.mxu1 %v4958_v55  ;;  %v3819_v62 = vld [vmem:[#allocation3 + $0x180] sm:$0xff] }
 0x207   : > { %vm4740_vm14 = vcmp.lt.s32.totalorder %v4739_v6, 0  ;;  %v1241_v48 = vadd.s32 536870912, %v1240_v61  ;;  %v4962_v53 = vpack.c.bf16 %v3814_v36, %v3812_v27  ;;  %v6836_v18 = vor.u32 %v1151_v21, %v1150_v59 }
 0x208   : > { %v6838_v46 = vor.u32 4788187, %v1155_v4  ;;  %v6842_v13 = vadd.s32 %v6719_v31, %v6716_v28  ;;  %v466_v58 = vand.u32 8388607, %v459_v10  ;;  %v4964_v30 = vpack.c.bf16 %v3813_v43, %v3811_v23  ;;  %v3821_v28 = vld [vmem:[#allocation3 + $0x190] sm:$0xff] }
 0x209   : > { %v6846_v22 = vshrl.u32 %v1241_v48, 30  ;;  %v4966_v17 = vpack.c.bf16 %v3818_v60, %v3816_v11  ;;  %v476_v5 = vshll.u32 %v7926_v37, %v5926_v29  ;;  %v6851_v55 = vsel %vm4740_vm14, 0, %v4739_v6  ;;  %4961 = vmatpush1.bf16.msra.mxu0 %v4960_v34  ;;  %5011 = vmatpush1.bf16.msra.mxu1 %v4960_v34 }
 0x20a   : > { %v477_v31 = vshrl.u32 %v7933_v9, %v5941_v44  ;;  %v479_v45 = vshll.u32 %v7933_v9, %v5926_v29  ;;  %v480_v21 = vshrl.u32 %v7924_v42, %v5941_v44  ;;  %4963 = vmatprep.subr.bf16.mxu0 %v4962_v53  ;;  %4996 = vmatprep.subr.bf16.mxu1 %v4962_v53  ;;  %v467_v27 = vor.u32 8388608, %v466_v58  ;;  %v7969_v53 = vld [vmem:[#allocation30_spill] sm:$0xff] }
 0x20b   : > { %v1243_v4 = vshll.u32 %v6846_v22, 30  ;;  %v4968_v33 = vpack.c.bf16 %v3817_v16, %v3815_v52  ;;  %v4970_v6 = vpack.c.bf16 %v3822_v49, %v3820_v51  ;;  %v482_v3 = vshll.u32 %v7924_v42, %v5926_v29  ;;  %v3824_v52 = vld [vmem:[#allocation3 + $0x1a8] sm:$0xff]  ;;  %v3826_v16 = vld [vmem:[#allocation3 + $0x1b8] sm:$0xff] }
 0x20c   : > { %v478_v36 = vor.u32 %v477_v31, %v476_v5  ;;  %v481_v63 = vor.u32 %v480_v21, %v479_v45  ;;  %v483_v54 = vshrl.u32 %v7935_v26, %v5941_v44  ;;  %v2076_v23 = vsub.s32 32, %v6851_v55  ;;  %v7970_v49 = vld [vmem:[#allocation21_spill] sm:$0xff] }
 0x20d   : > { %v6865_v59 = vsub.s32 %v1240_v61, %v1243_v4  ;;  %v4972_v34 = vpack.c.bf16 %v3821_v28, %v3819_v62  ;;  %vm491_vm0 = vcmp.lt.s32.totalorder %v5961_v2, 1  ;;  %v2080_v43 = vsub.s32 4294967266, %v6851_v55  ;;  %4965 = vmatpush1.bf16.msra.mxu0 %v4964_v30  ;;  %5012 = vmatpush1.bf16.msra.mxu1 %v4964_v30 }
 0x20e   : > { %v484_v11 = vor.u32 %v483_v54, %v482_v3  ;;  %vm493_vm3 = vcmp.lt.s32.totalorder %v5961_v2, 3  ;;  %v499_v29 = vsel %vm491_vm0, %v478_v36, %v481_v63  ;;  %vm7885_vm7 = vcmp.lt.s32.totalorder %v6181_v0, 0  ;;  %4967 = vmatprep.subr.bf16.mxu0 %v4966_v17  ;;  %4997 = vmatprep.subr.bf16.mxu1 %v4966_v17  ;;  %v7971_v17 = vld [vmem:[#allocation35_spill] sm:$0xff] }
 0x20f   : > { %v1246_v60 = vsub.s32 0, %v6865_v59  ;;  %v475_v61 = vshrl.u32 %v7926_v37, %v5941_v44  ;;  %vm492_vm10 = vcmp.lt.s32.totalorder %v5961_v2, 2  ;;  %v505_v48 = vsel %vm493_vm3, %v5971_v8, %v6104_v50 }
 0x210   : > { %vm7886_vm11 = vcmp.lt.s32.totalorder %v7969_v53, 0  ;;  %v496_v51 = vsel %vm494_vm15, %v484_v11, 2102212464  ;;  %v501_v58 = vsel %vm493_vm3, %v484_v11, %v7970_v49  ;;  %v503_v44 = vsel %vm491_vm0, %v481_v63, %v484_v11  ;;  %v3834_v49 = vld [vmem:[#allocation3 + $0x1f8] sm:$0xff] }
 0x211   : > { %v507_v30 = vshll.u32 %v467_v27, 8  ;;  %vm7883_vm12 = vcmp.lt.s32.totalorder %v7971_v17, 0  ;;  %v4706_v5 = vmin.u32 %v1246_v60, %v6865_v59  ;;  %v495_v8 = vsel %vm491_vm0, %v475_v61, %v478_v36  ;;  %4969 = vmatpush1.bf16.msra.mxu0 %v4968_v33  ;;  %5013 = vmatpush1.bf16.msra.mxu1 %v4968_v33  ;;  %v3823_v36 = vld [vmem:[#allocation3 + $0x1a0] sm:$0xff]  ;;  %v3830_v60 = vld [vmem:[#allocation3 + $0x1d8] sm:$0xff] }
 0x212   : > { %v497_v50 = vsel %vm493_vm3, %v481_v63, %v496_v51  ;;  %v502_v62 = vsel %vm492_vm10, %v499_v29, %v501_v58  ;;  %vm7884_vm15 = vcmp.lt.s32.totalorder %v6360_v7, 0  ;;  %v2081_v28 = vadd.s32 127, %v2080_v43  ;;  %4971 = vmatprep.subr.bf16.mxu0 %v4970_v6  ;;  %4998 = vmatprep.subr.bf16.mxu1 %v4970_v6  ;;  %v3825_v63 = vld [vmem:[#allocation3 + $0x1b0] sm:$0xff]  ;;  %v3828_v29 = vld [vmem:[#allocation3 + $0x1c8] sm:$0xff] }
 0x213   : > { %v506_v31 = vsel %vm492_vm10, %v503_v44, %v505_v48  ;;  %v6900_v45 = vmul.u32.u64.low %v507_v30, %v502_v62  ;;  %v6901_v21 = vmul.u32.u64.high %v507_v30, %v502_v62, %v6900_v45  ;;  %v1248_v4 = vclz %v4706_v5  ;;  %v3833_v5 = vld [vmem:[#allocation3 + $0x1f0] sm:$0xff] }
 0x214   : > { %v4974_v27 = vpack.c.bf16 %v3826_v16, %v3824_v52  ;;  %v6904_v3 = vmul.u32.u64.low %v507_v30, %v506_v31  ;;  %v6905_v54 = vmul.u32.u64.high %v507_v30, %v506_v31, %v6904_v3  ;;  %v955_v43 = vxor.u32 2147483648, %v6824_v39 }
 0x215   : > { %v1157_v33 = vand.u32 2147483647, %v6838_v46  ;;  %v2078_v11 = vshrl.u32 %v6842_v13, %v2076_v23  ;;  %v498_v61 = vsel %vm492_vm10, %v495_v8, %v497_v50  ;;  %v1882_v48 = vxor.u32 2147483648, %v6828_v40  ;;  %4973 = vmatpush1.bf16.msra.mxu0 %v4972_v34  ;;  %5014 = vmatpush1.bf16.msra.mxu1 %v4972_v34  ;;  %v3832_v34 = vld [vmem:[#allocation3 + $0x1e8] sm:$0xff] }
 0x216   : > { %v6917_v6 = vmul.f32 %v1983_v12, %v1981_v15  ;;  %v1159_v52 = vcvt.s32.f32 %v6836_v18  ;;  %v2077_v46 = vshll.u32 %v6773_v1, %v6851_v55  ;;  %v2082_v16 = vshll.u32 %v2081_v28, 23  ;;  %4975 = vmatprep.subr.bf16.mxu0 %v4974_v27  ;;  %4999 = vmatprep.subr.bf16.mxu1 %v4974_v27  ;;  %v3829_v12 = vld [vmem:[#allocation3 + $0x1d0] sm:$0xff] }
 0x217   : > { %v4707_v13 = vadd.s32 4294967294, %v1248_v4  ;;  %v4976_v23 = vpack.c.bf16 %v3825_v63, %v3823_v36  ;;  %v517_v2 = vadd.s32 1, %v6901_v21  ;;  %v1058_v51 = vxor.u32 2147483648, %v6830_v38  ;;  %v7973_v63 = vld [vmem:[#allocation15_spill] sm:$0xff] }
 0x218   : > { %v4978_v32 = vpack.c.bf16 %v3830_v60, %v3828_v29  ;;  %v514_v15 = vmul.u32 %v507_v30, %v498_v61  ;;  %vm516_vm13 = vc.u32 %v6905_v54, %v6900_v45  ;;  %v6931_v1 = vsel %vm7885_vm7, %v1779_v47, %v6608_v41  ;;  %v3831_v30 = vld [vmem:[#allocation3 + $0x1e0] sm:$0xff]  ;;  %v7972_v41 = vld [vmem:[#allocation17_spill] sm:$0xff] }
 0x219   : > { %v1160_v18 = vmul.f32 %v1159_v52, %v1157_v33  ;;  %v2079_v55 = vor.u32 %v2078_v11, %v2077_v46  ;;  %v518_v58 = vsel %vm516_vm13, %v517_v2, %v6901_v21  ;;  %v6937_v44 = vsel %vm7886_vm11, %v955_v43, %v6824_v39  ;;  %4977 = vmatpush1.bf16.msra.mxu0 %v4976_v23  ;;  %v7974_v11 = vld [vmem:[#allocation14_spill] sm:$0xff] }
 0x21a   : > { %vm7881_vm14 = vcmp.lt.s32.totalorder %v6497_v14, 0  ;;  %vm7882_vm0 = vcmp.lt.s32.totalorder %v6500_v35, 0  ;;  %v519_v8 = vadd.s32 %v518_v58, %v514_v15  ;;  %v648_v47 = vsub.s32 4, %v7972_v41  ;;  %5015 = vmatpush1.bf16.msra.mxu1 %v4976_v23  ;;  %4979 = vmatprep.subr.bf16.mxu0 %v4978_v32 }
 0x21b   : > { %v6945_v50 = vsel %vm7883_vm12, %v1882_v48, %v6828_v40  ;;  %v2083_v62 = vor.u32 4788187, %v2082_v16  ;;  %vm4708_vm3 = vcmp.lt.s32.totalorder %v4707_v13, 0  ;;  %v4980_v39 = vpack.c.bf16 %v3829_v12, %v3827_v19  ;;  %5000 = vmatprep.subr.bf16.mxu1 %v4978_v32  ;;  %v7978_v19 = vld [vmem:[#allocation31_spill] sm:$0xff] }
 0x21c   : > { %v6950_v28 = vsel %vm7884_vm15, %v1058_v51, %v6830_v38  ;;  %v1985_v31 = vxor.u32 2147483648, %v6917_v6  ;;  %v4982_v21 = vpack.c.bf16 %v3834_v49, %v3832_v34  ;;  %v520_v4 = vadd.s32 536870912, %v519_v8  ;;  %v7975_v38 = vld [vmem:[#allocation24_spill] sm:$0xff] }
 0x21d   : > { %v1161_v27 = vxor.u32 2147483648, %v1160_v18  ;;  %v2086_v36 = vcvt.s32.f32 %v2079_v55  ;;  %v4984_v40 = vpack.c.bf16 %v3833_v5, %v3831_v30  ;;  %v1283_v3 = vand.u32 2147483647, %v7973_v63  ;;  %4981 = vmatpush1.bf16.msra.mxu0 %v4980_v39 }
 0x21e   : > { %v1251_v43 = vsel %vm4708_vm3, 0, %v4707_v13  ;;  %v6954_v33 = vshrl.u32 %v520_v4, 30  ;;  %v649_v29 = vsel %vm564_vm8, %v648_v47, %v7972_v41  ;;  %v1301_v60 = vshrl.u32 %v7933_v9, %v7975_v38  ;;  %5016 = vmatpush1.bf16.msra.mxu1 %v4980_v39  ;;  %4983 = vmatprep.subr.bf16.mxu0 %v4982_v21  ;;  %v7977_v13 = vld [vmem:[#allocation22_spill] sm:$0xff] }
 0x21f   : > { %v2084_v61 = vand.u32 2147483647, %v2083_v62  ;;  %v7976_v48 = vand.u32 2147483647, %v7974_v11  ;;  %v1304_v52 = vshrl.u32 %v7924_v42, %v7975_v38  ;;  %v1307_v46 = vshrl.u32 %v7935_v26, %v7975_v38  ;;  %5001 = vmatprep.subr.bf16.mxu1 %v4982_v21  ;;  %v7980_v21 = vld [vmem:[#allocation32_spill] sm:$0xff] }
 0x220   : > { %v522_v16 = vshll.u32 %v6954_v33, 30  ;;  %v1300_v23 = vshll.u32 %v7926_v37, %v7977_v13  ;;  %v1303_v2 = vshll.u32 %v7933_v9, %v7977_v13  ;;  %v1306_v51 = vshll.u32 %v7924_v42, %v7977_v13 }
 0x221   : > { %vm563_vm10 = vcmp.le.f32.partialorder %v7976_v48, 0.7853982  ;;  %v1256_v32 = vsub.s32 4294967266, %v1251_v43  ;;  %v1290_v26 = vand.u32 8388607, %v1283_v3  ;;  %v6985_v9 = vsel %vm7881_vm14, %v1985_v31, %v6917_v6  ;;  %4985 = vmatpush1.bf16.msra.mxu0 %v4984_v40  ;;  %v7979_v6 = vld [vmem:[#allocation27_spill] sm:$0xff] }
 0x222   : > { %v650_v12 = vsel %vm563_vm10, %v7974_v11, %v7978_v19  ;;  %v6976_v15 = vsel %vm563_vm10, 0, %v649_v29  ;;  %v6980_v55 = vsub.s32 %v519_v8, %v522_v16  ;;  %v1302_v34 = vor.u32 %v1301_v60, %v1300_v23  ;;  %5017 = vmatpush1.bf16.msra.mxu1 %v4984_v40 }
 0x223   : > { %v1305_v49 = vor.u32 %v1304_v52, %v1303_v2  ;;  %v1308_v58 = vor.u32 %v1307_v46, %v1306_v51  ;;  %v6989_v42 = vsel %vm7882_vm0, %v1161_v27, %v1160_v18  ;;  %v6991_v30 = vmul.f32 %v2086_v36, %v2084_v61  ;;  %v7984_v46 = vld [vmem:[#allocation28_spill] sm:$0xff] }
 0x224   : > { %v1252_v5 = vsub.s32 32, %v1251_v43  ;;  %v1236_v8 = vadd.s32 %v6791_v20, %v6798_v56  ;;  %v525_v41 = vsub.s32 0, %v6980_v55  ;;  %5188 = vcosq.f32 %v650_v12 }
 0x225   : > { %v2304_v47 = vadd.s32 3, %v6976_v15  ;;  %v1257_v62 = vadd.s32 127, %v1256_v32  ;;  %5190 = vsinq.f32 %v650_v12  ;;  %vm1315_vm8 = vcmp.lt.s32.totalorder %v7979_v6, 1 }
 0x226   : > { %vm1317_vm13 = vcmp.lt.s32.totalorder %v7979_v6, 3  ;;  %v4678_v18 = vmin.u32 %v525_v41, %v6980_v55  ;;  %v1291_v39 = vor.u32 8388608, %v1290_v26  ;;  %v1323_v31 = vsel %vm1315_vm8, %v1302_v34, %v1305_v49 }
 0x227   : > { %v1325_v20 = vsel %vm1317_vm13, %v1308_v58, %v7980_v21  ;;  %v2088_v56 = vxor.u32 2147483648, %v6991_v30  ;;  %v1254_v4 = vshrl.u32 %v1236_v8, %v1252_v5  ;;  %vm461_vm3 = vcmp.lt.s32.totalorder %v5832_v24, 0 }
 0x228   : > { %v1299_v27 = vshrl.u32 %v7926_v37, %v7975_v38  ;;  %v1253_v36 = vshll.u32 %v6865_v59, %v1251_v43  ;;  %v527_v40 = vclz %v4678_v18  ;;  %v7010_v29 = vand.u32 3, %v2304_v47  ;;  %v7983_v38 = vld [vmem:[#allocation33_spill] sm:$0xff] }
 0x229   : > { %vm1316_vm10 = vcmp.lt.s32.totalorder %v7979_v6, 2  ;;  %v1258_v60 = vshll.u32 %v1257_v62, 23  ;;  %v545_v61 = vsub.s32 4, %v6954_v33  ;;  %v1320_v48 = vsel %vm1318_vm9, %v1308_v58, 2102212464 }
 0x22a   : > { %v1326_v52 = vsel %vm1316_vm10, %v1323_v31, %v1325_v20  ;;  %vm7020_vm14 = vcmp.le.f32.partialorder %v459_v10, 0.7853982  ;;  %v4679_v59 = vadd.s32 4294967294, %v527_v40  ;;  %v1327_v43 = vsel %vm1315_vm8, %v1305_v49, %v1308_v58  ;;  %v7988_v31 = vld [vmem:[#allocation20_spill] sm:$0xff] }
 0x22b   : > { %v1329_v16 = vsel %vm1317_vm13, %v7984_v46, %v7983_v38  ;;  %v1331_v13 = vshll.u32 %v1291_v39, 8  ;;  %v7030_v23 = vor.u32 %v1254_v4, %v1253_v36  ;;  %v515_v2 = vadd.s32 %v6900_v45, %v6905_v54  ;;  %v7989_v4 = vld [vmem:[#allocation38_spill] sm:$0xff] }
 0x22c   : > { %v1319_v10 = vsel %vm1315_vm8, %v1299_v27, %v1302_v34  ;;  %v1330_v51 = vsel %vm1316_vm10, %v1327_v43, %v1329_v16  ;;  %vm4680_vm9 = vcmp.lt.s32.totalorder %v4679_v59, 0  ;;  %v1321_v32 = vsel %vm1317_vm13, %v1305_v49, %v1320_v48 }
 0x22d   : > { %v7040_v19 = vmul.u32.u64.low %v1331_v13, %v1330_v51  ;;  %v7041_v12 = vmul.u32.u64.high %v1331_v13, %v1330_v51, %v7040_v19  ;;  %v7043_v26 = vor.u32 4788187, %v1258_v60  ;;  %v530_v58 = vsel %vm4680_vm9, 0, %v4679_v59 }
 0x22e   : > { %v7045_v5 = vmul.u32.u64.low %v1331_v13, %v1326_v52  ;;  %v7046_v8 = vmul.u32.u64.high %v1331_v13, %v1326_v52, %v7045_v5  ;;  %v5189_v45 = vpop.eup %5188  ;;  %v531_v54 = vsub.s32 32, %v530_v58  ;;  %v535_v34 = vsub.s32 4294967266, %v530_v58  ;;  %v7994_v19 = vld [vmem:[#allocation26_spill] sm:$0xff] }
 0x22f   : > { %v546_v41 = vsel %vm461_vm3, %v545_v61, %v6954_v33  ;;  %vm2307_vm8 = vcmp.eq.s32.totalorder %v7010_v29, 0  ;;  %vm2310_vm13 = vcmp.eq.s32.totalorder %v7010_v29, 2  ;;  %v5191_v49 = vpop.eup %5190  ;;  %v532_v47 = vshll.u32 %v6980_v55, %v530_v58 }
 0x230   : > { %v1322_v62 = vsel %vm1316_vm10, %v1319_v10, %v1321_v32  ;;  %v7985_v18 = vand.u32 2147483647, %v5835_v25  ;;  %v1472_v21 = vsub.s32 4, %v7988_v31  ;;  %v533_v20 = vshrl.u32 %v515_v2, %v531_v54  ;;  %v7990_v10 = vld [vmem:[#allocation18_spill] sm:$0xff]  ;;  %v7995_v54 = vld [vmem:[#allocation41_spill] sm:$0xff] }
 0x231   : > { %v536_v33 = vadd.s32 127, %v535_v34  ;;  %vm1340_vm0 = vc.u32 %v7041_v12, %v7045_v5  ;;  %v1260_v6 = vand.u32 2147483647, %v7043_v26  ;;  %v1262_v27 = vcvt.s32.f32 %v7030_v23 }
 0x232   : > { %vm7059_vm9 = vcmp.le.f32.partialorder %v7985_v18, 0.7853982  ;;  %v661_v36 = vxor.u32 2147483648, %v5189_v45  ;;  %v1341_v40 = vadd.s32 1, %v7046_v8  ;;  %v534_v60 = vor.u32 %v533_v20, %v532_v47 }
 0x233   : > { %v1474_v55 = vsel %vm7059_vm9, %v5835_v25, %v7989_v4  ;;  %v537_v61 = vshll.u32 %v536_v33, 23  ;;  %v1338_v48 = vmul.u32 %v1331_v13, %v1322_v62  ;;  %v1473_v52 = vsel %vm1388_vm1, %v1472_v21, %v7988_v31 }
 0x234   : > { %v548_v59 = vsel %vm7020_vm14, 0, %v546_v41  ;;  %v658_v43 = vxor.u32 2147483648, %v5191_v49  ;;  %v1342_v38 = vsel %vm1340_vm0, %v1341_v40, %v7046_v8  ;;  %5192 = vcosq.f32 %v1474_v55 }
 0x235   : > { %v538_v46 = vor.u32 4788187, %v537_v61  ;;  %vm7887_vm10 = vcmp.lt.s32.totalorder %v7973_v63, 0  ;;  %v1343_v16 = vadd.s32 %v1342_v38, %v1338_v48  ;;  %v655_v23 = vand.u32 3, %v6976_v15 }
 0x236   : > { %5194 = vsinq.f32 %v1474_v55  ;;  %v2312_v13 = vsel %vm2310_vm13, %v661_v36, %v5191_v49  ;;  %v1475_v2 = vsel %vm7059_vm9, 0, %v1473_v52  ;;  %v7991_v51 = vand.u32 2147483647, %v7990_v10 }
 0x237   : > { %v751_v26 = vsub.s32 4, %v7994_v19  ;;  %v539_v58 = vand.u32 2147483647, %v538_v46  ;;  %v541_v8 = vcvt.s32.f32 %v534_v60  ;;  %vm654_vm0 = vweird.f32 %v7974_v11  ;;  %v7998_v11 = vld [vmem:[#allocation23_spill] sm:$0xff] }
 0x238   : > { %vm7087_vm1 = vcmp.le.f32.partialorder %v7991_v51, 0.7853982  ;;  %v1344_v15 = vadd.s32 536870912, %v1343_v16  ;;  %v2200_v41 = vadd.s32 3, %v548_v59  ;;  %v2309_v47 = vsel %vm2307_vm8, %v5189_v45, %v658_v43 }
 0x239   : > { %v753_v34 = vsel %vm7087_vm1, %v7990_v10, %v7995_v54  ;;  %vm7101_vm13 = vcmp.le.f32.partialorder %v1283_v3, 0.7853982  ;;  %v752_v18 = vsel %vm667_vm4, %v751_v26, %v7994_v19  ;;  %v542_v39 = vmul.f32 %v541_v8, %v539_v58 }
 0x23a   : > { %5196 = vcosq.f32 %v753_v34  ;;  %v1345_v31 = vshrl.u32 %v1344_v15, 30  ;;  %vm657_vm9 = vcmp.eq.s32.totalorder %v655_v23, 0  ;;  %vm660_vm12 = vcmp.eq.s32.totalorder %v655_v23, 2 }
 0x23b   : > { %v659_v21 = vsel %vm657_vm9, %v5189_v45, %v658_v43  ;;  %v662_v20 = vsel %vm660_vm12, %v661_v36, %v5191_v49  ;;  %v3136_v33 = vadd.s32 3, %v1475_v2  ;;  %5198 = vsinq.f32 %v753_v34 }
 0x23c   : > { %v543_v4 = vxor.u32 2147483648, %v542_v39  ;;  %v1346_v55 = vshll.u32 %v1345_v31, 30  ;;  %v1369_v40 = vsub.s32 4, %v1345_v31  ;;  %v754_v3 = vsel %vm7087_vm1, 0, %v752_v18 }
 0x23d   : > { %v7110_v60 = vmul.f32 %v1262_v27, %v1260_v6  ;;  %v7112_v61 = vand.u32 3, %v548_v59  ;;  %vm2306_vm4 = vcmp.lt.s32.totalorder %v7010_v29, 2  ;;  %vm656_vm8 = vcmp.lt.s32.totalorder %v655_v23, 2 }
 0x23e   : > { %v544_v48 = vsel %vm461_vm3, %v543_v4, %v542_v39  ;;  %v2313_v45 = vsel %vm2306_vm4, %v2309_v47, %v2312_v13  ;;  %v7117_v49 = vsub.s32 %v1343_v16, %v1346_v55  ;;  %v663_v36 = vsel %vm656_vm8, %v659_v21, %v662_v20  ;;  %v5193_v52 = vpop.eup %5192  ;;  %v7999_v47 = vld [vmem:[#allocation16_spill] sm:$0xff] }
 0x23f   : > { %v547_v43 = vsel %vm7020_vm14, %v5832_v24, %v544_v48  ;;  %v1370_v6 = vsel %vm7887_vm10, %v1369_v40, %v1345_v31  ;;  %v2408_v27 = vadd.s32 3, %v754_v3  ;;  %v7124_v59 = vand.u32 3, %v1475_v2 }
 0x240   : > { %v5195_v29 = vpop.eup %5194  ;;  %5200 = vcosq.f32 %v547_v43  ;;  %v7126_v38 = vand.u32 3, %v2200_v41  ;;  %v1349_v46 = vsub.s32 0, %v7117_v49  ;;  %v7129_v16 = vand.u32 3, %v3136_v33 }
 0x241   : > { %v1264_v23 = vxor.u32 2147483648, %v7110_v60  ;;  %5202 = vsinq.f32 %v547_v43  ;;  %v7134_v37 = vsel %vm654_vm0, nan, %v2313_v45  ;;  %v1339_v13 = vadd.s32 %v7045_v5, %v7041_v12 }
 0x242   : > { %v4710_v2 = vmin.u32 %v1349_v46, %v7117_v49  ;;  %v1372_v51 = vsel %vm7101_vm13, 0, %v1370_v6  ;;  %v7143_v32 = vsel %vm654_vm0, nan, %v663_v36  ;;  %v1485_v19 = vxor.u32 2147483648, %v5193_v52 }
 0x243   : > { %v1482_v58 = vxor.u32 2147483648, %v5195_v29  ;;  %v7145_v8 = vand.u32 3, %v2408_v27  ;;  %v7147_v15 = vand.u32 3, %v754_v3  ;;  %vm1481_vm12 = vcmp.eq.s32.totalorder %v7124_v59, 0 }
 0x244   : > { %v5197_v26 = vpop.eup %5196  ;;  %vm2206_vm14 = vcmp.eq.s32.totalorder %v7126_v38, 2  ;;  %v1351_v12 = vclz %v4710_v2  ;;  %vm3139_vm1 = vcmp.eq.s32.totalorder %v7129_v16, 0  ;;  %vm3142_vm9 = vcmp.eq.s32.totalorder %v7129_v16, 2 }
 0x245   : > { %v1575_v5 = vsub.s32 4, %v7998_v11  ;;  %v5199_v54 = vpop.eup %5198  ;;  %v3032_v34 = vadd.s32 3, %v1372_v51  ;;  %v764_v41 = vxor.u32 2147483648, %v5197_v26  ;;  %vm1484_vm8 = vcmp.eq.s32.totalorder %v7124_v59, 2 }
 0x246   : > { %v8000_v18 = vand.u32 2147483647, %v7999_v47  ;;  %v4711_v31 = vadd.s32 4294967294, %v1351_v12  ;;  %v7166_v21 = vand.u32 3, %v1372_v51  ;;  %v3144_v20 = vsel %vm3142_vm9, %v1485_v19, %v5195_v29  ;;  %v8003_v12 = vld [vmem:[#allocation39_spill] sm:$0xff] }
 0x247   : > { %v761_v33 = vxor.u32 2147483648, %v5199_v54  ;;  %vm551_vm5 = vweird.f32 %v5832_v24  ;;  %v3141_v4 = vsel %vm3139_vm1, %v5193_v52, %v1482_v58  ;;  %vm2411_vm6 = vcmp.eq.s32.totalorder %v7145_v8, 0 }
 0x248   : > { %vm7160_vm15 = vcmp.le.f32.partialorder %v8000_v18, 0.7853982  ;;  %vm2414_vm4 = vcmp.eq.s32.totalorder %v7145_v8, 2  ;;  %vm760_vm7 = vcmp.eq.s32.totalorder %v7147_v15, 0  ;;  %vm1480_vm11 = vcmp.lt.s32.totalorder %v7124_v59, 2 }
 0x249   : > { %vm4712_vm0 = vcmp.lt.s32.totalorder %v4711_v31, 0  ;;  %vm2410_vm3 = vcmp.lt.s32.totalorder %v7145_v8, 2  ;;  %vm759_vm10 = vcmp.lt.s32.totalorder %v7147_v15, 2  ;;  %vm763_vm9 = vcmp.eq.s32.totalorder %v7147_v15, 2 }
 0x24a   : > { %v1483_v55 = vsel %vm1481_vm12, %v5193_v52, %v1482_v58  ;;  %v1576_v40 = vsel %vm1491_vm2, %v1575_v5, %v7998_v11  ;;  %v1354_v3 = vsel %vm4712_vm0, 0, %v4711_v31  ;;  %v2416_v48 = vsel %vm2414_vm4, %v764_v41, %v5199_v54  ;;  %v5201_v43 = vpop.eup %5200 }
 0x24b   : > { %v765_v45 = vsel %vm763_vm9, %v764_v41, %v5199_v54  ;;  %v1486_v36 = vsel %vm1484_vm8, %v1485_v19, %v5195_v29  ;;  %v1355_v6 = vsub.s32 32, %v1354_v3  ;;  %v1359_v27 = vsub.s32 4294967266, %v1354_v3  ;;  %v5203_v2 = vpop.eup %5202 }
 0x24c   : > { %vm1478_vm1 = vweird.f32 %v5835_v25  ;;  %v2413_v46 = vsel %vm2411_vm6, %v5197_v26, %v761_v33  ;;  %v762_v52 = vsel %vm760_vm7, %v5197_v26, %v761_v33  ;;  %v558_v51 = vxor.u32 2147483648, %v5201_v43 }
 0x24d   : > { %v1356_v58 = vshll.u32 %v7117_v49, %v1354_v3  ;;  %vm757_vm2 = vweird.f32 %v7990_v10  ;;  %v1577_v29 = vsel %vm7160_vm15, %v7999_v47, %v8003_v12  ;;  %v1578_v19 = vsel %vm7160_vm15, 0, %v1576_v40 }
 0x24e   : > { %v555_v11 = vxor.u32 2147483648, %v5203_v2  ;;  %v1357_v5 = vshrl.u32 %v1339_v13, %v1355_v6  ;;  %v1360_v54 = vadd.s32 127, %v1359_v27  ;;  %5204 = vcosq.f32 %v1577_v29 }
 0x24f   : > { %v2208_v26 = vsel %vm2206_vm14, %v558_v51, %v5203_v2  ;;  %vm8004_vm6 = vcmp.eq.s32.totalorder %v7112_v61, 2  ;;  %5206 = vsinq.f32 %v1577_v29  ;;  %v3240_v41 = vadd.s32 3, %v1578_v19  ;;  %v8013_v29 = vld [vmem:[#allocation44_spill] sm:$0xff] }
 0x250   : > { %v559_v49 = vsel %vm8004_vm6, %v558_v51, %v5203_v2  ;;  %vm8005_vm7 = vcmp.eq.s32.totalorder %v7126_v38, 0  ;;  %vm8006_vm12 = vcmp.eq.s32.totalorder %v7112_v61, 0  ;;  %v1358_v39 = vor.u32 %v1357_v5, %v1356_v58 }
 0x251   : > { %v2205_v18 = vsel %vm8005_vm7, %v5201_v43, %v555_v11  ;;  %v556_v31 = vsel %vm8006_vm12, %v5201_v43, %v555_v11  ;;  %v1361_v33 = vshll.u32 %v1360_v54, 23  ;;  %vm8007_vm15 = vcmp.lt.s32.totalorder %v7126_v38, 2 }
 0x252   : > { %v2209_v13 = vsel %vm8007_vm15, %v2205_v18, %v2208_v26  ;;  %vm8008_vm0 = vcmp.lt.s32.totalorder %v7112_v61, 2  ;;  %v7211_v3 = vand.u32 3, %v3032_v34  ;;  %vm8009_vm14 = vcmp.lt.s32.totalorder %v7129_v16, 2  ;;  %v8010_v34 = vld [vmem:[#allocation25_spill] sm:$0xff] }
 0x253   : > { %v560_v40 = vsel %vm8008_vm0, %v556_v31, %v559_v49  ;;  %v3145_v6 = vsel %vm8009_vm14, %v3141_v4, %v3144_v20  ;;  %v2210_v27 = vsel %vm551_vm5, nan, %v2209_v13  ;;  %v1362_v43 = vor.u32 4788187, %v1361_v33  ;;  %v8012_v20 = vld [vmem:[#allocation34_spill] sm:$0xff] }
 0x254   : > { %v561_v2 = vsel %vm551_vm5, nan, %v560_v40  ;;  %v1487_v51 = vsel %vm1480_vm11, %v1483_v55, %v1486_v36  ;;  %3911 = vmatprep.mubr.f32.mxu0 %v2210_v27  ;;  %v2417_v61 = vsel %vm2410_vm3, %v2413_v46, %v2416_v48  ;;  %v766_v38 = vsel %vm759_vm10, %v762_v52, %v765_v45  ;;  %v8015_v55 = vld [vmem:[#allocation29_spill] sm:$0xff] }
 0x255   : > { %v8011_v16 = vand.u32 2147483647, %v8010_v34  ;;  %v854_v4 = vsub.s32 4, %v8012_v20  ;;  %3912 = vmatmul.mubr.f32.vlgmr.msra.gmra.mrb[0].mxu0 %v561_v2  ;;  %v1363_v58 = vand.u32 2147483647, %v1362_v43  ;;  %v1365_v24 = vcvt.s32.f32 %v1358_v39 }
 0x256   : > { %v3241_v12 = vand.u32 3, %v3240_v41  ;;  %3917 = vmatprep.mubr.f32.mxu0 %v7134_v37  ;;  %v7233_v8 = vsel %vm1478_vm1, nan, %v3145_v6  ;;  %vm8014_vm5 = vcmp.lt.s32.totalorder %v8010_v34, 0  ;;  %v1678_v48 = vsub.s32 4, %v8015_v55  ;;  %v8016_v41 = vld [vmem:[#allocation19_spill] sm:$0xff]  ;;  %v8020_v6 = vld [vmem:[#allocation42_spill] sm:$0xff] }
 0x257   : > { %vm769_vm4 = vcmp.le.f32.partialorder %v8011_v16, 0.7853982  ;;  %v855_v15 = vsel %vm8014_vm5, %v854_v4, %v8012_v20  ;;  %v1366_v45 = vmul.f32 %v1365_v24, %v1363_v58  ;;  %v2418_v36 = vsel %vm757_vm2, nan, %v2417_v61  ;;  %v8024_v16 = vld [vmem:[#allocation37_spill] sm:$0xff] }
 0x258   : > { %v856_v59 = vsel %vm769_vm4, %v8010_v34, %v8013_v29  ;;  %v857_v46 = vsel %vm769_vm4, 0, %v855_v15  ;;  %v767_v37 = vsel %vm757_vm2, nan, %v766_v38  ;;  %v7245_v52 = vsel %vm1478_vm1, nan, %v1487_v51  ;;  %v5205_v54 = vpop.eup %5204 }
 0x259   : > { %5208 = vcosq.f32 %v856_v59  ;;  %v2512_v11 = vadd.s32 3, %v857_v46  ;;  %v7247_v5 = vand.u32 3, %v1578_v19  ;;  %v1367_v26 = vxor.u32 2147483648, %v1366_v45  ;;  %3918 = vmatmul.mubr.f32.gmra.mrb[2].mxu0 %v7143_v32  ;;  %v5207_v18 = vpop.eup %5206 }
 0x25a   : > { %5210 = vsinq.f32 %v856_v59  ;;  %vm7890_vm11 = vweird.f32 %v7999_v47  ;;  %vm3242_vm10 = vcmp.lt.s32.totalorder %v3241_v12, 2  ;;  %v7251_v49 = vand.u32 3, %v857_v46  ;;  %3923 = vmatprep.mubr.f32.mxu0 %v2418_v36 }
 0x25b   : > { %vm8017_vm3 = vcmp.lt.s32.totalorder %v8016_v41, 0  ;;  %v1588_v25 = vxor.u32 2147483648, %v5205_v54  ;;  %vm3243_vm8 = vcmp.eq.s32.totalorder %v3241_v12, 0  ;;  %vm3246_vm9 = vcmp.eq.s32.totalorder %v3241_v12, 2 }
 0x25c   : > { %v1679_v10 = vsel %vm8017_vm3, %v1678_v48, %v8015_v55  ;;  %v8018_v19 = vand.u32 2147483647, %v8016_v41  ;;  %vm8019_vm2 = vcmp.lt.s32.totalorder %v7973_v63, 0  ;;  %v1585_v31 = vxor.u32 2147483648, %v5207_v18 }
 0x25d   : > { %v1368_v32 = vsel %vm8019_vm2, %v1367_v26, %v1366_v45  ;;  %v2513_v39 = vand.u32 3, %v2512_v11  ;;  %v3248_v40 = vsel %vm3246_vm9, %v1588_v25, %v5207_v18  ;;  %vm1584_vm6 = vcmp.eq.s32.totalorder %v7247_v5, 0  ;;  %3924 = vmatmul.mubr.f32.gmra.mrb[4].mxu0 %v767_v37 }
 0x25e   : > { %vm1593_vm1 = vcmp.le.f32.partialorder %v8018_v19, 0.7853982  ;;  %v1371_v13 = vsel %vm7101_vm13, %v7973_v63, %v1368_v32  ;;  %v3245_v2 = vsel %vm3243_vm8, %v5205_v54, %v1585_v31  ;;  %vm860_vm7 = vweird.f32 %v8010_v34 }
 0x25f   : > { %v1681_v33 = vsel %vm1593_vm1, 0, %v1679_v10  ;;  %v1680_v27 = vsel %vm1593_vm1, %v8016_v41, %v8020_v6  ;;  %5212 = vcosq.f32 %v1371_v13  ;;  %vm862_vm12 = vcmp.lt.s32.totalorder %v7251_v49, 2 }
 0x260   : > { %vm1583_vm15 = vcmp.lt.s32.totalorder %v7247_v5, 2  ;;  %vm1587_vm0 = vcmp.eq.s32.totalorder %v7247_v5, 2  ;;  %5214 = vsinq.f32 %v1371_v13  ;;  %vm863_vm13 = vcmp.eq.s32.totalorder %v7251_v49, 0  ;;  %v8026_v5 = vld [vmem:[#allocation36_spill] sm:$0xff] }
 0x261   : > { %vm866_vm14 = vcmp.eq.s32.totalorder %v7251_v49, 2  ;;  %v3344_v62 = vadd.s32 3, %v1681_v33  ;;  %v3249_v43 = vsel %vm3242_vm10, %v3245_v2, %v3248_v40  ;;  %vm2514_vm4 = vcmp.lt.s32.totalorder %v2513_v39, 2 }
 0x262   : > { %vm2515_vm5 = vcmp.eq.s32.totalorder %v2513_v39, 0  ;;  %5216 = vcosq.f32 %v1680_v27  ;;  %vm2518_vm3 = vcmp.eq.s32.totalorder %v2513_v39, 2  ;;  %v8021_v61 = vand.u32 2147483647, %v7969_v53 }
 0x263   : > { %v5209_v51 = vpop.eup %5208  ;;  %5218 = vsinq.f32 %v1680_v27  ;;  %v957_v20 = vsub.s32 4, %v8024_v16  ;;  %vm3038_vm9 = vcmp.eq.s32.totalorder %v7211_v3, 2  ;;  %vm1381_vm1 = vcmp.eq.s32.totalorder %v7166_v21, 2  ;;  %v8041_v27 = vld [vmem:[#allocation40_spill] sm:$0xff] }
 0x264   : > { %vm7275_vm8 = vcmp.le.f32.partialorder %v8021_v61, 0.7853982  ;;  %v5211_v4 = vpop.eup %5210  ;;  %v867_v58 = vxor.u32 2147483648, %v5209_v51  ;;  %v1586_v24 = vsel %vm1584_vm6, %v5205_v54, %v1585_v31  ;;  %v1589_v12 = vsel %vm1587_vm0, %v1588_v25, %v5207_v18 }
 0x265   : > { %v959_v29 = vsel %vm7275_vm8, %v7969_v53, %v6937_v44  ;;  %vm3035_vm10 = vcmp.eq.s32.totalorder %v7211_v3, 0  ;;  %v7294_v59 = vsel %vm7890_vm11, nan, %v3249_v43  ;;  %v864_v15 = vxor.u32 2147483648, %v5211_v4 }
 0x266   : > { %v7296_v55 = vand.u32 3, %v3344_v62  ;;  %v7298_v48 = vand.u32 3, %v1681_v33  ;;  %vm3034_vm6 = vcmp.lt.s32.totalorder %v7211_v3, 2  ;;  %vm1377_vm0 = vcmp.lt.s32.totalorder %v7166_v21, 2 }
 0x267   : > { %v2520_v45 = vsel %vm2518_vm3, %v867_v58, %v5211_v4  ;;  %v868_v44 = vsel %vm866_vm14, %v867_v58, %v5211_v4  ;;  %vm8025_vm2 = vcmp.lt.s32.totalorder %v7969_v53, 0  ;;  %5220 = vcosq.f32 %v959_v29 }
 0x268   : > { %v958_v36 = vsel %vm8025_vm2, %v957_v20, %v8024_v16  ;;  %vm1375_vm11 = vweird.f32 %v7973_v63  ;;  %v2517_v46 = vsel %vm2515_vm5, %v5209_v51, %v864_v15  ;;  %v865_v37 = vsel %vm863_vm13, %v5209_v51, %v864_v15 }
 0x269   : > { %v960_v11 = vsel %vm7275_vm8, 0, %v958_v36  ;;  %5222 = vsinq.f32 %v959_v29  ;;  %v2521_v54 = vsel %vm2514_vm4, %v2517_v46, %v2520_v45  ;;  %v869_v26 = vsel %vm862_vm12, %v865_v37, %v868_v44  ;;  %v5213_v31 = vpop.eup %5212 }
 0x26a   : > { %v2616_v10 = vadd.s32 3, %v960_v11  ;;  %v7317_v18 = vand.u32 3, %v960_v11  ;;  %v2522_v25 = vsel %vm860_vm7, nan, %v2521_v54  ;;  %v870_v19 = vsel %vm860_vm7, nan, %v869_v26  ;;  %v5215_v49 = vpop.eup %5214 }
 0x26b   : > { %v7325_v32 = vsel %vm1583_vm15, %v1586_v24, %v1589_v12  ;;  %vm3346_vm13 = vcmp.lt.s32.totalorder %v7296_v55, 2  ;;  %3929 = vmatprep.mubr.f32.mxu0 %v2522_v25  ;;  %vm3347_vm14 = vcmp.eq.s32.totalorder %v7296_v55, 0  ;;  %vm3350_vm12 = vcmp.eq.s32.totalorder %v7296_v55, 2 }
 0x26c   : > { %vm1687_vm5 = vcmp.eq.s32.totalorder %v7298_v48, 0  ;;  %v1382_v39 = vxor.u32 2147483648, %v5213_v31  ;;  %3930 = vmatmul.mubr.f32.gmra.mrb[6].mxu0 %v870_v19  ;;  %v2617_v34 = vand.u32 3, %v2616_v10  ;;  %v1781_v33 = vsub.s32 4, %v8026_v5  ;;  %v5217_v13 = vpop.eup %5216 }
 0x26d   : > { %v1379_v40 = vxor.u32 2147483648, %v5215_v49  ;;  %vm969_vm3 = vcmp.eq.s32.totalorder %v7317_v18, 2  ;;  %vm1690_vm8 = vcmp.eq.s32.totalorder %v7298_v48, 2  ;;  %v8027_v6 = vand.u32 2147483647, %v6181_v0  ;;  %v5219_v2 = vpop.eup %5218 }
 0x26e   : > { %v3040_v62 = vsel %vm3038_vm9, %v1382_v39, %v5215_v49  ;;  %v1383_v43 = vsel %vm1381_vm1, %v1382_v39, %v5215_v49  ;;  %v1691_v51 = vxor.u32 2147483648, %v5217_v13  ;;  %vm963_vm15 = vweird.f32 %v7969_v53  ;;  %v8038_v39 = vld [vmem:[#allocation43_spill] sm:$0xff] }
 0x26f   : > { %vm7339_vm2 = vcmp.le.f32.partialorder %v8027_v6, 0.7853982  ;;  %vm8030_vm7 = vcmp.lt.s32.totalorder %v6181_v0, 0  ;;  %v3037_v38 = vsel %vm3035_vm10, %v5213_v31, %v1379_v40  ;;  %vm8031_vm4 = vcmp.eq.s32.totalorder %v7166_v21, 0 }
 0x270   : > { %v1782_v61 = vsel %vm8030_vm7, %v1781_v33, %v8026_v5  ;;  %v1380_v16 = vsel %vm8031_vm4, %v5213_v31, %v1379_v40  ;;  %v1688_v20 = vxor.u32 2147483648, %v5219_v2  ;;  %v1783_v4 = vsel %vm7339_vm2, %v6181_v0, %v6931_v1 }
 0x271   : > { %v3041_v58 = vsel %vm3034_vm6, %v3037_v38, %v3040_v62  ;;  %v1384_v24 = vsel %vm1377_vm0, %v1380_v16, %v1383_v43  ;;  %v3352_v12 = vsel %vm3350_vm12, %v1691_v51, %v5219_v2  ;;  %v1692_v29 = vsel %vm1690_vm8, %v1691_v51, %v5219_v2  ;;  %v5221_v15 = vpop.eup %5220 }
 0x272   : > { %v3042_v45 = vsel %vm1375_vm11, nan, %v3041_v58  ;;  %v1385_v44 = vsel %vm1375_vm11, nan, %v1384_v24  ;;  %v3349_v1 = vsel %vm3347_vm14, %v5217_v13, %v1688_v20  ;;  %v1689_v3 = vsel %vm1687_vm5, %v5217_v13, %v1688_v20  ;;  %v8048_v24 = vld [vmem:[#allocation47_spill] sm:$0xff] }
 0x273   : > { %v5223_v36 = vpop.eup %5222  ;;  %3959 = vmatprep.mubr.f32.mxu1 %v3042_v45  ;;  %v970_v21 = vxor.u32 2147483648, %v5221_v15  ;;  %vm2618_vm9 = vcmp.lt.s32.totalorder %v2617_v34, 2  ;;  %vm2619_vm1 = vcmp.eq.s32.totalorder %v2617_v34, 0  ;;  %v1784_v46 = vsel %vm7339_vm2, 0, %v1782_v61  ;;  %v8044_v61 = vld [vmem:[#allocation48_spill] sm:$0xff] }
 0x274   : > { %3960 = vmatmul.mubr.f32.vlgmr.msra.gmra.mrb[0].mxu1 %v1385_v44  ;;  %v3353_v37 = vsel %vm3346_vm13, %v3349_v1, %v3352_v12  ;;  %v967_v63 = vxor.u32 2147483648, %v5223_v36  ;;  %vm2622_vm11 = vcmp.eq.s32.totalorder %v2617_v34, 2  ;;  %5224 = vcosq.f32 %v1783_v4 }
 0x275   : > { %3965 = vmatprep.mubr.f32.mxu1 %v7233_v8  ;;  %v2624_v11 = vsel %vm2622_vm11, %v970_v21, %v5223_v36  ;;  %v971_v54 = vsel %vm969_vm3, %v970_v21, %v5223_v36  ;;  %vm8032_vm10 = vcmp.lt.s32.totalorder %v7298_v48, 2  ;;  %5226 = vsinq.f32 %v1783_v4 }
 0x276   : > { %v1693_v26 = vsel %vm8032_vm10, %v1689_v3, %v1692_v29  ;;  %v2621_v10 = vsel %vm2619_vm1, %v5221_v15, %v967_v63  ;;  %vm8033_vm6 = vcmp.eq.s32.totalorder %v7317_v18, 0  ;;  %v3448_v19 = vadd.s32 3, %v1784_v46 }
 0x277   : > { %v968_v25 = vsel %vm8033_vm6, %v5221_v15, %v967_v63  ;;  %v8034_v55 = vand.u32 2147483647, %v6360_v7  ;;  %v2625_v8 = vsel %vm2618_vm9, %v2621_v10, %v2624_v11  ;;  %vm8037_vm13 = vcmp.lt.s32.totalorder %v7317_v18, 2 }
 0x278   : > { %v972_v49 = vsel %vm8037_vm13, %v968_v25, %v971_v54  ;;  %v1060_v48 = vsub.s32 4, %v8038_v39  ;;  %3966 = vmatmul.mubr.f32.gmra.mrb[2].mxu1 %v7245_v52  ;;  %v2626_v33 = vsel %vm963_vm15, nan, %v2625_v8  ;;  %v3449_v34 = vand.u32 3, %v3448_v19 }
 0x279   : > { %vm7386_vm0 = vcmp.le.f32.partialorder %v8034_v55, 0.7853982  ;;  %v973_v13 = vsel %vm963_vm15, nan, %v972_v49  ;;  %3971 = vmatprep.mubr.f32.mxu1 %v7294_v59  ;;  %vm1684_vm14 = vweird.f32 %v8016_v41  ;;  %3935 = vmatprep.mubr.f32.mxu0 %v2626_v33  ;;  %vm8039_vm12 = vcmp.lt.s32.totalorder %v6360_v7, 0 }
 0x27a   : > { %v1062_v5 = vsel %vm7386_vm0, %v6360_v7, %v6950_v28  ;;  %v1061_v18 = vsel %vm8039_vm12, %v1060_v48, %v8038_v39  ;;  %v1788_v28 = vand.u32 3, %v1784_v46  ;;  %vm8040_vm4 = vweird.f32 %v7999_v47  ;;  %3936 = vmatmul.mubr.f32.gmra.mrb[8].mxu0 %v973_v13 }
 0x27b   : > { %5228 = vcosq.f32 %v1062_v5  ;;  %v1591_v52 = vsel %vm8040_vm4, nan, %v7325_v32  ;;  %v3354_v40 = vsel %vm1684_vm14, nan, %v3353_v37  ;;  %v1694_v53 = vsel %vm1684_vm14, nan, %v1693_v26 }
 0x27c   : > { %5230 = vsinq.f32 %v1062_v5  ;;  %v1063_v6 = vsel %vm7386_vm0, 0, %v1061_v18  ;;  %vm1787_vm5 = vweird.f32 %v6181_v0  ;;  %vm3450_vm7 = vcmp.lt.s32.totalorder %v3449_v34, 2  ;;  %3972 = vmatmul.mubr.f32.gmra.mrb[4].mxu1 %v1591_v52  ;;  %v8050_v18 = vld [vmem:[#allocation46_spill] sm:$0xff] }
 0x27d   : > { %v2720_v41 = vadd.s32 3, %v1063_v6  ;;  %v1067_v59 = vand.u32 3, %v1063_v6  ;;  %vm3451_vm15 = vcmp.eq.s32.totalorder %v3449_v34, 0  ;;  %vm3454_vm3 = vcmp.eq.s32.totalorder %v3449_v34, 2  ;;  %3977 = vmatprep.mubr.f32.mxu1 %v3354_v40 }
 0x27e   : > { %vm1789_vm8 = vcmp.lt.s32.totalorder %v1788_v28, 2  ;;  %v1884_v2 = vsub.s32 4, %v8041_v27  ;;  %vm1790_vm2 = vcmp.eq.s32.totalorder %v1788_v28, 0  ;;  %vm1793_vm9 = vcmp.eq.s32.totalorder %v1788_v28, 2  ;;  %v5225_v62 = vpop.eup %5224 }
 0x27f   : > { %v2721_v47 = vand.u32 3, %v2720_v41  ;;  %v8042_v32 = vand.u32 2147483647, %v7971_v17  ;;  %vm1068_vm11 = vcmp.lt.s32.totalorder %v1067_v59, 2  ;;  %vm8043_vm10 = vcmp.lt.s32.totalorder %v7971_v17, 0  ;;  %v5227_v16 = vpop.eup %5226 }
 0x280   : > { %v1885_v43 = vsel %vm8043_vm10, %v1884_v2, %v8041_v27  ;;  %v1163_v38 = vsub.s32 4, %v8044_v61  ;;  %v1794_v20 = vxor.u32 2147483648, %v5225_v62  ;;  %vm1069_vm6 = vcmp.eq.s32.totalorder %v1067_v59, 0  ;;  %3978 = vmatmul.mubr.f32.gmra.mrb[6].mxu1 %v1694_v53 }
 0x281   : > { %vm1799_vm1 = vcmp.le.f32.partialorder %v8042_v32, 0.7853982  ;;  %vm1072_vm0 = vcmp.eq.s32.totalorder %v1067_v59, 2  ;;  %v8045_v4 = vand.u32 2147483647, %v6500_v35  ;;  %vm1182_vm14 = vcmp.lt.s32.totalorder %v8048_v24, 0 }
 0x282   : > { %v1886_v51 = vsel %vm1799_vm1, %v7971_v17, %v6945_v50  ;;  %v1791_v12 = vxor.u32 2147483648, %v5227_v16  ;;  %v1887_v29 = vsel %vm1799_vm1, 0, %v1885_v43  ;;  %vm8049_vm12 = vcmp.lt.s32.totalorder %v6500_v35, 0 }
 0x283   : > { %vm7425_vm13 = vcmp.le.f32.partialorder %v8045_v4, 0.7853982  ;;  %5232 = vcosq.f32 %v1886_v51  ;;  %v1164_v50 = vsel %vm8049_vm12, %v1163_v38, %v8044_v61  ;;  %v3456_v15 = vsel %vm3454_vm3, %v1794_v20, %v5227_v16 }
 0x284   : > { %v1795_v45 = vsel %vm1793_vm9, %v1794_v20, %v5227_v16  ;;  %5234 = vsinq.f32 %v1886_v51  ;;  %v3552_v44 = vadd.s32 3, %v1887_v29  ;;  %v3453_v3 = vsel %vm3451_vm15, %v5225_v62, %v1791_v12 }
 0x285   : > { %v5229_v1 = vpop.eup %5228  ;;  %vm2723_vm4 = vcmp.eq.s32.totalorder %v2721_v47, 0  ;;  %v1792_v36 = vsel %vm1790_vm2, %v5225_v62, %v1791_v12  ;;  %v1165_v21 = vsel %vm7425_vm13, %v6500_v35, %v6989_v42  ;;  %v3457_v37 = vsel %vm3450_vm7, %v3453_v3, %v3456_v15 }
 0x286   : > { %v5231_v46 = vpop.eup %5230  ;;  %v1073_v63 = vxor.u32 2147483648, %v5229_v1  ;;  %vm2726_vm3 = vcmp.eq.s32.totalorder %v2721_v47, 2  ;;  %v1796_v11 = vsel %vm1789_vm8, %v1792_v36, %v1795_v45  ;;  %v3458_v54 = vsel %vm1787_vm5, nan, %v3457_v37 }
 0x287   : > { %v1070_v26 = vxor.u32 2147483648, %v5231_v46  ;;  %v1166_v10 = vsel %vm7425_vm13, 0, %v1164_v50  ;;  %5236 = vcosq.f32 %v1165_v21  ;;  %3983 = vmatprep.mubr.f32.mxu1 %v3458_v54  ;;  %v1797_v42 = vsel %vm1787_vm5, nan, %v1796_v11 }
 0x288   : > { %v2728_v25 = vsel %vm2726_vm3, %v1073_v63, %v5231_v46  ;;  %v1074_v19 = vsel %vm1072_vm0, %v1073_v63, %v5231_v46  ;;  %v3553_v55 = vand.u32 3, %v3552_v44  ;;  %vm2722_vm7 = vcmp.lt.s32.totalorder %v2721_v47, 2  ;;  %3984 = vmatmul.mubr.f32.gmra.mrb[8].mxu1 %v1797_v42 }
 0x289   : > { %v2725_v31 = vsel %vm2723_vm4, %v5229_v1, %v1070_v26  ;;  %v1071_v8 = vsel %vm1069_vm6, %v5229_v1, %v1070_v26  ;;  %5238 = vsinq.f32 %v1165_v21  ;;  %vm1066_vm15 = vweird.f32 %v6360_v7 }
 0x28a   : > { %v2729_v49 = vsel %vm2722_vm7, %v2725_v31, %v2728_v25  ;;  %v1075_v39 = vsel %vm1068_vm11, %v1071_v8, %v1074_v19  ;;  %v2824_v48 = vadd.s32 3, %v1166_v10  ;;  %v1170_v13 = vand.u32 3, %v1166_v10 }
 0x28b   : > { %v2730_v5 = vsel %vm1066_vm15, nan, %v2729_v49  ;;  %v1076_v33 = vsel %vm1066_vm15, nan, %v1075_v39  ;;  %v1891_v34 = vand.u32 3, %v1887_v29  ;;  %v1265_v0 = vsel %vm1182_vm14, %v1264_v23, %v7110_v60  ;;  %v8054_v60 = vld [vmem:[#allocation45_spill] sm:$0xff] }
 0x28c   : > { %3941 = vmatprep.mubr.f32.mxu0 %v2730_v5  ;;  %vm1890_vm5 = vweird.f32 %v7971_v17  ;;  %vm3554_vm8 = vcmp.lt.s32.totalorder %v3553_v55, 2  ;;  %v1987_v7 = vsub.s32 4, %v8050_v18  ;;  %vm3555_vm2 = vcmp.eq.s32.totalorder %v3553_v55, 0 }
 0x28d   : > { %v5233_v28 = vpop.eup %5232  ;;  %3942 = vmatmul.mubr.f32.gmra.mrb[10].mxu0 %v1076_v33  ;;  %vm3558_vm9 = vcmp.eq.s32.totalorder %v3553_v55, 2  ;;  %v2825_v52 = vand.u32 3, %v2824_v48  ;;  %v8051_v40 = vand.u32 2147483647, %v6497_v14  ;;  %vm1171_vm11 = vcmp.lt.s32.totalorder %v1170_v13, 2 }
 0x28e   : > { %v5235_v6 = vpop.eup %5234  ;;  %v1897_v41 = vxor.u32 2147483648, %v5233_v28  ;;  %vm1172_vm10 = vcmp.eq.s32.totalorder %v1170_v13, 0  ;;  %vm1175_vm6 = vcmp.eq.s32.totalorder %v1170_v13, 2  ;;  %vm1892_vm0 = vcmp.lt.s32.totalorder %v1891_v34, 2 }
 0x28f   : > { %vm7463_vm1 = vcmp.le.f32.partialorder %v8051_v40, 0.7853982  ;;  %vm2006_vm13 = vcmp.lt.s32.totalorder %v8054_v60, 0  ;;  %v1894_v23 = vxor.u32 2147483648, %v5235_v6  ;;  %vm1169_vm12 = vweird.f32 %v6500_v35 }
 0x290   : > { %vm1893_vm4 = vcmp.eq.s32.totalorder %v1891_v34, 0  ;;  %vm1896_vm3 = vcmp.eq.s32.totalorder %v1891_v34, 2  ;;  %vm8055_vm7 = vcmp.lt.s32.totalorder %v6497_v14, 0  ;;  %v3560_v27 = vsel %vm3558_vm9, %v1897_v41, %v5235_v6 }
 0x291   : > { %v1988_v59 = vsel %vm8055_vm7, %v1987_v7, %v8050_v18  ;;  %v1898_v2 = vsel %vm1896_vm3, %v1897_v41, %v5235_v6  ;;  %v1989_v47 = vsel %vm7463_vm1, %v6497_v14, %v6985_v9  ;;  %v5237_v62 = vpop.eup %5236  ;;  %v3557_v43 = vsel %vm3555_vm2, %v5233_v28, %v1894_v23 }
 0x292   : > { %v1990_v32 = vsel %vm7463_vm1, 0, %v1988_v59  ;;  %v1895_v51 = vsel %vm1893_vm4, %v5233_v28, %v1894_v23  ;;  %5240 = vcosq.f32 %v1989_v47  ;;  %v3561_v38 = vsel %vm3554_vm8, %v3557_v43, %v3560_v27 }
 0x293   : > { %v3656_v61 = vadd.s32 3, %v1990_v32  ;;  %v1176_v16 = vxor.u32 2147483648, %v5237_v62  ;;  %v1899_v20 = vsel %vm1892_vm0, %v1895_v51, %v1898_v2  ;;  %5242 = vsinq.f32 %v1989_v47  ;;  %v5239_v4 = vpop.eup %5238 }
 0x294   : > { %v3562_v58 = vsel %vm1890_vm5, nan, %v3561_v38  ;;  %vm2830_vm15 = vcmp.eq.s32.totalorder %v2825_v52, 2  ;;  %v1900_v9 = vsel %vm1890_vm5, nan, %v1899_v20  ;;  %v8056_v12 = vand.u32 2147483647, %v8048_v24 }
 0x295   : > { %3989 = vmatprep.mubr.f32.mxu1 %v3562_v58  ;;  %v1173_v50 = vxor.u32 2147483648, %v5239_v4  ;;  %v2832_v15 = vsel %vm2830_vm15, %v1176_v16, %v5239_v4  ;;  %v1177_v45 = vsel %vm1175_vm6, %v1176_v16, %v5239_v4  ;;  %v1266_v44 = vsub.s32 4, %v6846_v22 }
 0x296   : > { %vm7487_vm2 = vcmp.le.f32.partialorder %v8056_v12, 0.7853982  ;;  %vm2826_vm8 = vcmp.lt.s32.totalorder %v2825_v52, 2  ;;  %vm2827_vm9 = vcmp.eq.s32.totalorder %v2825_v52, 0  ;;  %3990 = vmatmul.mubr.f32.gmra.mrb[10].mxu1 %v1900_v9  ;;  %v3657_v1 = vand.u32 3, %v3656_v61 }
 0x297   : > { %v1268_v17 = vsel %vm7487_vm2, %v8048_v24, %v1265_v0  ;;  %v2829_v3 = vsel %vm2827_vm9, %v5237_v62, %v1173_v50  ;;  %v1174_v36 = vsel %vm1172_vm10, %v5237_v62, %v1173_v50  ;;  %v1267_v21 = vsel %vm1182_vm14, %v1266_v44, %v6846_v22 }
 0x298   : > { %5244 = vcosq.f32 %v1268_v17  ;;  %v2833_v46 = vsel %vm2826_vm8, %v2829_v3, %v2832_v15  ;;  %v1178_v37 = vsel %vm1171_vm11, %v1174_v36, %v1177_v45  ;;  %v1269_v63 = vsel %vm7487_vm2, 0, %v1267_v21 }
 0x299   : > { %5246 = vsinq.f32 %v1268_v17  ;;  %v2089_v11 = vsel %vm2006_vm13, %v2088_v56, %v6991_v30  ;;  %v2834_v54 = vsel %vm1169_vm12, nan, %v2833_v46  ;;  %v1179_v22 = vsel %vm1169_vm12, nan, %v1178_v37 }
 0x29a   : > { %v2928_v26 = vadd.s32 3, %v1269_v63  ;;  %3947 = vmatprep.mubr.f32.mxu0 %v2834_v54  ;;  %v1994_v10 = vand.u32 3, %v1990_v32  ;;  %v2090_v25 = vsub.s32 4, %v6760_v57  ;;  %v8059_v19 = vand.u32 2147483647, %v8054_v60 }
 0x29b   : > { %3948 = vmatmul.mubr.f32.gmra.mrb[12].mxu0 %v1179_v22  ;;  %vm3658_vm5 = vcmp.lt.s32.totalorder %v3657_v1, 2  ;;  %vm3659_vm1 = vcmp.eq.s32.totalorder %v3657_v1, 0  ;;  %vm3662_vm11 = vcmp.eq.s32.totalorder %v3657_v1, 2  ;;  %v1273_v8 = vand.u32 3, %v1269_v63  ;;  %v3835_v1 = vld [vmem:[%s7796_s3] sm:$0x3] }
 0x29c   : > { %vm7515_vm14 = vcmp.le.f32.partialorder %v8059_v19, 0.7853982  ;;  %v5241_v55 = vpop.eup %5240  ;;  %v2929_v31 = vand.u32 3, %v2928_v26  ;;  %vm1995_vm10 = vcmp.lt.s32.totalorder %v1994_v10, 2  ;;  %vm1999_vm6 = vcmp.eq.s32.totalorder %v1994_v10, 2 }
 0x29d   : > { %v2092_v35 = vsel %vm7515_vm14, %v8054_v60, %v2089_v11  ;;  %v5243_v30 = vpop.eup %5242  ;;  %v2000_v56 = vxor.u32 2147483648, %v5241_v55  ;;  %v2091_v39 = vsel %vm2006_vm13, %v2090_v25, %v6760_v57  ;;  %vm1996_vm0 = vcmp.eq.s32.totalorder %v1994_v10, 0 }
 0x29e   : > { %v1997_v49 = vxor.u32 2147483648, %v5243_v30  ;;  %5248 = vcosq.f32 %v2092_v35  ;;  %v2093_v34 = vsel %vm7515_vm14, 0, %v2091_v39  ;;  %vm1993_vm12 = vweird.f32 %v6497_v14 }
 0x29f   : > { %v3664_v48 = vsel %vm3662_vm11, %v2000_v56, %v5243_v30  ;;  %v2001_v5 = vsel %vm1999_vm6, %v2000_v56, %v5243_v30  ;;  %5250 = vsinq.f32 %v2092_v35  ;;  %vm1278_vm13 = vcmp.eq.s32.totalorder %v1273_v8, 2 }
 0x2a0   : > { %v3661_v33 = vsel %vm3659_vm1, %v5241_v55, %v1997_v49  ;;  %v1998_v13 = vsel %vm1996_vm0, %v5241_v55, %v1997_v49  ;;  %vm2934_vm4 = vcmp.eq.s32.totalorder %v2929_v31, 2  ;;  %v3760_v6 = vadd.s32 3, %v2093_v34 }
 0x2a1   : > { %v3665_v18 = vsel %vm3658_vm5, %v3661_v33, %v3664_v48  ;;  %v2002_v7 = vsel %vm1995_vm10, %v1998_v13, %v2001_v5  ;;  %vm2931_vm3 = vcmp.eq.s32.totalorder %v2929_v31, 0  ;;  %vm1275_vm7 = vcmp.eq.s32.totalorder %v1273_v8, 0 }
 0x2a2   : > { %v5245_v0 = vpop.eup %5244  ;;  %v3666_v52 = vsel %vm1993_vm12, nan, %v3665_v18  ;;  %v2003_v53 = vsel %vm1993_vm12, nan, %v2002_v7  ;;  %vm2930_vm15 = vcmp.lt.s32.totalorder %v2929_v31, 2  ;;  %vm1274_vm2 = vcmp.lt.s32.totalorder %v1273_v8, 2 }
 0x2a3   : > { %v5247_v28 = vpop.eup %5246  ;;  %v1279_v40 = vxor.u32 2147483648, %v5245_v0  ;;  %3995 = vmatprep.mubr.f32.mxu1 %v3666_v52  ;;  %vm1272_vm8 = vweird.f32 %v8048_v24  ;;  %v3761_v62 = vand.u32 3, %v3760_v6  ;;  %v2097_v43 = vand.u32 3, %v2093_v34 }
 0x2a4   : > { %v1276_v57 = vxor.u32 2147483648, %v5247_v28  ;;  %3996 = vmatmul.mubr.f32.gmra.mrb[12].mxu1 %v2003_v53  ;;  %vm2096_vm6 = vweird.f32 %v8054_v60  ;;  %v3837_v15 = vlaneseq }
 0x2a5   : > { %v2936_v41 = vsel %vm2934_vm4, %v1279_v40, %v5247_v28  ;;  %v1280_v23 = vsel %vm1278_vm13, %v1279_v40, %v5247_v28  ;;  %vm3766_vm9 = vcmp.eq.s32.totalorder %v3761_v62, 2  ;;  %vm2102_vm14 = vcmp.eq.s32.totalorder %v2097_v43, 2 }
 0x2a6   : > { %v2933_v59 = vsel %vm2931_vm3, %v5245_v0, %v1276_v57  ;;  %v1277_v14 = vsel %vm1275_vm7, %v5245_v0, %v1276_v57  ;;  %vm3763_vm5 = vcmp.eq.s32.totalorder %v3761_v62, 0  ;;  %vm2099_vm1 = vcmp.eq.s32.totalorder %v2097_v43, 0 }
 0x2a7   : > { %v2937_v27 = vsel %vm2930_vm15, %v2933_v59, %v2936_v41  ;;  %v1281_v2 = vsel %vm1274_vm2, %v1277_v14, %v1280_v23  ;;  %vm3762_vm11 = vcmp.lt.s32.totalorder %v3761_v62, 2  ;;  %vm2098_vm10 = vcmp.lt.s32.totalorder %v2097_v43, 2 }
 0x2a8   : > { %v2938_v47 = vsel %vm1272_vm8, nan, %v2937_v27  ;;  %v1282_v32 = vsel %vm1272_vm8, nan, %v1281_v2  ;;  %v5249_v51 = vpop.eup %5248  ;;  %v3838_v45 = vshrl.u32 %v3837_v15, 7 }
 0x2a9   : > { %3953 = vmatprep.mubr.f32.mxu0 %v2938_v47  ;;  %v5251_v61 = vpop.eup %5250  ;;  %v2103_v38 = vxor.u32 2147483648, %v5249_v51 }
 0x2aa   : > { %3954 = vmatmul.mubr.f32.gmra.mrb[14].mxu0 %v1282_v32  ;;  %v2100_v16 = vxor.u32 2147483648, %v5251_v61  ;;  %v3839_v44 = vsub.s32 0, %v3838_v45  ;;  %v3843_v17 = vsub.s32 1, %v3838_v45 }
 0x2ab   : > { %v3768_v20 = vsel %vm3766_vm9, %v2103_v38, %v5251_v61  ;;  %v2104_v4 = vsel %vm2102_vm14, %v2103_v38, %v5251_v61 }
 0x2ac   : > { %v3765_v24 = vsel %vm3763_vm5, %v5249_v51, %v2100_v16  ;;  %v2101_v58 = vsel %vm2099_vm1, %v5249_v51, %v2100_v16  ;;  %v7534_v3 = vrot.slane %v3835_v1, %v3839_v44  ;;  %v7536_v36 = vrot.slane %v3835_v1, %v3843_v17 }
 0x2ad   : > { %v3769_v9 = vsel %vm3762_vm11, %v3765_v24, %v3768_v20  ;;  %v2105_v12 = vsel %vm2098_vm10, %v2101_v58, %v2104_v4 }
 0x2ae   : > { %v3770_v29 = vsel %vm2096_vm6, nan, %v3769_v9  ;;  %v2106_v50 = vsel %vm2096_vm6, nan, %v2105_v12 }
 0x2af   : > { %4001 = vmatprep.mubr.f32.mxu1 %v3770_v29 }
 0x2b0   : > { %4002 = vmatmul.mubr.f32.gmra.mrb[14].mxu1 %v2106_v50 }
 0x328   : > { %v3913_v21 = vpop.f32.mrb[0].mxu0 }
 0x329   : > { %v7539_v60 = vadd.f32 %v3913_v21, %v7534_v3  ;;  %v3915_v46 = vpop.f32.mrb[1].mxu0 }
 0x32a   : > { %v7542_v37 = vadd.f32 %v3915_v46, %v7536_v36 }
 0x32b   : > { %v4805_v63 = vmul.f32 -1.442695, %v7539_v60 }
 0x32c   : > { %v4806_v11 = vmul.f32 -1.442695, %v7542_v37  ;;  %v3919_v54 = vpop.f32.mrb[2].mxu0 }
 0x32d   : > { %5252 = vpow2.f32 %v4805_v63  ;;  %v3920_v22 = vadd.f32 %v3919_v54, %v7534_v3  ;;  %v3921_v26 = vpop.f32.mrb[3].mxu0 }
 0x32e   : > { %5254 = vpow2.f32 %v4806_v11  ;;  %v3922_v10 = vadd.f32 %v3921_v26, %v7536_v36 }
 0x32f   : > { %v4807_v25 = vmul.f32 -1.442695, %v3920_v22 }
 0x330   : > { %v4808_v19 = vmul.f32 -1.442695, %v3922_v10  ;;  %v3925_v42 = vpop.f32.mrb[4].mxu0 }
 0x331   : > { %5256 = vpow2.f32 %v4807_v25  ;;  %v7549_v55 = vadd.f32 %v3925_v42, %v7534_v3  ;;  %v3927_v35 = vpop.f32.mrb[5].mxu0 }
 0x332   : > { %5258 = vpow2.f32 %v4808_v19  ;;  %v7552_v30 = vadd.f32 %v3927_v35, %v7536_v36 }
 0x333   : > { %v4809_v56 = vmul.f32 -1.442695, %v7549_v55 }
 0x334   : > { %v4810_v31 = vmul.f32 -1.442695, %v7552_v30 }
 0x335   : > { %5260 = vpow2.f32 %v4809_v56 }
 0x336   : > { %5262 = vpow2.f32 %v4810_v31 }
 0x337   : > { %v5253_v8 = vpop.eup %5252 }
 0x338   : > { %v5255_v49 = vpop.eup %5254  ;;  %v4104_v39 = vadd.f32 1.0, %v5253_v8 }
 0x339   : > { %v4105_v48 = vadd.f32 1.0, %v5255_v49 }
 0x33a   : > { %5264 = vrcp.f32 %v4104_v39 }
 0x33b   : > { %v5257_v5 = vpop.eup %5256  ;;  %5266 = vrcp.f32 %v4105_v48 }
 0x33c   : > { %v5259_v13 = vpop.eup %5258  ;;  %v4106_v34 = vadd.f32 1.0, %v5257_v5 }
 0x33d   : > { %v4107_v7 = vadd.f32 1.0, %v5259_v13 }
 0x33e   : > { %5268 = vrcp.f32 %v4106_v34 }
 0x33f   : > { %v3931_v33 = vpop.f32.mrb[6].mxu0  ;;  %v5261_v40 = vpop.eup %5260  ;;  %5270 = vrcp.f32 %v4107_v7 }
 0x340   : > { %v7557_v0 = vadd.f32 %v3931_v33, %v7534_v3  ;;  %v3933_v18 = vpop.f32.mrb[7].mxu0  ;;  %v5263_v53 = vpop.eup %5262  ;;  %v4108_v41 = vadd.f32 1.0, %v5261_v40 }
 0x341   : > { %v7560_v28 = vadd.f32 %v3933_v18, %v7536_v36  ;;  %v4109_v2 = vadd.f32 1.0, %v5263_v53 }
 0x342   : > { %v4811_v52 = vmul.f32 -1.442695, %v7557_v0 }
 0x343   : > { %v4812_v57 = vmul.f32 -1.442695, %v7560_v28 }
 0x344   : > { %5272 = vpow2.f32 %v4811_v52  ;;  %v5265_v47 = vpop.eup %5264 }
 0x345   : > { %5274 = vpow2.f32 %v4812_v57  ;;  %v5267_v43 = vpop.eup %5266  ;;  %v4200_v24 = vmul.f32 %v5265_v47, %v7539_v60 }
 0x346   : > { %5276 = vrcp.f32 %v4108_v41  ;;  %v4201_v50 = vmul.f32 %v5267_v43, %v7542_v37 }
 0x347   : > { %v3961_v6 = vpop.f32.mrb[0].mxu1 }
 0x348   : > { %v7565_v23 = vadd.f32 %v3961_v6, %v7534_v3  ;;  %v3963_v59 = vpop.f32.mrb[1].mxu1  ;;  %v5269_v38 = vpop.eup %5268 }
 0x349   : > { %v7568_v14 = vadd.f32 %v3963_v59, %v7536_v36  ;;  %v5271_v4 = vpop.eup %5270  ;;  %v4202_v58 = vmul.f32 %v5269_v38, %v3920_v22 }
 0x34a   : > { %v4821_v27 = vmul.f32 -1.442695, %v7565_v23  ;;  %v4203_v15 = vmul.f32 %v5271_v4, %v3922_v10 }
 0x34b   : > { %v4822_v32 = vmul.f32 -1.442695, %v7568_v14  ;;  %v3967_v62 = vpop.f32.mrb[2].mxu1  ;;  %v4232_v21 = vpack.c.bf16 %v4202_v58, %v4200_v24 }
 0x34c   : > { %5278 = vpow2.f32 %v4821_v27  ;;  %v7573_v51 = vadd.f32 %v3967_v62, %v7534_v3  ;;  %v3969_v61 = vpop.f32.mrb[3].mxu1  ;;  %v4233_v11 = vpack.c.bf16 %v4203_v15, %v4201_v50 }
 0x34d   : > { %5280 = vpow2.f32 %v4822_v32  ;;  %v7576_v16 = vadd.f32 %v3969_v61, %v7536_v36  ;;  %v3937_v20 = vpop.f32.mrb[8].mxu0  ;;  %4248 = vst [vmem:[#allocation2] sm:$0xff] %v4232_v21 }
 0x34e   : > { %v4823_v9 = vmul.f32 -1.442695, %v7573_v51  ;;  %5282 = vrcp.f32 %v4109_v2  ;;  %v3939_v12 = vpop.f32.mrb[9].mxu0  ;;  %v5273_v29 = vpop.eup %5272  ;;  %v7583_v1 = vadd.f32 %v3937_v20, %v7534_v3  ;;  %4249 = vst [vmem:[#allocation2 + $0x8] sm:$0xff] %v4233_v11 }
 0x34f   : > { %v4824_v45 = vmul.f32 -1.442695, %v7576_v16  ;;  %v3973_v44 = vpop.f32.mrb[4].mxu1  ;;  %v5275_v17 = vpop.eup %5274  ;;  %v4110_v46 = vadd.f32 1.0, %v5273_v29  ;;  %v7602_v48 = vadd.f32 %v3939_v12, %v7536_v36 }
 0x350   : > { %5284 = vpow2.f32 %v4823_v9  ;;  %v7586_v60 = vadd.f32 %v3973_v44, %v7534_v3  ;;  %v3975_v63 = vpop.f32.mrb[5].mxu1  ;;  %v4111_v54 = vadd.f32 1.0, %v5275_v17  ;;  %v5277_v42 = vpop.eup %5276  ;;  %v4813_v35 = vmul.f32 -1.442695, %v7583_v1 }
 0x351   : > { %5286 = vpow2.f32 %v4824_v45  ;;  %v7589_v37 = vadd.f32 %v3975_v63, %v7536_v36  ;;  %v4814_v53 = vmul.f32 -1.442695, %v7602_v48  ;;  %v4204_v47 = vmul.f32 %v5277_v42, %v7549_v55 }
 0x352   : > { %5288 = vrcp.f32 %v4110_v46  ;;  %v4825_v22 = vmul.f32 -1.442695, %v7586_v60 }
 0x353   : > { %5290 = vrcp.f32 %v4111_v54  ;;  %v4826_v26 = vmul.f32 -1.442695, %v7589_v37  ;;  %v3979_v10 = vpop.f32.mrb[6].mxu1 }
 0x354   : > { %5292 = vpow2.f32 %v4825_v22  ;;  %v7594_v25 = vadd.f32 %v3979_v10, %v7534_v3  ;;  %v3981_v19 = vpop.f32.mrb[7].mxu1 }
 0x355   : > { %5294 = vpow2.f32 %v4826_v26  ;;  %v7598_v56 = vadd.f32 %v3981_v19, %v7536_v36 }
 0x356   : > { %v5279_v31 = vpop.eup %5278  ;;  %v4827_v8 = vmul.f32 -1.442695, %v7594_v25 }
 0x357   : > { %v5281_v49 = vpop.eup %5280  ;;  %v4120_v39 = vadd.f32 1.0, %v5279_v31  ;;  %v4828_v5 = vmul.f32 -1.442695, %v7598_v56 }
 0x358   : > { %v5283_v33 = vpop.eup %5282  ;;  %v4121_v13 = vadd.f32 1.0, %v5281_v49  ;;  %5296 = vpow2.f32 %v4827_v8 }
 0x359   : > { %5298 = vpow2.f32 %v4813_v35  ;;  %v4205_v38 = vmul.f32 %v5283_v33, %v7552_v30 }
 0x35a   : > { %v5285_v18 = vpop.eup %5284  ;;  %5300 = vrcp.f32 %v4120_v39 }
 0x35b   : > { %v3985_v34 = vpop.f32.mrb[8].mxu1  ;;  %v5287_v40 = vpop.eup %5286  ;;  %v4122_v57 = vadd.f32 1.0, %v5285_v18  ;;  %5302 = vpow2.f32 %v4828_v5 }
 0x35c   : > { %v7606_v7 = vadd.f32 %v3985_v34, %v7534_v3  ;;  %v3987_v52 = vpop.f32.mrb[9].mxu1  ;;  %v5289_v41 = vpop.eup %5288  ;;  %5304 = vrcp.f32 %v4121_v13  ;;  %v4123_v59 = vadd.f32 1.0, %v5287_v40 }
 0x35d   : > { %v7610_v6 = vadd.f32 %v3987_v52, %v7536_v36  ;;  %v5291_v2 = vpop.eup %5290  ;;  %5306 = vrcp.f32 %v4122_v57  ;;  %v4206_v32 = vmul.f32 %v5289_v41, %v7557_v0 }
 0x35e   : > { %v4829_v27 = vmul.f32 -1.442695, %v7606_v7  ;;  %v5293_v61 = vpop.eup %5292  ;;  %5308 = vrcp.f32 %v4123_v59  ;;  %v4207_v20 = vmul.f32 %v5291_v2, %v7560_v28 }
 0x35f   : > { %v4830_v43 = vmul.f32 -1.442695, %v7610_v6  ;;  %v5295_v58 = vpop.eup %5294  ;;  %v4234_v9 = vpack.c.bf16 %v4206_v32, %v4204_v47  ;;  %v4124_v12 = vadd.f32 1.0, %v5293_v61  ;;  %5310 = vpow2.f32 %v4814_v53 }
 0x360   : > { %v3943_v62 = vpop.f32.mrb[10].mxu0  ;;  %v4235_v0 = vpack.c.bf16 %v4207_v20, %v4205_v38  ;;  %v4125_v29 = vadd.f32 1.0, %v5295_v58  ;;  %5312 = vpow2.f32 %v4829_v27 }
 0x361   : > { %v7619_v4 = vadd.f32 %v3943_v62, %v7534_v3  ;;  %v3945_v24 = vpop.f32.mrb[11].mxu0  ;;  %4250 = vst [vmem:[#allocation2 + $0x10] sm:$0xff] %v4234_v9  ;;  %5314 = vpow2.f32 %v4830_v43 }
 0x362   : > { %v7622_v55 = vadd.f32 %v3945_v24, %v7536_v36  ;;  %v5297_v30 = vpop.eup %5296  ;;  %4251 = vst [vmem:[#allocation2 + $0x18] sm:$0xff] %v4235_v0  ;;  %5316 = vrcp.f32 %v4124_v12 }
 0x363   : > { %v4815_v28 = vmul.f32 -1.442695, %v7619_v4  ;;  %v5299_v50 = vpop.eup %5298  ;;  %v4126_v15 = vadd.f32 1.0, %v5297_v30  ;;  %5318 = vrcp.f32 %v4125_v29 }
 0x364   : > { %v4816_v45 = vmul.f32 -1.442695, %v7622_v55  ;;  %v5301_v44 = vpop.eup %5300  ;;  %v4112_v52 = vadd.f32 1.0, %v5299_v50 }
 0x365   : > { %v5303_v17 = vpop.eup %5302  ;;  %5320 = vrcp.f32 %v4126_v15  ;;  %v4216_v19 = vmul.f32 %v5301_v44, %v7565_v23 }
 0x366   : > { %v5305_v46 = vpop.eup %5304  ;;  %v4127_v63 = vadd.f32 1.0, %v5303_v17  ;;  %5322 = vpow2.f32 %v4815_v28 }
 0x367   : > { %v5307_v22 = vpop.eup %5306  ;;  %5324 = vpow2.f32 %v4816_v45  ;;  %v4217_v8 = vmul.f32 %v5305_v46, %v7568_v14 }
 0x368   : > { %v5309_v10 = vpop.eup %5308  ;;  %v4218_v42 = vmul.f32 %v5307_v22, %v7573_v51  ;;  %5326 = vrcp.f32 %v4127_v63 }
 0x369   : > { %v3991_v21 = vpop.f32.mrb[10].mxu1  ;;  %v5311_v31 = vpop.eup %5310  ;;  %v4219_v49 = vmul.f32 %v5309_v10, %v7576_v16 }
 0x36a   : > { %v7627_v11 = vadd.f32 %v3991_v21, %v7534_v3  ;;  %v3993_v54 = vpop.f32.mrb[11].mxu1  ;;  %v5313_v5 = vpop.eup %5312  ;;  %v4240_v33 = vpack.c.bf16 %v4218_v42, %v4216_v19  ;;  %v4113_v51 = vadd.f32 1.0, %v5311_v31 }
 0x36b   : > { %v7630_v26 = vadd.f32 %v3993_v54, %v7536_v36  ;;  %v5315_v34 = vpop.eup %5314  ;;  %v4241_v18 = vpack.c.bf16 %v4219_v49, %v4217_v8  ;;  %v4128_v57 = vadd.f32 1.0, %v5313_v5 }
 0x36c   : > { %v4831_v35 = vmul.f32 -1.442695, %v7627_v11  ;;  %4256 = vst [vmem:[#allocation2 + $0x40] sm:$0xff] %v4240_v33  ;;  %v5317_v40 = vpop.eup %5316  ;;  %v4129_v14 = vadd.f32 1.0, %v5315_v34 }
 0x36d   : > { %v4832_v39 = vmul.f32 -1.442695, %v7630_v26  ;;  %4257 = vst [vmem:[#allocation2 + $0x48] sm:$0xff] %v4241_v18  ;;  %v5319_v53 = vpop.eup %5318  ;;  %v4220_v27 = vmul.f32 %v5317_v40, %v7586_v60 }
 0x36e   : > { %v3949_v13 = vpop.f32.mrb[12].mxu0  ;;  %5328 = vpow2.f32 %v4831_v35  ;;  %v4221_v24 = vmul.f32 %v5319_v53, %v7589_v37 }
 0x36f   : > { %v3951_v23 = vpop.f32.mrb[13].mxu0  ;;  %5330 = vpow2.f32 %v4832_v39  ;;  %v7639_v16 = vadd.f32 %v3949_v13, %v7534_v3  ;;  %v5321_v41 = vpop.eup %5320 }
 0x370   : > { %5332 = vrcp.f32 %v4112_v52  ;;  %v5323_v59 = vpop.eup %5322  ;;  %v4222_v2 = vmul.f32 %v5321_v41, %v7594_v25  ;;  %v7644_v62 = vadd.f32 %v3951_v23, %v7536_v36 }
 0x371   : > { %5334 = vrcp.f32 %v4113_v51  ;;  %v5325_v47 = vpop.eup %5324  ;;  %v4114_v32 = vadd.f32 1.0, %v5323_v59  ;;  %v4817_v20 = vmul.f32 -1.442695, %v7639_v16 }
 0x372   : > { %5336 = vrcp.f32 %v4128_v57  ;;  %v5327_v43 = vpop.eup %5326  ;;  %v4242_v61 = vpack.c.bf16 %v4222_v2, %v4220_v27  ;;  %v4115_v38 = vadd.f32 1.0, %v5325_v47  ;;  %v4818_v30 = vmul.f32 -1.442695, %v7644_v62 }
 0x373   : > { %5338 = vrcp.f32 %v4129_v14  ;;  %v4223_v58 = vmul.f32 %v5327_v43, %v7598_v56 }
 0x374   : > { %5340 = vrcp.f32 %v4114_v32  ;;  %4258 = vst [vmem:[#allocation2 + $0x50] sm:$0xff] %v4242_v61 }
 0x375   : > { %5342 = vrcp.f32 %v4115_v38  ;;  %v4243_v0 = vpack.c.bf16 %v4223_v58, %v4221_v24 }
 0x376   : > { %5344 = vpow2.f32 %v4817_v20 }
 0x377   : > { %v3997_v60 = vpop.f32.mrb[12].mxu1  ;;  %4259 = vst [vmem:[#allocation2 + $0x58] sm:$0xff] %v4243_v0 }
 0x378   : > { %v5329_v25 = vpop.eup %5328  ;;  %v3999_v9 = vpop.f32.mrb[13].mxu1  ;;  %v7651_v28 = vadd.f32 %v3997_v60, %v7534_v3 }
 0x379   : > { %v5331_v12 = vpop.eup %5330  ;;  %v4130_v29 = vadd.f32 1.0, %v5329_v25  ;;  %v7661_v46 = vadd.f32 %v3999_v9, %v7536_v36 }
 0x37a   : > { %v4131_v50 = vadd.f32 1.0, %v5331_v12  ;;  %v5333_v56 = vpop.eup %5332  ;;  %v4833_v45 = vmul.f32 -1.442695, %v7651_v28 }
 0x37b   : > { %5346 = vrcp.f32 %v4130_v29  ;;  %v5335_v17 = vpop.eup %5334  ;;  %v4208_v35 = vmul.f32 %v5333_v56, %v7583_v1  ;;  %v4834_v8 = vmul.f32 -1.442695, %v7661_v46 }
 0x37c   : > { %5348 = vrcp.f32 %v4131_v50  ;;  %v5337_v63 = vpop.eup %5336  ;;  %v4209_v49 = vmul.f32 %v5335_v17, %v7602_v48 }
 0x37d   : > { %v3955_v37 = vpop.f32.mrb[14].mxu0  ;;  %5350 = vpow2.f32 %v4818_v30  ;;  %v5339_v22 = vpop.eup %5338  ;;  %v4224_v1 = vmul.f32 %v5337_v63, %v7606_v7 }
 0x37e   : > { %v7654_v15 = vadd.f32 %v3955_v37, %v7534_v3  ;;  %v3957_v44 = vpop.f32.mrb[15].mxu0  ;;  %v5341_v19 = vpop.eup %5340  ;;  %5352 = vpow2.f32 %v4833_v45 }
 0x37f   : > { %v7658_v21 = vadd.f32 %v3957_v44, %v7536_v36  ;;  %v5343_v42 = vpop.eup %5342  ;;  %v4210_v31 = vmul.f32 %v5341_v19, %v7619_v4 }
 0x380   : > { %v4819_v54 = vmul.f32 -1.442695, %v7654_v15  ;;  %v4211_v39 = vmul.f32 %v5343_v42, %v7622_v55  ;;  %v5345_v5 = vpop.eup %5344  ;;  %v4225_v55 = vmul.f32 %v5339_v22, %v7610_v6 }
 0x381   : > { %v4820_v10 = vmul.f32 -1.442695, %v7658_v21  ;;  %v4236_v33 = vpack.c.bf16 %v4210_v31, %v4208_v35 }
 0x382   : > { %5354 = vpow2.f32 %v4819_v54  ;;  %v4237_v18 = vpack.c.bf16 %v4211_v39, %v4209_v49 }
 0x383   : > { %5356 = vpow2.f32 %v4820_v10  ;;  %v4003_v13 = vpop.f32.mrb[14].mxu1  ;;  %4252 = vst [vmem:[#allocation2 + $0x20] sm:$0xff] %v4236_v33 }
 0x384   : > { %v4004_v52 = vadd.f32 %v4003_v13, %v7534_v3  ;;  %v4005_v23 = vpop.f32.mrb[15].mxu1  ;;  %5358 = vpow2.f32 %v4834_v8  ;;  %4253 = vst [vmem:[#allocation2 + $0x28] sm:$0xff] %v4237_v18  ;;  %v4116_v3 = vadd.f32 1.0, %v5345_v5 }
 0x385   : > { %v5347_v34 = vpop.eup %5346  ;;  %v4006_v48 = vadd.f32 %v4005_v23, %v7536_v36 }
 0x386   : > { %v5349_v51 = vpop.eup %5348  ;;  %v4226_v4 = vmul.f32 %v5347_v34, %v7627_v11  ;;  %v4835_v53 = vmul.f32 -1.442695, %v4004_v52 }
 0x387   : > { %v5351_v40 = vpop.eup %5350  ;;  %v4227_v57 = vmul.f32 %v5349_v51, %v7630_v26  ;;  %v4836_v41 = vmul.f32 -1.442695, %v4006_v48 }
 0x388   : > { %v4244_v14 = vpack.c.bf16 %v4226_v4, %v4224_v1  ;;  %5360 = vpow2.f32 %v4835_v53  ;;  %v4117_v27 = vadd.f32 1.0, %v5351_v40  ;;  %v5353_v7 = vpop.eup %5352 }
 0x389   : > { %v4245_v59 = vpack.c.bf16 %v4227_v57, %v4225_v55  ;;  %5362 = vpow2.f32 %v4836_v41  ;;  %v4132_v26 = vadd.f32 1.0, %v5353_v7 }
 0x38a   : > { %4260 = vst [vmem:[#allocation2 + $0x60] sm:$0xff] %v4244_v14  ;;  %5364 = vrcp.f32 %v4116_v3 }
 0x38b   : > { %4261 = vst [vmem:[#allocation2 + $0x68] sm:$0xff] %v4245_v59  ;;  %5366 = vrcp.f32 %v4117_v27 }
 0x38c   : > { %v5355_v11 = vpop.eup %5354 }
 0x38d   : > { %v5357_v2 = vpop.eup %5356  ;;  %v4118_v36 = vadd.f32 1.0, %v5355_v11 }
 0x38e   : > { %v4119_v47 = vadd.f32 1.0, %v5357_v2  ;;  %v5359_v6 = vpop.eup %5358 }
 0x38f   : > { %5368 = vrcp.f32 %v4118_v36  ;;  %v4133_v43 = vadd.f32 1.0, %v5359_v6 }
 0x390   : > { %5370 = vrcp.f32 %v4119_v47 }
 0x391   : > { %5372 = vrcp.f32 %v4132_v26 }
 0x392   : > { %v5361_v32 = vpop.eup %5360 }
 0x393   : > { %v4134_v61 = vadd.f32 1.0, %v5361_v32  ;;  %v5363_v38 = vpop.eup %5362 }
 0x394   : > { %v5365_v20 = vpop.eup %5364  ;;  %v4135_v24 = vadd.f32 1.0, %v5363_v38 }
 0x395   : > { %5374 = vrcp.f32 %v4134_v61  ;;  %v5367_v58 = vpop.eup %5366  ;;  %v4212_v9 = vmul.f32 %v5365_v20, %v7639_v16 }
 0x396   : > { %5376 = vrcp.f32 %v4133_v43  ;;  %v4213_v0 = vmul.f32 %v5367_v58, %v7644_v62 }
 0x397   : > { %5378 = vrcp.f32 %v4135_v24 }
 0x399   : > { %v5369_v60 = vpop.eup %5368 }
 0x39a   : > { %v5371_v25 = vpop.eup %5370  ;;  %v4214_v12 = vmul.f32 %v5369_v60, %v7654_v15 }
 0x39b   : > { %v4215_v29 = vmul.f32 %v5371_v25, %v7658_v21  ;;  %v5373_v37 = vpop.eup %5372 }
 0x39c   : > { %v4238_v30 = vpack.c.bf16 %v4214_v12, %v4212_v9  ;;  %v4228_v44 = vmul.f32 %v5373_v37, %v7651_v28 }
 0x39d   : > { %v4239_v50 = vpack.c.bf16 %v4215_v29, %v4213_v0 }
 0x39e   : > { %4254 = vst [vmem:[#allocation2 + $0x30] sm:$0xff] %v4238_v30 }
 0x39f   : > { %4255 = vst [vmem:[#allocation2 + $0x38] sm:$0xff] %v4239_v50  ;;  %v5375_v56 = vpop.eup %5374 }
 0x3a0   : > { %v5377_v45 = vpop.eup %5376  ;;  %v4230_v17 = vmul.f32 %v5375_v56, %v4004_v52 }
 0x3a1   : > { %v5379_v63 = vpop.eup %5378  ;;  %v4229_v16 = vmul.f32 %v5377_v45, %v7661_v46 }
 0x3a2   : > { %v4246_v54 = vpack.c.bf16 %v4230_v17, %v4228_v44  ;;  %v4231_v22 = vmul.f32 %v5379_v63, %v4006_v48 }
 0x3a4   : > { %4262 = vst [vmem:[#allocation2 + $0x70] sm:$0xff] %v4246_v54  ;;  %v4247_v15 = vpack.c.bf16 %v4231_v22, %v4229_v16 }
 0x3a6   : > { %4263 = vst [vmem:[#allocation2 + $0x78] sm:$0xff] %v4247_v15 }
 0x3a7 PF: > { %v5381_v62 = vld [vmem:[%s5757_s20 + $0x40] sm:$0xff]   ;;  %v5383_v28 = vld [vmem:[%s5757_s20 + $0x48] sm:$0xff]   ;;  %v5385_v10 = vld [vmem:[%s5757_s20 + $0x50] sm:$0xff]   ;;  %s4855_s29 = sshll.u32 %s5533_s24, 7  ;;  %s4529_s19 = scalar_lea.sflag [#allocation5], %s5753_s27 }
 0x3a8   : > { %v5382_v21 = vld [vmem:[%s5757_s20] sm:$0xff]   ;;  %4858 = vmatprep.subr.bf16.mxu0 %v5381_v62  ;;  %5018 = vmatprep.subr.bf16.mxu1 %v5381_v62  ;;  %v5384_v46 = vld [vmem:[%s5757_s20 + $0x8] sm:$0xff]   ;;  %v5386_v19 = vld [vmem:[%s5757_s20 + $0x10] sm:$0xff]   ;;  %s7736_s24 = scalar_lea.hbm %s7799_s6, %s4855_s29  ;;  %p8062_p4 = scmp.ne.s32.totalorder %s7895_s8, 0 }
 0x3a9   : > { %4859 = vmatpush3.bf16.msra.mxu0 %v5382_v21  ;;  %5026 = vmatpush3.bf16.msra.mxu1 %v5382_v21  ;;  %v5387_v42 = vld [vmem:[%s5757_s20 + $0x58] sm:$0xff]   ;;  %v5389_v31 = vld [vmem:[%s5757_s20 + $0x60] sm:$0xff]   ;;  %v5391_v49 = vld [vmem:[%s5757_s20 + $0x68] sm:$0xff]   ;;  %s5557_s14 = smov [#allocation8]  }
 0x3aa   : > { %4860 = vmatprep.subr.bf16.mxu0 %v5383_v28  ;;  %5019 = vmatprep.subr.bf16.mxu1 %v5383_v28  ;;  %v5388_v35 = vld [vmem:[%s5757_s20 + $0x18] sm:$0xff]   ;;  %v5390_v8 = vld [vmem:[%s5757_s20 + $0x20] sm:$0xff]   ;;  %v4265_v39 = vld [vmem:[#allocation2 + $0x8] sm:$0xff]  ;;  %s5459_s17 = sshll.u32 %s5557_s14, 4  ;;  %s5460_s17 = int_to_ptr.vmem [resolvable:$false] %s5459_s17 }
 0x3ab   : > { %v4273_v5 = vld [vmem:[#allocation2 + $0x48] sm:$0xff]  ;;  %4447 = vmatprep.mubr.bf16.mxu0 %v4265_v39  ;;  %v5393_v13 = vld [vmem:[%s5757_s20 + $0x70] sm:$0xff]   ;;  %v5395_v18 = vld [vmem:[%s5757_s20 + $0x78] sm:$0xff]   ;;  %s5461_s12 = scalar_lea.vmem %s5460_s17, 4096 }
 0x3ac   : > { %4479 = vmatprep.mubr.bf16.mxu1 %v4273_v5  ;;  %v5392_v33 = vld [vmem:[%s5757_s20 + $0x28] sm:$0xff]   ;;  %v5394_v34 = vld [vmem:[%s5757_s20 + $0x30] sm:$0xff]   ;;  %v5396_v52 = vld [vmem:[%s5757_s20 + $0x38] sm:$0xff]  }
 0x3ad   : > { %4861 = vmatpush3.bf16.msra.mxu0 %v5384_v46  ;;  %5027 = vmatpush3.bf16.msra.mxu1 %v5384_v46  ;;  %v4264_v23 = vld [vmem:[#allocation2] sm:$0xff]  ;;  %v4267_v1 = vld [vmem:[#allocation2 + $0x18] sm:$0xff]  ;;  %v4266_v48 = vld [vmem:[#allocation2 + $0x10] sm:$0xff] }
 0x3ae   : > { %4862 = vmatprep.subr.bf16.mxu0 %v5385_v10  ;;  %5020 = vmatprep.subr.bf16.mxu1 %v5385_v10  ;;  %v4272_v51 = vld [vmem:[#allocation2 + $0x40] sm:$0xff]  ;;  %v4275_v4 = vld [vmem:[#allocation2 + $0x58] sm:$0xff]  ;;  %v4274_v40 = vld [vmem:[#allocation2 + $0x50] sm:$0xff] }
 0x3af   : > { %v4269_v55 = vld [vmem:[#allocation2 + $0x28] sm:$0xff]  ;;  %v4268_v53 = vld [vmem:[#allocation2 + $0x20] sm:$0xff]  ;;  %v4271_v41 = vld [vmem:[#allocation2 + $0x38] sm:$0xff] }
 0x3b0   : > { %v4277_v57 = vld [vmem:[#allocation2 + $0x68] sm:$0xff]  ;;  %v4276_v14 = vld [vmem:[#allocation2 + $0x60] sm:$0xff]  ;;  %v4279_v3 = vld [vmem:[#allocation2 + $0x78] sm:$0xff] }
 0x3b1   : > { %4863 = vmatpush3.bf16.msra.mxu0 %v5386_v19  ;;  %5028 = vmatpush3.bf16.msra.mxu1 %v5386_v19  ;;  %v4270_v59 = vld [vmem:[#allocation2 + $0x30] sm:$0xff]  ;;  %v7703_v2 = vld [vmem:[%s333_s13] ss:$0 sm:$0xff]  ;;  %s4544_s13 = sshll.u32 %s5771_s11, 4  ;;  %s7738_s13 = int_to_ptr.vmem [resolvable:$true] %s4544_s13 }
 0x3b2   : > { %4864 = vmatprep.subr.bf16.mxu0 %v5387_v42  ;;  %5021 = vmatprep.subr.bf16.mxu1 %v5387_v42  ;;  %v4278_v27 = vld [vmem:[#allocation2 + $0x70] sm:$0xff]  ;;  %s5455_s10 = scalar_lea.vmem %s7738_s13, 2048  ;;  %p5462_p3 = scmp.lt.s32.totalorder %s7738_s13, %s5460_s17 }
 0x3b3   : > { %p5456_p13 = scmp.ne.s32.totalorder %s7738_s13, %s5455_s10  ;;  %p5463_p6 = scmp.lt.s32.totalorder %s5461_s12, %s5455_s10 }
 0x3b5   : > { %4865 = vmatpush3.bf16.msra.mxu0 %v5388_v35  ;;  %5029 = vmatpush3.bf16.msra.mxu1 %v5388_v35  ;;  %p5457_p1 = pnand %p5456_p13, %p8062_p4  ;;  %p5464_p0 = por %p5463_p6, %p5462_p3 }
 0x3b6   : > { %4866 = vmatprep.subr.bf16.mxu0 %v5389_v31  ;;  %5022 = vmatprep.subr.bf16.mxu1 %v5389_v31 }
 0x3b7   : > { %p5458_p10 = pneg %p5457_p1 }
 0x3b9   : > { %4867 = vmatpush3.bf16.msra.mxu0 %v5390_v8  ;;  %5030 = vmatpush3.bf16.msra.mxu1 %v5390_v8  ;;  %p5465_p2 = pnand %p5464_p0, %p5458_p10 }
 0x3ba   : > { %4868 = vmatprep.subr.bf16.mxu0 %v5391_v49  ;;  %5023 = vmatprep.subr.bf16.mxu1 %v5391_v49 }
 0x3bd   : > { %4869 = vmatpush3.bf16.msra.mxu0 %v5392_v33  ;;  %5031 = vmatpush3.bf16.msra.mxu1 %v5392_v33 }
 0x3be   : > { %4870 = vmatprep.subr.bf16.mxu0 %v5393_v13  ;;  %5024 = vmatprep.subr.bf16.mxu1 %v5393_v13 }
 0x3c1   : > { %4871 = vmatpush3.bf16.msra.mxu0 %v5394_v34  ;;  %5032 = vmatpush3.bf16.msra.mxu1 %v5394_v34 }
 0x3c2   : > { %4872 = vmatprep.subr.bf16.mxu0 %v5395_v18  ;;  %5025 = vmatprep.subr.bf16.mxu1 %v5395_v18 }
 0x3c5   : > { %4873 = vmatpush3.bf16.msra.mxu0 %v5396_v52  ;;  %5033 = vmatpush3.bf16.msra.mxu1 %v5396_v52 }
 0x3c8   : > { %4448 = vmatmul.mubr.bf16.vlgmr.msra.gmra.mrb[0].mxu0 %v4264_v23  ;;  %4480 = vmatmul.mubr.bf16.vlgmr.msra.gmra.mrb[0].mxu1 %v4272_v51 }
 0x3c9   : > { %4455 = vmatprep.mubr.bf16.mxu0 %v4267_v1  ;;  %4487 = vmatprep.mubr.bf16.mxu1 %v4275_v4 }
 0x3d0   : > { %4456 = vmatmul.mubr.bf16.gmra.mrb[4].mxu0 %v4266_v48  ;;  %4488 = vmatmul.mubr.bf16.gmra.mrb[4].mxu1 %v4274_v40 }
 0x3d1   : > { %4463 = vmatprep.mubr.bf16.mxu0 %v4269_v55  ;;  %4495 = vmatprep.mubr.bf16.mxu1 %v4277_v57 }
 0x3d8   : > { %4464 = vmatmul.mubr.bf16.gmra.mrb[8].mxu0 %v4268_v53  ;;  %4496 = vmatmul.mubr.bf16.gmra.mrb[8].mxu1 %v4276_v14 }
 0x3d9   : > { %4471 = vmatprep.mubr.bf16.mxu0 %v4271_v41  ;;  %4503 = vmatprep.mubr.bf16.mxu1 %v4279_v3 }
 0x3e0   : > { %4472 = vmatmul.mubr.bf16.gmra.mrb[12].mxu0 %v4270_v59  ;;  %4504 = vmatmul.mubr.bf16.gmra.mrb[12].mxu1 %v4278_v27 }
 0x49b   : > { %v4874_v7 = vpop.f32.mrb[0].mxu0  ;;  %v4898_v11 = vpop.f32.mrb[0].mxu1 }
 0x49c   : > { %v4875_v36 = vpop.f32.mrb[1].mxu0  ;;  %v4899_v47 = vpop.f32.mrb[1].mxu1 }
 0x49d   : > { %v4876_v6 = vadd.f32 %v4875_v36, %v4874_v7  ;;  %v4900_v26 = vadd.f32 %v4899_v47, %v4898_v11  ;;  %v4877_v32 = vpop.f32.mrb[2].mxu0  ;;  %v4901_v43 = vpop.f32.mrb[2].mxu1 }
 0x49e   : > { %v4878_v61 = vpop.f32.mrb[3].mxu0  ;;  %v4902_v38 = vpop.f32.mrb[3].mxu1 }
 0x49f   : > { %v4450_v20 = vadd.f32 %v4876_v6, %v7703_v2  ;;  %v4482_v24 = vadd.f32 %v4900_v26, %v7703_v2  ;;  %v4879_v58 = vadd.f32 %v4878_v61, %v4877_v32  ;;  %v4903_v60 = vadd.f32 %v4902_v38, %v4901_v43 }
 0x4a1   : > { %4512 = vst [vmem:[%s5771_s11] sm:$0xff] %v4450_v20  ;;  %4520 = vst [vmem:[%s5771_s11 + $0x40] sm:$0xff] %v4482_v24  ;;  %v4453_v25 = vadd.f32 %v4879_v58, %v7703_v2  ;;  %v4485_v9 = vadd.f32 %v4903_v60, %v7703_v2 }
 0x4a3   : > { %4513 = vst [vmem:[%s5771_s11 + $0x8] sm:$0xff] %v4453_v25  ;;  %4521 = vst [vmem:[%s5771_s11 + $0x48] sm:$0xff] %v4485_v9  ;;  %v4880_v12 = vpop.f32.mrb[4].mxu0  ;;  %v4904_v0 = vpop.f32.mrb[4].mxu1 }
 0x4a4   : > { %v4881_v29 = vpop.f32.mrb[5].mxu0  ;;  %v4905_v30 = vpop.f32.mrb[5].mxu1 }
 0x4a5   : > { %v4882_v50 = vadd.f32 %v4881_v29, %v4880_v12  ;;  %v4906_v37 = vadd.f32 %v4905_v30, %v4904_v0  ;;  %v4883_v56 = vpop.f32.mrb[6].mxu0  ;;  %v4907_v45 = vpop.f32.mrb[6].mxu1 }
 0x4a6   : > { %v4884_v44 = vpop.f32.mrb[7].mxu0  ;;  %v4908_v17 = vpop.f32.mrb[7].mxu1 }
 0x4a7   : > { %v4458_v63 = vadd.f32 %v4882_v50, %v7703_v2  ;;  %v4490_v54 = vadd.f32 %v4906_v37, %v7703_v2  ;;  %v4885_v16 = vadd.f32 %v4884_v44, %v4883_v56  ;;  %v4909_v22 = vadd.f32 %v4908_v17, %v4907_v45 }
 0x4a9   : > { %4514 = vst [vmem:[%s5771_s11 + $0x10] sm:$0xff] %v4458_v63  ;;  %4522 = vst [vmem:[%s5771_s11 + $0x50] sm:$0xff] %v4490_v54  ;;  %v4461_v15 = vadd.f32 %v4885_v16, %v7703_v2  ;;  %v4493_v62 = vadd.f32 %v4909_v22, %v7703_v2 }
 0x4ab   : > { %4515 = vst [vmem:[%s5771_s11 + $0x18] sm:$0xff] %v4461_v15  ;;  %4523 = vst [vmem:[%s5771_s11 + $0x58] sm:$0xff] %v4493_v62  ;;  %v4886_v21 = vpop.f32.mrb[8].mxu0  ;;  %v4910_v28 = vpop.f32.mrb[8].mxu1 }
 0x4ac   : > { %v4887_v46 = vpop.f32.mrb[9].mxu0  ;;  %v4911_v10 = vpop.f32.mrb[9].mxu1 }
 0x4ad   : > { %v4888_v19 = vadd.f32 %v4887_v46, %v4886_v21  ;;  %v4912_v42 = vadd.f32 %v4911_v10, %v4910_v28  ;;  %v4889_v35 = vpop.f32.mrb[10].mxu0  ;;  %v4913_v31 = vpop.f32.mrb[10].mxu1 }
 0x4ae   : > { %v4890_v8 = vpop.f32.mrb[11].mxu0  ;;  %v4914_v49 = vpop.f32.mrb[11].mxu1 }
 0x4af   : > { %v4466_v39 = vadd.f32 %v4888_v19, %v7703_v2  ;;  %v4498_v5 = vadd.f32 %v4912_v42, %v7703_v2  ;;  %v4891_v33 = vadd.f32 %v4890_v8, %v4889_v35  ;;  %v4915_v13 = vadd.f32 %v4914_v49, %v4913_v31 }
 0x4b1   : > { %4516 = vst [vmem:[%s5771_s11 + $0x20] sm:$0xff] %v4466_v39  ;;  %4524 = vst [vmem:[%s5771_s11 + $0x60] sm:$0xff] %v4498_v5  ;;  %v4469_v34 = vadd.f32 %v4891_v33, %v7703_v2  ;;  %v4501_v18 = vadd.f32 %v4915_v13, %v7703_v2 }
 0x4b3   : > { %4517 = vst [vmem:[%s5771_s11 + $0x28] sm:$0xff] %v4469_v34  ;;  %4525 = vst [vmem:[%s5771_s11 + $0x68] sm:$0xff] %v4501_v18  ;;  %v4892_v52 = vpop.f32.mrb[12].mxu0  ;;  %v4916_v23 = vpop.f32.mrb[12].mxu1 }
 0x4b4   : > { %v4893_v51 = vpop.f32.mrb[13].mxu0  ;;  %v4917_v1 = vpop.f32.mrb[13].mxu1 }
 0x4b5   : > { %v4894_v4 = vadd.f32 %v4893_v51, %v4892_v52  ;;  %v4918_v48 = vadd.f32 %v4917_v1, %v4916_v23  ;;  %v4895_v40 = vpop.f32.mrb[14].mxu0  ;;  %v4919_v55 = vpop.f32.mrb[14].mxu1 }
 0x4b6   : > { %v4896_v57 = vpop.f32.mrb[15].mxu0  ;;  %v4920_v53 = vpop.f32.mrb[15].mxu1 }
 0x4b7   : > { %v4474_v14 = vadd.f32 %v4894_v4, %v7703_v2  ;;  %v4506_v41 = vadd.f32 %v4918_v48, %v7703_v2  ;;  %v4897_v3 = vadd.f32 %v4896_v57, %v4895_v40  ;;  %v4921_v59 = vadd.f32 %v4920_v53, %v4919_v55 }
 0x4b9   : > { %4518 = vst [vmem:[%s5771_s11 + $0x30] sm:$0xff] %v4474_v14  ;;  %4526 = vst [vmem:[%s5771_s11 + $0x70] sm:$0xff] %v4506_v41  ;;  %v4477_v27 = vadd.f32 %v4897_v3, %v7703_v2  ;;  %v4509_v7 = vadd.f32 %v4921_v59, %v7703_v2 }
 0x4bb   : > { %4519 = vst [vmem:[%s5771_s11 + $0x38] sm:$0xff] %v4477_v27  ;;  %4527 = vst [vmem:[%s5771_s11 + $0x78] sm:$0xff] %v4509_v7 }
 0x4bc   : > { %5468 = shalt.err (!%p5465_p2)
}
 0x4bd   : > { %s5469_s11 = scalar_lea.hbm %s7736_s24, 2048  ;;  %s5473_s18 = scalar_lea.hbm %s7799_s6, 4096 }
 0x4be   : > { %p5470_p7 = scmp.ne.s32.totalorder %s7736_s24, %s5469_s11  ;;  %p5474_p8 = scmp.lt.u32.totalorder %s7736_s24, %s7799_s6 }
 0x4bf   : > { %p5475_p9 = scmp.lt.u32.totalorder %s5473_s18, %s5469_s11  ;;  %p5477_p13 = scmp.lt.u32.totalorder %s5469_s11, %s7736_s24 }
 0x4c0   : > { %p5471_p12 = pnand %p5470_p7, %p8062_p4 }
 0x4c1   : > { %p5476_p11 = por %p5475_p9, %p5474_p8 }
 0x4c2   : > { %p5472_p5 = pneg %p5471_p12 }
 0x4c3   : > { %p5478_p1 = por %p5477_p13, %p5476_p11 }
 0x4c5   : > { %p5479_p10 = pnand %p5478_p1, %p5472_p5 }
 0x4c7   : > { %5482 = shalt.err (!%p5479_p10)
}
 0x4c8   : > { %s5558_s29 = smov 128   ;;  %s5559_s28 = smov 256  }
 0x4c9   : > { %s5560_s30 = smov 8  }
 0x4ca   : > { %5104 = dma.vmem_to_hbm [thread:$0]  (%p8062_p4), %s7738_s13, 2048, %s7736_s24, %s4529_s19, %s5558_s29, %s5559_s28, %s5560_s30  }
 0x4cb PF: > { %s8063_s10 = sld [smem:[#allocation13_spill]]  ;;  %s8064_s14 = sld [smem:[#allocation12_spill]] }
 0x4cc   : > { %s4559_s17 = sand.u32 1, %s5521_s21  }
 0x4cd   : > { %s4560_s12 = scalar_lea.sflag [#allocation5], %s4559_s17 }
 0x4d1   : > { %p8065_p3 = scmp.ne.s32.totalorder %s8063_s10, 0  ;;  %p8066_p6 = scmp.ge.s32.totalorder %s8064_s14, 2 }
 0x4d3   : > { %p5115_p0 = pnand %p8066_p6, %p8065_p3 }
 0x4d5   : > { %5516 = dma.done.wait (!%p5115_p0), %s4560_s12, 2048  }
 0x4d6   : > { %5518 = vsyncadd (!%p5115_p0), %s4560_s12, 4294965248  ;;  %s23_s26 = sadd.s32 1, %s8064_s14   ;;  %s8067_s21 = smov %s5525_s22 }
 0x4d7   : > { %p20_p2 = scmp.ge.s32.totalorder %s23_s26, 4   ;;  %s8068_s22 = smov %s5529_s23 }
 0x4d8   : > { %s8069_s23 = smov %s5714_s16  ;;  %s8070_s24 = smov %s5537_s25 }
 0x4d9   : > { %s8071_s25 = smov %s8073_s15  ;;  %22 = sbr.rel (!%p20_p2) target bundleno = 7 (0x7), region = 104 }
 0x4e0   :  { %4565 = vsyncpa [#allocation4], 1 }
 0x4e1   :  { %4567 = vsyncpa [#allocation4 + $0x1], 1 }
 0x4e2   :  { %4568 = vsyncpa [#allocation7], 1 }
 0x4e3   :  { %4570 = vsyncpa [#allocation7 + $0x1], 1 }
 0x4e4   :  { %4571 = vsyncpa [#allocation5], 1 }
 0x4e5   :  { %4573 = vsyncpa [#allocation5 + $0x1], 1 }

// kernel: tpu_custom_call.1
= control target key start
LH: loop header
LB: loop body
LE: loop exit
PB: predicated region body
PF: predicated region fallthrough
CT: control target
= control target key end

     0   :  { %11 = vsyncpa [#allocation4], 0  ;;  %s7793_s0 = inlined_call_operand.vmem [shape: f32[128,1], index: 0, kind: input, shape index: {}]   ;;  %s7794_s1 = inlined_call_operand.vmem [shape: f32[1,128], index: 1, kind: input, shape index: {}]   ;;  %s7795_s2 = inlined_call_operand.hbm [shape: f32[256,256], index: 2, kind: input, shape index: {}]   ;;  %s7796_s3 = inlined_call_operand.vmem [shape: f32[1,256], index: 3, kind: input, shape index: {}]   ;;  %s7797_s4 = inlined_call_operand.hbm [shape: bf16[256,256], index: 4, kind: input, shape index: {}]   ;;  %s7798_s5 = inlined_call_operand.vmem [shape: f32[1,256], index: 5, kind: input, shape index: {}]   ;;  %s7799_s6 = inlined_call_operand.hbm [shape: f32[128,256], index: 6, kind: output, shape index: {}]  }
   0x1   :  { %12 = vsyncpa [#allocation7], 0 }
   0x2   :  { %14 = vsyncpa [#allocation7 + $0x1], 0 }
   0x3   :  { %15 = vsyncpa [#allocation5], 0 }
   0x4   :  { %17 = vsyncpa [#allocation5 + $0x1], 0  ;;  %s5596_s21 = smov 0   ;;  %s5598_s22 = smov 0  }
   0x5   :  { %s5600_s23 = smov 0   ;;  %s5602_s24 = smov 0  }
   0x6   :  { %s5604_s25 = smov 0   ;;  %s5606_s26 = smov 0  }
   0x7 LB: > { %7891 = sst [smem:[#allocation12_spill]] %s5541_s26  ;;  %s4663_s27 = sadd.s32 4294967295, %s5541_s26   ;;  %s5541_s26 = sphi %s5606_s26, %s23_s26   ;;  %s5537_s25 = sphi %s5604_s25, %s8071_s25   ;;  %s5533_s24 = sphi %s5602_s24, %s8070_s24   ;;  %s5529_s23 = sphi %s5600_s23, %s8069_s23   ;;  %s5525_s22 = sphi %s5598_s22, %s8068_s22   ;;  %s5521_s21 = sphi %s5596_s21, %s8067_s21  }
   0x8   : > { %s4664_s28 = sadd.s32 4294967294, %s5541_s26   ;;  %p138_p0 = scmp.ne.s32.totalorder %s5529_s23, %s5525_s22 }
   0x9   : > { %p139_p1 = scmp.eq.s32.totalorder %s5541_s26, 0  ;;  %p144_p2 = scmp.ne.s32.totalorder %s5525_s22, %s5521_s21 }
   0xa   : > { %p5633_p3 = scmp.eq.s32.totalorder %s4663_s27, 0  ;;  %p196_p5 = scmp.eq.s32.totalorder %s4663_s27, 1 }
   0xb   : > { %p5637_p4 = por %p139_p1, %p138_p0  ;;  %p202_p7 = scmp.eq.s32.totalorder %s4664_s28, 1 }
   0xc   : > { %s7892_s29 = scalar_select %p5633_p3, 1, 0 }
   0xd   : > { %p5643_p6 = por %p5633_p3, %p144_p2  ;;  %p5647_p8 = por %p196_p5, %p138_p0 }
   0xe   : > { %p4665_p9 = scmp.ge.s32.totalorder %s5541_s26, 1  ;;  %p5652_p10 = por %p202_p7, %p144_p2 }
   0xf   : > { %s7894_s7 = scalar_select %p5643_p6, 1, 0 }
  0x10   : > { %s7895_s8 = scalar_select %p5647_p8, 1, 0 }
  0x11   : > { %s7896_s9 = scalar_select %p5652_p10, 1, 0 }
  0x12   : > { %p209_p11 = scmp.lt.s32.totalorder %s5541_s26, 3  ;;  %s5543_s11 = smov [#allocation3]  }
  0x13   : > { %7897 = sst [smem:[#allocation13_spill]] %s7896_s9  ;;  %s233_s12 = sshll.u32 %s5543_s11, 4  ;;  %s5661_s12 = int_to_ptr.vmem [resolvable:$true] %s233_s12 }
  0x14   : > { %p5657_p12 = pnand %p4665_p9, %p209_p11  ;;  %p5119_p1 = scmp.lt.s32.totalorder %s5541_s26, 2 }
  0x15   : > { %s32_s15 = sadd.s32 1, %s5537_s25  ;;  %s5397_s18 = scalar_lea.hbm %s7795_s2, 8192 }
  0x16   : > { %s7898_s10 = scalar_select %p5657_p12, 1, 0 }
  0x17   : > { %p5106_p13 = pneg %p5657_p12  ;;  %p5675_p2 = pnand %p5119_p1, %p5637_p4 }
  0x18   : > { %p5398_p7 = scmp.ne.s32.totalorder %s7795_s2, %s5397_s18  ;;  %p5404_p4 = scmp.lt.u32.totalorder %s5397_s18, %s7795_s2 }
  0x19   : > { %p5669_p5 = pnand %p5106_p13, %p5633_p3 }
  0x1a   : > { %s7900_s14 = scalar_select %p5675_p2, 1, 0 }
  0x1b   : > { %p5399_p9 = pneg %p5669_p5 }
  0x1d   : > { %p5400_p11 = pnand %p5399_p9, %p5398_p7 }
  0x1f   : > { %p5401_p13 = pneg %p5400_p11 }
  0x21   : > { %p5406_p1 = pnand %p5404_p4, %p5401_p13 }
  0x23   : > { %5409 = shalt.err (!%p5406_p1)
}
  0x24   : > { %s5410_s30 = scalar_lea.vmem %s5661_s12, 8192  ;;  %p5418_p6 = scmp.lt.s32.totalorder %s5661_s12, %s5661_s12 }
  0x25   : > { %p5411_p0 = scmp.ne.s32.totalorder %s5661_s12, %s5410_s30  ;;  %p5419_p3 = scmp.lt.s32.totalorder %s5410_s30, %s5410_s30 }
  0x27   : > { %p5413_p10 = pnand %p5411_p0, %p5399_p9  ;;  %p5420_p12 = por %p5419_p3, %p5418_p6 }
  0x29   : > { %p5414_p8 = pneg %p5413_p10 }
  0x2b   : > { %p5421_p2 = pnand %p5420_p12, %p5414_p8 }
  0x2d   : > { %5424 = shalt.err (!%p5421_p2)
}
  0x2e   : > { %s5544_s11 = smov 256   ;;  %s5545_s16 = smov 16  }
  0x2f   : > { %5109 = dma.hbm_to_vmem [thread:$0]  (!%p5669_p5), %s7795_s2, 8192, %s5661_s12, [#allocation4], %s5544_s11, %s5544_s11, %s5545_s16  }
  0x30   : > { %p33_p10 = scmp.ge.s32.totalorder %s32_s15, 2  ;;  %s131_s19 = sadd.s32 1, %s5529_s23 }
  0x31   : > { %s250_s20 = sand.u32 1, %s5529_s23   ;;  %s4670_s30 = sshll.u32 %s5537_s25, 6 }
  0x32   : > { %s8073_s15 = smov (%p33_p10, %s32_s15), 0  ;;  %s4669_s27 = sshll.u32 %s250_s20, 7 }
  0x33   : > { %s128_s28 = ssub.s32 %s5537_s25, %s8073_s15  ;;  %s5711_s13 = scalar_lea.hbm %s7797_s4, %s4670_s30 }
  0x34   : > { %p129_p3 = scmp.eq.s32.totalorder %s128_s28, 0  ;;  %s254_s12 = scalar_lea.vmem [#allocation6], %s4669_s27 }
  0x35   : > { %s260_s11 = sshll.u32 %s254_s12, 4  ;;  %s5718_s17 = scalar_lea.sflag [#allocation7], %s250_s20  ;;  %s5716_s11 = int_to_ptr.vmem [resolvable:$true] %s260_s11 }
  0x36   : > { %s5714_s16 = scalar_select %p129_p3, %s5529_s23, %s131_s19  }
  0x37   : > { %s5425_s18 = scalar_lea.hbm %s5711_s13, 2048  ;;  %p7901_p8 = scmp.ne.s32.totalorder %s7900_s14, 0 }
  0x38   : > { %p5426_p6 = scmp.ne.s32.totalorder %s5711_s13, %s5425_s18  ;;  %s5430_s28 = scalar_lea.hbm %s7797_s4, 4096 }
  0x39   : > { %p5427_p12 = pneg %p7901_p8  ;;  %p5431_p2 = scmp.lt.u32.totalorder %s5711_s13, %s7797_s4 }
  0x3a   : > { %p5432_p7 = scmp.lt.u32.totalorder %s5430_s28, %s5425_s18  ;;  %p5434_p11 = scmp.lt.u32.totalorder %s5425_s18, %s5711_s13 }
  0x3b   : > { %p5428_p0 = pnand %p5427_p12, %p5426_p6 }
  0x3c   : > { %p5433_p9 = por %p5432_p7, %p5431_p2 }
  0x3d   : > { %p5429_p5 = pneg %p5428_p0 }
  0x3e   : > { %p5435_p13 = por %p5434_p11, %p5433_p9 }
  0x40   : > { %p5436_p4 = pnand %p5435_p13, %p5429_p5 }
  0x42   : > { %5439 = shalt.err (!%p5436_p4)
}
  0x43   : > { %s5440_s19 = scalar_lea.vmem %s5716_s11, 2048  ;;  %s5546_s20 = smov [#allocation6]  }
  0x44   : > { %p5441_p1 = scmp.ne.s32.totalorder %s5716_s11, %s5440_s19  ;;  %s5445_s12 = sshll.u32 %s5546_s20, 4  ;;  %s5446_s12 = int_to_ptr.vmem [resolvable:$false] %s5445_s12 }
  0x45   : > { %s5447_s26 = scalar_lea.vmem %s5446_s12, 4096  ;;  %p5448_p6 = scmp.lt.s32.totalorder %s5716_s11, %s5446_s12 }
  0x46   : > { %p5443_p10 = pnand %p5441_p1, %p5427_p12  ;;  %p5449_p0 = scmp.lt.s32.totalorder %s5447_s26, %s5440_s19 }
  0x48   : > { %p5444_p3 = pneg %p5443_p10  ;;  %p5450_p2 = por %p5449_p0, %p5448_p6 }
  0x4a   : > { %p5451_p7 = pnand %p5450_p2, %p5444_p3 }
  0x4c   : > { %5454 = shalt.err (!%p5451_p7)
}
  0x4d   : > { %s5547_s18 = smov 128   ;;  %s5548_s9 = smov 64  }
  0x4e   : > { %s5549_s28 = smov 4   ;;  %p7902_p12 = scmp.ne.s32.totalorder %s7898_s10, 0 }
  0x4f   : > { %5113 = dma.hbm_to_vmem [thread:$0]  (!%p7901_p8), %s5711_s13, 2048, %s5716_s11, %s5718_s17, %s5547_s18, %s5548_s9, %s5549_s28  }
  0x50   : > { %278 = sbr.rel (%p7902_p12) target bundleno = 1227 (0x4cb), region = 44  ;;  %p7903_p5 = scmp.ne.s32.totalorder (!%p7902_p12), %s7892_s29, 0 }
  0x57   : > { %5508 = dma.done.wait (%p7903_p5), [#allocation4], 8192  }
  0x58   : > { %5510 = vsyncadd (%p7903_p5), [#allocation4], 4294959104  ;;  %s5753_s27 = sand.u32 1, %s5525_s22   ;;  %p7904_p8 = scmp.ne.s32.totalorder %s7894_s7, 0 }
  0x59   : > { %s4673_s30 = sshll.u32 %s5753_s27, 7  ;;  %s285_s19 = scalar_lea.sflag [#allocation7], %s5753_s27 }
  0x5a   : > { %s5757_s20 = scalar_lea.vmem [#allocation6], %s4673_s30 }
  0x5b   : > { %5512 = dma.done.wait (%p7904_p8), %s285_s19, 2048  }
  0x5c   : > { %5514 = vsyncadd (%p7904_p8), %s285_s19, 4294965248  ;;  %p331_p9 = scmp.lt.s32.totalorder %s5533_s24, 1  ;;  %s5771_s11 = scalar_lea.vmem [#allocation8], %s4673_s30 }
  0x5d   : > { %p4675_p11 = scmp.ne.s32.totalorder %s5533_s24, 0 }
  0x5e   : > { %s5765_s29 = scalar_select %p331_p9, %s5533_s24, 1 }
  0x5f   : > { %339 = sbr.rel (%p4675_p11) target bundleno = 935 (0x3a7), region = 56 }
  0x60   : > { %s333_s13 = scalar_lea.vmem %s7798_s5, %s5765_s29 }
  0x66   : > { %v341_v0 = vld [vmem:[%s7793_s0 + $0x8] sm:$0xff]  ;;  %v340_v1 = vld [vmem:[%s7793_s0] sm:$0xff]  ;;  %v5550_v2 = vmov 0   ;;  %v350_v5 = vld [vmem:[%s7793_s0 + $0x50] sm:$0xff]  ;;  %v7819_v39 = vmov 683565275  }
  0x67   : > { %5187 = vset.pattern.permute.xlu1 %v5550_v2  ;;  %5186 = vset.pattern.permute.xlu0 %v5550_v2  ;;  %v349_v3 = vld [vmem:[%s7793_s0 + $0x48] sm:$0xff]  ;;  %v348_v4 = vld [vmem:[%s7793_s0 + $0x40] sm:$0xff]  ;;  %v342_v6 = vld [vmem:[%s7793_s0 + $0x10] sm:$0xff]  ;;  %v7825_v41 = vmov 2475754826  }
  0x68   : > { %364 = vperm.xlu1 %5187, %v341_v0   ;;  %359 = vperm.xlu0 %5186, %v340_v1   ;;  %v351_v7 = vld [vmem:[%s7793_s0 + $0x58] sm:$0xff]  ;;  %v352_v9 = vld [vmem:[%s7793_s0 + $0x60] sm:$0xff]  ;;  %v353_v11 = vld [vmem:[%s7793_s0 + $0x68] sm:$0xff]  ;;  %v7816_v43 = vmov 2131351028  }
  0x69   : > { %v343_v8 = vld [vmem:[%s7793_s0 + $0x18] sm:$0xff]  ;;  %v344_v10 = vld [vmem:[%s7793_s0 + $0x20] sm:$0xff]  ;;  %v345_v12 = vld [vmem:[%s7793_s0 + $0x28] sm:$0xff]  ;;  %v7837_v45 = vmov 2102212464  }
  0x6a   : > { %v354_v13 = vld [vmem:[%s7793_s0 + $0x70] sm:$0xff]  ;;  %v355_v15 = vld [vmem:[%s7793_s0 + $0x78] sm:$0xff]  ;;  %v5825_v17 = vld [vmem:[%s7794_s1] ss:$0 sm:$0xff]  ;;  %v7839_v47 = vmov 920167782  }
  0x6b   : > { %v346_v14 = vld [vmem:[%s7793_s0 + $0x30] sm:$0xff]  ;;  %v347_v16 = vld [vmem:[%s7793_s0 + $0x38] sm:$0xff]  ;;  %v7814_v55 = vmov 1326507024  }
  0x6c   : > { %404 = vperm.xlu1 %5187, %v349_v3   ;;  %399 = vperm.xlu0 %5186, %v348_v4  }
  0x70   : > { %409 = vperm.xlu1 %5187, %v350_v5   ;;  %369 = vperm.xlu0 %5186, %v342_v6  }
  0x74   : > { %414 = vperm.xlu1 %5187, %v351_v7   ;;  %374 = vperm.xlu0 %5186, %v343_v8  }
  0x78   : > { %419 = vperm.xlu1 %5187, %v352_v9   ;;  %379 = vperm.xlu0 %5186, %v344_v10  }
  0x7c   : > { %424 = vperm.xlu1 %5187, %v353_v11   ;;  %384 = vperm.xlu0 %5186, %v345_v12  }
  0x80   : > { %429 = vperm.xlu1 %5187, %v354_v13   ;;  %389 = vperm.xlu0 %5186, %v346_v14  }
  0x84   : > { %434 = vperm.xlu1 %5187, %v355_v15   ;;  %394 = vperm.xlu0 %5186, %v347_v16  }
  0xe7   : > { %v365_v18 = vpop.permute.xlu1 %364  ;;  %v360_v21 = vpop.permute.xlu0 %359 }
  0xe8   : > { %v5828_v19 = vmul.f32 %v5825_v17, %v365_v18  ;;  %v5832_v24 = vmul.f32 %v5825_v17, %v360_v21 }
  0xea   : > { %7905 = vst [vmem:[#allocation14_spill] sm:$0xff] %v5828_v19  ;;  %v565_v20 = vand.u32 2139095040, %v5828_v19  ;;  %v7813_v27 = vand.u32 2147483647, %v5828_v19  ;;  %v462_v29 = vand.u32 2139095040, %v5832_v24 }
  0xeb   : > { %v405_v22 = vpop.permute.xlu1 %404  ;;  %v400_v34 = vpop.permute.xlu0 %399 }
  0xec   : > { %v566_v23 = vshrl.u32 %v565_v20, 23  ;;  %v5835_v25 = vmul.f32 %v5825_v17, %v405_v22  ;;  %v569_v32 = vand.u32 8388607, %v7813_v27  ;;  %v463_v36 = vshrl.u32 %v462_v29, 23 }
  0xed   : > { %v5848_v49 = vmul.f32 %v5825_v17, %v400_v34 }
  0xee   : > { %v4681_v26 = vadd.s32 4294967169, %v566_v23  ;;  %v1389_v30 = vand.u32 2139095040, %v5835_v25  ;;  %v570_v50 = vor.u32 8388608, %v569_v32  ;;  %v4677_v57 = vadd.s32 4294967169, %v463_v36 }
  0xef   : > { %7906 = vst [vmem:[#allocation15_spill] sm:$0xff] %v5848_v49  ;;  %v7812_v4 = vand.u32 2147483647, %v5835_v25  ;;  %v410_v23 = vpop.permute.xlu1 %409 }
  0xf0   : > { %v572_v28 = vadd.s32 1, %v4681_v26  ;;  %v1390_v37 = vshrl.u32 %v1389_v30, 23  ;;  %v610_v10 = vshll.u32 %v570_v50, 8  ;;  %v469_v30 = vadd.s32 1, %v4677_v57 }
  0xf2   : > { %vm573_vm0 = vcmp.gt.s32.totalorder %v572_v28, 0  ;;  %v4713_v58 = vadd.s32 4294967169, %v1390_v37  ;;  %vm470_vm8 = vcmp.gt.s32.totalorder %v469_v30, 0 }
  0xf3   : > { %v574_v31 = vsel %vm573_vm0, %v572_v28, 0  ;;  %v1286_v28 = vand.u32 2139095040, %v5848_v49 }
  0xf4   : > { %v576_v33 = vand.u32 31, %v574_v31  ;;  %v575_v35 = vshrl.u32 %v574_v31, 5  ;;  %v1396_v7 = vadd.s32 1, %v4713_v58  ;;  %v1393_v31 = vand.u32 8388607, %v7812_v4 }
  0xf6   : > { %v577_v38 = vsub.s32 32, %v576_v33  ;;  %v579_v40 = vshll.u32 %v7819_v39, %v576_v33  ;;  %v582_v42 = vshll.u32 %v7825_v41, %v576_v33  ;;  %v585_v44 = vshll.u32 %v7816_v43, %v576_v33 }
  0xf7   : > { %v588_v46 = vshll.u32 %v7837_v45, %v576_v33  ;;  %v591_v48 = vshll.u32 %v7839_v47, %v576_v33  ;;  %vm594_vm1 = vcmp.lt.s32.totalorder %v575_v35, 1  ;;  %vm597_vm2 = vcmp.lt.s32.totalorder %v575_v35, 4 }
  0xf8   : > { %v580_v51 = vshrl.u32 %v7825_v41, %v577_v38  ;;  %v583_v52 = vshrl.u32 %v7816_v43, %v577_v38  ;;  %v586_v53 = vshrl.u32 %v7837_v45, %v577_v38  ;;  %v589_v54 = vshrl.u32 %v7839_v47, %v577_v38 }
  0xf9   : > { %v592_v56 = vshrl.u32 %v7814_v55, %v577_v38  ;;  %v578_v62 = vshrl.u32 %v7819_v39, %v577_v38  ;;  %vm596_vm3 = vcmp.lt.s32.totalorder %v575_v35, 3  ;;  %vm595_vm4 = vcmp.lt.s32.totalorder %v575_v35, 2 }
  0xfa   : > { %v581_v59 = vor.u32 %v580_v51, %v579_v40  ;;  %v584_v60 = vor.u32 %v583_v52, %v582_v42  ;;  %v587_v61 = vor.u32 %v586_v53, %v585_v44  ;;  %v590_v63 = vor.u32 %v589_v54, %v588_v46 }
  0xfb   : > { %v593_v0 = vor.u32 %v592_v56, %v591_v48  ;;  %vm1397_vm5 = vcmp.gt.s32.totalorder %v1396_v7, 0  ;;  %v5876_v35 = vmul.f32 %v5825_v17, %v410_v23  ;;  %v1394_v56 = vor.u32 8388608, %v1393_v31 }
  0xfc   : > { %v599_v1 = vsel %vm597_vm2, %v587_v61, 2102212464  ;;  %v602_v2 = vsel %vm594_vm1, %v581_v59, %v584_v60  ;;  %v606_v3 = vsel %vm594_vm1, %v584_v60, %v587_v61  ;;  %v603_v5 = vsel %vm597_vm2, %v590_v63, 920167782 }
  0xfd   : > { %v607_v6 = vsel %vm597_vm2, %v593_v0, 1326507024  ;;  %v604_v8 = vsel %vm596_vm3, %v587_v61, %v603_v5  ;;  %v598_v11 = vsel %vm594_vm1, %v578_v62, %v581_v59  ;;  %v600_v12 = vsel %vm596_vm3, %v584_v60, %v599_v1  ;;  %7907 = vst [vmem:[#allocation16_spill] sm:$0xff] %v5876_v35 }
  0xfe   : > { %v608_v9 = vsel %vm596_vm3, %v590_v63, %v607_v6  ;;  %v605_v13 = vsel %vm595_vm4, %v602_v2, %v604_v8  ;;  %v601_v21 = vsel %vm595_vm4, %v598_v11, %v600_v12  ;;  %v1398_v22 = vsel %vm1397_vm5, %v1396_v7, 0 }
  0xff   : > { %v609_v14 = vsel %vm595_vm4, %v606_v3, %v608_v9  ;;  %v5863_v18 = vmul.u32.u64.low %v610_v10, %v605_v13  ;;  %v5864_v20 = vmul.u32.u64.high %v610_v10, %v605_v13, %v5863_v18  ;;  %v1400_v26 = vand.u32 31, %v1398_v22 }
 0x100   : > { %v5860_v15 = vmul.u32.u64.low %v610_v10, %v609_v14  ;;  %v5861_v16 = vmul.u32.u64.high %v610_v10, %v609_v14, %v5860_v15  ;;  %v617_v32 = vmul.u32 %v610_v10, %v601_v21  ;;  %v5873_v33 = vshrl.u32 %v1398_v22, 5 }
 0x101   : > { %v620_v29 = vadd.s32 1, %v5864_v20  ;;  %v1401_v34 = vsub.s32 32, %v1400_v26  ;;  %v1403_v37 = vshll.u32 %v7819_v39, %v1400_v26  ;;  %v1406_v38 = vshll.u32 %v7825_v41, %v1400_v26 }
 0x102   : > { %vm619_vm6 = vc.u32 %v5861_v16, %v5863_v18  ;;  %v1409_v40 = vshll.u32 %v7816_v43, %v1400_v26  ;;  %v1412_v48 = vshll.u32 %v7837_v45, %v1400_v26  ;;  %v1415_v52 = vshll.u32 %v7839_v47, %v1400_v26 }
 0x103   : > { %v621_v36 = vsel %vm619_vm6, %v620_v29, %v5864_v20  ;;  %v1404_v44 = vshrl.u32 %v7825_v41, %v1401_v34  ;;  %v1407_v46 = vshrl.u32 %v7816_v43, %v1401_v34  ;;  %v1410_v50 = vshrl.u32 %v7837_v45, %v1401_v34  ;;  %v370_v20 = vpop.permute.xlu0 %369 }
 0x104   : > { %v622_v42 = vadd.s32 %v621_v36, %v617_v32  ;;  %v1413_v51 = vshrl.u32 %v7839_v47, %v1401_v34  ;;  %v1416_v53 = vshrl.u32 %v7814_v55, %v1401_v34  ;;  %vm1418_vm7 = vcmp.lt.s32.totalorder %v5873_v33, 1 }
 0x105   : > { %v1405_v57 = vor.u32 %v1404_v44, %v1403_v37  ;;  %v1408_v58 = vor.u32 %v1407_v46, %v1406_v38  ;;  %v1411_v59 = vor.u32 %v1410_v50, %v1409_v40  ;;  %vm1421_vm9 = vcmp.lt.s32.totalorder %v5873_v33, 4  ;;  %v415_v40 = vpop.permute.xlu1 %414 }
 0x106   : > { %v623_v54 = vadd.s32 536870912, %v622_v42  ;;  %v1414_v60 = vor.u32 %v1413_v51, %v1412_v48  ;;  %v1417_v61 = vor.u32 %v1416_v53, %v1415_v52  ;;  %vm1420_vm10 = vcmp.lt.s32.totalorder %v5873_v33, 3 }
 0x107   : > { %v1426_v63 = vsel %vm1418_vm7, %v1405_v57, %v1408_v58  ;;  %v1430_v1 = vsel %vm1418_vm7, %v1408_v58, %v1411_v59  ;;  %vm1419_vm11 = vcmp.lt.s32.totalorder %v5873_v33, 2  ;;  %v1434_v6 = vshll.u32 %v1394_v56, 8 }
 0x108   : > { %v5890_v62 = vshrl.u32 %v623_v54, 30  ;;  %v1427_v0 = vsel %vm1421_vm9, %v1414_v60, 920167782  ;;  %v1431_v2 = vsel %vm1421_vm9, %v1417_v61, 1326507024  ;;  %v1287_v12 = vshrl.u32 %v1286_v28, 23 }
 0x109   : > { %v1428_v3 = vsel %vm1420_vm10, %v1411_v59, %v1427_v0  ;;  %v1432_v5 = vsel %vm1420_vm10, %v1414_v60, %v1431_v2  ;;  %v471_v13 = vsel %vm470_vm8, %v469_v30, 0  ;;  %v1423_v21 = vsel %vm1421_vm9, %v1411_v59, 2102212464 }
 0x10a   : > { %7908 = vst [vmem:[#allocation17_spill] sm:$0xff] %v5890_v62  ;;  %v1429_v7 = vsel %vm1419_vm11, %v1426_v63, %v1428_v3  ;;  %v1433_v8 = vsel %vm1419_vm11, %v1430_v1, %v1432_v5  ;;  %v625_v9 = vshll.u32 %v5890_v62, 30  ;;  %v1492_v22 = vand.u32 2139095040, %v5876_v35 }
 0x10b   : > { %v5912_v10 = vmul.u32.u64.low %v1434_v6, %v1433_v8  ;;  %v5913_v11 = vmul.u32.u64.high %v1434_v6, %v1433_v8, %v5912_v10  ;;  %v5916_v14 = vmul.u32.u64.low %v1434_v6, %v1429_v7  ;;  %v5917_v15 = vmul.u32.u64.high %v1434_v6, %v1429_v7, %v5916_v14 }
 0x10c   : > { %v1402_v23 = vshrl.u32 %v7819_v39, %v1401_v34  ;;  %v5924_v26 = vsub.s32 %v622_v42, %v625_v9  ;;  %v5926_v29 = vand.u32 31, %v471_v13  ;;  %v4709_v31 = vadd.s32 4294967169, %v1287_v12 }
 0x10d   : > { %v5929_v28 = vmul.f32 %v5825_v17, %v370_v20  ;;  %v1424_v32 = vsel %vm1420_vm10, %v1408_v58, %v1423_v21  ;;  %v7810_v36 = vand.u32 2147483647, %v5876_v35  ;;  %v1493_v37 = vshrl.u32 %v1492_v22, 23 }
 0x10e   : > { %v1422_v30 = vsel %vm1418_vm7, %v1402_v23, %v1405_v57  ;;  %v1444_v38 = vadd.s32 1, %v5917_v15  ;;  %vm1443_vm12 = vc.u32 %v5913_v11, %v5916_v14  ;;  %v628_v42 = vsub.s32 0, %v5924_v26 }
 0x10f   : > { %7909 = vst [vmem:[#allocation18_spill] sm:$0xff] %v5929_v28  ;;  %v4717_v34 = vadd.s32 4294967169, %v1493_v37  ;;  %v5941_v44 = vsub.s32 32, %v5926_v29  ;;  %v1425_v46 = vsel %vm1419_vm11, %v1422_v30, %v1424_v32  ;;  %v1293_v48 = vadd.s32 1, %v4709_v31 }
 0x110   : > { %v1496_v50 = vand.u32 8388607, %v7810_v36  ;;  %v668_v52 = vand.u32 2139095040, %v5929_v28  ;;  %v1445_v53 = vsel %vm1443_vm12, %v1444_v38, %v5917_v15  ;;  %v5950_v54 = vmul.f32 %v5825_v17, %v415_v40 }
 0x111   : > { %v1499_v51 = vadd.s32 1, %v4717_v34  ;;  %v1441_v56 = vmul.u32 %v1434_v6, %v1425_v46  ;;  %v4682_v57 = vmin.u32 %v628_v42, %v5924_v26  ;;  %v486_v33 = vshrl.u32 %v7839_v47, %v5941_v44 }
 0x112   : > { %7910 = vst [vmem:[#allocation19_spill] sm:$0xff] %v5950_v54  ;;  %vm1294_vm14 = vcmp.gt.s32.totalorder %v1293_v48, 0  ;;  %v7811_v58 = vand.u32 2147483647, %v5929_v28  ;;  %v1497_v60 = vor.u32 8388608, %v1496_v50  ;;  %v669_v63 = vshrl.u32 %v668_v52, 23 }
 0x113   : > { %vm1500_vm13 = vcmp.gt.s32.totalorder %v1499_v51, 0  ;;  %v5956_v59 = vadd.s32 %v1445_v53, %v1441_v56  ;;  %v485_v0 = vshll.u32 %v7837_v45, %v5926_v29  ;;  %v1595_v1 = vand.u32 2139095040, %v5950_v54 }
 0x114   : > { %v1501_v61 = vsel %vm1500_vm13, %v1499_v51, 0  ;;  %v5961_v2 = vshrl.u32 %v471_v13, 5  ;;  %v5965_v3 = vshll.u32 %v7839_v47, %v5926_v29  ;;  %v5969_v5 = vshrl.u32 %v7814_v55, %v5941_v44 }
 0x115   : > { %v1503_v6 = vand.u32 31, %v1501_v61  ;;  %v630_v7 = vclz %v4682_v57  ;;  %v5971_v8 = vor.u32 %v486_v33, %v485_v0  ;;  %v5973_v9 = vsel %vm1294_vm14, %v1293_v48, 0 }
 0x116   : > { %v5977_v10 = vand.u32 8388607, %v7811_v58  ;;  %v1447_v12 = vadd.s32 536870912, %v5956_v59  ;;  %v5980_v15 = vshll.u32 %v1497_v60, 8  ;;  %v4685_v20 = vadd.s32 4294967169, %v669_v63 }
 0x117   : > { %v1504_v13 = vsub.s32 32, %v1503_v6  ;;  %v1502_v21 = vshrl.u32 %v1501_v61, 5  ;;  %v1506_v22 = vshll.u32 %v7819_v39, %v1503_v6  ;;  %v1509_v23 = vshll.u32 %v7825_v41, %v1503_v6 }
 0x118   : > { %v1596_v31 = vshrl.u32 %v1595_v1, 23  ;;  %v1512_v37 = vshll.u32 %v7816_v43, %v1503_v6  ;;  %v4683_v34 = vadd.s32 4294967294, %v630_v7  ;;  %v1515_v40 = vshll.u32 %v7837_v45, %v1503_v6 }
 0x119   : > { %v1507_v30 = vshrl.u32 %v7825_v41, %v1504_v13  ;;  %v1510_v32 = vshrl.u32 %v7816_v43, %v1504_v13  ;;  %v1513_v38 = vshrl.u32 %v7837_v45, %v1504_v13  ;;  %v1516_v42 = vshrl.u32 %v7839_v47, %v1504_v13 }
 0x11a   : > { %v1518_v46 = vshll.u32 %v7839_v47, %v1503_v6  ;;  %vm494_vm15 = vcmp.lt.s32.totalorder %v5961_v2, 4  ;;  %v1519_v52 = vshrl.u32 %v7814_v55, %v1504_v13  ;;  %v5993_v53 = vshrl.u32 %v1447_v12, 30 }
 0x11b   : > { %v1508_v48 = vor.u32 %v1507_v30, %v1506_v22  ;;  %v1511_v50 = vor.u32 %v1510_v32, %v1509_v23  ;;  %v1514_v51 = vor.u32 %v1513_v38, %v1512_v37  ;;  %v1517_v56 = vor.u32 %v1516_v42, %v1515_v40 }
 0x11c   : > { %7911 = vst [vmem:[#allocation20_spill] sm:$0xff] %v5993_v53  ;;  %v673_v57 = vor.u32 8388608, %v5977_v10  ;;  %v7809_v33 = vand.u32 2147483647, %v5950_v54  ;;  %v1520_v60 = vor.u32 %v1519_v52, %v1518_v46  ;;  %vm1521_vm0 = vcmp.lt.s32.totalorder %v1502_v21, 1 }
 0x11d   : > { %v675_v61 = vadd.s32 1, %v4685_v20  ;;  %v4721_v63 = vadd.s32 4294967169, %v1596_v31  ;;  %vm4684_vm1 = vcmp.lt.s32.totalorder %v4683_v34, 0  ;;  %vm1523_vm2 = vcmp.lt.s32.totalorder %v1502_v21, 3 }
 0x11e   : > { %vm1524_vm3 = vcmp.lt.s32.totalorder %v1502_v21, 4  ;;  %v1529_v0 = vsel %vm1521_vm0, %v1508_v48, %v1511_v50  ;;  %v1533_v7 = vsel %vm1521_vm0, %v1511_v50, %v1514_v51  ;;  %v1449_v22 = vshll.u32 %v5993_v53, 30 }
 0x11f   : > { %v1526_v1 = vsel %vm1524_vm3, %v1514_v51, 2102212464  ;;  %v1530_v6 = vsel %vm1524_vm3, %v1517_v56, 920167782  ;;  %v1534_v12 = vsel %vm1524_vm3, %v1520_v60, 1326507024  ;;  %v1505_v10 = vshrl.u32 %v7819_v39, %v1504_v13 }
 0x120   : > { %vm1522_vm4 = vcmp.lt.s32.totalorder %v1502_v21, 2  ;;  %v1531_v23 = vsel %vm1523_vm2, %v1514_v51, %v1530_v6  ;;  %v1535_v31 = vsel %vm1523_vm2, %v1517_v56, %v1534_v12  ;;  %vm676_vm5 = vcmp.gt.s32.totalorder %v675_v61, 0 }
 0x121   : > { %v1532_v20 = vsel %vm1522_vm4, %v1529_v0, %v1531_v23  ;;  %v1602_v30 = vadd.s32 1, %v4721_v63  ;;  %v6005_v32 = vsel %vm4684_vm1, 0, %v4683_v34  ;;  %v1525_v37 = vsel %vm1521_vm0, %v1505_v10, %v1508_v48 }
 0x122   : > { %v1527_v38 = vsel %vm1523_vm2, %v1511_v50, %v1526_v1  ;;  %v1536_v40 = vsel %vm1522_vm4, %v1533_v7, %v1535_v31  ;;  %v6015_v46 = vmul.u32.u64.low %v5980_v15, %v1532_v20  ;;  %v6016_v51 = vmul.u32.u64.high %v5980_v15, %v1532_v20, %v6015_v46 }
 0x123   : > { %v6011_v13 = vmul.u32.u64.low %v5980_v15, %v1536_v40  ;;  %v6012_v42 = vmul.u32.u64.high %v5980_v15, %v1536_v40, %v6011_v13  ;;  %v6024_v34 = vsel %vm494_vm15, %v5971_v8, 920167782  ;;  %v6027_v48 = vsub.s32 %v5956_v59, %v1449_v22 }
 0x124   : > { %7912 = vst [vmem:[#allocation21_spill] sm:$0xff] %v6024_v34  ;;  %v677_v50 = vsel %vm676_vm5, %v675_v61, 0  ;;  %v6031_v56 = vadd.s32 %v5863_v18, %v5861_v16  ;;  %v1528_v60 = vsel %vm1522_vm4, %v1525_v37, %v1527_v38  ;;  %vm1603_vm6 = vcmp.gt.s32.totalorder %v1602_v30, 0 }
 0x125   : > { %v679_v63 = vand.u32 31, %v677_v50  ;;  %v6036_v1 = vand.u32 31, %v5973_v9  ;;  %v6038_v6 = vshll.u32 %v673_v57, 8  ;;  %v6042_v59 = vand.u32 8388607, %v7809_v33 }
 0x126   : > { %v638_v61 = vsub.s32 4294967266, %v6005_v32  ;;  %vm1546_vm7 = vc.u32 %v6012_v42, %v6015_v46  ;;  %v1547_v16 = vadd.s32 1, %v6016_v51  ;;  %v1452_v21 = vsub.s32 0, %v6027_v48 }
 0x127   : > { %7913 = vst [vmem:[#allocation22_spill] sm:$0xff] %v6036_v1  ;;  %v680_v18 = vsub.s32 32, %v679_v63  ;;  %v1544_v7 = vmul.u32 %v5980_v15, %v1528_v60  ;;  %v682_v12 = vshll.u32 %v7819_v39, %v679_v63  ;;  %v1604_v57 = vsel %vm1603_vm6, %v1602_v30, 0 }
 0x128   : > { %v1548_v22 = vsel %vm1546_vm7, %v1547_v16, %v6016_v51  ;;  %v685_v23 = vshll.u32 %v7825_v41, %v679_v63  ;;  %v678_v37 = vshrl.u32 %v677_v50, 5  ;;  %v688_v38 = vshll.u32 %v7816_v43, %v679_v63 }
 0x129   : > { %v683_v10 = vshrl.u32 %v7825_v41, %v680_v18  ;;  %v686_v20 = vshrl.u32 %v7816_v43, %v680_v18  ;;  %v1549_v31 = vadd.s32 %v1548_v22, %v1544_v7  ;;  %v689_v40 = vshrl.u32 %v7837_v45, %v680_v18 }
 0x12a   : > { %v691_v15 = vshll.u32 %v7837_v45, %v679_v63  ;;  %v692_v30 = vshrl.u32 %v7839_v47, %v680_v18  ;;  %v4714_v51 = vmin.u32 %v1452_v21, %v6027_v48  ;;  %v1606_v36 = vand.u32 31, %v1604_v57 }
 0x12b   : > { %v684_v13 = vor.u32 %v683_v10, %v682_v12  ;;  %v687_v33 = vor.u32 %v686_v20, %v685_v23  ;;  %v1550_v60 = vadd.s32 536870912, %v1549_v31  ;;  %v690_v16 = vor.u32 %v689_v40, %v688_v38 }
 0x12c   : > { %v681_v58 = vshrl.u32 %v7819_v39, %v680_v18  ;;  %v693_v4 = vor.u32 %v692_v30, %v691_v15  ;;  %v694_v50 = vshll.u32 %v7839_v47, %v679_v63  ;;  %v695_v7 = vshrl.u32 %v7814_v55, %v680_v18 }
 0x12d   : > { %v6063_v22 = vshrl.u32 %v1550_v60, 30  ;;  %vm697_vm8 = vcmp.lt.s32.totalorder %v678_v37, 1  ;;  %vm699_vm9 = vcmp.lt.s32.totalorder %v678_v37, 3  ;;  %vm700_vm10 = vcmp.lt.s32.totalorder %v678_v37, 4 }
 0x12e   : > { %v696_v12 = vor.u32 %v695_v7, %v694_v50  ;;  %v701_v10 = vsel %vm697_vm8, %v681_v58, %v684_v13  ;;  %v702_v23 = vsel %vm700_vm10, %v690_v16, 2102212464  ;;  %v705_v20 = vsel %vm697_vm8, %v684_v13, %v687_v33 }
 0x12f   : > { %7914 = vst [vmem:[#allocation23_spill] sm:$0xff] %v6063_v22  ;;  %v1454_v21 = vclz %v4714_v51  ;;  %v1552_v38 = vshll.u32 %v6063_v22, 30  ;;  %v703_v40 = vsel %vm699_vm9, %v687_v33, %v702_v23  ;;  %v706_v27 = vsel %vm700_vm10, %v693_v4, 920167782 }
 0x130   : > { %vm698_vm11 = vcmp.lt.s32.totalorder %v678_v37, 2  ;;  %v707_v63 = vsel %vm699_vm9, %v690_v16, %v706_v27  ;;  %v709_v15 = vsel %vm697_vm8, %v687_v33, %v690_v16  ;;  %v710_v18 = vsel %vm700_vm10, %v696_v12, 1326507024 }
 0x131   : > { %v6068_v30 = vsub.s32 %v1549_v31, %v1552_v38  ;;  %v704_v60 = vsel %vm698_vm11, %v701_v10, %v703_v40  ;;  %v708_v0 = vsel %vm698_vm11, %v705_v20, %v707_v63  ;;  %v711_v50 = vsel %vm699_vm9, %v693_v4, %v710_v18 }
 0x132   : > { %v712_v58 = vsel %vm698_vm11, %v709_v15, %v711_v50  ;;  %v6072_v13 = vmul.u32.u64.low %v6038_v6, %v708_v0  ;;  %v6073_v51 = vmul.u32.u64.high %v6038_v6, %v708_v0, %v6072_v13  ;;  %v1607_v7 = vsub.s32 32, %v1606_v36 }
 0x133   : > { %v639_v23 = vadd.s32 127, %v638_v61  ;;  %v6077_v52 = vmul.u32.u64.low %v6038_v6, %v712_v58  ;;  %v6078_v55 = vmul.u32.u64.high %v6038_v6, %v712_v58, %v6077_v52  ;;  %v1600_v27 = vor.u32 8388608, %v6042_v59 }
 0x134   : > { %v4715_v33 = vadd.s32 4294967294, %v1454_v21  ;;  %v6081_v31 = vshrl.u32 %v1604_v57, 5  ;;  %v1610_v37 = vshrl.u32 %v7825_v41, %v1607_v7  ;;  %v1613_v4 = vshrl.u32 %v7816_v43, %v1607_v7 }
 0x135   : > { %v720_v16 = vmul.u32 %v6038_v6, %v704_v60  ;;  %v1609_v0 = vshll.u32 %v7819_v39, %v1606_v36  ;;  %v1612_v12 = vshll.u32 %v7825_v41, %v1606_v36  ;;  %v1616_v61 = vshrl.u32 %v7837_v45, %v1607_v7 }
 0x136   : > { %v1555_v10 = vsub.s32 0, %v6068_v30  ;;  %v723_v52 = vadd.s32 1, %v6073_v51  ;;  %v1618_v59 = vshll.u32 %v7837_v45, %v1606_v36  ;;  %v1619_v57 = vshrl.u32 %v7839_v47, %v1607_v7 }
 0x137   : > { %vm722_vm12 = vc.u32 %v6078_v55, %v6072_v13  ;;  %v1611_v20 = vor.u32 %v1610_v37, %v1609_v0  ;;  %v1614_v21 = vor.u32 %v1613_v4, %v1612_v12  ;;  %v1615_v6 = vshll.u32 %v7816_v43, %v1606_v36  ;;  %v375_v0 = vpop.permute.xlu0 %374 }
 0x138   : > { %v724_v38 = vsel %vm722_vm12, %v723_v52, %v6073_v51  ;;  %v1620_v40 = vor.u32 %v1619_v57, %v1618_v59  ;;  %v1621_v63 = vshll.u32 %v7839_v47, %v1606_v36  ;;  %v7915_v15 = vmov 1326507024  }
 0x139   : > { %v1622_v18 = vshrl.u32 %v7915_v15, %v1607_v7  ;;  %v7916_v60 = vor.u32 %v5969_v5, %v5965_v3  ;;  %v6107_v58 = vsub.s32 32, %v6036_v1  ;;  %v725_v37 = vadd.s32 %v724_v38, %v720_v16 }
 0x13a   : > { %v1617_v4 = vor.u32 %v1616_v61, %v1615_v6  ;;  %v7918_v51 = vsub.s32 32, %v6005_v32  ;;  %v640_v36 = vshll.u32 %v639_v23, 23  ;;  %v1640_v59 = vshll.u32 %v1600_v27, 8 }
 0x13b   : > { %v6104_v50 = vsel %vm494_vm15, %v7916_v60, 1326507024  ;;  %7917 = vst [vmem:[#allocation24_spill] sm:$0xff] %v6107_v58  ;;  %v1623_v52 = vor.u32 %v1622_v18, %v1621_v63  ;;  %v4718_v57 = vmin.u32 %v1555_v10, %v6068_v30  ;;  %v726_v3 = vadd.s32 536870912, %v725_v37 }
 0x13c   : > { %v636_v12 = vshrl.u32 %v6031_v56, %v7918_v51  ;;  %vm1624_vm13 = vcmp.lt.s32.totalorder %v6081_v31, 1  ;;  %vm1627_vm14 = vcmp.lt.s32.totalorder %v6081_v31, 4  ;;  %vm4716_vm0 = vcmp.lt.s32.totalorder %v4715_v33, 0 }
 0x13d   : > { %v1632_v5 = vsel %vm1624_vm13, %v1611_v20, %v1614_v21  ;;  %v1633_v16 = vsel %vm1627_vm14, %v1620_v40, 920167782  ;;  %v6118_v61 = vmul.f32 %v5825_v17, %v375_v0  ;;  %v6120_v6 = vshrl.u32 %v726_v3, 30 }
 0x13e   : > { %v1608_v56 = vshrl.u32 %v7819_v39, %v1607_v7  ;;  %vm1626_vm1 = vcmp.lt.s32.totalorder %v6081_v31, 3  ;;  %v1629_v23 = vsel %vm1627_vm14, %v1617_v4, 2102212464  ;;  %vm1625_vm2 = vcmp.lt.s32.totalorder %v6081_v31, 2 }
 0x13f   : > { %7919 = vst [vmem:[#allocation25_spill] sm:$0xff] %v6118_v61  ;;  %7920 = vst [vmem:[#allocation26_spill] sm:$0xff] %v6120_v6  ;;  %v1634_v27 = vsel %vm1626_vm1, %v1617_v4, %v1633_v16  ;;  %v1636_v10 = vsel %vm1624_vm13, %v1614_v21, %v1617_v4  ;;  %v1637_v38 = vsel %vm1627_vm14, %v1623_v52, 1326507024  ;;  %v1557_v63 = vclz %v4718_v57 }
 0x140   : > { %v728_v18 = vshll.u32 %v6120_v6, 30  ;;  %v1628_v60 = vsel %vm1624_vm13, %v1608_v56, %v1611_v20  ;;  %v1635_v0 = vsel %vm1625_vm2, %v1632_v5, %v1634_v27  ;;  %v1630_v7 = vsel %vm1626_vm1, %v1614_v21, %v1629_v23  ;;  %v3774_v23 = vld [vmem:[#allocation3 + $0x18] sm:$0xff] }
 0x141   : > { %v1638_v51 = vsel %vm1626_vm1, %v1620_v40, %v1637_v38  ;;  %v6132_v3 = vmul.u32.u64.low %v1640_v59, %v1635_v0  ;;  %v6133_v43 = vmul.u32.u64.high %v1640_v59, %v1635_v0, %v6132_v3  ;;  %v635_v16 = vshll.u32 %v5924_v26, %v6005_v32  ;;  %v3772_v40 = vld [vmem:[#allocation3 + $0x8] sm:$0xff] }
 0x142   : > { %v641_v4 = vor.u32 4788187, %v640_v36  ;;  %v6139_v52 = vshrl.u32 %v5973_v9, 5  ;;  %v1639_v57 = vsel %vm1625_vm2, %v1636_v10, %v1638_v51  ;;  %v1457_v20 = vsel %vm4716_vm0, 0, %v4715_v33 }
 0x143   : > { %v6144_v56 = vmul.u32.u64.low %v1640_v59, %v1639_v57  ;;  %v6145_v5 = vmul.u32.u64.high %v1640_v59, %v1639_v57, %v6144_v56  ;;  %v771_v21 = vand.u32 2139095040, %v6118_v61  ;;  %v637_v27 = vor.u32 %v636_v12, %v635_v16 }
 0x144   : > { %7921 = vst [vmem:[#allocation27_spill] sm:$0xff] %v6139_v52  ;;  %v1309_v26 = vshll.u32 %v7837_v45, %v6036_v1  ;;  %v6150_v32 = vsub.s32 %v725_v37, %v728_v18  ;;  %v1631_v9 = vsel %vm1625_vm2, %v1628_v60, %v1630_v7  ;;  %v1310_v36 = vshrl.u32 %v7839_v47, %v6107_v58 }
 0x145   : > { %v4719_v33 = vadd.s32 4294967294, %v1557_v63  ;;  %v1650_v10 = vadd.s32 1, %v6133_v43  ;;  %v772_v38 = vshrl.u32 %v771_v21, 23  ;;  %v642_v0 = vand.u32 2147483647, %v641_v4  ;;  %v420_v21 = vpop.permute.xlu1 %419 }
 0x146   : > { %v1458_v51 = vsub.s32 32, %v1457_v20  ;;  %v1462_v57 = vsub.s32 4294967266, %v1457_v20  ;;  %v4922_v56 = vpack.c.bf16 %v3774_v23, %v3772_v40  ;;  %v1647_v12 = vmul.u32 %v1640_v59, %v1631_v9 }
 0x147   : > { %vm1649_vm3 = vc.u32 %v6145_v5, %v6132_v3  ;;  %v7818_v37 = vand.u32 2147483647, %v6118_v61  ;;  %v4689_v18 = vadd.s32 4294967169, %v772_v38  ;;  %v644_v31 = vcvt.s32.f32 %v637_v27 }
 0x148   : > { %v1442_v60 = vadd.s32 %v5916_v14, %v5913_v11  ;;  %v731_v63 = vsub.s32 0, %v6150_v32  ;;  %v1651_v7 = vsel %vm1649_vm3, %v1650_v10, %v6133_v43  ;;  %4923 = vmatprep.subr.bf16.mxu0 %v4922_v56  ;;  %4986 = vmatprep.subr.bf16.mxu1 %v4922_v56  ;;  %v6166_v16 = vshrl.u32 %v7915_v15, %v6107_v58 }
 0x149   : > { %vm4720_vm4 = vcmp.lt.s32.totalorder %v4719_v33, 0  ;;  %v1652_v59 = vadd.s32 %v1651_v7, %v1647_v12  ;;  %v778_v4 = vadd.s32 1, %v4689_v18  ;;  %v6168_v40 = vmul.f32 %v644_v31, %v642_v0 }
 0x14a   : > { %v1460_v23 = vshrl.u32 %v1442_v60, %v1458_v51  ;;  %v1463_v27 = vadd.s32 127, %v1462_v57  ;;  %v6172_v11 = vshll.u32 %v7839_v47, %v6036_v1  ;;  %v1459_v43 = vshll.u32 %v6027_v48, %v1457_v20 }
 0x14b   : > { %v1653_v14 = vadd.s32 536870912, %v1652_v59  ;;  %v775_v9 = vand.u32 8388607, %v7818_v37  ;;  %vm779_vm5 = vcmp.gt.s32.totalorder %v778_v4, 0  ;;  %v6177_v10 = vsel %vm4720_vm4, 0, %v4719_v33 }
 0x14c   : > { %v4686_v38 = vmin.u32 %v731_v63, %v6150_v32  ;;  %v780_v56 = vsel %vm779_vm5, %v778_v4, 0  ;;  %v6181_v0 = vmul.f32 %v5825_v17, %v420_v21  ;;  %v6183_v51 = vor.u32 %v1310_v36, %v1309_v26 }
 0x14d   : > { %v6187_v12 = vshrl.u32 %v1653_v14, 30  ;;  %v782_v48 = vand.u32 31, %v780_v56  ;;  %v6190_v18 = vor.u32 %v1460_v23, %v1459_v43  ;;  %v1464_v33 = vshll.u32 %v1463_v27, 23 }
 0x14e   : > { %7922 = vst [vmem:[#allocation28_spill] sm:$0xff] %v6183_v51  ;;  %v6194_v31 = vadd.s32 %v6015_v46, %v6012_v42  ;;  %v1565_v60 = vsub.s32 4294967266, %v6177_v10  ;;  %v776_v36 = vor.u32 8388608, %v775_v9  ;;  %v733_v7 = vclz %v4686_v38 }
 0x14f   : > { %7923 = vst [vmem:[#allocation29_spill] sm:$0xff] %v6187_v12  ;;  %v1655_v26 = vshll.u32 %v6187_v12, 30  ;;  %v783_v63 = vsub.s32 32, %v782_v48  ;;  %v781_v4 = vshrl.u32 %v780_v56, 5  ;;  %v1698_v14 = vand.u32 2139095040, %v6181_v0 }
 0x150   : > { %v785_v23 = vshll.u32 %v7819_v39, %v782_v48  ;;  %v788_v43 = vshll.u32 %v7825_v41, %v782_v48  ;;  %v7924_v42 = vmov 2131351028   ;;  %v794_v9 = vshll.u32 %v7837_v45, %v782_v48 }
 0x151   : > { %v786_v27 = vshrl.u32 %v7825_v41, %v783_v63  ;;  %v789_v46 = vshrl.u32 %v7924_v42, %v783_v63  ;;  %v791_v37 = vshll.u32 %v7924_v42, %v782_v48  ;;  %v792_v57 = vshrl.u32 %v7837_v45, %v783_v63 }
 0x152   : > { %v795_v38 = vshrl.u32 %v7839_v47, %v783_v63  ;;  %v6208_v56 = vor.u32 4788187, %v1464_v33  ;;  %v6210_v20 = vsub.s32 %v1652_v59, %v1655_v26  ;;  %v1561_v12 = vsub.s32 32, %v6177_v10 }
 0x153   : > { %v787_v21 = vor.u32 %v786_v27, %v785_v23  ;;  %v790_v39 = vor.u32 %v789_v46, %v788_v43  ;;  %v1566_v22 = vadd.s32 127, %v1565_v60  ;;  %v793_v41 = vor.u32 %v792_v57, %v791_v37  ;;  %v380_v46 = vpop.permute.xlu0 %379 }
 0x154   : > { %v796_v6 = vor.u32 %v795_v38, %v794_v9  ;;  %v797_v53 = vshll.u32 %v7839_v47, %v782_v48  ;;  %v798_v1 = vshrl.u32 %v7915_v15, %v783_v63  ;;  %v816_v58 = vshll.u32 %v776_v36, 8 }
 0x155   : > { %v1699_v49 = vshrl.u32 %v1698_v14, 23  ;;  %v4687_v45 = vadd.s32 4294967294, %v733_v7  ;;  %vm800_vm6 = vcmp.lt.s32.totalorder %v781_v4, 1  ;;  %vm803_vm7 = vcmp.lt.s32.totalorder %v781_v4, 4 }
 0x156   : > { %v7925_v33 = vand.u32 2147483647, %v6181_v0  ;;  %v1658_v26 = vsub.s32 0, %v6210_v20  ;;  %v799_v23 = vor.u32 %v798_v1, %v797_v53  ;;  %v805_v27 = vsel %vm803_vm7, %v793_v41, 2102212464 }
 0x157   : > { %v808_v60 = vsel %vm800_vm6, %v787_v21, %v790_v39  ;;  %vm564_vm8 = vcmp.lt.s32.totalorder %v5828_v19, 0  ;;  %vm1318_vm9 = vcmp.lt.s32.totalorder %v6139_v52, 4  ;;  %v7926_v37 = vmov 683565275  }
 0x158   : > { %v1702_v59 = vand.u32 8388607, %v7925_v33  ;;  %v784_v57 = vshrl.u32 %v7926_v37, %v783_v63  ;;  %vm802_vm10 = vcmp.lt.s32.totalorder %v781_v4, 3  ;;  %v809_v48 = vsel %vm803_vm7, %v796_v6, 920167782 }
 0x159   : > { %v812_v36 = vsel %vm800_vm6, %v790_v39, %v793_v41  ;;  %vm801_vm11 = vcmp.lt.s32.totalorder %v781_v4, 2  ;;  %v810_v7 = vsel %vm802_vm10, %v793_v41, %v809_v48  ;;  %v813_v14 = vsel %vm803_vm7, %v799_v23, 1326507024 }
 0x15a   : > { %v4725_v43 = vadd.s32 4294967169, %v1699_v49  ;;  %v804_v53 = vsel %vm800_vm6, %v784_v57, %v787_v21  ;;  %v806_v1 = vsel %vm802_vm10, %v790_v39, %v805_v27  ;;  %v811_v9 = vsel %vm801_vm11, %v808_v60, %v810_v7 }
 0x15b   : > { %v814_v38 = vsel %vm802_vm10, %v796_v6, %v813_v14  ;;  %v4722_v33 = vmin.u32 %v1658_v26, %v6210_v20  ;;  %v6227_v63 = vmul.u32.u64.low %v816_v58, %v811_v9  ;;  %v6228_v62 = vmul.u32.u64.high %v816_v58, %v811_v9, %v6227_v63 }
 0x15c   : > { %v815_v47 = vsel %vm801_vm11, %v812_v36, %v814_v38  ;;  %vm4688_vm12 = vcmp.lt.s32.totalorder %v4687_v45, 0  ;;  %v6235_v49 = vmul.f32 %v5825_v17, %v380_v46  ;;  %v1466_v39 = vand.u32 2147483647, %v6208_v56 }
 0x15d   : > { %v6231_v34 = vmul.u32.u64.low %v816_v58, %v815_v47  ;;  %v6232_v41 = vmul.u32.u64.high %v816_v58, %v815_v47, %v6231_v34  ;;  %v1468_v21 = vcvt.s32.f32 %v6190_v18  ;;  %v807_v6 = vsel %vm801_vm11, %v804_v53, %v806_v1 }
 0x15e   : > { %7927 = vst [vmem:[#allocation30_spill] sm:$0xff] %v6235_v49  ;;  %v1705_v26 = vadd.s32 1, %v4725_v43  ;;  %v1562_v23 = vshll.u32 %v6068_v30, %v6177_v10  ;;  %v1563_v27 = vshrl.u32 %v6194_v31, %v1561_v12  ;;  %v1567_v60 = vshll.u32 %v1566_v22, 23 }
 0x15f   : > { %v1703_v57 = vor.u32 8388608, %v1702_v59  ;;  %v6243_v48 = vsel %vm4688_vm12, 0, %v4687_v45  ;;  %v1660_v47 = vclz %v4722_v33  ;;  %v826_v17 = vadd.s32 1, %v6228_v62 }
 0x160   : > { %vm1706_vm13 = vcmp.gt.s32.totalorder %v1705_v26, 0  ;;  %v823_v34 = vmul.u32 %v816_v58, %v807_v6  ;;  %vm825_vm14 = vc.u32 %v6232_v41, %v6227_v63  ;;  %v874_v4 = vand.u32 2139095040, %v6235_v49 }
 0x161   : > { %v1707_v18 = vsel %vm1706_vm13, %v1705_v26, 0  ;;  %v7928_v30 = vxor.u32 2147483648, %v6168_v40  ;;  %v6259_v45 = vsel %vm1318_vm9, %v6183_v51, 920167782  ;;  %v7931_v58 = vor.u32 %v6166_v16, %v6172_v11 }
 0x162   : > { %7930 = vst [vmem:[#allocation32_spill] sm:$0xff] %v6259_v45  ;;  %v827_v12 = vsel %vm825_vm14, %v826_v17, %v6228_v62  ;;  %v6269_v31 = vmul.f32 %v1468_v21, %v1466_v39  ;;  %v6271_v56 = vor.u32 %v1563_v27, %v1562_v23  ;;  %v1709_v59 = vand.u32 31, %v1707_v18 }
 0x163   : > { %v6254_v22 = vsel %vm564_vm8, %v7928_v30, %v6168_v40  ;;  %v6266_v10 = vsel %vm1318_vm9, %v7931_v58, 1326507024  ;;  %v828_v40 = vadd.s32 %v827_v12, %v823_v34  ;;  %v6273_v36 = vor.u32 4788187, %v1567_v60 }
 0x164   : > { %7929 = vst [vmem:[#allocation31_spill] sm:$0xff] %v6254_v22  ;;  %7932 = vst [vmem:[#allocation33_spill] sm:$0xff] %v6266_v10  ;;  %v741_v7 = vsub.s32 4294967266, %v6243_v48  ;;  %v6276_v14 = vadd.s32 4294967294, %v1660_v47  ;;  %v1710_v43 = vsub.s32 32, %v1709_v59  ;;  %v6279_v46 = vshll.u32 %v1703_v57, 8 }
 0x165   : > { %v829_v11 = vadd.s32 536870912, %v828_v40  ;;  %v875_v53 = vshrl.u32 %v874_v4, 23  ;;  %v1708_v62 = vshrl.u32 %v1707_v18, 5  ;;  %v1712_v1 = vshll.u32 %v7926_v37, %v1709_v59 }
 0x166   : > { %v7933_v9 = vmov 2475754826   ;;  %v1718_v33 = vshll.u32 %v7924_v42, %v1709_v59  ;;  %v1716_v6 = vshrl.u32 %v7924_v42, %v1710_v43  ;;  %v7935_v26 = vmov 2102212464  }
 0x167   : > { %v1715_v38 = vshll.u32 %v7933_v9, %v1709_v59  ;;  %v6284_v39 = vshrl.u32 %v829_v11, 30  ;;  %v1713_v21 = vshrl.u32 %v7933_v9, %v1710_v43  ;;  %v1721_v23 = vshll.u32 %v7935_v26, %v1709_v59 }
 0x168   : > { %v1719_v27 = vshrl.u32 %v7935_v26, %v1710_v43  ;;  %v7936_v60 = vmov 920167782   ;;  %v1725_v17 = vshrl.u32 %v7915_v15, %v1710_v43  ;;  %v4693_v30 = vadd.s32 4294967169, %v875_v53 }
 0x169   : > { %7934 = vst [vmem:[#allocation34_spill] sm:$0xff] %v6284_v39  ;;  %v1722_v57 = vshrl.u32 %v7936_v60, %v1710_v43  ;;  %v1724_v47 = vshll.u32 %v7936_v60, %v1709_v59  ;;  %v831_v34 = vshll.u32 %v6284_v39, 30  ;;  %v1714_v18 = vor.u32 %v1713_v21, %v1712_v1 }
 0x16a   : > { %v1717_v4 = vor.u32 %v1716_v6, %v1715_v38  ;;  %v1720_v58 = vor.u32 %v1719_v27, %v1718_v33  ;;  %vm1727_vm0 = vcmp.lt.s32.totalorder %v1708_v62, 1  ;;  %v1711_v51 = vshrl.u32 %v7926_v37, %v1710_v43 }
 0x16b   : > { %v1723_v12 = vor.u32 %v1722_v57, %v1721_v23  ;;  %v1726_v11 = vor.u32 %v1725_v17, %v1724_v47  ;;  %v6294_v16 = vsub.s32 %v828_v40, %v831_v34  ;;  %vm1730_vm1 = vcmp.lt.s32.totalorder %v1708_v62, 4 }
 0x16c   : > { %v1735_v10 = vsel %vm1727_vm0, %v1714_v18, %v1717_v4  ;;  %vm1729_vm2 = vcmp.lt.s32.totalorder %v1708_v62, 3  ;;  %v1732_v45 = vsel %vm1730_vm1, %v1720_v58, 2102212464  ;;  %v1739_v52 = vsel %vm1727_vm0, %v1717_v4, %v1720_v58 }
 0x16d   : > { %v1736_v59 = vsel %vm1730_vm1, %v1723_v12, 920167782  ;;  %vm1728_vm3 = vcmp.lt.s32.totalorder %v1708_v62, 2  ;;  %v1731_v22 = vsel %vm1727_vm0, %v1711_v51, %v1714_v18  ;;  %v1740_v1 = vsel %vm1730_vm1, %v1726_v11, 1326507024  ;;  %v425_v62 = vpop.permute.xlu1 %424 }
 0x16e   : > { %v1737_v39 = vsel %vm1729_vm2, %v1720_v58, %v1736_v59  ;;  %v1733_v38 = vsel %vm1729_vm2, %v1717_v4, %v1732_v45  ;;  %v1741_v33 = vsel %vm1729_vm2, %v1723_v12, %v1740_v1  ;;  %v881_v21 = vadd.s32 1, %v4693_v30 }
 0x16f   : > { %v1738_v53 = vsel %vm1728_vm3, %v1735_v10, %v1737_v39  ;;  %v834_v40 = vsub.s32 0, %v6294_v16  ;;  %v1742_v6 = vsel %vm1728_vm3, %v1739_v52, %v1741_v33  ;;  %v737_v45 = vsub.s32 32, %v6243_v48 }
 0x170   : > { %v6301_v43 = vmul.u32.u64.low %v6279_v46, %v1738_v53  ;;  %v6302_v23 = vmul.u32.u64.high %v6279_v46, %v1738_v53, %v6301_v43  ;;  %v6307_v51 = vmul.u32.u64.low %v6279_v46, %v1742_v6  ;;  %v6308_v57 = vmul.u32.u64.high %v6279_v46, %v1742_v6, %v6307_v51 }
 0x171   : > { %vm882_vm4 = vcmp.gt.s32.totalorder %v881_v21, 0  ;;  %v742_v10 = vadd.s32 127, %v741_v7  ;;  %v1734_v39 = vsel %vm1728_vm3, %v1731_v22, %v1733_v38  ;;  %v721_v52 = vadd.s32 %v6072_v13, %v6078_v55 }
 0x172   : > { %v883_v47 = vsel %vm882_vm4, %v881_v21, 0  ;;  %vm4724_vm5 = vcmp.lt.s32.totalorder %v6276_v14, 0  ;;  %v7937_v17 = vand.u32 2147483647, %v6235_v49  ;;  %v4690_v58 = vmin.u32 %v834_v40, %v6294_v16  ;;  %v3782_v49 = vld [vmem:[#allocation3 + $0x58] sm:$0xff] }
 0x173   : > { %v885_v18 = vand.u32 31, %v883_v47  ;;  %v1753_v7 = vadd.s32 1, %v6302_v23  ;;  %v738_v22 = vshll.u32 %v6150_v32, %v6243_v48  ;;  %v1750_v55 = vmul.u32 %v6279_v46, %v1734_v39  ;;  %v6334_v32 = vld [vmem:[%s7794_s1] ss:$0 sm:$0xff] }
 0x174   : > { %v878_v34 = vand.u32 8388607, %v7937_v17  ;;  %vm1752_vm6 = vc.u32 %v6308_v57, %v6301_v43  ;;  %v739_v12 = vshrl.u32 %v721_v52, %v737_v45  ;;  %v743_v11 = vshll.u32 %v742_v10, 23 }
 0x175   : > { %v886_v13 = vsub.s32 32, %v885_v18  ;;  %v6327_v59 = vsel %vm4724_vm5, 0, %v6276_v14  ;;  %v1754_v1 = vsel %vm1752_vm6, %v1753_v7, %v6302_v23  ;;  %v6337_v48 = vmul.f32 %v6334_v32, %v425_v62 }
 0x176   : > { %v1755_v38 = vadd.s32 %v1754_v1, %v1750_v55  ;;  %v879_v53 = vor.u32 8388608, %v878_v34  ;;  %v836_v46 = vclz %v4690_v58  ;;  %v888_v21 = vshll.u32 %v7926_v37, %v885_v18 }
 0x177   : > { %v889_v33 = vshrl.u32 %v7933_v9, %v886_v13  ;;  %7938 = vst [vmem:[#allocation35_spill] sm:$0xff] %v6337_v48  ;;  %v891_v14 = vshll.u32 %v7933_v9, %v885_v18  ;;  %v892_v40 = vshrl.u32 %v7924_v42, %v886_v13  ;;  %v884_v23 = vshrl.u32 %v883_v47, 5 }
 0x178   : > { %v1756_v6 = vadd.s32 536870912, %v1755_v38  ;;  %v894_v51 = vshll.u32 %v7924_v42, %v885_v18  ;;  %v895_v45 = vshrl.u32 %v7935_v26, %v886_v13  ;;  %v897_v52 = vshll.u32 %v7935_v26, %v885_v18 }
 0x179   : > { %v890_v10 = vor.u32 %v889_v33, %v888_v21  ;;  %v893_v39 = vor.u32 %v892_v40, %v891_v14  ;;  %v898_v17 = vshrl.u32 %v7936_v60, %v886_v13  ;;  %v900_v7 = vshll.u32 %v7936_v60, %v885_v18  ;;  %v385_v18 = vpop.permute.xlu0 %384 }
 0x17a   : > { %v6346_v34 = vshrl.u32 %v1756_v6, 30  ;;  %v896_v58 = vor.u32 %v895_v45, %v894_v51  ;;  %v901_v62 = vshrl.u32 %v7915_v15, %v886_v13  ;;  %v6350_v55 = vor.u32 %v739_v12, %v738_v22 }
 0x17b   : > { %v6352_v47 = vor.u32 4788187, %v743_v11  ;;  %v4691_v1 = vadd.s32 4294967294, %v836_v46  ;;  %v899_v27 = vor.u32 %v898_v17, %v897_v52  ;;  %v1668_v33 = vsub.s32 4294967266, %v6327_v59 }
 0x17c   : > { %7939 = vst [vmem:[#allocation36_spill] sm:$0xff] %v6346_v34  ;;  %v902_v21 = vor.u32 %v901_v62, %v900_v7  ;;  %v919_v14 = vshll.u32 %v879_v53, 8  ;;  %v1801_v40 = vand.u32 2139095040, %v6337_v48  ;;  %v1758_v6 = vshll.u32 %v6346_v34, 30 }
 0x17d   : > { %v887_v51 = vshrl.u32 %v7926_v37, %v886_v13  ;;  %vm903_vm7 = vcmp.lt.s32.totalorder %v884_v23, 1  ;;  %vm906_vm10 = vcmp.lt.s32.totalorder %v884_v23, 4  ;;  %vm905_vm11 = vcmp.lt.s32.totalorder %v884_v23, 3 }
 0x17e   : > { %v908_v22 = vsel %vm906_vm10, %v896_v58, 2102212464  ;;  %v911_v12 = vsel %vm903_vm7, %v890_v10, %v893_v39  ;;  %v912_v11 = vsel %vm906_vm10, %v899_v27, 920167782  ;;  %vm4692_vm12 = vcmp.lt.s32.totalorder %v4691_v1, 0 }
 0x17f   : > { %vm904_vm13 = vcmp.lt.s32.totalorder %v884_v23, 2  ;;  %v913_v46 = vsel %vm905_vm11, %v896_v58, %v912_v11  ;;  %v915_v45 = vsel %vm903_vm7, %v893_v39, %v896_v58  ;;  %v907_v52 = vsel %vm903_vm7, %v887_v51, %v890_v10 }
 0x180   : > { %v914_v53 = vsel %vm904_vm13, %v911_v12, %v913_v46  ;;  %v916_v17 = vsel %vm906_vm10, %v902_v21, 1326507024  ;;  %v6360_v7 = vmul.f32 %v6334_v32, %v385_v18  ;;  %v909_v62 = vsel %vm905_vm11, %v893_v39, %v908_v22  ;;  %v3773_v39 = vld [vmem:[#allocation3 + $0x10] sm:$0xff]  ;;  %v3776_v46 = vld [vmem:[#allocation3 + $0x28] sm:$0xff] }
 0x181   : > { %v917_v13 = vsel %vm905_vm11, %v899_v27, %v916_v17  ;;  %v6362_v30 = vmul.u32.u64.low %v919_v14, %v914_v53  ;;  %v6363_v4 = vmul.u32.u64.high %v919_v14, %v914_v53, %v6362_v30  ;;  %v6366_v34 = vsel %vm4692_vm12, 0, %v4691_v1  ;;  %v3771_v27 = vld [vmem:[#allocation3] sm:$0xff] }
 0x182   : > { %v6368_v19 = vsub.s32 %v1755_v38, %v1758_v6  ;;  %v918_v11 = vsel %vm904_vm13, %v915_v45, %v917_v13  ;;  %v1802_v58 = vshrl.u32 %v1801_v40, 23  ;;  %v1648_v10 = vadd.s32 %v6132_v3, %v6145_v5  ;;  %v3778_v45 = vld [vmem:[#allocation3 + $0x38] sm:$0xff] }
 0x183   : > { %v1664_v21 = vsub.s32 32, %v6327_v59  ;;  %v6374_v51 = vmul.u32.u64.low %v919_v14, %v918_v11  ;;  %v6375_v18 = vmul.u32.u64.high %v919_v14, %v918_v11, %v6374_v51  ;;  %v7940_v22 = vand.u32 2147483647, %v6273_v36 }
 0x184   : > { %v7941_v1 = vcvt.s32.f32 %v6271_v56  ;;  %v1669_v38 = vadd.s32 127, %v1668_v33  ;;  %v910_v6 = vsel %vm904_vm13, %v907_v52, %v909_v62  ;;  %v4729_v40 = vadd.s32 4294967169, %v1802_v58 }
 0x185   : > { %v745_v3 = vand.u32 2147483647, %v6352_v47  ;;  %v747_v5 = vcvt.s32.f32 %v6350_v55  ;;  %v844_v53 = vsub.s32 4294967266, %v6366_v34  ;;  %v929_v17 = vadd.s32 1, %v6363_v4 }
 0x186   : > { %v6381_v12 = vmul.f32 %v7941_v1, %v7940_v22  ;;  %v1761_v36 = vsub.s32 0, %v6368_v19  ;;  %v1808_v13 = vadd.s32 1, %v4729_v40  ;;  %v977_v56 = vand.u32 2139095040, %v6360_v7 }
 0x187   : > { %v4924_v11 = vpack.c.bf16 %v3773_v39, %v3771_v27  ;;  %v1666_v33 = vshrl.u32 %v1648_v10, %v1664_v21  ;;  %v926_v23 = vmul.u32 %v919_v14, %v910_v6  ;;  %vm928_vm14 = vc.u32 %v6375_v18, %v6362_v30 }
 0x188   : > { %v4926_v52 = vpack.c.bf16 %v3778_v45, %v3776_v46  ;;  %v1670_v62 = vshll.u32 %v1669_v38, 23  ;;  %v930_v47 = vsel %vm928_vm14, %v929_v17, %v6363_v4  ;;  %v7852_v55 = vand.u32 2147483647, %v6337_v48  ;;  %v3780_v48 = vld [vmem:[#allocation3 + $0x48] sm:$0xff] }
 0x189   : > { %vm1809_vm0 = vcmp.gt.s32.totalorder %v1808_v13, 0  ;;  %4925 = vmatpush1.bf16.msra.mxu0 %v4924_v11  ;;  %5002 = vmatpush1.bf16.msra.mxu1 %v4924_v11  ;;  %v840_v58 = vsub.s32 32, %v6366_v34  ;;  %v6395_v51 = vadd.s32 127, %v844_v53  ;;  %v931_v22 = vadd.s32 %v930_v47, %v926_v23 }
 0x18a   : > { %v1810_v27 = vsel %vm1809_vm0, %v1808_v13, 0  ;;  %4927 = vmatprep.subr.bf16.mxu0 %v4926_v52  ;;  %4987 = vmatprep.subr.bf16.mxu1 %v4926_v52  ;;  %v1665_v10 = vshll.u32 %v6210_v20, %v6327_v59  ;;  %v4726_v4 = vmin.u32 %v1761_v36, %v6368_v19  ;;  %v978_v21 = vshrl.u32 %v977_v56, 23 }
 0x18b   : > { %v6401_v39 = vmul.f32 %v747_v5, %v745_v3  ;;  %v824_v1 = vadd.s32 %v6227_v63, %v6232_v41  ;;  %v932_v38 = vadd.s32 536870912, %v931_v22  ;;  %v1812_v6 = vand.u32 31, %v1810_v27 }
 0x18c   : > { %v6405_v40 = vor.u32 %v1666_v33, %v1665_v10  ;;  %v6407_v46 = vor.u32 4788187, %v1670_v62  ;;  %v1805_v20 = vand.u32 8388607, %v7852_v55  ;;  %v846_v3 = vshll.u32 %v6395_v51, 23  ;;  %v3777_v10 = vld [vmem:[#allocation3 + $0x30] sm:$0xff] }
 0x18d   : > { %v6413_v59 = vshrl.u32 %v824_v1, %v840_v58  ;;  %v6416_v5 = vshrl.u32 %v932_v38, 30  ;;  %v1813_v53 = vsub.s32 32, %v1812_v6  ;;  %v1763_v63 = vclz %v4726_v4 }
 0x18e   : > { %v1811_v41 = vshrl.u32 %v1810_v27, 5  ;;  %v1815_v17 = vshll.u32 %v7926_v37, %v1812_v6  ;;  %v4697_v36 = vadd.s32 4294967169, %v978_v21  ;;  %v1818_v11 = vshll.u32 %v7933_v9, %v1812_v6 }
 0x18f   : > { %7942 = vst [vmem:[#allocation37_spill] sm:$0xff] %v6416_v5  ;;  %v934_v13 = vshll.u32 %v6416_v5, 30  ;;  %v1816_v56 = vshrl.u32 %v7933_v9, %v1813_v53  ;;  %v1819_v33 = vshrl.u32 %v7924_v42, %v1813_v53  ;;  %v1821_v23 = vshll.u32 %v7924_v42, %v1812_v6 }
 0x190   : > { %v1822_v52 = vshrl.u32 %v7935_v26, %v1813_v53  ;;  %v1824_v62 = vshll.u32 %v7935_v26, %v1812_v6  ;;  %v1825_v47 = vshrl.u32 %v7936_v60, %v1813_v53  ;;  %v1806_v58 = vor.u32 8388608, %v1805_v20 }
 0x191   : > { %v1817_v51 = vor.u32 %v1816_v56, %v1815_v17  ;;  %v1820_v27 = vor.u32 %v1819_v33, %v1818_v11  ;;  %v1827_v1 = vshll.u32 %v7936_v60, %v1812_v6  ;;  %v1828_v38 = vshrl.u32 %v7915_v15, %v1813_v53 }
 0x192   : > { %v1823_v4 = vor.u32 %v1822_v52, %v1821_v23  ;;  %v1826_v21 = vor.u32 %v1825_v47, %v1824_v62  ;;  %vm1388_vm1 = vcmp.lt.s32.totalorder %v5835_v25, 0  ;;  %vm1491_vm2 = vcmp.lt.s32.totalorder %v5876_v35, 0 }
 0x193   : > { %v4727_v55 = vadd.s32 4294967294, %v1763_v63  ;;  %v6432_v45 = vsub.s32 %v931_v22, %v934_v13  ;;  %vm1830_vm3 = vcmp.lt.s32.totalorder %v1811_v41, 1  ;;  %v984_v14 = vadd.s32 1, %v4697_v36  ;;  %v3775_v36 = vld [vmem:[#allocation3 + $0x20] sm:$0xff] }
 0x194   : > { %v1814_v20 = vshrl.u32 %v7926_v37, %v1813_v53  ;;  %v1829_v17 = vor.u32 %v1828_v38, %v1827_v1  ;;  %vm1833_vm4 = vcmp.lt.s32.totalorder %v1811_v41, 4  ;;  %v1838_v56 = vsel %vm1830_vm3, %v1817_v51, %v1820_v27 }
 0x195   : > { %vm1832_vm5 = vcmp.lt.s32.totalorder %v1811_v41, 3  ;;  %v1835_v11 = vsel %vm1833_vm4, %v1823_v4, 2102212464  ;;  %v1839_v33 = vsel %vm1833_vm4, %v1826_v21, 920167782  ;;  %v1842_v6 = vsel %vm1830_vm3, %v1820_v27, %v1823_v4 }
 0x196   : > { %vm1831_vm6 = vcmp.lt.s32.totalorder %v1811_v41, 2  ;;  %v1840_v23 = vsel %vm1832_vm5, %v1823_v4, %v1839_v33  ;;  %v1843_v52 = vsel %vm1833_vm4, %v1829_v17, 1326507024  ;;  %v1846_v62 = vshll.u32 %v1806_v58, 8 }
 0x197   : > { %v937_v47 = vsub.s32 0, %v6432_v45  ;;  %v1834_v63 = vsel %vm1830_vm3, %v1814_v20, %v1817_v51  ;;  %v1841_v22 = vsel %vm1831_vm6, %v1838_v56, %v1840_v23  ;;  %v1844_v13 = vsel %vm1832_vm5, %v1826_v21, %v1843_v52 }
 0x198   : > { %v1836_v53 = vsel %vm1832_vm5, %v1820_v27, %v1835_v11  ;;  %v1845_v1 = vsel %vm1831_vm6, %v1842_v6, %v1844_v13  ;;  %v6438_v38 = vmul.u32.u64.low %v1846_v62, %v1841_v22  ;;  %v6439_v5 = vmul.u32.u64.high %v1846_v62, %v1841_v22, %v6438_v38 }
 0x199   : > { %vm4728_vm7 = vcmp.lt.s32.totalorder %v4727_v55, 0  ;;  %v6442_v4 = vmul.u32.u64.low %v1846_v62, %v1845_v1  ;;  %v6443_v58 = vmul.u32.u64.high %v1846_v62, %v1845_v1, %v6442_v4  ;;  %vm985_vm10 = vcmp.gt.s32.totalorder %v984_v14, 0 }
 0x19a   : > { %v6445_v51 = vor.u32 4788187, %v846_v3  ;;  %v7943_v21 = vand.u32 2147483647, %v6360_v7  ;;  %v986_v17 = vsel %vm985_vm10, %v984_v14, 0  ;;  %v4928_v27 = vpack.c.bf16 %v3777_v10, %v3775_v36 }
 0x19b   : > { %v4694_v56 = vmin.u32 %v937_v47, %v6432_v45  ;;  %v1837_v11 = vsel %vm1831_vm6, %v1834_v63, %v1836_v53  ;;  %v988_v33 = vand.u32 31, %v986_v17  ;;  %v4930_v6 = vpack.c.bf16 %v3782_v49, %v3780_v48 }
 0x19c   : > { %v981_v20 = vand.u32 8388607, %v7943_v21  ;;  %v7944_v23 = vxor.u32 2147483648, %v6269_v31  ;;  %v7946_v3 = vxor.u32 2147483648, %v6381_v12  ;;  %v6465_v10 = vsel %vm4728_vm7, 0, %v4727_v55  ;;  %4929 = vmatpush1.bf16.msra.mxu0 %v4928_v27  ;;  %5003 = vmatpush1.bf16.msra.mxu1 %v4928_v27 }
 0x19d   : > { %v1856_v41 = vadd.s32 1, %v6439_v5  ;;  %v7948_v47 = vshll.u32 %v6294_v16, %v6366_v34  ;;  %4931 = vmatprep.subr.bf16.mxu0 %v4930_v6  ;;  %4988 = vmatprep.subr.bf16.mxu1 %v4930_v6  ;;  %v1853_v55 = vmul.u32 %v1846_v62, %v1837_v11  ;;  %vm1855_vm11 = vc.u32 %v6443_v58, %v6438_v38 }
 0x19e   : > { %v6456_v52 = vsel %vm1388_vm1, %v7944_v23, %v6269_v31  ;;  %v6463_v14 = vsel %vm1491_vm2, %v7946_v3, %v6381_v12  ;;  %v989_v22 = vsub.s32 32, %v988_v33  ;;  %v939_v36 = vclz %v4694_v56  ;;  %v430_v23 = vpop.permute.xlu1 %429  ;;  %v390_v3 = vpop.permute.xlu0 %389 }
 0x19f   : > { %7945 = vst [vmem:[#allocation38_spill] sm:$0xff] %v6456_v52  ;;  %7947 = vst [vmem:[#allocation39_spill] sm:$0xff] %v6463_v14  ;;  %v6475_v63 = vor.u32 %v6413_v59, %v7948_v47  ;;  %v1857_v53 = vsel %vm1855_vm11, %v1856_v41, %v6439_v5  ;;  %v982_v1 = vor.u32 8388608, %v981_v20  ;;  %v1771_v16 = vsub.s32 4294967266, %v6465_v10 }
 0x1a0   : > { %v1858_v34 = vadd.s32 %v1857_v53, %v1853_v55  ;;  %v992_v59 = vshrl.u32 %v7933_v9, %v989_v22  ;;  %v995_v4 = vshrl.u32 %v7924_v42, %v989_v22  ;;  %v991_v21 = vshll.u32 %v7926_v37, %v988_v33 }
 0x1a1   : > { %v994_v62 = vshll.u32 %v7933_v9, %v988_v33  ;;  %v997_v27 = vshll.u32 %v7924_v42, %v988_v33  ;;  %v998_v11 = vshrl.u32 %v7935_v26, %v989_v22  ;;  %v987_v56 = vshrl.u32 %v986_v17, 5 }
 0x1a2   : > { %v1859_v6 = vadd.s32 536870912, %v1858_v34  ;;  %v1000_v5 = vshll.u32 %v7935_v26, %v988_v33  ;;  %v1001_v20 = vshrl.u32 %v7936_v60, %v989_v22  ;;  %v4695_v41 = vadd.s32 4294967294, %v939_v36 }
 0x1a3   : > { %v993_v47 = vor.u32 %v992_v59, %v991_v21  ;;  %v996_v55 = vor.u32 %v995_v4, %v994_v62  ;;  %v999_v53 = vor.u32 %v998_v11, %v997_v27  ;;  %v1003_v12 = vshll.u32 %v7936_v60, %v988_v33 }
 0x1a4   : > { %v6491_v49 = vshrl.u32 %v1859_v6, 30  ;;  %v1002_v13 = vor.u32 %v1001_v20, %v1000_v5  ;;  %v1004_v31 = vshrl.u32 %v7915_v15, %v989_v22  ;;  %v990_v48 = vshrl.u32 %v7926_v37, %v989_v22 }
 0x1a5   : > { %v1022_v17 = vshll.u32 %v982_v1, 8  ;;  %v6497_v14 = vmul.f32 %v6334_v32, %v430_v23  ;;  %v6500_v35 = vmul.f32 %v6334_v32, %v390_v3  ;;  %vm1006_vm12 = vcmp.lt.s32.totalorder %v987_v56, 1 }
 0x1a6   : > { %7949 = vst [vmem:[#allocation40_spill] sm:$0xff] %v6491_v49  ;;  %v1861_v36 = vshll.u32 %v6491_v49, 30  ;;  %v1005_v59 = vor.u32 %v1004_v31, %v1003_v12  ;;  %vm1009_vm13 = vcmp.lt.s32.totalorder %v987_v56, 4  ;;  %vm1008_vm14 = vcmp.lt.s32.totalorder %v987_v56, 3 }
 0x1a7   : > { %v1011_v4 = vsel %vm1009_vm13, %v999_v53, 2102212464  ;;  %v1014_v21 = vsel %vm1006_vm12, %v993_v47, %v996_v55  ;;  %v1015_v33 = vsel %vm1009_vm13, %v1002_v13, 920167782  ;;  %vm4696_vm0 = vcmp.lt.s32.totalorder %v4695_v41, 0 }
 0x1a8   : > { %vm1007_vm3 = vcmp.lt.s32.totalorder %v987_v56, 2  ;;  %v1016_v62 = vsel %vm1008_vm14, %v999_v53, %v1015_v33  ;;  %v1018_v22 = vsel %vm1006_vm12, %v996_v55, %v999_v53  ;;  %v6503_v1 = vsub.s32 %v1858_v34, %v1861_v36 }
 0x1a9   : > { %v1010_v27 = vsel %vm1006_vm12, %v990_v48, %v993_v47  ;;  %v1017_v11 = vsel %vm1007_vm3, %v1014_v21, %v1016_v62  ;;  %v1019_v6 = vsel %vm1009_vm13, %v1005_v59, 1326507024  ;;  %v1012_v5 = vsel %vm1008_vm14, %v996_v55, %v1011_v4 }
 0x1aa   : > { %v1020_v20 = vsel %vm1008_vm14, %v1002_v13, %v1019_v6  ;;  %v6506_v23 = vmul.u32.u64.low %v1022_v17, %v1017_v11  ;;  %v6507_v31 = vmul.u32.u64.high %v1022_v17, %v1017_v11, %v6506_v23  ;;  %v1751_v12 = vadd.s32 %v6301_v43, %v6308_v57 }
 0x1ab   : > { %v1772_v3 = vadd.s32 127, %v1771_v16  ;;  %v1021_v49 = vsel %vm1007_vm3, %v1018_v22, %v1020_v20  ;;  %v1904_v53 = vand.u32 2139095040, %v6497_v14  ;;  %vm667_vm4 = vcmp.lt.s32.totalorder %v5929_v28, 0 }
 0x1ac   : > { %v850_v48 = vcvt.s32.f32 %v6475_v63  ;;  %v942_v34 = vsel %vm4696_vm0, 0, %v4695_v41  ;;  %v6517_v47 = vmul.u32.u64.low %v1022_v17, %v1021_v49  ;;  %v6518_v13 = vmul.u32.u64.high %v1022_v17, %v1021_v49, %v6517_v47 }
 0x1ad   : > { %vm7888_vm5 = vcmp.lt.s32.totalorder %v5950_v54, 0  ;;  %v1864_v55 = vsub.s32 0, %v6503_v1  ;;  %v1013_v43 = vsel %vm1007_vm3, %v1010_v27, %v1012_v5  ;;  %v1905_v57 = vshrl.u32 %v1904_v53, 23 }
 0x1ae   : > { %v1080_v16 = vand.u32 2139095040, %v6500_v35  ;;  %v7950_v36 = vand.u32 2147483647, %v6407_v46  ;;  %v7951_v59 = vcvt.s32.f32 %v6405_v40  ;;  %vm7889_vm6 = vcmp.lt.s32.totalorder %v6118_v61, 0 }
 0x1af   : > { %v7952_v63 = vand.u32 2147483647, %v6445_v51  ;;  %v7953_v41 = vsub.s32 32, %v6465_v10  ;;  %v1032_v33 = vadd.s32 1, %v6507_v31  ;;  %v1773_v56 = vshll.u32 %v1772_v3, 23 }
 0x1b0   : > { %v1675_v4 = vmul.f32 %v7951_v59, %v7950_v36  ;;  %v7863_v62 = vand.u32 2147483647, %v6497_v14  ;;  %v4733_v22 = vadd.s32 4294967169, %v1905_v57  ;;  %v1081_v27 = vshrl.u32 %v1080_v16, 23 }
 0x1b1   : > { %v851_v49 = vmul.f32 %v850_v48, %v7952_v63  ;;  %v1769_v21 = vshrl.u32 %v1751_v12, %v7953_v41  ;;  %v943_v11 = vsub.s32 32, %v942_v34  ;;  %v947_v46 = vsub.s32 4294967266, %v942_v34 }
 0x1b2   : > { %v1029_v6 = vmul.u32 %v1022_v17, %v1013_v43  ;;  %vm1031_vm7 = vc.u32 %v6518_v13, %v6506_v23  ;;  %v1768_v40 = vshll.u32 %v6368_v19, %v6465_v10  ;;  %v4730_v51 = vmin.u32 %v1864_v55, %v6503_v1 }
 0x1b3   : > { %v1033_v5 = vsel %vm1031_vm7, %v1032_v33, %v6507_v31  ;;  %v1911_v20 = vadd.s32 1, %v4733_v22  ;;  %v1676_v12 = vxor.u32 2147483648, %v1675_v4  ;;  %v927_v3 = vadd.s32 %v6362_v30, %v6375_v18  ;;  %v435_v33 = vpop.permute.xlu1 %434 }
 0x1b4   : > { %v1034_v53 = vadd.s32 %v1033_v5, %v1029_v6  ;;  %v4701_v48 = vadd.s32 4294967169, %v1081_v27  ;;  %v852_v47 = vxor.u32 2147483648, %v851_v49  ;;  %v6543_v57 = vor.u32 %v1769_v21, %v1768_v40 }
 0x1b5   : > { %v6545_v17 = vor.u32 4788187, %v1773_v56  ;;  %vm1912_vm10 = vcmp.gt.s32.totalorder %v1911_v20, 0  ;;  %v945_v43 = vshrl.u32 %v927_v3, %v943_v11  ;;  %v6547_v16 = vadd.s32 127, %v947_v46 }
 0x1b6   : > { %v1035_v19 = vadd.s32 536870912, %v1034_v53  ;;  %v1908_v10 = vand.u32 8388607, %v7863_v62  ;;  %v7954_v31 = vxor.u32 2147483648, %v6401_v39  ;;  %v1866_v18 = vclz %v4730_v51 }
 0x1b7   : > { %v1913_v55 = vsel %vm1912_vm10, %v1911_v20, 0  ;;  %v7864_v36 = vand.u32 2147483647, %v6500_v35  ;;  %v6561_v59 = vsel %vm7888_vm5, %v1676_v12, %v1675_v4  ;;  %v944_v63 = vshll.u32 %v6432_v45, %v942_v34 }
 0x1b8   : > { %v6556_v30 = vsel %vm667_vm4, %v7954_v31, %v6401_v39  ;;  %7956 = vst [vmem:[#allocation42_spill] sm:$0xff] %v6561_v59  ;;  %v6564_v41 = vshrl.u32 %v1035_v19, 30  ;;  %v1087_v21 = vadd.s32 1, %v4701_v48  ;;  %v6568_v56 = vsel %vm7889_vm6, %v852_v47, %v851_v49 }
 0x1b9   : > { %7955 = vst [vmem:[#allocation41_spill] sm:$0xff] %v6556_v30  ;;  %7958 = vst [vmem:[#allocation44_spill] sm:$0xff] %v6568_v56  ;;  %v1775_v39 = vand.u32 2147483647, %v6545_v17  ;;  %v1777_v22 = vcvt.s32.f32 %v6543_v57  ;;  %v1915_v27 = vand.u32 31, %v1913_v55  ;;  %v6572_v11 = vor.u32 %v945_v43, %v944_v63 }
 0x1ba   : > { %7957 = vst [vmem:[#allocation43_spill] sm:$0xff] %v6564_v41  ;;  %v949_v4 = vshll.u32 %v6547_v16, 23  ;;  %v1037_v46 = vshll.u32 %v6564_v41, 30  ;;  %v1909_v45 = vor.u32 8388608, %v1908_v10  ;;  %v4731_v34 = vadd.s32 4294967294, %v1866_v18 }
 0x1bb   : > { %v1916_v6 = vsub.s32 32, %v1915_v27  ;;  %v1084_v40 = vand.u32 8388607, %v7864_v36  ;;  %v6579_v49 = vmul.f32 %v6334_v32, %v435_v33  ;;  %v1914_v51 = vshrl.u32 %v1913_v55, 5 }
 0x1bc   : > { %v1918_v5 = vshll.u32 %v7926_v37, %v1915_v27  ;;  %v1921_v20 = vshll.u32 %v7933_v9, %v1915_v27  ;;  %vm1088_vm11 = vcmp.gt.s32.totalorder %v1087_v21, 0  ;;  %v1924_v48 = vshll.u32 %v7924_v42, %v1915_v27 }
 0x1bd   : > { %7959 = vst [vmem:[#allocation45_spill] sm:$0xff] %v6579_v49  ;;  %v1919_v12 = vshrl.u32 %v7933_v9, %v1916_v6  ;;  %v1922_v3 = vshrl.u32 %v7924_v42, %v1916_v6  ;;  %v1925_v47 = vshrl.u32 %v7935_v26, %v1916_v6  ;;  %v6587_v57 = vsub.s32 %v1034_v53, %v1037_v46 }
 0x1be   : > { %v1927_v17 = vshll.u32 %v7935_v26, %v1915_v27  ;;  %v1928_v43 = vshrl.u32 %v7936_v60, %v1916_v6  ;;  %v1930_v16 = vshll.u32 %v7936_v60, %v1915_v27  ;;  %v1931_v18 = vshrl.u32 %v7915_v15, %v1916_v6 }
 0x1bf   : > { %v1920_v19 = vor.u32 %v1919_v12, %v1918_v5  ;;  %v1923_v10 = vor.u32 %v1922_v3, %v1921_v20  ;;  %v1926_v31 = vor.u32 %v1925_v47, %v1924_v48  ;;  %vm4732_vm12 = vcmp.lt.s32.totalorder %v4731_v34, 0 }
 0x1c0   : > { %v1929_v55 = vor.u32 %v1928_v43, %v1927_v17  ;;  %v1949_v63 = vshll.u32 %v1909_v45, 8  ;;  %v1085_v33 = vor.u32 8388608, %v1084_v40  ;;  %v1932_v62 = vor.u32 %v1931_v18, %v1930_v16 }
 0x1c1   : > { %vm1933_vm13 = vcmp.lt.s32.totalorder %v1914_v51, 1  ;;  %vm1936_vm14 = vcmp.lt.s32.totalorder %v1914_v51, 4  ;;  %v1089_v53 = vsel %vm1088_vm11, %v1087_v21, 0  ;;  %v1040_v46 = vsub.s32 0, %v6587_v57 }
 0x1c2   : > { %v1917_v36 = vshrl.u32 %v7926_v37, %v1916_v6  ;;  %v1938_v41 = vsel %vm1936_vm14, %v1926_v31, 2102212464  ;;  %v1941_v27 = vsel %vm1933_vm13, %v1920_v19, %v1923_v10  ;;  %vm1935_vm0 = vcmp.lt.s32.totalorder %v1914_v51, 3 }
 0x1c3   : > { %v1942_v5 = vsel %vm1936_vm14, %v1929_v55, 920167782  ;;  %v1945_v20 = vsel %vm1933_vm13, %v1923_v10, %v1926_v31  ;;  %v1946_v12 = vsel %vm1936_vm14, %v1932_v62, 1326507024  ;;  %vm1934_vm3 = vcmp.lt.s32.totalorder %v1914_v51, 2 }
 0x1c4   : > { %v1937_v3 = vsel %vm1933_vm13, %v1917_v36, %v1920_v19  ;;  %v1939_v48 = vsel %vm1935_vm0, %v1923_v10, %v1938_v41  ;;  %v1943_v45 = vsel %vm1935_vm0, %v1926_v31, %v1942_v5  ;;  %v6597_v40 = vsel %vm4732_vm12, 0, %v4731_v34 }
 0x1c5   : > { %v1944_v47 = vsel %vm1934_vm3, %v1941_v27, %v1943_v45  ;;  %v1947_v17 = vsel %vm1935_vm0, %v1929_v55, %v1946_v12  ;;  %v2007_v21 = vand.u32 2139095040, %v6579_v49  ;;  %v4698_v43 = vmin.u32 %v1040_v46, %v6587_v57 }
 0x1c6   : > { %v1948_v6 = vsel %vm1934_vm3, %v1945_v20, %v1947_v17  ;;  %v6601_v16 = vmul.u32.u64.low %v1949_v63, %v1944_v47  ;;  %v6602_v18 = vmul.u32.u64.high %v1949_v63, %v1944_v47, %v6601_v16  ;;  %v1940_v59 = vsel %vm1934_vm3, %v1937_v3, %v1939_v48 }
 0x1c7   : > { %v6605_v62 = vmul.u32.u64.low %v1949_v63, %v1948_v6  ;;  %v6606_v51 = vmul.u32.u64.high %v1949_v63, %v1948_v6, %v6605_v62  ;;  %v1091_v36 = vand.u32 31, %v1089_v53  ;;  %v6608_v41 = vmul.f32 %v1777_v22, %v1775_v39 }
 0x1c8   : > { %v6610_v34 = vor.u32 4788187, %v949_v4  ;;  %v6615_v10 = vadd.s32 %v6438_v38, %v6443_v58  ;;  %v1874_v31 = vsub.s32 4294967266, %v6597_v40  ;;  %v6618_v46 = vshll.u32 %v1085_v33, 8 }
 0x1c9   : > { %v1092_v55 = vsub.s32 32, %v1091_v36  ;;  %v1042_v5 = vclz %v4698_v43  ;;  %v1956_v20 = vmul.u32 %v1949_v63, %v1940_v59  ;;  %v1959_v39 = vadd.s32 1, %v6602_v18 }
 0x1ca   : > { %v2008_v22 = vshrl.u32 %v2007_v21, 23  ;;  %vm1958_vm7 = vc.u32 %v6606_v51, %v6601_v16  ;;  %v1090_v4 = vshrl.u32 %v1089_v53, 5  ;;  %v1094_v12 = vshll.u32 %v7926_v37, %v1091_v36 }
 0x1cb   : > { %v1095_v38 = vshrl.u32 %v7933_v9, %v1092_v55  ;;  %v1960_v58 = vsel %vm1958_vm7, %v1959_v39, %v6602_v18  ;;  %v1097_v33 = vshll.u32 %v7933_v9, %v1091_v36  ;;  %v1098_v3 = vshrl.u32 %v7924_v42, %v1092_v55 }
 0x1cc   : > { %v1100_v48 = vshll.u32 %v7924_v42, %v1091_v36  ;;  %v1961_v59 = vadd.s32 %v1960_v58, %v1956_v20  ;;  %v1101_v63 = vshrl.u32 %v7935_v26, %v1092_v55  ;;  %v1103_v45 = vshll.u32 %v7935_v26, %v1091_v36 }
 0x1cd   : > { %v1104_v47 = vshrl.u32 %v7936_v60, %v1092_v55  ;;  %v1870_v53 = vsub.s32 32, %v6597_v40  ;;  %v1096_v17 = vor.u32 %v1095_v38, %v1094_v12  ;;  %v1099_v21 = vor.u32 %v1098_v3, %v1097_v33 }
 0x1ce   : > { %v1106_v43 = vshll.u32 %v7936_v60, %v1091_v36  ;;  %v1962_v6 = vadd.s32 536870912, %v1961_v59  ;;  %v1102_v18 = vor.u32 %v1101_v63, %v1100_v48  ;;  %v1107_v39 = vshrl.u32 %v7915_v15, %v1092_v55 }
 0x1cf   : > { %v1105_v62 = vor.u32 %v1104_v47, %v1103_v45  ;;  %v1875_v19 = vadd.s32 127, %v1874_v31  ;;  %v4699_v27 = vadd.s32 4294967294, %v1042_v5  ;;  %vm1112_vm10 = vcmp.lt.s32.totalorder %v1090_v4, 4 }
 0x1d0   : > { %v4737_v20 = vadd.s32 4294967169, %v2008_v22  ;;  %v6636_v58 = vshrl.u32 %v1962_v6, 30  ;;  %v1108_v54 = vor.u32 %v1107_v39, %v1106_v43  ;;  %vm1109_vm11 = vcmp.lt.s32.totalorder %v1090_v4, 1  ;;  %v3779_v6 = vld [vmem:[#allocation3 + $0x40] sm:$0xff]  ;;  %v3781_v39 = vld [vmem:[#allocation3 + $0x50] sm:$0xff] }
 0x1d1   : > { %v1114_v56 = vsel %vm1112_vm10, %v1102_v18, 2102212464  ;;  %v1093_v12 = vshrl.u32 %v7926_v37, %v1092_v55  ;;  %vm1111_vm12 = vcmp.lt.s32.totalorder %v1090_v4, 3  ;;  %v1117_v38 = vsel %vm1109_vm11, %v1096_v17, %v1099_v21 }
 0x1d2   : > { %7960 = vst [vmem:[#allocation46_spill] sm:$0xff] %v6636_v58  ;;  %v1118_v36 = vsel %vm1112_vm10, %v1105_v62, 920167782  ;;  %v1964_v33 = vshll.u32 %v6636_v58, 30  ;;  %vm1110_vm13 = vcmp.lt.s32.totalorder %v1090_v4, 2  ;;  %v1121_v31 = vsel %vm1109_vm11, %v1099_v21, %v1102_v18 }
 0x1d3   : > { %v1119_v3 = vsel %vm1111_vm12, %v1102_v18, %v1118_v36  ;;  %v1113_v5 = vsel %vm1109_vm11, %v1093_v12, %v1096_v17  ;;  %v1115_v48 = vsel %vm1111_vm12, %v1099_v21, %v1114_v56  ;;  %v1122_v63 = vsel %vm1112_vm10, %v1108_v54, 1326507024  ;;  %v395_v12 = vpop.permute.xlu0 %394  ;;  %v3786_v36 = vld [vmem:[#allocation3 + $0x78] sm:$0xff] }
 0x1d4   : > { %v1120_v22 = vsel %vm1110_vm13, %v1117_v38, %v1119_v3  ;;  %v6644_v45 = vsub.s32 %v1961_v59, %v1964_v33  ;;  %v1123_v47 = vsel %vm1111_vm12, %v1105_v62, %v1122_v63  ;;  %v7961_v56 = vand.u32 2147483647, %v6579_v49  ;;  %v3784_v38 = vld [vmem:[#allocation3 + $0x68] sm:$0xff] }
 0x1d5   : > { %v6647_v55 = vmul.u32.u64.low %v6618_v46, %v1120_v22  ;;  %v6648_v43 = vmul.u32.u64.high %v6618_v46, %v1120_v22, %v6647_v55  ;;  %v1124_v18 = vsel %vm1110_vm13, %v1121_v31, %v1123_v47  ;;  %v2014_v21 = vadd.s32 1, %v4737_v20 }
 0x1d6   : > { %v2011_v17 = vand.u32 8388607, %v7961_v56  ;;  %vm4700_vm14 = vcmp.lt.s32.totalorder %v4699_v27, 0  ;;  %v1967_v54 = vsub.s32 0, %v6644_v45  ;;  %v1872_v33 = vshrl.u32 %v6615_v10, %v1870_v53 }
 0x1d7   : > { %v6657_v59 = vmul.u32.u64.low %v6618_v46, %v1124_v18  ;;  %v6658_v62 = vmul.u32.u64.high %v6618_v46, %v1124_v18, %v6657_v59  ;;  %v1116_v3 = vsel %vm1110_vm13, %v1113_v5, %v1115_v48  ;;  %vm2015_vm0 = vcmp.gt.s32.totalorder %v2014_v21, 0 }
 0x1d8   : > { %v4932_v31 = vpack.c.bf16 %v3781_v39, %v3779_v6  ;;  %v1876_v22 = vshll.u32 %v1875_v19, 23  ;;  %v4734_v63 = vmin.u32 %v1967_v54, %v6644_v45  ;;  %v1135_v20 = vadd.s32 1, %v6648_v43 }
 0x1d9   : > { %v2016_v47 = vsel %vm2015_vm0, %v2014_v21, 0  ;;  %v6665_v56 = vsel %vm4700_vm14, 0, %v4699_v27  ;;  %v6668_v59 = vmul.f32 %v6334_v32, %v395_v12  ;;  %v4934_v58 = vpack.c.bf16 %v3786_v36, %v3784_v38 }
 0x1da   : > { %v2018_v18 = vand.u32 31, %v2016_v47  ;;  %4933 = vmatpush1.bf16.msra.mxu0 %v4932_v31  ;;  %5004 = vmatpush1.bf16.msra.mxu1 %v4932_v31  ;;  %v1871_v10 = vshll.u32 %v6503_v1, %v6597_v40  ;;  %v6674_v19 = vadd.s32 %v6506_v23, %v6518_v13  ;;  %v1132_v4 = vmul.u32 %v6618_v46, %v1116_v3 }
 0x1db   : > { %7962 = vst [vmem:[#allocation47_spill] sm:$0xff] %v6668_v59  ;;  %vm1134_vm3 = vc.u32 %v6658_v62, %v6647_v55  ;;  %v1969_v27 = vclz %v4734_v63  ;;  %v2012_v32 = vor.u32 8388608, %v2011_v17  ;;  %4935 = vmatprep.subr.bf16.mxu0 %v4934_v58  ;;  %4989 = vmatprep.subr.bf16.mxu1 %v4934_v58  ;;  %v6682_v6 = vor.u32 4788187, %v1876_v22 }
 0x1dc   : > { %v1136_v53 = vsel %vm1134_vm3, %v1135_v20, %v6648_v43  ;;  %v2019_v5 = vsub.s32 32, %v2018_v18  ;;  %v6680_v48 = vor.u32 %v1872_v33, %v1871_v10  ;;  %v1050_v1 = vsub.s32 4294967266, %v6665_v56 }
 0x1dd   : > { %v1137_v23 = vadd.s32 %v1136_v53, %v1132_v4  ;;  %v1183_v39 = vand.u32 2139095040, %v6668_v59  ;;  %v2021_v17 = vshll.u32 %v7926_v37, %v2018_v18  ;;  %v2024_v58 = vshll.u32 %v7933_v9, %v2018_v18 }
 0x1de   : > { %v2022_v13 = vshrl.u32 %v7933_v9, %v2019_v5  ;;  %v2025_v40 = vshrl.u32 %v7924_v42, %v2019_v5  ;;  %v2028_v46 = vshrl.u32 %v7935_v26, %v2019_v5  ;;  %v2031_v21 = vshrl.u32 %v7936_v60, %v2019_v5 }
 0x1df   : > { %v1138_v43 = vadd.s32 536870912, %v1137_v23  ;;  %v4735_v54 = vadd.s32 4294967294, %v1969_v27  ;;  %v2017_v12 = vshrl.u32 %v2016_v47, 5  ;;  %v2027_v38 = vshll.u32 %v7924_v42, %v2018_v18 }
 0x1e0   : > { %v2030_v36 = vshll.u32 %v7935_v26, %v2018_v18  ;;  %v1046_v33 = vsub.s32 32, %v6665_v56  ;;  %v2023_v31 = vor.u32 %v2022_v13, %v2021_v17  ;;  %v2026_v22 = vor.u32 %v2025_v40, %v2024_v58 }
 0x1e1   : > { %v6695_v3 = vshrl.u32 %v1138_v43, 30  ;;  %v2029_v63 = vor.u32 %v2028_v46, %v2027_v38  ;;  %v2033_v10 = vshll.u32 %v7936_v60, %v2018_v18  ;;  %v2034_v4 = vshrl.u32 %v7915_v15, %v2019_v5 }
 0x1e2   : > { %v2032_v20 = vor.u32 %v2031_v21, %v2030_v36  ;;  %v6699_v53 = vadd.s32 127, %v1050_v1  ;;  %v6702_v27 = vshll.u32 %v2012_v32, 8  ;;  %vm4736_vm7 = vcmp.lt.s32.totalorder %v4735_v54, 0 }
 0x1e3   : > { %7963 = vst [vmem:[#allocation48_spill] sm:$0xff] %v6695_v3  ;;  %v1140_v47 = vshll.u32 %v6695_v3, 30  ;;  %v2035_v61 = vor.u32 %v2034_v4, %v2033_v10  ;;  %vm2036_vm10 = vcmp.lt.s32.totalorder %v2017_v12, 1  ;;  %v1184_v43 = vshrl.u32 %v1183_v39, 23  ;;  %v3785_v3 = vld [vmem:[#allocation3 + $0x70] sm:$0xff] }
 0x1e4   : > { %v2020_v40 = vshrl.u32 %v7926_v37, %v2019_v5  ;;  %vm2039_vm11 = vcmp.lt.s32.totalorder %v2017_v12, 4  ;;  %v2044_v18 = vsel %vm2036_vm10, %v2023_v31, %v2026_v22  ;;  %v2048_v1 = vsel %vm2036_vm10, %v2026_v22, %v2029_v63 }
 0x1e5   : > { %v6705_v13 = vsub.s32 %v1137_v23, %v1140_v47  ;;  %v2041_v46 = vsel %vm2039_vm11, %v2029_v63, 2102212464  ;;  %v2045_v17 = vsel %vm2039_vm11, %v2032_v20, 920167782  ;;  %v2049_v58 = vsel %vm2039_vm11, %v2035_v61, 1326507024 }
 0x1e6   : > { %v6708_v21 = vsel %vm4736_vm7, 0, %v4735_v54  ;;  %vm2037_vm12 = vcmp.lt.s32.totalorder %v2017_v12, 2  ;;  %vm2038_vm13 = vcmp.lt.s32.totalorder %v2017_v12, 3  ;;  %v2040_v38 = vsel %vm2036_vm10, %v2020_v40, %v2023_v31  ;;  %v3783_v23 = vld [vmem:[#allocation3 + $0x60] sm:$0xff]  ;;  %v3788_v61 = vld [vmem:[#allocation3 + $0x88] sm:$0xff]  ;;  %v3790_v54 = vld [vmem:[#allocation3 + $0x98] sm:$0xff] }
 0x1e7   : > { %v1143_v32 = vsub.s32 0, %v6705_v13  ;;  %v2046_v36 = vsel %vm2038_vm13, %v2029_v63, %v2045_v17  ;;  %v2050_v10 = vsel %vm2038_vm13, %v2032_v20, %v2049_v58  ;;  %v4705_v39 = vadd.s32 4294967169, %v1184_v43  ;;  %v3787_v20 = vld [vmem:[#allocation3 + $0x80] sm:$0xff]  ;;  %v3789_v43 = vld [vmem:[#allocation3 + $0x90] sm:$0xff]  ;;  %v3792_v58 = vld [vmem:[#allocation3 + $0xa8] sm:$0xff] }
 0x1e8   : > { %v2042_v5 = vsel %vm2038_vm13, %v2026_v22, %v2041_v46  ;;  %v2047_v47 = vsel %vm2037_vm12, %v2044_v18, %v2046_v36  ;;  %v2051_v49 = vsel %vm2037_vm12, %v2048_v1, %v2050_v10  ;;  %v1047_v22 = vshll.u32 %v6587_v57, %v6665_v56 }
 0x1e9   : > { %v4702_v4 = vmin.u32 %v1143_v32, %v6705_v13  ;;  %v6715_v30 = vmul.u32.u64.low %v6702_v27, %v2051_v49  ;;  %v6716_v28 = vmul.u32.u64.high %v6702_v27, %v2051_v49, %v6715_v30  ;;  %v1048_v40 = vshrl.u32 %v6674_v19, %v1046_v33  ;;  %v3794_v32 = vld [vmem:[#allocation3 + $0xb8] sm:$0xff] }
 0x1ea   : > { %v6719_v31 = vmul.u32.u64.low %v6702_v27, %v2047_v47  ;;  %v6720_v63 = vmul.u32.u64.high %v6702_v27, %v2047_v47, %v6719_v31  ;;  %v1190_v46 = vadd.s32 1, %v4705_v39  ;;  %v1052_v17 = vshll.u32 %v6699_v53, 23  ;;  %v3791_v39 = vld [vmem:[#allocation3 + $0xa0] sm:$0xff] }
 0x1eb   : > { %v1145_v18 = vclz %v4702_v4  ;;  %v2043_v1 = vsel %vm2037_vm12, %v2040_v38, %v2042_v5  ;;  %v4936_v49 = vpack.c.bf16 %v3785_v3, %v3783_v23  ;;  %v4938_v30 = vpack.c.bf16 %v3790_v54, %v3788_v61  ;;  %v3793_v23 = vld [vmem:[#allocation3 + $0xb0] sm:$0xff] }
 0x1ec   : > { %v1977_v36 = vsub.s32 4294967266, %v6708_v21  ;;  %v7964_v10 = vand.u32 2147483647, %v6668_v59  ;;  %vm1191_vm14 = vcmp.gt.s32.totalorder %v1190_v46, 0  ;;  %v4940_v57 = vpack.c.bf16 %v3789_v43, %v3787_v20  ;;  %v3796_v20 = vld [vmem:[#allocation3 + $0xc8] sm:$0xff] }
 0x1ed   : > { %v4703_v56 = vadd.s32 4294967294, %v1145_v18  ;;  %vm2061_vm0 = vc.u32 %v6716_v28, %v6719_v31  ;;  %v2062_v19 = vadd.s32 1, %v6720_v63  ;;  %v1192_v12 = vsel %vm1191_vm14, %v1190_v46, 0  ;;  %4937 = vmatpush1.bf16.msra.mxu0 %v4936_v49  ;;  %5005 = vmatpush1.bf16.msra.mxu1 %v4936_v49 }
 0x1ee   : > { %v6731_v47 = vand.u32 8388607, %v7964_v10  ;;  %v2059_v3 = vmul.u32 %v6702_v27, %v2043_v1  ;;  %v1194_v53 = vand.u32 31, %v1192_v12  ;;  %4939 = vmatprep.subr.bf16.mxu0 %v4938_v30  ;;  %4990 = vmatprep.subr.bf16.mxu1 %v4938_v30  ;;  %v4942_v38 = vpack.c.bf16 %v3794_v32, %v3792_v58  ;;  %v3798_v27 = vld [vmem:[#allocation3 + $0xd8] sm:$0xff]  ;;  %v3795_v30 = vld [vmem:[#allocation3 + $0xc0] sm:$0xff]  ;;  %v3797_v58 = vld [vmem:[#allocation3 + $0xd0] sm:$0xff] }
 0x1ef   : > { %v6738_v4 = vor.u32 %v1048_v40, %v1047_v22  ;;  %v6740_v5 = vor.u32 4788187, %v1052_v17  ;;  %v1957_v61 = vadd.s32 %v6601_v16, %v6606_v51  ;;  %v2063_v54 = vsel %vm2061_vm0, %v2062_v19, %v6720_v63 }
 0x1f0   : > { %v1973_v43 = vsub.s32 32, %v6708_v21  ;;  %v2064_v46 = vadd.s32 %v2063_v54, %v2059_v3  ;;  %v1188_v22 = vor.u32 8388608, %v6731_v47  ;;  %v6752_v40 = vadd.s32 127, %v1977_v36 }
 0x1f1   : > { %vm4704_vm3 = vcmp.lt.s32.totalorder %v4703_v56, 0  ;;  %v1195_v17 = vsub.s32 32, %v1194_v53  ;;  %4941 = vmatpush1.bf16.msra.mxu0 %v4940_v57  ;;  %5006 = vmatpush1.bf16.msra.mxu1 %v4940_v57  ;;  %v4944_v16 = vpack.c.bf16 %v3793_v23, %v3791_v39  ;;  %v1197_v63 = vshll.u32 %v7926_v37, %v1194_v53 }
 0x1f2   : > { %v2065_v51 = vadd.s32 536870912, %v2064_v46  ;;  %v1200_v1 = vshll.u32 %v7933_v9, %v1194_v53  ;;  %4943 = vmatprep.subr.bf16.mxu0 %v4942_v38  ;;  %4991 = vmatprep.subr.bf16.mxu1 %v4942_v38  ;;  %v4946_v49 = vpack.c.bf16 %v3798_v27, %v3796_v20  ;;  %v1203_v10 = vshll.u32 %v7924_v42, %v1194_v53 }
 0x1f3   : > { %v1198_v32 = vshrl.u32 %v7933_v9, %v1195_v17  ;;  %v1201_v36 = vshrl.u32 %v7924_v42, %v1195_v17  ;;  %v1204_v47 = vshrl.u32 %v7935_v26, %v1195_v17  ;;  %v1193_v19 = vshrl.u32 %v1192_v12, 5 }
 0x1f4   : > { %v6760_v57 = vshrl.u32 %v2065_v51, 30  ;;  %v1206_v3 = vshll.u32 %v7935_v26, %v1194_v53  ;;  %v1207_v39 = vshrl.u32 %v7936_v60, %v1195_v17  ;;  %v4948_v20 = vpack.c.bf16 %v3797_v58, %v3795_v30  ;;  %v3799_v30 = vld [vmem:[#allocation3 + $0xe0] sm:$0xff] }
 0x1f5   : > { %v1199_v23 = vor.u32 %v1198_v32, %v1197_v63  ;;  %v1202_v38 = vor.u32 %v1201_v36, %v1200_v1  ;;  %v1205_v54 = vor.u32 %v1204_v47, %v1203_v10  ;;  %4945 = vmatpush1.bf16.msra.mxu0 %v4944_v16  ;;  %v1975_v27 = vshrl.u32 %v1957_v61, %v1973_v43  ;;  %v3801_v10 = vld [vmem:[#allocation3 + $0xf0] sm:$0xff]  ;;  %v3804_v47 = vld [vmem:[#allocation3 + $0x108] sm:$0xff] }
 0x1f6   : > { %v1979_v33 = vshll.u32 %v6752_v40, 23  ;;  %v2067_v18 = vshll.u32 %v6760_v57, 30  ;;  %v1208_v59 = vor.u32 %v1207_v39, %v1206_v3  ;;  %4947 = vmatprep.subr.bf16.mxu0 %v4946_v49  ;;  %5007 = vmatpush1.bf16.msra.mxu1 %v4944_v16  ;;  %v6767_v51 = vsel %vm4704_vm3, 0, %v4703_v56  ;;  %v3806_v3 = vld [vmem:[#allocation3 + $0x118] sm:$0xff] }
 0x1f7   : > { %v1209_v12 = vshll.u32 %v7936_v60, %v1194_v53  ;;  %v1210_v52 = vshrl.u32 %v7915_v15, %v1195_v17  ;;  %v6771_v63 = vshll.u32 %v1188_v22, 8  ;;  %4992 = vmatprep.subr.bf16.mxu1 %v4946_v49  ;;  %vm1212_vm7 = vcmp.lt.s32.totalorder %v1193_v19, 1 }
 0x1f8   : > { %v6773_v1 = vsub.s32 %v2064_v46, %v2067_v18  ;;  %vm1214_vm10 = vcmp.lt.s32.totalorder %v1193_v19, 3  ;;  %vm1215_vm11 = vcmp.lt.s32.totalorder %v1193_v19, 4  ;;  %v1220_v40 = vsel %vm1212_vm7, %v1199_v23, %v1202_v38  ;;  %v3800_v18 = vld [vmem:[#allocation3 + $0xe8] sm:$0xff]  ;;  %v3802_v46 = vld [vmem:[#allocation3 + $0xf8] sm:$0xff] }
 0x1f9   : > { %v1211_v61 = vor.u32 %v1210_v52, %v1209_v12  ;;  %v1217_v43 = vsel %vm1215_vm11, %v1205_v54, 2102212464  ;;  %v1221_v56 = vsel %vm1215_vm11, %v1208_v59, 920167782  ;;  %4949 = vmatpush1.bf16.msra.mxu0 %v4948_v20  ;;  %v1196_v15 = vshrl.u32 %v7926_v37, %v1195_v17 }
 0x1fa   : > { %v2070_v60 = vsub.s32 0, %v6773_v1  ;;  %vm1213_vm12 = vcmp.lt.s32.totalorder %v1193_v19, 2  ;;  %v1222_v53 = vsel %vm1214_vm10, %v1205_v54, %v1221_v56  ;;  %5008 = vmatpush1.bf16.msra.mxu1 %v4948_v20  ;;  %v1153_v22 = vsub.s32 4294967266, %v6767_v51 }
 0x1fb   : > { %v1223_v52 = vsel %vm1213_vm12, %v1220_v40, %v1222_v53  ;;  %v1224_v16 = vsel %vm1212_vm7, %v1202_v38, %v1205_v54  ;;  %v1225_v49 = vsel %vm1215_vm11, %v1211_v61, 1326507024  ;;  %v1216_v32 = vsel %vm1212_vm7, %v1196_v15, %v1199_v23 }
 0x1fc   : > { %v4738_v58 = vmin.u32 %v2070_v60, %v6773_v1  ;;  %v1218_v17 = vsel %vm1214_vm10, %v1202_v38, %v1217_v43  ;;  %v1226_v36 = vsel %vm1214_vm10, %v1208_v59, %v1225_v49  ;;  %v4950_v54 = vpack.c.bf16 %v3802_v46, %v3800_v18  ;;  %v3803_v38 = vld [vmem:[#allocation3 + $0x100] sm:$0xff]  ;;  %v3805_v59 = vld [vmem:[#allocation3 + $0x110] sm:$0xff] }
 0x1fd   : > { %v1227_v39 = vsel %vm1213_vm12, %v1224_v16, %v1226_v36  ;;  %v6791_v20 = vmul.u32.u64.low %v6771_v63, %v1223_v52  ;;  %v6792_v12 = vmul.u32.u64.high %v6771_v63, %v1223_v52, %v6791_v20  ;;  %v1149_v61 = vsub.s32 32, %v6767_v51  ;;  %v3808_v52 = vld [vmem:[#allocation3 + $0x128] sm:$0xff]  ;;  %v3810_v16 = vld [vmem:[#allocation3 + $0x138] sm:$0xff] }
 0x1fe   : > { %v2072_v40 = vclz %v4738_v58  ;;  %v6797_v23 = vmul.u32.u64.low %v6771_v63, %v1227_v39  ;;  %v6798_v56 = vmul.u32.u64.high %v6771_v63, %v1227_v39, %v6797_v23  ;;  %v1154_v43 = vadd.s32 127, %v1153_v22  ;;  %4951 = vmatprep.subr.bf16.mxu0 %v4950_v54  ;;  %4993 = vmatprep.subr.bf16.mxu1 %v4950_v54  ;;  %v3814_v36 = vld [vmem:[#allocation3 + $0x158] sm:$0xff] }
 0x1ff   : > { %v1219_v60 = vsel %vm1213_vm12, %v1216_v32, %v1218_v17  ;;  %v4952_v15 = vpack.c.bf16 %v3801_v10, %v3799_v30  ;;  %v4954_v53 = vpack.c.bf16 %v3806_v3, %v3804_v47  ;;  %v1878_v18 = vand.u32 2147483647, %v6682_v6  ;;  %v3811_v23 = vld [vmem:[#allocation3 + $0x140] sm:$0xff] }
 0x200   : > { %v1054_v46 = vand.u32 2147483647, %v6740_v5  ;;  %v1056_v49 = vcvt.s32.f32 %v6738_v4  ;;  %v1133_v58 = vadd.s32 %v6647_v55, %v6658_v62  ;;  %v7965_v22 = vshll.u32 %v6644_v45, %v6708_v21  ;;  %v3807_v62 = vld [vmem:[#allocation3 + $0x120] sm:$0xff]  ;;  %v3809_v45 = vld [vmem:[#allocation3 + $0x130] sm:$0xff] }
 0x201   : > { %v6811_v32 = vor.u32 4788187, %v1979_v33  ;;  %v1238_v30 = vadd.s32 1, %v6792_v12  ;;  %4953 = vmatpush1.bf16.msra.mxu0 %v4952_v15  ;;  %5009 = vmatpush1.bf16.msra.mxu1 %v4952_v15  ;;  %v4956_v17 = vpack.c.bf16 %v3805_v59, %v3803_v38  ;;  %v4739_v6 = vadd.s32 4294967294, %v2072_v40 }
 0x202   : > { %v6809_v19 = vor.u32 %v1975_v27, %v7965_v22  ;;  %v1235_v5 = vmul.u32 %v6771_v63, %v1219_v60  ;;  %vm1237_vm13 = vc.u32 %v6798_v56, %v6791_v20  ;;  %4955 = vmatprep.subr.bf16.mxu0 %v4954_v53  ;;  %4994 = vmatprep.subr.bf16.mxu1 %v4954_v53  ;;  %v1155_v4 = vshll.u32 %v1154_v43, 23  ;;  %v3812_v27 = vld [vmem:[#allocation3 + $0x148] sm:$0xff]  ;;  %v3813_v43 = vld [vmem:[#allocation3 + $0x150] sm:$0xff]  ;;  %v3818_v60 = vld [vmem:[#allocation3 + $0x178] sm:$0xff] }
 0x203   : > { %v4958_v55 = vpack.c.bf16 %v3810_v16, %v3808_v52  ;;  %v1151_v21 = vshrl.u32 %v1133_v58, %v1149_v61  ;;  %v1239_v33 = vsel %vm1237_vm13, %v1238_v30, %v6792_v12  ;;  %v459_v10 = vand.u32 2147483647, %v5832_v24  ;;  %v3815_v52 = vld [vmem:[#allocation3 + $0x160] sm:$0xff]  ;;  %v3817_v16 = vld [vmem:[#allocation3 + $0x170] sm:$0xff] }
 0x204   : > { %v1779_v47 = vxor.u32 2147483648, %v6608_v41  ;;  %v7966_v63 = vand.u32 2147483647, %v6610_v34  ;;  %v7967_v3 = vcvt.s32.f32 %v6572_v11  ;;  %v7968_v54 = vcvt.s32.f32 %v6680_v48  ;;  %v3816_v11 = vld [vmem:[#allocation3 + $0x168] sm:$0xff] }
 0x205   : > { %v1240_v61 = vadd.s32 %v1239_v33, %v1235_v5  ;;  %v6830_v38 = vmul.f32 %v1056_v49, %v1054_v46  ;;  %v1983_v12 = vcvt.s32.f32 %v6809_v19  ;;  %v1150_v59 = vshll.u32 %v6705_v13, %v6767_v51  ;;  %4957 = vmatpush1.bf16.msra.mxu0 %v4956_v17  ;;  %5010 = vmatpush1.bf16.msra.mxu1 %v4956_v17  ;;  %v3820_v51 = vld [vmem:[#allocation3 + $0x188] sm:$0xff]  ;;  %v3822_v49 = vld [vmem:[#allocation3 + $0x198] sm:$0xff]  ;;  %v3827_v19 = vld [vmem:[#allocation3 + $0x1c0] sm:$0xff] }
 0x206   : > { %v6824_v39 = vmul.f32 %v7967_v3, %v7966_v63  ;;  %v6828_v40 = vmul.f32 %v7968_v54, %v1878_v18  ;;  %v4960_v34 = vpack.c.bf16 %v3809_v45, %v3807_v62  ;;  %v1981_v15 = vand.u32 2147483647, %v6811_v32  ;;  %4959 = vmatprep.subr.bf16.mxu0 %v4958_v55  ;;  %4995 = vmatprep.subr.bf16.mxu1 %v4958_v55  ;;  %v3819_v62 = vld [vmem:[#allocation3 + $0x180] sm:$0xff] }
 0x207   : > { %vm4740_vm14 = vcmp.lt.s32.totalorder %v4739_v6, 0  ;;  %v1241_v48 = vadd.s32 536870912, %v1240_v61  ;;  %v4962_v53 = vpack.c.bf16 %v3814_v36, %v3812_v27  ;;  %v6836_v18 = vor.u32 %v1151_v21, %v1150_v59 }
 0x208   : > { %v6838_v46 = vor.u32 4788187, %v1155_v4  ;;  %v6842_v13 = vadd.s32 %v6719_v31, %v6716_v28  ;;  %v466_v58 = vand.u32 8388607, %v459_v10  ;;  %v4964_v30 = vpack.c.bf16 %v3813_v43, %v3811_v23  ;;  %v3821_v28 = vld [vmem:[#allocation3 + $0x190] sm:$0xff] }
 0x209   : > { %v6846_v22 = vshrl.u32 %v1241_v48, 30  ;;  %v4966_v17 = vpack.c.bf16 %v3818_v60, %v3816_v11  ;;  %v476_v5 = vshll.u32 %v7926_v37, %v5926_v29  ;;  %v6851_v55 = vsel %vm4740_vm14, 0, %v4739_v6  ;;  %4961 = vmatpush1.bf16.msra.mxu0 %v4960_v34  ;;  %5011 = vmatpush1.bf16.msra.mxu1 %v4960_v34 }
 0x20a   : > { %v477_v31 = vshrl.u32 %v7933_v9, %v5941_v44  ;;  %v479_v45 = vshll.u32 %v7933_v9, %v5926_v29  ;;  %v480_v21 = vshrl.u32 %v7924_v42, %v5941_v44  ;;  %4963 = vmatprep.subr.bf16.mxu0 %v4962_v53  ;;  %4996 = vmatprep.subr.bf16.mxu1 %v4962_v53  ;;  %v467_v27 = vor.u32 8388608, %v466_v58  ;;  %v7969_v53 = vld [vmem:[#allocation30_spill] sm:$0xff] }
 0x20b   : > { %v1243_v4 = vshll.u32 %v6846_v22, 30  ;;  %v4968_v33 = vpack.c.bf16 %v3817_v16, %v3815_v52  ;;  %v4970_v6 = vpack.c.bf16 %v3822_v49, %v3820_v51  ;;  %v482_v3 = vshll.u32 %v7924_v42, %v5926_v29  ;;  %v3824_v52 = vld [vmem:[#allocation3 + $0x1a8] sm:$0xff]  ;;  %v3826_v16 = vld [vmem:[#allocation3 + $0x1b8] sm:$0xff] }
 0x20c   : > { %v478_v36 = vor.u32 %v477_v31, %v476_v5  ;;  %v481_v63 = vor.u32 %v480_v21, %v479_v45  ;;  %v483_v54 = vshrl.u32 %v7935_v26, %v5941_v44  ;;  %v2076_v23 = vsub.s32 32, %v6851_v55  ;;  %v7970_v49 = vld [vmem:[#allocation21_spill] sm:$0xff] }
 0x20d   : > { %v6865_v59 = vsub.s32 %v1240_v61, %v1243_v4  ;;  %v4972_v34 = vpack.c.bf16 %v3821_v28, %v3819_v62  ;;  %vm491_vm0 = vcmp.lt.s32.totalorder %v5961_v2, 1  ;;  %v2080_v43 = vsub.s32 4294967266, %v6851_v55  ;;  %4965 = vmatpush1.bf16.msra.mxu0 %v4964_v30  ;;  %5012 = vmatpush1.bf16.msra.mxu1 %v4964_v30 }
 0x20e   : > { %v484_v11 = vor.u32 %v483_v54, %v482_v3  ;;  %vm493_vm3 = vcmp.lt.s32.totalorder %v5961_v2, 3  ;;  %v499_v29 = vsel %vm491_vm0, %v478_v36, %v481_v63  ;;  %vm7885_vm7 = vcmp.lt.s32.totalorder %v6181_v0, 0  ;;  %4967 = vmatprep.subr.bf16.mxu0 %v4966_v17  ;;  %4997 = vmatprep.subr.bf16.mxu1 %v4966_v17  ;;  %v7971_v17 = vld [vmem:[#allocation35_spill] sm:$0xff] }
 0x20f   : > { %v1246_v60 = vsub.s32 0, %v6865_v59  ;;  %v475_v61 = vshrl.u32 %v7926_v37, %v5941_v44  ;;  %vm492_vm10 = vcmp.lt.s32.totalorder %v5961_v2, 2  ;;  %v505_v48 = vsel %vm493_vm3, %v5971_v8, %v6104_v50 }
 0x210   : > { %vm7886_vm11 = vcmp.lt.s32.totalorder %v7969_v53, 0  ;;  %v496_v51 = vsel %vm494_vm15, %v484_v11, 2102212464  ;;  %v501_v58 = vsel %vm493_vm3, %v484_v11, %v7970_v49  ;;  %v503_v44 = vsel %vm491_vm0, %v481_v63, %v484_v11  ;;  %v3834_v49 = vld [vmem:[#allocation3 + $0x1f8] sm:$0xff] }
 0x211   : > { %v507_v30 = vshll.u32 %v467_v27, 8  ;;  %vm7883_vm12 = vcmp.lt.s32.totalorder %v7971_v17, 0  ;;  %v4706_v5 = vmin.u32 %v1246_v60, %v6865_v59  ;;  %v495_v8 = vsel %vm491_vm0, %v475_v61, %v478_v36  ;;  %4969 = vmatpush1.bf16.msra.mxu0 %v4968_v33  ;;  %5013 = vmatpush1.bf16.msra.mxu1 %v4968_v33  ;;  %v3823_v36 = vld [vmem:[#allocation3 + $0x1a0] sm:$0xff]  ;;  %v3830_v60 = vld [vmem:[#allocation3 + $0x1d8] sm:$0xff] }
 0x212   : > { %v497_v50 = vsel %vm493_vm3, %v481_v63, %v496_v51  ;;  %v502_v62 = vsel %vm492_vm10, %v499_v29, %v501_v58  ;;  %vm7884_vm15 = vcmp.lt.s32.totalorder %v6360_v7, 0  ;;  %v2081_v28 = vadd.s32 127, %v2080_v43  ;;  %4971 = vmatprep.subr.bf16.mxu0 %v4970_v6  ;;  %4998 = vmatprep.subr.bf16.mxu1 %v4970_v6  ;;  %v3825_v63 = vld [vmem:[#allocation3 + $0x1b0] sm:$0xff]  ;;  %v3828_v29 = vld [vmem:[#allocation3 + $0x1c8] sm:$0xff] }
 0x213   : > { %v506_v31 = vsel %vm492_vm10, %v503_v44, %v505_v48  ;;  %v6900_v45 = vmul.u32.u64.low %v507_v30, %v502_v62  ;;  %v6901_v21 = vmul.u32.u64.high %v507_v30, %v502_v62, %v6900_v45  ;;  %v1248_v4 = vclz %v4706_v5  ;;  %v3833_v5 = vld [vmem:[#allocation3 + $0x1f0] sm:$0xff] }
 0x214   : > { %v4974_v27 = vpack.c.bf16 %v3826_v16, %v3824_v52  ;;  %v6904_v3 = vmul.u32.u64.low %v507_v30, %v506_v31  ;;  %v6905_v54 = vmul.u32.u64.high %v507_v30, %v506_v31, %v6904_v3  ;;  %v955_v43 = vxor.u32 2147483648, %v6824_v39 }
 0x215   : > { %v1157_v33 = vand.u32 2147483647, %v6838_v46  ;;  %v2078_v11 = vshrl.u32 %v6842_v13, %v2076_v23  ;;  %v498_v61 = vsel %vm492_vm10, %v495_v8, %v497_v50  ;;  %v1882_v48 = vxor.u32 2147483648, %v6828_v40  ;;  %4973 = vmatpush1.bf16.msra.mxu0 %v4972_v34  ;;  %5014 = vmatpush1.bf16.msra.mxu1 %v4972_v34  ;;  %v3832_v34 = vld [vmem:[#allocation3 + $0x1e8] sm:$0xff] }
 0x216   : > { %v6917_v6 = vmul.f32 %v1983_v12, %v1981_v15  ;;  %v1159_v52 = vcvt.s32.f32 %v6836_v18  ;;  %v2077_v46 = vshll.u32 %v6773_v1, %v6851_v55  ;;  %v2082_v16 = vshll.u32 %v2081_v28, 23  ;;  %4975 = vmatprep.subr.bf16.mxu0 %v4974_v27  ;;  %4999 = vmatprep.subr.bf16.mxu1 %v4974_v27  ;;  %v3829_v12 = vld [vmem:[#allocation3 + $0x1d0] sm:$0xff] }
 0x217   : > { %v4707_v13 = vadd.s32 4294967294, %v1248_v4  ;;  %v4976_v23 = vpack.c.bf16 %v3825_v63, %v3823_v36  ;;  %v517_v2 = vadd.s32 1, %v6901_v21  ;;  %v1058_v51 = vxor.u32 2147483648, %v6830_v38  ;;  %v7973_v63 = vld [vmem:[#allocation15_spill] sm:$0xff] }
 0x218   : > { %v4978_v32 = vpack.c.bf16 %v3830_v60, %v3828_v29  ;;  %v514_v15 = vmul.u32 %v507_v30, %v498_v61  ;;  %vm516_vm13 = vc.u32 %v6905_v54, %v6900_v45  ;;  %v6931_v1 = vsel %vm7885_vm7, %v1779_v47, %v6608_v41  ;;  %v3831_v30 = vld [vmem:[#allocation3 + $0x1e0] sm:$0xff]  ;;  %v7972_v41 = vld [vmem:[#allocation17_spill] sm:$0xff] }
 0x219   : > { %v1160_v18 = vmul.f32 %v1159_v52, %v1157_v33  ;;  %v2079_v55 = vor.u32 %v2078_v11, %v2077_v46  ;;  %v518_v58 = vsel %vm516_vm13, %v517_v2, %v6901_v21  ;;  %v6937_v44 = vsel %vm7886_vm11, %v955_v43, %v6824_v39  ;;  %4977 = vmatpush1.bf16.msra.mxu0 %v4976_v23  ;;  %v7974_v11 = vld [vmem:[#allocation14_spill] sm:$0xff] }
 0x21a   : > { %vm7881_vm14 = vcmp.lt.s32.totalorder %v6497_v14, 0  ;;  %vm7882_vm0 = vcmp.lt.s32.totalorder %v6500_v35, 0  ;;  %v519_v8 = vadd.s32 %v518_v58, %v514_v15  ;;  %v648_v47 = vsub.s32 4, %v7972_v41  ;;  %5015 = vmatpush1.bf16.msra.mxu1 %v4976_v23  ;;  %4979 = vmatprep.subr.bf16.mxu0 %v4978_v32 }
 0x21b   : > { %v6945_v50 = vsel %vm7883_vm12, %v1882_v48, %v6828_v40  ;;  %v2083_v62 = vor.u32 4788187, %v2082_v16  ;;  %vm4708_vm3 = vcmp.lt.s32.totalorder %v4707_v13, 0  ;;  %v4980_v39 = vpack.c.bf16 %v3829_v12, %v3827_v19  ;;  %5000 = vmatprep.subr.bf16.mxu1 %v4978_v32  ;;  %v7978_v19 = vld [vmem:[#allocation31_spill] sm:$0xff] }
 0x21c   : > { %v6950_v28 = vsel %vm7884_vm15, %v1058_v51, %v6830_v38  ;;  %v1985_v31 = vxor.u32 2147483648, %v6917_v6  ;;  %v4982_v21 = vpack.c.bf16 %v3834_v49, %v3832_v34  ;;  %v520_v4 = vadd.s32 536870912, %v519_v8  ;;  %v7975_v38 = vld [vmem:[#allocation24_spill] sm:$0xff] }
 0x21d   : > { %v1161_v27 = vxor.u32 2147483648, %v1160_v18  ;;  %v2086_v36 = vcvt.s32.f32 %v2079_v55  ;;  %v4984_v40 = vpack.c.bf16 %v3833_v5, %v3831_v30  ;;  %v1283_v3 = vand.u32 2147483647, %v7973_v63  ;;  %4981 = vmatpush1.bf16.msra.mxu0 %v4980_v39 }
 0x21e   : > { %v1251_v43 = vsel %vm4708_vm3, 0, %v4707_v13  ;;  %v6954_v33 = vshrl.u32 %v520_v4, 30  ;;  %v649_v29 = vsel %vm564_vm8, %v648_v47, %v7972_v41  ;;  %v1301_v60 = vshrl.u32 %v7933_v9, %v7975_v38  ;;  %5016 = vmatpush1.bf16.msra.mxu1 %v4980_v39  ;;  %4983 = vmatprep.subr.bf16.mxu0 %v4982_v21  ;;  %v7977_v13 = vld [vmem:[#allocation22_spill] sm:$0xff] }
 0x21f   : > { %v2084_v61 = vand.u32 2147483647, %v2083_v62  ;;  %v7976_v48 = vand.u32 2147483647, %v7974_v11  ;;  %v1304_v52 = vshrl.u32 %v7924_v42, %v7975_v38  ;;  %v1307_v46 = vshrl.u32 %v7935_v26, %v7975_v38  ;;  %5001 = vmatprep.subr.bf16.mxu1 %v4982_v21  ;;  %v7980_v21 = vld [vmem:[#allocation32_spill] sm:$0xff] }
 0x220   : > { %v522_v16 = vshll.u32 %v6954_v33, 30  ;;  %v1300_v23 = vshll.u32 %v7926_v37, %v7977_v13  ;;  %v1303_v2 = vshll.u32 %v7933_v9, %v7977_v13  ;;  %v1306_v51 = vshll.u32 %v7924_v42, %v7977_v13 }
 0x221   : > { %vm563_vm10 = vcmp.le.f32.partialorder %v7976_v48, 0.7853982  ;;  %v1256_v32 = vsub.s32 4294967266, %v1251_v43  ;;  %v1290_v26 = vand.u32 8388607, %v1283_v3  ;;  %v6985_v9 = vsel %vm7881_vm14, %v1985_v31, %v6917_v6  ;;  %4985 = vmatpush1.bf16.msra.mxu0 %v4984_v40  ;;  %v7979_v6 = vld [vmem:[#allocation27_spill] sm:$0xff] }
 0x222   : > { %v650_v12 = vsel %vm563_vm10, %v7974_v11, %v7978_v19  ;;  %v6976_v15 = vsel %vm563_vm10, 0, %v649_v29  ;;  %v6980_v55 = vsub.s32 %v519_v8, %v522_v16  ;;  %v1302_v34 = vor.u32 %v1301_v60, %v1300_v23  ;;  %5017 = vmatpush1.bf16.msra.mxu1 %v4984_v40 }
 0x223   : > { %v1305_v49 = vor.u32 %v1304_v52, %v1303_v2  ;;  %v1308_v58 = vor.u32 %v1307_v46, %v1306_v51  ;;  %v6989_v42 = vsel %vm7882_vm0, %v1161_v27, %v1160_v18  ;;  %v6991_v30 = vmul.f32 %v2086_v36, %v2084_v61  ;;  %v7984_v46 = vld [vmem:[#allocation28_spill] sm:$0xff] }
 0x224   : > { %v1252_v5 = vsub.s32 32, %v1251_v43  ;;  %v1236_v8 = vadd.s32 %v6791_v20, %v6798_v56  ;;  %v525_v41 = vsub.s32 0, %v6980_v55  ;;  %5188 = vcosq.f32 %v650_v12 }
 0x225   : > { %v2304_v47 = vadd.s32 3, %v6976_v15  ;;  %v1257_v62 = vadd.s32 127, %v1256_v32  ;;  %5190 = vsinq.f32 %v650_v12  ;;  %vm1315_vm8 = vcmp.lt.s32.totalorder %v7979_v6, 1 }
 0x226   : > { %vm1317_vm13 = vcmp.lt.s32.totalorder %v7979_v6, 3  ;;  %v4678_v18 = vmin.u32 %v525_v41, %v6980_v55  ;;  %v1291_v39 = vor.u32 8388608, %v1290_v26  ;;  %v1323_v31 = vsel %vm1315_vm8, %v1302_v34, %v1305_v49 }
 0x227   : > { %v1325_v20 = vsel %vm1317_vm13, %v1308_v58, %v7980_v21  ;;  %v2088_v56 = vxor.u32 2147483648, %v6991_v30  ;;  %v1254_v4 = vshrl.u32 %v1236_v8, %v1252_v5  ;;  %vm461_vm3 = vcmp.lt.s32.totalorder %v5832_v24, 0 }
 0x228   : > { %v1299_v27 = vshrl.u32 %v7926_v37, %v7975_v38  ;;  %v1253_v36 = vshll.u32 %v6865_v59, %v1251_v43  ;;  %v527_v40 = vclz %v4678_v18  ;;  %v7010_v29 = vand.u32 3, %v2304_v47  ;;  %v7983_v38 = vld [vmem:[#allocation33_spill] sm:$0xff] }
 0x229   : > { %vm1316_vm10 = vcmp.lt.s32.totalorder %v7979_v6, 2  ;;  %v1258_v60 = vshll.u32 %v1257_v62, 23  ;;  %v545_v61 = vsub.s32 4, %v6954_v33  ;;  %v1320_v48 = vsel %vm1318_vm9, %v1308_v58, 2102212464 }
 0x22a   : > { %v1326_v52 = vsel %vm1316_vm10, %v1323_v31, %v1325_v20  ;;  %vm7020_vm14 = vcmp.le.f32.partialorder %v459_v10, 0.7853982  ;;  %v4679_v59 = vadd.s32 4294967294, %v527_v40  ;;  %v1327_v43 = vsel %vm1315_vm8, %v1305_v49, %v1308_v58  ;;  %v7988_v31 = vld [vmem:[#allocation20_spill] sm:$0xff] }
 0x22b   : > { %v1329_v16 = vsel %vm1317_vm13, %v7984_v46, %v7983_v38  ;;  %v1331_v13 = vshll.u32 %v1291_v39, 8  ;;  %v7030_v23 = vor.u32 %v1254_v4, %v1253_v36  ;;  %v515_v2 = vadd.s32 %v6900_v45, %v6905_v54  ;;  %v7989_v4 = vld [vmem:[#allocation38_spill] sm:$0xff] }
 0x22c   : > { %v1319_v10 = vsel %vm1315_vm8, %v1299_v27, %v1302_v34  ;;  %v1330_v51 = vsel %vm1316_vm10, %v1327_v43, %v1329_v16  ;;  %vm4680_vm9 = vcmp.lt.s32.totalorder %v4679_v59, 0  ;;  %v1321_v32 = vsel %vm1317_vm13, %v1305_v49, %v1320_v48 }
 0x22d   : > { %v7040_v19 = vmul.u32.u64.low %v1331_v13, %v1330_v51  ;;  %v7041_v12 = vmul.u32.u64.high %v1331_v13, %v1330_v51, %v7040_v19  ;;  %v7043_v26 = vor.u32 4788187, %v1258_v60  ;;  %v530_v58 = vsel %vm4680_vm9, 0, %v4679_v59 }
 0x22e   : > { %v7045_v5 = vmul.u32.u64.low %v1331_v13, %v1326_v52  ;;  %v7046_v8 = vmul.u32.u64.high %v1331_v13, %v1326_v52, %v7045_v5  ;;  %v5189_v45 = vpop.eup %5188  ;;  %v531_v54 = vsub.s32 32, %v530_v58  ;;  %v535_v34 = vsub.s32 4294967266, %v530_v58  ;;  %v7994_v19 = vld [vmem:[#allocation26_spill] sm:$0xff] }
 0x22f   : > { %v546_v41 = vsel %vm461_vm3, %v545_v61, %v6954_v33  ;;  %vm2307_vm8 = vcmp.eq.s32.totalorder %v7010_v29, 0  ;;  %vm2310_vm13 = vcmp.eq.s32.totalorder %v7010_v29, 2  ;;  %v5191_v49 = vpop.eup %5190  ;;  %v532_v47 = vshll.u32 %v6980_v55, %v530_v58 }
 0x230   : > { %v1322_v62 = vsel %vm1316_vm10, %v1319_v10, %v1321_v32  ;;  %v7985_v18 = vand.u32 2147483647, %v5835_v25  ;;  %v1472_v21 = vsub.s32 4, %v7988_v31  ;;  %v533_v20 = vshrl.u32 %v515_v2, %v531_v54  ;;  %v7990_v10 = vld [vmem:[#allocation18_spill] sm:$0xff]  ;;  %v7995_v54 = vld [vmem:[#allocation41_spill] sm:$0xff] }
 0x231   : > { %v536_v33 = vadd.s32 127, %v535_v34  ;;  %vm1340_vm0 = vc.u32 %v7041_v12, %v7045_v5  ;;  %v1260_v6 = vand.u32 2147483647, %v7043_v26  ;;  %v1262_v27 = vcvt.s32.f32 %v7030_v23 }
 0x232   : > { %vm7059_vm9 = vcmp.le.f32.partialorder %v7985_v18, 0.7853982  ;;  %v661_v36 = vxor.u32 2147483648, %v5189_v45  ;;  %v1341_v40 = vadd.s32 1, %v7046_v8  ;;  %v534_v60 = vor.u32 %v533_v20, %v532_v47 }
 0x233   : > { %v1474_v55 = vsel %vm7059_vm9, %v5835_v25, %v7989_v4  ;;  %v537_v61 = vshll.u32 %v536_v33, 23  ;;  %v1338_v48 = vmul.u32 %v1331_v13, %v1322_v62  ;;  %v1473_v52 = vsel %vm1388_vm1, %v1472_v21, %v7988_v31 }
 0x234   : > { %v548_v59 = vsel %vm7020_vm14, 0, %v546_v41  ;;  %v658_v43 = vxor.u32 2147483648, %v5191_v49  ;;  %v1342_v38 = vsel %vm1340_vm0, %v1341_v40, %v7046_v8  ;;  %5192 = vcosq.f32 %v1474_v55 }
 0x235   : > { %v538_v46 = vor.u32 4788187, %v537_v61  ;;  %vm7887_vm10 = vcmp.lt.s32.totalorder %v7973_v63, 0  ;;  %v1343_v16 = vadd.s32 %v1342_v38, %v1338_v48  ;;  %v655_v23 = vand.u32 3, %v6976_v15 }
 0x236   : > { %5194 = vsinq.f32 %v1474_v55  ;;  %v2312_v13 = vsel %vm2310_vm13, %v661_v36, %v5191_v49  ;;  %v1475_v2 = vsel %vm7059_vm9, 0, %v1473_v52  ;;  %v7991_v51 = vand.u32 2147483647, %v7990_v10 }
 0x237   : > { %v751_v26 = vsub.s32 4, %v7994_v19  ;;  %v539_v58 = vand.u32 2147483647, %v538_v46  ;;  %v541_v8 = vcvt.s32.f32 %v534_v60  ;;  %vm654_vm0 = vweird.f32 %v7974_v11  ;;  %v7998_v11 = vld [vmem:[#allocation23_spill] sm:$0xff] }
 0x238   : > { %vm7087_vm1 = vcmp.le.f32.partialorder %v7991_v51, 0.7853982  ;;  %v1344_v15 = vadd.s32 536870912, %v1343_v16  ;;  %v2200_v41 = vadd.s32 3, %v548_v59  ;;  %v2309_v47 = vsel %vm2307_vm8, %v5189_v45, %v658_v43 }
 0x239   : > { %v753_v34 = vsel %vm7087_vm1, %v7990_v10, %v7995_v54  ;;  %vm7101_vm13 = vcmp.le.f32.partialorder %v1283_v3, 0.7853982  ;;  %v752_v18 = vsel %vm667_vm4, %v751_v26, %v7994_v19  ;;  %v542_v39 = vmul.f32 %v541_v8, %v539_v58 }
 0x23a   : > { %5196 = vcosq.f32 %v753_v34  ;;  %v1345_v31 = vshrl.u32 %v1344_v15, 30  ;;  %vm657_vm9 = vcmp.eq.s32.totalorder %v655_v23, 0  ;;  %vm660_vm12 = vcmp.eq.s32.totalorder %v655_v23, 2 }
 0x23b   : > { %v659_v21 = vsel %vm657_vm9, %v5189_v45, %v658_v43  ;;  %v662_v20 = vsel %vm660_vm12, %v661_v36, %v5191_v49  ;;  %v3136_v33 = vadd.s32 3, %v1475_v2  ;;  %5198 = vsinq.f32 %v753_v34 }
 0x23c   : > { %v543_v4 = vxor.u32 2147483648, %v542_v39  ;;  %v1346_v55 = vshll.u32 %v1345_v31, 30  ;;  %v1369_v40 = vsub.s32 4, %v1345_v31  ;;  %v754_v3 = vsel %vm7087_vm1, 0, %v752_v18 }
 0x23d   : > { %v7110_v60 = vmul.f32 %v1262_v27, %v1260_v6  ;;  %v7112_v61 = vand.u32 3, %v548_v59  ;;  %vm2306_vm4 = vcmp.lt.s32.totalorder %v7010_v29, 2  ;;  %vm656_vm8 = vcmp.lt.s32.totalorder %v655_v23, 2 }
 0x23e   : > { %v544_v48 = vsel %vm461_vm3, %v543_v4, %v542_v39  ;;  %v2313_v45 = vsel %vm2306_vm4, %v2309_v47, %v2312_v13  ;;  %v7117_v49 = vsub.s32 %v1343_v16, %v1346_v55  ;;  %v663_v36 = vsel %vm656_vm8, %v659_v21, %v662_v20  ;;  %v5193_v52 = vpop.eup %5192  ;;  %v7999_v47 = vld [vmem:[#allocation16_spill] sm:$0xff] }
 0x23f   : > { %v547_v43 = vsel %vm7020_vm14, %v5832_v24, %v544_v48  ;;  %v1370_v6 = vsel %vm7887_vm10, %v1369_v40, %v1345_v31  ;;  %v2408_v27 = vadd.s32 3, %v754_v3  ;;  %v7124_v59 = vand.u32 3, %v1475_v2 }
 0x240   : > { %v5195_v29 = vpop.eup %5194  ;;  %5200 = vcosq.f32 %v547_v43  ;;  %v7126_v38 = vand.u32 3, %v2200_v41  ;;  %v1349_v46 = vsub.s32 0, %v7117_v49  ;;  %v7129_v16 = vand.u32 3, %v3136_v33 }
 0x241   : > { %v1264_v23 = vxor.u32 2147483648, %v7110_v60  ;;  %5202 = vsinq.f32 %v547_v43  ;;  %v7134_v37 = vsel %vm654_vm0, nan, %v2313_v45  ;;  %v1339_v13 = vadd.s32 %v7045_v5, %v7041_v12 }
 0x242   : > { %v4710_v2 = vmin.u32 %v1349_v46, %v7117_v49  ;;  %v1372_v51 = vsel %vm7101_vm13, 0, %v1370_v6  ;;  %v7143_v32 = vsel %vm654_vm0, nan, %v663_v36  ;;  %v1485_v19 = vxor.u32 2147483648, %v5193_v52 }
 0x243   : > { %v1482_v58 = vxor.u32 2147483648, %v5195_v29  ;;  %v7145_v8 = vand.u32 3, %v2408_v27  ;;  %v7147_v15 = vand.u32 3, %v754_v3  ;;  %vm1481_vm12 = vcmp.eq.s32.totalorder %v7124_v59, 0 }
 0x244   : > { %v5197_v26 = vpop.eup %5196  ;;  %vm2206_vm14 = vcmp.eq.s32.totalorder %v7126_v38, 2  ;;  %v1351_v12 = vclz %v4710_v2  ;;  %vm3139_vm1 = vcmp.eq.s32.totalorder %v7129_v16, 0  ;;  %vm3142_vm9 = vcmp.eq.s32.totalorder %v7129_v16, 2 }
 0x245   : > { %v1575_v5 = vsub.s32 4, %v7998_v11  ;;  %v5199_v54 = vpop.eup %5198  ;;  %v3032_v34 = vadd.s32 3, %v1372_v51  ;;  %v764_v41 = vxor.u32 2147483648, %v5197_v26  ;;  %vm1484_vm8 = vcmp.eq.s32.totalorder %v7124_v59, 2 }
 0x246   : > { %v8000_v18 = vand.u32 2147483647, %v7999_v47  ;;  %v4711_v31 = vadd.s32 4294967294, %v1351_v12  ;;  %v7166_v21 = vand.u32 3, %v1372_v51  ;;  %v3144_v20 = vsel %vm3142_vm9, %v1485_v19, %v5195_v29  ;;  %v8003_v12 = vld [vmem:[#allocation39_spill] sm:$0xff] }
 0x247   : > { %v761_v33 = vxor.u32 2147483648, %v5199_v54  ;;  %vm551_vm5 = vweird.f32 %v5832_v24  ;;  %v3141_v4 = vsel %vm3139_vm1, %v5193_v52, %v1482_v58  ;;  %vm2411_vm6 = vcmp.eq.s32.totalorder %v7145_v8, 0 }
 0x248   : > { %vm7160_vm15 = vcmp.le.f32.partialorder %v8000_v18, 0.7853982  ;;  %vm2414_vm4 = vcmp.eq.s32.totalorder %v7145_v8, 2  ;;  %vm760_vm7 = vcmp.eq.s32.totalorder %v7147_v15, 0  ;;  %vm1480_vm11 = vcmp.lt.s32.totalorder %v7124_v59, 2 }
 0x249   : > { %vm4712_vm0 = vcmp.lt.s32.totalorder %v4711_v31, 0  ;;  %vm2410_vm3 = vcmp.lt.s32.totalorder %v7145_v8, 2  ;;  %vm759_vm10 = vcmp.lt.s32.totalorder %v7147_v15, 2  ;;  %vm763_vm9 = vcmp.eq.s32.totalorder %v7147_v15, 2 }
 0x24a   : > { %v1483_v55 = vsel %vm1481_vm12, %v5193_v52, %v1482_v58  ;;  %v1576_v40 = vsel %vm1491_vm2, %v1575_v5, %v7998_v11  ;;  %v1354_v3 = vsel %vm4712_vm0, 0, %v4711_v31  ;;  %v2416_v48 = vsel %vm2414_vm4, %v764_v41, %v5199_v54  ;;  %v5201_v43 = vpop.eup %5200 }
 0x24b   : > { %v765_v45 = vsel %vm763_vm9, %v764_v41, %v5199_v54  ;;  %v1486_v36 = vsel %vm1484_vm8, %v1485_v19, %v5195_v29  ;;  %v1355_v6 = vsub.s32 32, %v1354_v3  ;;  %v1359_v27 = vsub.s32 4294967266, %v1354_v3  ;;  %v5203_v2 = vpop.eup %5202 }
 0x24c   : > { %vm1478_vm1 = vweird.f32 %v5835_v25  ;;  %v2413_v46 = vsel %vm2411_vm6, %v5197_v26, %v761_v33  ;;  %v762_v52 = vsel %vm760_vm7, %v5197_v26, %v761_v33  ;;  %v558_v51 = vxor.u32 2147483648, %v5201_v43 }
 0x24d   : > { %v1356_v58 = vshll.u32 %v7117_v49, %v1354_v3  ;;  %vm757_vm2 = vweird.f32 %v7990_v10  ;;  %v1577_v29 = vsel %vm7160_vm15, %v7999_v47, %v8003_v12  ;;  %v1578_v19 = vsel %vm7160_vm15, 0, %v1576_v40 }
 0x24e   : > { %v555_v11 = vxor.u32 2147483648, %v5203_v2  ;;  %v1357_v5 = vshrl.u32 %v1339_v13, %v1355_v6  ;;  %v1360_v54 = vadd.s32 127, %v1359_v27  ;;  %5204 = vcosq.f32 %v1577_v29 }
 0x24f   : > { %v2208_v26 = vsel %vm2206_vm14, %v558_v51, %v5203_v2  ;;  %vm8004_vm6 = vcmp.eq.s32.totalorder %v7112_v61, 2  ;;  %5206 = vsinq.f32 %v1577_v29  ;;  %v3240_v41 = vadd.s32 3, %v1578_v19  ;;  %v8013_v29 = vld [vmem:[#allocation44_spill] sm:$0xff] }
 0x250   : > { %v559_v49 = vsel %vm8004_vm6, %v558_v51, %v5203_v2  ;;  %vm8005_vm7 = vcmp.eq.s32.totalorder %v7126_v38, 0  ;;  %vm8006_vm12 = vcmp.eq.s32.totalorder %v7112_v61, 0  ;;  %v1358_v39 = vor.u32 %v1357_v5, %v1356_v58 }
 0x251   : > { %v2205_v18 = vsel %vm8005_vm7, %v5201_v43, %v555_v11  ;;  %v556_v31 = vsel %vm8006_vm12, %v5201_v43, %v555_v11  ;;  %v1361_v33 = vshll.u32 %v1360_v54, 23  ;;  %vm8007_vm15 = vcmp.lt.s32.totalorder %v7126_v38, 2 }
 0x252   : > { %v2209_v13 = vsel %vm8007_vm15, %v2205_v18, %v2208_v26  ;;  %vm8008_vm0 = vcmp.lt.s32.totalorder %v7112_v61, 2  ;;  %v7211_v3 = vand.u32 3, %v3032_v34  ;;  %vm8009_vm14 = vcmp.lt.s32.totalorder %v7129_v16, 2  ;;  %v8010_v34 = vld [vmem:[#allocation25_spill] sm:$0xff] }
 0x253   : > { %v560_v40 = vsel %vm8008_vm0, %v556_v31, %v559_v49  ;;  %v3145_v6 = vsel %vm8009_vm14, %v3141_v4, %v3144_v20  ;;  %v2210_v27 = vsel %vm551_vm5, nan, %v2209_v13  ;;  %v1362_v43 = vor.u32 4788187, %v1361_v33  ;;  %v8012_v20 = vld [vmem:[#allocation34_spill] sm:$0xff] }
 0x254   : > { %v561_v2 = vsel %vm551_vm5, nan, %v560_v40  ;;  %v1487_v51 = vsel %vm1480_vm11, %v1483_v55, %v1486_v36  ;;  %3911 = vmatprep.mubr.f32.mxu0 %v2210_v27  ;;  %v2417_v61 = vsel %vm2410_vm3, %v2413_v46, %v2416_v48  ;;  %v766_v38 = vsel %vm759_vm10, %v762_v52, %v765_v45  ;;  %v8015_v55 = vld [vmem:[#allocation29_spill] sm:$0xff] }
 0x255   : > { %v8011_v16 = vand.u32 2147483647, %v8010_v34  ;;  %v854_v4 = vsub.s32 4, %v8012_v20  ;;  %3912 = vmatmul.mubr.f32.vlgmr.msra.gmra.mrb[0].mxu0 %v561_v2  ;;  %v1363_v58 = vand.u32 2147483647, %v1362_v43  ;;  %v1365_v24 = vcvt.s32.f32 %v1358_v39 }
 0x256   : > { %v3241_v12 = vand.u32 3, %v3240_v41  ;;  %3917 = vmatprep.mubr.f32.mxu0 %v7134_v37  ;;  %v7233_v8 = vsel %vm1478_vm1, nan, %v3145_v6  ;;  %vm8014_vm5 = vcmp.lt.s32.totalorder %v8010_v34, 0  ;;  %v1678_v48 = vsub.s32 4, %v8015_v55  ;;  %v8016_v41 = vld [vmem:[#allocation19_spill] sm:$0xff]  ;;  %v8020_v6 = vld [vmem:[#allocation42_spill] sm:$0xff] }
 0x257   : > { %vm769_vm4 = vcmp.le.f32.partialorder %v8011_v16, 0.7853982  ;;  %v855_v15 = vsel %vm8014_vm5, %v854_v4, %v8012_v20  ;;  %v1366_v45 = vmul.f32 %v1365_v24, %v1363_v58  ;;  %v2418_v36 = vsel %vm757_vm2, nan, %v2417_v61  ;;  %v8024_v16 = vld [vmem:[#allocation37_spill] sm:$0xff] }
 0x258   : > { %v856_v59 = vsel %vm769_vm4, %v8010_v34, %v8013_v29  ;;  %v857_v46 = vsel %vm769_vm4, 0, %v855_v15  ;;  %v767_v37 = vsel %vm757_vm2, nan, %v766_v38  ;;  %v7245_v52 = vsel %vm1478_vm1, nan, %v1487_v51  ;;  %v5205_v54 = vpop.eup %5204 }
 0x259   : > { %5208 = vcosq.f32 %v856_v59  ;;  %v2512_v11 = vadd.s32 3, %v857_v46  ;;  %v7247_v5 = vand.u32 3, %v1578_v19  ;;  %v1367_v26 = vxor.u32 2147483648, %v1366_v45  ;;  %3918 = vmatmul.mubr.f32.gmra.mrb[2].mxu0 %v7143_v32  ;;  %v5207_v18 = vpop.eup %5206 }
 0x25a   : > { %5210 = vsinq.f32 %v856_v59  ;;  %vm7890_vm11 = vweird.f32 %v7999_v47  ;;  %vm3242_vm10 = vcmp.lt.s32.totalorder %v3241_v12, 2  ;;  %v7251_v49 = vand.u32 3, %v857_v46  ;;  %3923 = vmatprep.mubr.f32.mxu0 %v2418_v36 }
 0x25b   : > { %vm8017_vm3 = vcmp.lt.s32.totalorder %v8016_v41, 0  ;;  %v1588_v25 = vxor.u32 2147483648, %v5205_v54  ;;  %vm3243_vm8 = vcmp.eq.s32.totalorder %v3241_v12, 0  ;;  %vm3246_vm9 = vcmp.eq.s32.totalorder %v3241_v12, 2 }
 0x25c   : > { %v1679_v10 = vsel %vm8017_vm3, %v1678_v48, %v8015_v55  ;;  %v8018_v19 = vand.u32 2147483647, %v8016_v41  ;;  %vm8019_vm2 = vcmp.lt.s32.totalorder %v7973_v63, 0  ;;  %v1585_v31 = vxor.u32 2147483648, %v5207_v18 }
 0x25d   : > { %v1368_v32 = vsel %vm8019_vm2, %v1367_v26, %v1366_v45  ;;  %v2513_v39 = vand.u32 3, %v2512_v11  ;;  %v3248_v40 = vsel %vm3246_vm9, %v1588_v25, %v5207_v18  ;;  %vm1584_vm6 = vcmp.eq.s32.totalorder %v7247_v5, 0  ;;  %3924 = vmatmul.mubr.f32.gmra.mrb[4].mxu0 %v767_v37 }
 0x25e   : > { %vm1593_vm1 = vcmp.le.f32.partialorder %v8018_v19, 0.7853982  ;;  %v1371_v13 = vsel %vm7101_vm13, %v7973_v63, %v1368_v32  ;;  %v3245_v2 = vsel %vm3243_vm8, %v5205_v54, %v1585_v31  ;;  %vm860_vm7 = vweird.f32 %v8010_v34 }
 0x25f   : > { %v1681_v33 = vsel %vm1593_vm1, 0, %v1679_v10  ;;  %v1680_v27 = vsel %vm1593_vm1, %v8016_v41, %v8020_v6  ;;  %5212 = vcosq.f32 %v1371_v13  ;;  %vm862_vm12 = vcmp.lt.s32.totalorder %v7251_v49, 2 }
 0x260   : > { %vm1583_vm15 = vcmp.lt.s32.totalorder %v7247_v5, 2  ;;  %vm1587_vm0 = vcmp.eq.s32.totalorder %v7247_v5, 2  ;;  %5214 = vsinq.f32 %v1371_v13  ;;  %vm863_vm13 = vcmp.eq.s32.totalorder %v7251_v49, 0  ;;  %v8026_v5 = vld [vmem:[#allocation36_spill] sm:$0xff] }
 0x261   : > { %vm866_vm14 = vcmp.eq.s32.totalorder %v7251_v49, 2  ;;  %v3344_v62 = vadd.s32 3, %v1681_v33  ;;  %v3249_v43 = vsel %vm3242_vm10, %v3245_v2, %v3248_v40  ;;  %vm2514_vm4 = vcmp.lt.s32.totalorder %v2513_v39, 2 }
 0x262   : > { %vm2515_vm5 = vcmp.eq.s32.totalorder %v2513_v39, 0  ;;  %5216 = vcosq.f32 %v1680_v27  ;;  %vm2518_vm3 = vcmp.eq.s32.totalorder %v2513_v39, 2  ;;  %v8021_v61 = vand.u32 2147483647, %v7969_v53 }
 0x263   : > { %v5209_v51 = vpop.eup %5208  ;;  %5218 = vsinq.f32 %v1680_v27  ;;  %v957_v20 = vsub.s32 4, %v8024_v16  ;;  %vm3038_vm9 = vcmp.eq.s32.totalorder %v7211_v3, 2  ;;  %vm1381_vm1 = vcmp.eq.s32.totalorder %v7166_v21, 2  ;;  %v8041_v27 = vld [vmem:[#allocation40_spill] sm:$0xff] }
 0x264   : > { %vm7275_vm8 = vcmp.le.f32.partialorder %v8021_v61, 0.7853982  ;;  %v5211_v4 = vpop.eup %5210  ;;  %v867_v58 = vxor.u32 2147483648, %v5209_v51  ;;  %v1586_v24 = vsel %vm1584_vm6, %v5205_v54, %v1585_v31  ;;  %v1589_v12 = vsel %vm1587_vm0, %v1588_v25, %v5207_v18 }
 0x265   : > { %v959_v29 = vsel %vm7275_vm8, %v7969_v53, %v6937_v44  ;;  %vm3035_vm10 = vcmp.eq.s32.totalorder %v7211_v3, 0  ;;  %v7294_v59 = vsel %vm7890_vm11, nan, %v3249_v43  ;;  %v864_v15 = vxor.u32 2147483648, %v5211_v4 }
 0x266   : > { %v7296_v55 = vand.u32 3, %v3344_v62  ;;  %v7298_v48 = vand.u32 3, %v1681_v33  ;;  %vm3034_vm6 = vcmp.lt.s32.totalorder %v7211_v3, 2  ;;  %vm1377_vm0 = vcmp.lt.s32.totalorder %v7166_v21, 2 }
 0x267   : > { %v2520_v45 = vsel %vm2518_vm3, %v867_v58, %v5211_v4  ;;  %v868_v44 = vsel %vm866_vm14, %v867_v58, %v5211_v4  ;;  %vm8025_vm2 = vcmp.lt.s32.totalorder %v7969_v53, 0  ;;  %5220 = vcosq.f32 %v959_v29 }
 0x268   : > { %v958_v36 = vsel %vm8025_vm2, %v957_v20, %v8024_v16  ;;  %vm1375_vm11 = vweird.f32 %v7973_v63  ;;  %v2517_v46 = vsel %vm2515_vm5, %v5209_v51, %v864_v15  ;;  %v865_v37 = vsel %vm863_vm13, %v5209_v51, %v864_v15 }
 0x269   : > { %v960_v11 = vsel %vm7275_vm8, 0, %v958_v36  ;;  %5222 = vsinq.f32 %v959_v29  ;;  %v2521_v54 = vsel %vm2514_vm4, %v2517_v46, %v2520_v45  ;;  %v869_v26 = vsel %vm862_vm12, %v865_v37, %v868_v44  ;;  %v5213_v31 = vpop.eup %5212 }
 0x26a   : > { %v2616_v10 = vadd.s32 3, %v960_v11  ;;  %v7317_v18 = vand.u32 3, %v960_v11  ;;  %v2522_v25 = vsel %vm860_vm7, nan, %v2521_v54  ;;  %v870_v19 = vsel %vm860_vm7, nan, %v869_v26  ;;  %v5215_v49 = vpop.eup %5214 }
 0x26b   : > { %v7325_v32 = vsel %vm1583_vm15, %v1586_v24, %v1589_v12  ;;  %vm3346_vm13 = vcmp.lt.s32.totalorder %v7296_v55, 2  ;;  %3929 = vmatprep.mubr.f32.mxu0 %v2522_v25  ;;  %vm3347_vm14 = vcmp.eq.s32.totalorder %v7296_v55, 0  ;;  %vm3350_vm12 = vcmp.eq.s32.totalorder %v7296_v55, 2 }
 0x26c   : > { %vm1687_vm5 = vcmp.eq.s32.totalorder %v7298_v48, 0  ;;  %v1382_v39 = vxor.u32 2147483648, %v5213_v31  ;;  %3930 = vmatmul.mubr.f32.gmra.mrb[6].mxu0 %v870_v19  ;;  %v2617_v34 = vand.u32 3, %v2616_v10  ;;  %v1781_v33 = vsub.s32 4, %v8026_v5  ;;  %v5217_v13 = vpop.eup %5216 }
 0x26d   : > { %v1379_v40 = vxor.u32 2147483648, %v5215_v49  ;;  %vm969_vm3 = vcmp.eq.s32.totalorder %v7317_v18, 2  ;;  %vm1690_vm8 = vcmp.eq.s32.totalorder %v7298_v48, 2  ;;  %v8027_v6 = vand.u32 2147483647, %v6181_v0  ;;  %v5219_v2 = vpop.eup %5218 }
 0x26e   : > { %v3040_v62 = vsel %vm3038_vm9, %v1382_v39, %v5215_v49  ;;  %v1383_v43 = vsel %vm1381_vm1, %v1382_v39, %v5215_v49  ;;  %v1691_v51 = vxor.u32 2147483648, %v5217_v13  ;;  %vm963_vm15 = vweird.f32 %v7969_v53  ;;  %v8038_v39 = vld [vmem:[#allocation43_spill] sm:$0xff] }
 0x26f   : > { %vm7339_vm2 = vcmp.le.f32.partialorder %v8027_v6, 0.7853982  ;;  %vm8030_vm7 = vcmp.lt.s32.totalorder %v6181_v0, 0  ;;  %v3037_v38 = vsel %vm3035_vm10, %v5213_v31, %v1379_v40  ;;  %vm8031_vm4 = vcmp.eq.s32.totalorder %v7166_v21, 0 }
 0x270   : > { %v1782_v61 = vsel %vm8030_vm7, %v1781_v33, %v8026_v5  ;;  %v1380_v16 = vsel %vm8031_vm4, %v5213_v31, %v1379_v40  ;;  %v1688_v20 = vxor.u32 2147483648, %v5219_v2  ;;  %v1783_v4 = vsel %vm7339_vm2, %v6181_v0, %v6931_v1 }
 0x271   : > { %v3041_v58 = vsel %vm3034_vm6, %v3037_v38, %v3040_v62  ;;  %v1384_v24 = vsel %vm1377_vm0, %v1380_v16, %v1383_v43  ;;  %v3352_v12 = vsel %vm3350_vm12, %v1691_v51, %v5219_v2  ;;  %v1692_v29 = vsel %vm1690_vm8, %v1691_v51, %v5219_v2  ;;  %v5221_v15 = vpop.eup %5220 }
 0x272   : > { %v3042_v45 = vsel %vm1375_vm11, nan, %v3041_v58  ;;  %v1385_v44 = vsel %vm1375_vm11, nan, %v1384_v24  ;;  %v3349_v1 = vsel %vm3347_vm14, %v5217_v13, %v1688_v20  ;;  %v1689_v3 = vsel %vm1687_vm5, %v5217_v13, %v1688_v20  ;;  %v8048_v24 = vld [vmem:[#allocation47_spill] sm:$0xff] }
 0x273   : > { %v5223_v36 = vpop.eup %5222  ;;  %3959 = vmatprep.mubr.f32.mxu1 %v3042_v45  ;;  %v970_v21 = vxor.u32 2147483648, %v5221_v15  ;;  %vm2618_vm9 = vcmp.lt.s32.totalorder %v2617_v34, 2  ;;  %vm2619_vm1 = vcmp.eq.s32.totalorder %v2617_v34, 0  ;;  %v1784_v46 = vsel %vm7339_vm2, 0, %v1782_v61  ;;  %v8044_v61 = vld [vmem:[#allocation48_spill] sm:$0xff] }
 0x274   : > { %3960 = vmatmul.mubr.f32.vlgmr.msra.gmra.mrb[0].mxu1 %v1385_v44  ;;  %v3353_v37 = vsel %vm3346_vm13, %v3349_v1, %v3352_v12  ;;  %v967_v63 = vxor.u32 2147483648, %v5223_v36  ;;  %vm2622_vm11 = vcmp.eq.s32.totalorder %v2617_v34, 2  ;;  %5224 = vcosq.f32 %v1783_v4 }
 0x275   : > { %3965 = vmatprep.mubr.f32.mxu1 %v7233_v8  ;;  %v2624_v11 = vsel %vm2622_vm11, %v970_v21, %v5223_v36  ;;  %v971_v54 = vsel %vm969_vm3, %v970_v21, %v5223_v36  ;;  %vm8032_vm10 = vcmp.lt.s32.totalorder %v7298_v48, 2  ;;  %5226 = vsinq.f32 %v1783_v4 }
 0x276   : > { %v1693_v26 = vsel %vm8032_vm10, %v1689_v3, %v1692_v29  ;;  %v2621_v10 = vsel %vm2619_vm1, %v5221_v15, %v967_v63  ;;  %vm8033_vm6 = vcmp.eq.s32.totalorder %v7317_v18, 0  ;;  %v3448_v19 = vadd.s32 3, %v1784_v46 }
 0x277   : > { %v968_v25 = vsel %vm8033_vm6, %v5221_v15, %v967_v63  ;;  %v8034_v55 = vand.u32 2147483647, %v6360_v7  ;;  %v2625_v8 = vsel %vm2618_vm9, %v2621_v10, %v2624_v11  ;;  %vm8037_vm13 = vcmp.lt.s32.totalorder %v7317_v18, 2 }
 0x278   : > { %v972_v49 = vsel %vm8037_vm13, %v968_v25, %v971_v54  ;;  %v1060_v48 = vsub.s32 4, %v8038_v39  ;;  %3966 = vmatmul.mubr.f32.gmra.mrb[2].mxu1 %v7245_v52  ;;  %v2626_v33 = vsel %vm963_vm15, nan, %v2625_v8  ;;  %v3449_v34 = vand.u32 3, %v3448_v19 }
 0x279   : > { %vm7386_vm0 = vcmp.le.f32.partialorder %v8034_v55, 0.7853982  ;;  %v973_v13 = vsel %vm963_vm15, nan, %v972_v49  ;;  %3971 = vmatprep.mubr.f32.mxu1 %v7294_v59  ;;  %vm1684_vm14 = vweird.f32 %v8016_v41  ;;  %3935 = vmatprep.mubr.f32.mxu0 %v2626_v33  ;;  %vm8039_vm12 = vcmp.lt.s32.totalorder %v6360_v7, 0 }
 0x27a   : > { %v1062_v5 = vsel %vm7386_vm0, %v6360_v7, %v6950_v28  ;;  %v1061_v18 = vsel %vm8039_vm12, %v1060_v48, %v8038_v39  ;;  %v1788_v28 = vand.u32 3, %v1784_v46  ;;  %vm8040_vm4 = vweird.f32 %v7999_v47  ;;  %3936 = vmatmul.mubr.f32.gmra.mrb[8].mxu0 %v973_v13 }
 0x27b   : > { %5228 = vcosq.f32 %v1062_v5  ;;  %v1591_v52 = vsel %vm8040_vm4, nan, %v7325_v32  ;;  %v3354_v40 = vsel %vm1684_vm14, nan, %v3353_v37  ;;  %v1694_v53 = vsel %vm1684_vm14, nan, %v1693_v26 }
 0x27c   : > { %5230 = vsinq.f32 %v1062_v5  ;;  %v1063_v6 = vsel %vm7386_vm0, 0, %v1061_v18  ;;  %vm1787_vm5 = vweird.f32 %v6181_v0  ;;  %vm3450_vm7 = vcmp.lt.s32.totalorder %v3449_v34, 2  ;;  %3972 = vmatmul.mubr.f32.gmra.mrb[4].mxu1 %v1591_v52  ;;  %v8050_v18 = vld [vmem:[#allocation46_spill] sm:$0xff] }
 0x27d   : > { %v2720_v41 = vadd.s32 3, %v1063_v6  ;;  %v1067_v59 = vand.u32 3, %v1063_v6  ;;  %vm3451_vm15 = vcmp.eq.s32.totalorder %v3449_v34, 0  ;;  %vm3454_vm3 = vcmp.eq.s32.totalorder %v3449_v34, 2  ;;  %3977 = vmatprep.mubr.f32.mxu1 %v3354_v40 }
 0x27e   : > { %vm1789_vm8 = vcmp.lt.s32.totalorder %v1788_v28, 2  ;;  %v1884_v2 = vsub.s32 4, %v8041_v27  ;;  %vm1790_vm2 = vcmp.eq.s32.totalorder %v1788_v28, 0  ;;  %vm1793_vm9 = vcmp.eq.s32.totalorder %v1788_v28, 2  ;;  %v5225_v62 = vpop.eup %5224 }
 0x27f   : > { %v2721_v47 = vand.u32 3, %v2720_v41  ;;  %v8042_v32 = vand.u32 2147483647, %v7971_v17  ;;  %vm1068_vm11 = vcmp.lt.s32.totalorder %v1067_v59, 2  ;;  %vm8043_vm10 = vcmp.lt.s32.totalorder %v7971_v17, 0  ;;  %v5227_v16 = vpop.eup %5226 }
 0x280   : > { %v1885_v43 = vsel %vm8043_vm10, %v1884_v2, %v8041_v27  ;;  %v1163_v38 = vsub.s32 4, %v8044_v61  ;;  %v1794_v20 = vxor.u32 2147483648, %v5225_v62  ;;  %vm1069_vm6 = vcmp.eq.s32.totalorder %v1067_v59, 0  ;;  %3978 = vmatmul.mubr.f32.gmra.mrb[6].mxu1 %v1694_v53 }
 0x281   : > { %vm1799_vm1 = vcmp.le.f32.partialorder %v8042_v32, 0.7853982  ;;  %vm1072_vm0 = vcmp.eq.s32.totalorder %v1067_v59, 2  ;;  %v8045_v4 = vand.u32 2147483647, %v6500_v35  ;;  %vm1182_vm14 = vcmp.lt.s32.totalorder %v8048_v24, 0 }
 0x282   : > { %v1886_v51 = vsel %vm1799_vm1, %v7971_v17, %v6945_v50  ;;  %v1791_v12 = vxor.u32 2147483648, %v5227_v16  ;;  %v1887_v29 = vsel %vm1799_vm1, 0, %v1885_v43  ;;  %vm8049_vm12 = vcmp.lt.s32.totalorder %v6500_v35, 0 }
 0x283   : > { %vm7425_vm13 = vcmp.le.f32.partialorder %v8045_v4, 0.7853982  ;;  %5232 = vcosq.f32 %v1886_v51  ;;  %v1164_v50 = vsel %vm8049_vm12, %v1163_v38, %v8044_v61  ;;  %v3456_v15 = vsel %vm3454_vm3, %v1794_v20, %v5227_v16 }
 0x284   : > { %v1795_v45 = vsel %vm1793_vm9, %v1794_v20, %v5227_v16  ;;  %5234 = vsinq.f32 %v1886_v51  ;;  %v3552_v44 = vadd.s32 3, %v1887_v29  ;;  %v3453_v3 = vsel %vm3451_vm15, %v5225_v62, %v1791_v12 }
 0x285   : > { %v5229_v1 = vpop.eup %5228  ;;  %vm2723_vm4 = vcmp.eq.s32.totalorder %v2721_v47, 0  ;;  %v1792_v36 = vsel %vm1790_vm2, %v5225_v62, %v1791_v12  ;;  %v1165_v21 = vsel %vm7425_vm13, %v6500_v35, %v6989_v42  ;;  %v3457_v37 = vsel %vm3450_vm7, %v3453_v3, %v3456_v15 }
 0x286   : > { %v5231_v46 = vpop.eup %5230  ;;  %v1073_v63 = vxor.u32 2147483648, %v5229_v1  ;;  %vm2726_vm3 = vcmp.eq.s32.totalorder %v2721_v47, 2  ;;  %v1796_v11 = vsel %vm1789_vm8, %v1792_v36, %v1795_v45  ;;  %v3458_v54 = vsel %vm1787_vm5, nan, %v3457_v37 }
 0x287   : > { %v1070_v26 = vxor.u32 2147483648, %v5231_v46  ;;  %v1166_v10 = vsel %vm7425_vm13, 0, %v1164_v50  ;;  %5236 = vcosq.f32 %v1165_v21  ;;  %3983 = vmatprep.mubr.f32.mxu1 %v3458_v54  ;;  %v1797_v42 = vsel %vm1787_vm5, nan, %v1796_v11 }
 0x288   : > { %v2728_v25 = vsel %vm2726_vm3, %v1073_v63, %v5231_v46  ;;  %v1074_v19 = vsel %vm1072_vm0, %v1073_v63, %v5231_v46  ;;  %v3553_v55 = vand.u32 3, %v3552_v44  ;;  %vm2722_vm7 = vcmp.lt.s32.totalorder %v2721_v47, 2  ;;  %3984 = vmatmul.mubr.f32.gmra.mrb[8].mxu1 %v1797_v42 }
 0x289   : > { %v2725_v31 = vsel %vm2723_vm4, %v5229_v1, %v1070_v26  ;;  %v1071_v8 = vsel %vm1069_vm6, %v5229_v1, %v1070_v26  ;;  %5238 = vsinq.f32 %v1165_v21  ;;  %vm1066_vm15 = vweird.f32 %v6360_v7 }
 0x28a   : > { %v2729_v49 = vsel %vm2722_vm7, %v2725_v31, %v2728_v25  ;;  %v1075_v39 = vsel %vm1068_vm11, %v1071_v8, %v1074_v19  ;;  %v2824_v48 = vadd.s32 3, %v1166_v10  ;;  %v1170_v13 = vand.u32 3, %v1166_v10 }
 0x28b   : > { %v2730_v5 = vsel %vm1066_vm15, nan, %v2729_v49  ;;  %v1076_v33 = vsel %vm1066_vm15, nan, %v1075_v39  ;;  %v1891_v34 = vand.u32 3, %v1887_v29  ;;  %v1265_v0 = vsel %vm1182_vm14, %v1264_v23, %v7110_v60  ;;  %v8054_v60 = vld [vmem:[#allocation45_spill] sm:$0xff] }
 0x28c   : > { %3941 = vmatprep.mubr.f32.mxu0 %v2730_v5  ;;  %vm1890_vm5 = vweird.f32 %v7971_v17  ;;  %vm3554_vm8 = vcmp.lt.s32.totalorder %v3553_v55, 2  ;;  %v1987_v7 = vsub.s32 4, %v8050_v18  ;;  %vm3555_vm2 = vcmp.eq.s32.totalorder %v3553_v55, 0 }
 0x28d   : > { %v5233_v28 = vpop.eup %5232  ;;  %3942 = vmatmul.mubr.f32.gmra.mrb[10].mxu0 %v1076_v33  ;;  %vm3558_vm9 = vcmp.eq.s32.totalorder %v3553_v55, 2  ;;  %v2825_v52 = vand.u32 3, %v2824_v48  ;;  %v8051_v40 = vand.u32 2147483647, %v6497_v14  ;;  %vm1171_vm11 = vcmp.lt.s32.totalorder %v1170_v13, 2 }
 0x28e   : > { %v5235_v6 = vpop.eup %5234  ;;  %v1897_v41 = vxor.u32 2147483648, %v5233_v28  ;;  %vm1172_vm10 = vcmp.eq.s32.totalorder %v1170_v13, 0  ;;  %vm1175_vm6 = vcmp.eq.s32.totalorder %v1170_v13, 2  ;;  %vm1892_vm0 = vcmp.lt.s32.totalorder %v1891_v34, 2 }
 0x28f   : > { %vm7463_vm1 = vcmp.le.f32.partialorder %v8051_v40, 0.7853982  ;;  %vm2006_vm13 = vcmp.lt.s32.totalorder %v8054_v60, 0  ;;  %v1894_v23 = vxor.u32 2147483648, %v5235_v6  ;;  %vm1169_vm12 = vweird.f32 %v6500_v35 }
 0x290   : > { %vm1893_vm4 = vcmp.eq.s32.totalorder %v1891_v34, 0  ;;  %vm1896_vm3 = vcmp.eq.s32.totalorder %v1891_v34, 2  ;;  %vm8055_vm7 = vcmp.lt.s32.totalorder %v6497_v14, 0  ;;  %v3560_v27 = vsel %vm3558_vm9, %v1897_v41, %v5235_v6 }
 0x291   : > { %v1988_v59 = vsel %vm8055_vm7, %v1987_v7, %v8050_v18  ;;  %v1898_v2 = vsel %vm1896_vm3, %v1897_v41, %v5235_v6  ;;  %v1989_v47 = vsel %vm7463_vm1, %v6497_v14, %v6985_v9  ;;  %v5237_v62 = vpop.eup %5236  ;;  %v3557_v43 = vsel %vm3555_vm2, %v5233_v28, %v1894_v23 }
 0x292   : > { %v1990_v32 = vsel %vm7463_vm1, 0, %v1988_v59  ;;  %v1895_v51 = vsel %vm1893_vm4, %v5233_v28, %v1894_v23  ;;  %5240 = vcosq.f32 %v1989_v47  ;;  %v3561_v38 = vsel %vm3554_vm8, %v3557_v43, %v3560_v27 }
 0x293   : > { %v3656_v61 = vadd.s32 3, %v1990_v32  ;;  %v1176_v16 = vxor.u32 2147483648, %v5237_v62  ;;  %v1899_v20 = vsel %vm1892_vm0, %v1895_v51, %v1898_v2  ;;  %5242 = vsinq.f32 %v1989_v47  ;;  %v5239_v4 = vpop.eup %5238 }
 0x294   : > { %v3562_v58 = vsel %vm1890_vm5, nan, %v3561_v38  ;;  %vm2830_vm15 = vcmp.eq.s32.totalorder %v2825_v52, 2  ;;  %v1900_v9 = vsel %vm1890_vm5, nan, %v1899_v20  ;;  %v8056_v12 = vand.u32 2147483647, %v8048_v24 }
 0x295   : > { %3989 = vmatprep.mubr.f32.mxu1 %v3562_v58  ;;  %v1173_v50 = vxor.u32 2147483648, %v5239_v4  ;;  %v2832_v15 = vsel %vm2830_vm15, %v1176_v16, %v5239_v4  ;;  %v1177_v45 = vsel %vm1175_vm6, %v1176_v16, %v5239_v4  ;;  %v1266_v44 = vsub.s32 4, %v6846_v22 }
 0x296   : > { %vm7487_vm2 = vcmp.le.f32.partialorder %v8056_v12, 0.7853982  ;;  %vm2826_vm8 = vcmp.lt.s32.totalorder %v2825_v52, 2  ;;  %vm2827_vm9 = vcmp.eq.s32.totalorder %v2825_v52, 0  ;;  %3990 = vmatmul.mubr.f32.gmra.mrb[10].mxu1 %v1900_v9  ;;  %v3657_v1 = vand.u32 3, %v3656_v61 }
 0x297   : > { %v1268_v17 = vsel %vm7487_vm2, %v8048_v24, %v1265_v0  ;;  %v2829_v3 = vsel %vm2827_vm9, %v5237_v62, %v1173_v50  ;;  %v1174_v36 = vsel %vm1172_vm10, %v5237_v62, %v1173_v50  ;;  %v1267_v21 = vsel %vm1182_vm14, %v1266_v44, %v6846_v22 }
 0x298   : > { %5244 = vcosq.f32 %v1268_v17  ;;  %v2833_v46 = vsel %vm2826_vm8, %v2829_v3, %v2832_v15  ;;  %v1178_v37 = vsel %vm1171_vm11, %v1174_v36, %v1177_v45  ;;  %v1269_v63 = vsel %vm7487_vm2, 0, %v1267_v21 }
 0x299   : > { %5246 = vsinq.f32 %v1268_v17  ;;  %v2089_v11 = vsel %vm2006_vm13, %v2088_v56, %v6991_v30  ;;  %v2834_v54 = vsel %vm1169_vm12, nan, %v2833_v46  ;;  %v1179_v22 = vsel %vm1169_vm12, nan, %v1178_v37 }
 0x29a   : > { %v2928_v26 = vadd.s32 3, %v1269_v63  ;;  %3947 = vmatprep.mubr.f32.mxu0 %v2834_v54  ;;  %v1994_v10 = vand.u32 3, %v1990_v32  ;;  %v2090_v25 = vsub.s32 4, %v6760_v57  ;;  %v8059_v19 = vand.u32 2147483647, %v8054_v60 }
 0x29b   : > { %3948 = vmatmul.mubr.f32.gmra.mrb[12].mxu0 %v1179_v22  ;;  %vm3658_vm5 = vcmp.lt.s32.totalorder %v3657_v1, 2  ;;  %vm3659_vm1 = vcmp.eq.s32.totalorder %v3657_v1, 0  ;;  %vm3662_vm11 = vcmp.eq.s32.totalorder %v3657_v1, 2  ;;  %v1273_v8 = vand.u32 3, %v1269_v63  ;;  %v3835_v1 = vld [vmem:[%s7796_s3] sm:$0x3] }
 0x29c   : > { %vm7515_vm14 = vcmp.le.f32.partialorder %v8059_v19, 0.7853982  ;;  %v5241_v55 = vpop.eup %5240  ;;  %v2929_v31 = vand.u32 3, %v2928_v26  ;;  %vm1995_vm10 = vcmp.lt.s32.totalorder %v1994_v10, 2  ;;  %vm1999_vm6 = vcmp.eq.s32.totalorder %v1994_v10, 2 }
 0x29d   : > { %v2092_v35 = vsel %vm7515_vm14, %v8054_v60, %v2089_v11  ;;  %v5243_v30 = vpop.eup %5242  ;;  %v2000_v56 = vxor.u32 2147483648, %v5241_v55  ;;  %v2091_v39 = vsel %vm2006_vm13, %v2090_v25, %v6760_v57  ;;  %vm1996_vm0 = vcmp.eq.s32.totalorder %v1994_v10, 0 }
 0x29e   : > { %v1997_v49 = vxor.u32 2147483648, %v5243_v30  ;;  %5248 = vcosq.f32 %v2092_v35  ;;  %v2093_v34 = vsel %vm7515_vm14, 0, %v2091_v39  ;;  %vm1993_vm12 = vweird.f32 %v6497_v14 }
 0x29f   : > { %v3664_v48 = vsel %vm3662_vm11, %v2000_v56, %v5243_v30  ;;  %v2001_v5 = vsel %vm1999_vm6, %v2000_v56, %v5243_v30  ;;  %5250 = vsinq.f32 %v2092_v35  ;;  %vm1278_vm13 = vcmp.eq.s32.totalorder %v1273_v8, 2 }
 0x2a0   : > { %v3661_v33 = vsel %vm3659_vm1, %v5241_v55, %v1997_v49  ;;  %v1998_v13 = vsel %vm1996_vm0, %v5241_v55, %v1997_v49  ;;  %vm2934_vm4 = vcmp.eq.s32.totalorder %v2929_v31, 2  ;;  %v3760_v6 = vadd.s32 3, %v2093_v34 }
 0x2a1   : > { %v3665_v18 = vsel %vm3658_vm5, %v3661_v33, %v3664_v48  ;;  %v2002_v7 = vsel %vm1995_vm10, %v1998_v13, %v2001_v5  ;;  %vm2931_vm3 = vcmp.eq.s32.totalorder %v2929_v31, 0  ;;  %vm1275_vm7 = vcmp.eq.s32.totalorder %v1273_v8, 0 }
 0x2a2   : > { %v5245_v0 = vpop.eup %5244  ;;  %v3666_v52 = vsel %vm1993_vm12, nan, %v3665_v18  ;;  %v2003_v53 = vsel %vm1993_vm12, nan, %v2002_v7  ;;  %vm2930_vm15 = vcmp.lt.s32.totalorder %v2929_v31, 2  ;;  %vm1274_vm2 = vcmp.lt.s32.totalorder %v1273_v8, 2 }
 0x2a3   : > { %v5247_v28 = vpop.eup %5246  ;;  %v1279_v40 = vxor.u32 2147483648, %v5245_v0  ;;  %3995 = vmatprep.mubr.f32.mxu1 %v3666_v52  ;;  %vm1272_vm8 = vweird.f32 %v8048_v24  ;;  %v3761_v62 = vand.u32 3, %v3760_v6  ;;  %v2097_v43 = vand.u32 3, %v2093_v34 }
 0x2a4   : > { %v1276_v57 = vxor.u32 2147483648, %v5247_v28  ;;  %3996 = vmatmul.mubr.f32.gmra.mrb[12].mxu1 %v2003_v53  ;;  %vm2096_vm6 = vweird.f32 %v8054_v60  ;;  %v3837_v15 = vlaneseq }
 0x2a5   : > { %v2936_v41 = vsel %vm2934_vm4, %v1279_v40, %v5247_v28  ;;  %v1280_v23 = vsel %vm1278_vm13, %v1279_v40, %v5247_v28  ;;  %vm3766_vm9 = vcmp.eq.s32.totalorder %v3761_v62, 2  ;;  %vm2102_vm14 = vcmp.eq.s32.totalorder %v2097_v43, 2 }
 0x2a6   : > { %v2933_v59 = vsel %vm2931_vm3, %v5245_v0, %v1276_v57  ;;  %v1277_v14 = vsel %vm1275_vm7, %v5245_v0, %v1276_v57  ;;  %vm3763_vm5 = vcmp.eq.s32.totalorder %v3761_v62, 0  ;;  %vm2099_vm1 = vcmp.eq.s32.totalorder %v2097_v43, 0 }
 0x2a7   : > { %v2937_v27 = vsel %vm2930_vm15, %v2933_v59, %v2936_v41  ;;  %v1281_v2 = vsel %vm1274_vm2, %v1277_v14, %v1280_v23  ;;  %vm3762_vm11 = vcmp.lt.s32.totalorder %v3761_v62, 2  ;;  %vm2098_vm10 = vcmp.lt.s32.totalorder %v2097_v43, 2 }
 0x2a8   : > { %v2938_v47 = vsel %vm1272_vm8, nan, %v2937_v27  ;;  %v1282_v32 = vsel %vm1272_vm8, nan, %v1281_v2  ;;  %v5249_v51 = vpop.eup %5248  ;;  %v3838_v45 = vshrl.u32 %v3837_v15, 7 }
 0x2a9   : > { %3953 = vmatprep.mubr.f32.mxu0 %v2938_v47  ;;  %v5251_v61 = vpop.eup %5250  ;;  %v2103_v38 = vxor.u32 2147483648, %v5249_v51 }
 0x2aa   : > { %3954 = vmatmul.mubr.f32.gmra.mrb[14].mxu0 %v1282_v32  ;;  %v2100_v16 = vxor.u32 2147483648, %v5251_v61  ;;  %v3839_v44 = vsub.s32 0, %v3838_v45  ;;  %v3843_v17 = vsub.s32 1, %v3838_v45 }
 0x2ab   : > { %v3768_v20 = vsel %vm3766_vm9, %v2103_v38, %v5251_v61  ;;  %v2104_v4 = vsel %vm2102_vm14, %v2103_v38, %v5251_v61 }
 0x2ac   : > { %v3765_v24 = vsel %vm3763_vm5, %v5249_v51, %v2100_v16  ;;  %v2101_v58 = vsel %vm2099_vm1, %v5249_v51, %v2100_v16  ;;  %v7534_v3 = vrot.slane %v3835_v1, %v3839_v44  ;;  %v7536_v36 = vrot.slane %v3835_v1, %v3843_v17 }
 0x2ad   : > { %v3769_v9 = vsel %vm3762_vm11, %v3765_v24, %v3768_v20  ;;  %v2105_v12 = vsel %vm2098_vm10, %v2101_v58, %v2104_v4 }
 0x2ae   : > { %v3770_v29 = vsel %vm2096_vm6, nan, %v3769_v9  ;;  %v2106_v50 = vsel %vm2096_vm6, nan, %v2105_v12 }
 0x2af   : > { %4001 = vmatprep.mubr.f32.mxu1 %v3770_v29 }
 0x2b0   : > { %4002 = vmatmul.mubr.f32.gmra.mrb[14].mxu1 %v2106_v50 }
 0x328   : > { %v3913_v21 = vpop.f32.mrb[0].mxu0 }
 0x329   : > { %v7539_v60 = vadd.f32 %v3913_v21, %v7534_v3  ;;  %v3915_v46 = vpop.f32.mrb[1].mxu0 }
 0x32a   : > { %v7542_v37 = vadd.f32 %v3915_v46, %v7536_v36 }
 0x32b   : > { %v4805_v63 = vmul.f32 -1.442695, %v7539_v60 }
 0x32c   : > { %v4806_v11 = vmul.f32 -1.442695, %v7542_v37  ;;  %v3919_v54 = vpop.f32.mrb[2].mxu0 }
 0x32d   : > { %5252 = vpow2.f32 %v4805_v63  ;;  %v3920_v22 = vadd.f32 %v3919_v54, %v7534_v3  ;;  %v3921_v26 = vpop.f32.mrb[3].mxu0 }
 0x32e   : > { %5254 = vpow2.f32 %v4806_v11  ;;  %v3922_v10 = vadd.f32 %v3921_v26, %v7536_v36 }
 0x32f   : > { %v4807_v25 = vmul.f32 -1.442695, %v3920_v22 }
 0x330   : > { %v4808_v19 = vmul.f32 -1.442695, %v3922_v10  ;;  %v3925_v42 = vpop.f32.mrb[4].mxu0 }
 0x331   : > { %5256 = vpow2.f32 %v4807_v25  ;;  %v7549_v55 = vadd.f32 %v3925_v42, %v7534_v3  ;;  %v3927_v35 = vpop.f32.mrb[5].mxu0 }
 0x332   : > { %5258 = vpow2.f32 %v4808_v19  ;;  %v7552_v30 = vadd.f32 %v3927_v35, %v7536_v36 }
 0x333   : > { %v4809_v56 = vmul.f32 -1.442695, %v7549_v55 }
 0x334   : > { %v4810_v31 = vmul.f32 -1.442695, %v7552_v30 }
 0x335   : > { %5260 = vpow2.f32 %v4809_v56 }
 0x336   : > { %5262 = vpow2.f32 %v4810_v31 }
 0x337   : > { %v5253_v8 = vpop.eup %5252 }
 0x338   : > { %v5255_v49 = vpop.eup %5254  ;;  %v4104_v39 = vadd.f32 1.0, %v5253_v8 }
 0x339   : > { %v4105_v48 = vadd.f32 1.0, %v5255_v49 }
 0x33a   : > { %5264 = vrcp.f32 %v4104_v39 }
 0x33b   : > { %v5257_v5 = vpop.eup %5256  ;;  %5266 = vrcp.f32 %v4105_v48 }
 0x33c   : > { %v5259_v13 = vpop.eup %5258  ;;  %v4106_v34 = vadd.f32 1.0, %v5257_v5 }
 0x33d   : > { %v4107_v7 = vadd.f32 1.0, %v5259_v13 }
 0x33e   : > { %5268 = vrcp.f32 %v4106_v34 }
 0x33f   : > { %v3931_v33 = vpop.f32.mrb[6].mxu0  ;;  %v5261_v40 = vpop.eup %5260  ;;  %5270 = vrcp.f32 %v4107_v7 }
 0x340   : > { %v7557_v0 = vadd.f32 %v3931_v33, %v7534_v3  ;;  %v3933_v18 = vpop.f32.mrb[7].mxu0  ;;  %v5263_v53 = vpop.eup %5262  ;;  %v4108_v41 = vadd.f32 1.0, %v5261_v40 }
 0x341   : > { %v7560_v28 = vadd.f32 %v3933_v18, %v7536_v36  ;;  %v4109_v2 = vadd.f32 1.0, %v5263_v53 }
 0x342   : > { %v4811_v52 = vmul.f32 -1.442695, %v7557_v0 }
 0x343   : > { %v4812_v57 = vmul.f32 -1.442695, %v7560_v28 }
 0x344   : > { %5272 = vpow2.f32 %v4811_v52  ;;  %v5265_v47 = vpop.eup %5264 }
 0x345   : > { %5274 = vpow2.f32 %v4812_v57  ;;  %v5267_v43 = vpop.eup %5266  ;;  %v4200_v24 = vmul.f32 %v5265_v47, %v7539_v60 }
 0x346   : > { %5276 = vrcp.f32 %v4108_v41  ;;  %v4201_v50 = vmul.f32 %v5267_v43, %v7542_v37 }
 0x347   : > { %v3961_v6 = vpop.f32.mrb[0].mxu1 }
 0x348   : > { %v7565_v23 = vadd.f32 %v3961_v6, %v7534_v3  ;;  %v3963_v59 = vpop.f32.mrb[1].mxu1  ;;  %v5269_v38 = vpop.eup %5268 }
 0x349   : > { %v7568_v14 = vadd.f32 %v3963_v59, %v7536_v36  ;;  %v5271_v4 = vpop.eup %5270  ;;  %v4202_v58 = vmul.f32 %v5269_v38, %v3920_v22 }
 0x34a   : > { %v4821_v27 = vmul.f32 -1.442695, %v7565_v23  ;;  %v4203_v15 = vmul.f32 %v5271_v4, %v3922_v10 }
 0x34b   : > { %v4822_v32 = vmul.f32 -1.442695, %v7568_v14  ;;  %v3967_v62 = vpop.f32.mrb[2].mxu1  ;;  %v4232_v21 = vpack.c.bf16 %v4202_v58, %v4200_v24 }
 0x34c   : > { %5278 = vpow2.f32 %v4821_v27  ;;  %v7573_v51 = vadd.f32 %v3967_v62, %v7534_v3  ;;  %v3969_v61 = vpop.f32.mrb[3].mxu1  ;;  %v4233_v11 = vpack.c.bf16 %v4203_v15, %v4201_v50 }
 0x34d   : > { %5280 = vpow2.f32 %v4822_v32  ;;  %v7576_v16 = vadd.f32 %v3969_v61, %v7536_v36  ;;  %v3937_v20 = vpop.f32.mrb[8].mxu0  ;;  %4248 = vst [vmem:[#allocation2] sm:$0xff] %v4232_v21 }
 0x34e   : > { %v4823_v9 = vmul.f32 -1.442695, %v7573_v51  ;;  %5282 = vrcp.f32 %v4109_v2  ;;  %v3939_v12 = vpop.f32.mrb[9].mxu0  ;;  %v5273_v29 = vpop.eup %5272  ;;  %v7583_v1 = vadd.f32 %v3937_v20, %v7534_v3  ;;  %4249 = vst [vmem:[#allocation2 + $0x8] sm:$0xff] %v4233_v11 }
 0x34f   : > { %v4824_v45 = vmul.f32 -1.442695, %v7576_v16  ;;  %v3973_v44 = vpop.f32.mrb[4].mxu1  ;;  %v5275_v17 = vpop.eup %5274  ;;  %v4110_v46 = vadd.f32 1.0, %v5273_v29  ;;  %v7602_v48 = vadd.f32 %v3939_v12, %v7536_v36 }
 0x350   : > { %5284 = vpow2.f32 %v4823_v9  ;;  %v7586_v60 = vadd.f32 %v3973_v44, %v7534_v3  ;;  %v3975_v63 = vpop.f32.mrb[5].mxu1  ;;  %v4111_v54 = vadd.f32 1.0, %v5275_v17  ;;  %v5277_v42 = vpop.eup %5276  ;;  %v4813_v35 = vmul.f32 -1.442695, %v7583_v1 }
 0x351   : > { %5286 = vpow2.f32 %v4824_v45  ;;  %v7589_v37 = vadd.f32 %v3975_v63, %v7536_v36  ;;  %v4814_v53 = vmul.f32 -1.442695, %v7602_v48  ;;  %v4204_v47 = vmul.f32 %v5277_v42, %v7549_v55 }
 0x352   : > { %5288 = vrcp.f32 %v4110_v46  ;;  %v4825_v22 = vmul.f32 -1.442695, %v7586_v60 }
 0x353   : > { %5290 = vrcp.f32 %v4111_v54  ;;  %v4826_v26 = vmul.f32 -1.442695, %v7589_v37  ;;  %v3979_v10 = vpop.f32.mrb[6].mxu1 }
 0x354   : > { %5292 = vpow2.f32 %v4825_v22  ;;  %v7594_v25 = vadd.f32 %v3979_v10, %v7534_v3  ;;  %v3981_v19 = vpop.f32.mrb[7].mxu1 }
 0x355   : > { %5294 = vpow2.f32 %v4826_v26  ;;  %v7598_v56 = vadd.f32 %v3981_v19, %v7536_v36 }
 0x356   : > { %v5279_v31 = vpop.eup %5278  ;;  %v4827_v8 = vmul.f32 -1.442695, %v7594_v25 }
 0x357   : > { %v5281_v49 = vpop.eup %5280  ;;  %v4120_v39 = vadd.f32 1.0, %v5279_v31  ;;  %v4828_v5 = vmul.f32 -1.442695, %v7598_v56 }
 0x358   : > { %v5283_v33 = vpop.eup %5282  ;;  %v4121_v13 = vadd.f32 1.0, %v5281_v49  ;;  %5296 = vpow2.f32 %v4827_v8 }
 0x359   : > { %5298 = vpow2.f32 %v4813_v35  ;;  %v4205_v38 = vmul.f32 %v5283_v33, %v7552_v30 }
 0x35a   : > { %v5285_v18 = vpop.eup %5284  ;;  %5300 = vrcp.f32 %v4120_v39 }
 0x35b   : > { %v3985_v34 = vpop.f32.mrb[8].mxu1  ;;  %v5287_v40 = vpop.eup %5286  ;;  %v4122_v57 = vadd.f32 1.0, %v5285_v18  ;;  %5302 = vpow2.f32 %v4828_v5 }
 0x35c   : > { %v7606_v7 = vadd.f32 %v3985_v34, %v7534_v3  ;;  %v3987_v52 = vpop.f32.mrb[9].mxu1  ;;  %v5289_v41 = vpop.eup %5288  ;;  %5304 = vrcp.f32 %v4121_v13  ;;  %v4123_v59 = vadd.f32 1.0, %v5287_v40 }
 0x35d   : > { %v7610_v6 = vadd.f32 %v3987_v52, %v7536_v36  ;;  %v5291_v2 = vpop.eup %5290  ;;  %5306 = vrcp.f32 %v4122_v57  ;;  %v4206_v32 = vmul.f32 %v5289_v41, %v7557_v0 }
 0x35e   : > { %v4829_v27 = vmul.f32 -1.442695, %v7606_v7  ;;  %v5293_v61 = vpop.eup %5292  ;;  %5308 = vrcp.f32 %v4123_v59  ;;  %v4207_v20 = vmul.f32 %v5291_v2, %v7560_v28 }
 0x35f   : > { %v4830_v43 = vmul.f32 -1.442695, %v7610_v6  ;;  %v5295_v58 = vpop.eup %5294  ;;  %v4234_v9 = vpack.c.bf16 %v4206_v32, %v4204_v47  ;;  %v4124_v12 = vadd.f32 1.0, %v5293_v61  ;;  %5310 = vpow2.f32 %v4814_v53 }
 0x360   : > { %v3943_v62 = vpop.f32.mrb[10].mxu0  ;;  %v4235_v0 = vpack.c.bf16 %v4207_v20, %v4205_v38  ;;  %v4125_v29 = vadd.f32 1.0, %v5295_v58  ;;  %5312 = vpow2.f32 %v4829_v27 }
 0x361   : > { %v7619_v4 = vadd.f32 %v3943_v62, %v7534_v3  ;;  %v3945_v24 = vpop.f32.mrb[11].mxu0  ;;  %4250 = vst [vmem:[#allocation2 + $0x10] sm:$0xff] %v4234_v9  ;;  %5314 = vpow2.f32 %v4830_v43 }
 0x362   : > { %v7622_v55 = vadd.f32 %v3945_v24, %v7536_v36  ;;  %v5297_v30 = vpop.eup %5296  ;;  %4251 = vst [vmem:[#allocation2 + $0x18] sm:$0xff] %v4235_v0  ;;  %5316 = vrcp.f32 %v4124_v12 }
 0x363   : > { %v4815_v28 = vmul.f32 -1.442695, %v7619_v4  ;;  %v5299_v50 = vpop.eup %5298  ;;  %v4126_v15 = vadd.f32 1.0, %v5297_v30  ;;  %5318 = vrcp.f32 %v4125_v29 }
 0x364   : > { %v4816_v45 = vmul.f32 -1.442695, %v7622_v55  ;;  %v5301_v44 = vpop.eup %5300  ;;  %v4112_v52 = vadd.f32 1.0, %v5299_v50 }
 0x365   : > { %v5303_v17 = vpop.eup %5302  ;;  %5320 = vrcp.f32 %v4126_v15  ;;  %v4216_v19 = vmul.f32 %v5301_v44, %v7565_v23 }
 0x366   : > { %v5305_v46 = vpop.eup %5304  ;;  %v4127_v63 = vadd.f32 1.0, %v5303_v17  ;;  %5322 = vpow2.f32 %v4815_v28 }
 0x367   : > { %v5307_v22 = vpop.eup %5306  ;;  %5324 = vpow2.f32 %v4816_v45  ;;  %v4217_v8 = vmul.f32 %v5305_v46, %v7568_v14 }
 0x368   : > { %v5309_v10 = vpop.eup %5308  ;;  %v4218_v42 = vmul.f32 %v5307_v22, %v7573_v51  ;;  %5326 = vrcp.f32 %v4127_v63 }
 0x369   : > { %v3991_v21 = vpop.f32.mrb[10].mxu1  ;;  %v5311_v31 = vpop.eup %5310  ;;  %v4219_v49 = vmul.f32 %v5309_v10, %v7576_v16 }
 0x36a   : > { %v7627_v11 = vadd.f32 %v3991_v21, %v7534_v3  ;;  %v3993_v54 = vpop.f32.mrb[11].mxu1  ;;  %v5313_v5 = vpop.eup %5312  ;;  %v4240_v33 = vpack.c.bf16 %v4218_v42, %v4216_v19  ;;  %v4113_v51 = vadd.f32 1.0, %v5311_v31 }
 0x36b   : > { %v7630_v26 = vadd.f32 %v3993_v54, %v7536_v36  ;;  %v5315_v34 = vpop.eup %5314  ;;  %v4241_v18 = vpack.c.bf16 %v4219_v49, %v4217_v8  ;;  %v4128_v57 = vadd.f32 1.0, %v5313_v5 }
 0x36c   : > { %v4831_v35 = vmul.f32 -1.442695, %v7627_v11  ;;  %4256 = vst [vmem:[#allocation2 + $0x40] sm:$0xff] %v4240_v33  ;;  %v5317_v40 = vpop.eup %5316  ;;  %v4129_v14 = vadd.f32 1.0, %v5315_v34 }
 0x36d   : > { %v4832_v39 = vmul.f32 -1.442695, %v7630_v26  ;;  %4257 = vst [vmem:[#allocation2 + $0x48] sm:$0xff] %v4241_v18  ;;  %v5319_v53 = vpop.eup %5318  ;;  %v4220_v27 = vmul.f32 %v5317_v40, %v7586_v60 }
 0x36e   : > { %v3949_v13 = vpop.f32.mrb[12].mxu0  ;;  %5328 = vpow2.f32 %v4831_v35  ;;  %v4221_v24 = vmul.f32 %v5319_v53, %v7589_v37 }
 0x36f   : > { %v3951_v23 = vpop.f32.mrb[13].mxu0  ;;  %5330 = vpow2.f32 %v4832_v39  ;;  %v7639_v16 = vadd.f32 %v3949_v13, %v7534_v3  ;;  %v5321_v41 = vpop.eup %5320 }
 0x370   : > { %5332 = vrcp.f32 %v4112_v52  ;;  %v5323_v59 = vpop.eup %5322  ;;  %v4222_v2 = vmul.f32 %v5321_v41, %v7594_v25  ;;  %v7644_v62 = vadd.f32 %v3951_v23, %v7536_v36 }
 0x371   : > { %5334 = vrcp.f32 %v4113_v51  ;;  %v5325_v47 = vpop.eup %5324  ;;  %v4114_v32 = vadd.f32 1.0, %v5323_v59  ;;  %v4817_v20 = vmul.f32 -1.442695, %v7639_v16 }
 0x372   : > { %5336 = vrcp.f32 %v4128_v57  ;;  %v5327_v43 = vpop.eup %5326  ;;  %v4242_v61 = vpack.c.bf16 %v4222_v2, %v4220_v27  ;;  %v4115_v38 = vadd.f32 1.0, %v5325_v47  ;;  %v4818_v30 = vmul.f32 -1.442695, %v7644_v62 }
 0x373   : > { %5338 = vrcp.f32 %v4129_v14  ;;  %v4223_v58 = vmul.f32 %v5327_v43, %v7598_v56 }
 0x374   : > { %5340 = vrcp.f32 %v4114_v32  ;;  %4258 = vst [vmem:[#allocation2 + $0x50] sm:$0xff] %v4242_v61 }
 0x375   : > { %5342 = vrcp.f32 %v4115_v38  ;;  %v4243_v0 = vpack.c.bf16 %v4223_v58, %v4221_v24 }
 0x376   : > { %5344 = vpow2.f32 %v4817_v20 }
 0x377   : > { %v3997_v60 = vpop.f32.mrb[12].mxu1  ;;  %4259 = vst [vmem:[#allocation2 + $0x58] sm:$0xff] %v4243_v0 }
 0x378   : > { %v5329_v25 = vpop.eup %5328  ;;  %v3999_v9 = vpop.f32.mrb[13].mxu1  ;;  %v7651_v28 = vadd.f32 %v3997_v60, %v7534_v3 }
 0x379   : > { %v5331_v12 = vpop.eup %5330  ;;  %v4130_v29 = vadd.f32 1.0, %v5329_v25  ;;  %v7661_v46 = vadd.f32 %v3999_v9, %v7536_v36 }
 0x37a   : > { %v4131_v50 = vadd.f32 1.0, %v5331_v12  ;;  %v5333_v56 = vpop.eup %5332  ;;  %v4833_v45 = vmul.f32 -1.442695, %v7651_v28 }
 0x37b   : > { %5346 = vrcp.f32 %v4130_v29  ;;  %v5335_v17 = vpop.eup %5334  ;;  %v4208_v35 = vmul.f32 %v5333_v56, %v7583_v1  ;;  %v4834_v8 = vmul.f32 -1.442695, %v7661_v46 }
 0x37c   : > { %5348 = vrcp.f32 %v4131_v50  ;;  %v5337_v63 = vpop.eup %5336  ;;  %v4209_v49 = vmul.f32 %v5335_v17, %v7602_v48 }
 0x37d   : > { %v3955_v37 = vpop.f32.mrb[14].mxu0  ;;  %5350 = vpow2.f32 %v4818_v30  ;;  %v5339_v22 = vpop.eup %5338  ;;  %v4224_v1 = vmul.f32 %v5337_v63, %v7606_v7 }
 0x37e   : > { %v7654_v15 = vadd.f32 %v3955_v37, %v7534_v3  ;;  %v3957_v44 = vpop.f32.mrb[15].mxu0  ;;  %v5341_v19 = vpop.eup %5340  ;;  %5352 = vpow2.f32 %v4833_v45 }
 0x37f   : > { %v7658_v21 = vadd.f32 %v3957_v44, %v7536_v36  ;;  %v5343_v42 = vpop.eup %5342  ;;  %v4210_v31 = vmul.f32 %v5341_v19, %v7619_v4 }
 0x380   : > { %v4819_v54 = vmul.f32 -1.442695, %v7654_v15  ;;  %v4211_v39 = vmul.f32 %v5343_v42, %v7622_v55  ;;  %v5345_v5 = vpop.eup %5344  ;;  %v4225_v55 = vmul.f32 %v5339_v22, %v7610_v6 }
 0x381   : > { %v4820_v10 = vmul.f32 -1.442695, %v7658_v21  ;;  %v4236_v33 = vpack.c.bf16 %v4210_v31, %v4208_v35 }
 0x382   : > { %5354 = vpow2.f32 %v4819_v54  ;;  %v4237_v18 = vpack.c.bf16 %v4211_v39, %v4209_v49 }
 0x383   : > { %5356 = vpow2.f32 %v4820_v10  ;;  %v4003_v13 = vpop.f32.mrb[14].mxu1  ;;  %4252 = vst [vmem:[#allocation2 + $0x20] sm:$0xff] %v4236_v33 }
 0x384   : > { %v4004_v52 = vadd.f32 %v4003_v13, %v7534_v3  ;;  %v4005_v23 = vpop.f32.mrb[15].mxu1  ;;  %5358 = vpow2.f32 %v4834_v8  ;;  %4253 = vst [vmem:[#allocation2 + $0x28] sm:$0xff] %v4237_v18  ;;  %v4116_v3 = vadd.f32 1.0, %v5345_v5 }
 0x385   : > { %v5347_v34 = vpop.eup %5346  ;;  %v4006_v48 = vadd.f32 %v4005_v23, %v7536_v36 }
 0x386   : > { %v5349_v51 = vpop.eup %5348  ;;  %v4226_v4 = vmul.f32 %v5347_v34, %v7627_v11  ;;  %v4835_v53 = vmul.f32 -1.442695, %v4004_v52 }
 0x387   : > { %v5351_v40 = vpop.eup %5350  ;;  %v4227_v57 = vmul.f32 %v5349_v51, %v7630_v26  ;;  %v4836_v41 = vmul.f32 -1.442695, %v4006_v48 }
 0x388   : > { %v4244_v14 = vpack.c.bf16 %v4226_v4, %v4224_v1  ;;  %5360 = vpow2.f32 %v4835_v53  ;;  %v4117_v27 = vadd.f32 1.0, %v5351_v40  ;;  %v5353_v7 = vpop.eup %5352 }
 0x389   : > { %v4245_v59 = vpack.c.bf16 %v4227_v57, %v4225_v55  ;;  %5362 = vpow2.f32 %v4836_v41  ;;  %v4132_v26 = vadd.f32 1.0, %v5353_v7 }
 0x38a   : > { %4260 = vst [vmem:[#allocation2 + $0x60] sm:$0xff] %v4244_v14  ;;  %5364 = vrcp.f32 %v4116_v3 }
 0x38b   : > { %4261 = vst [vmem:[#allocation2 + $0x68] sm:$0xff] %v4245_v59  ;;  %5366 = vrcp.f32 %v4117_v27 }
 0x38c   : > { %v5355_v11 = vpop.eup %5354 }
 0x38d   : > { %v5357_v2 = vpop.eup %5356  ;;  %v4118_v36 = vadd.f32 1.0, %v5355_v11 }
 0x38e   : > { %v4119_v47 = vadd.f32 1.0, %v5357_v2  ;;  %v5359_v6 = vpop.eup %5358 }
 0x38f   : > { %5368 = vrcp.f32 %v4118_v36  ;;  %v4133_v43 = vadd.f32 1.0, %v5359_v6 }
 0x390   : > { %5370 = vrcp.f32 %v4119_v47 }
 0x391   : > { %5372 = vrcp.f32 %v4132_v26 }
 0x392   : > { %v5361_v32 = vpop.eup %5360 }
 0x393   : > { %v4134_v61 = vadd.f32 1.0, %v5361_v32  ;;  %v5363_v38 = vpop.eup %5362 }
 0x394   : > { %v5365_v20 = vpop.eup %5364  ;;  %v4135_v24 = vadd.f32 1.0, %v5363_v38 }
 0x395   : > { %5374 = vrcp.f32 %v4134_v61  ;;  %v5367_v58 = vpop.eup %5366  ;;  %v4212_v9 = vmul.f32 %v5365_v20, %v7639_v16 }
 0x396   : > { %5376 = vrcp.f32 %v4133_v43  ;;  %v4213_v0 = vmul.f32 %v5367_v58, %v7644_v62 }
 0x397   : > { %5378 = vrcp.f32 %v4135_v24 }
 0x399   : > { %v5369_v60 = vpop.eup %5368 }
 0x39a   : > { %v5371_v25 = vpop.eup %5370  ;;  %v4214_v12 = vmul.f32 %v5369_v60, %v7654_v15 }
 0x39b   : > { %v4215_v29 = vmul.f32 %v5371_v25, %v7658_v21  ;;  %v5373_v37 = vpop.eup %5372 }
 0x39c   : > { %v4238_v30 = vpack.c.bf16 %v4214_v12, %v4212_v9  ;;  %v4228_v44 = vmul.f32 %v5373_v37, %v7651_v28 }
 0x39d   : > { %v4239_v50 = vpack.c.bf16 %v4215_v29, %v4213_v0 }
 0x39e   : > { %4254 = vst [vmem:[#allocation2 + $0x30] sm:$0xff] %v4238_v30 }
 0x39f   : > { %4255 = vst [vmem:[#allocation2 + $0x38] sm:$0xff] %v4239_v50  ;;  %v5375_v56 = vpop.eup %5374 }
 0x3a0   : > { %v5377_v45 = vpop.eup %5376  ;;  %v4230_v17 = vmul.f32 %v5375_v56, %v4004_v52 }
 0x3a1   : > { %v5379_v63 = vpop.eup %5378  ;;  %v4229_v16 = vmul.f32 %v5377_v45, %v7661_v46 }
 0x3a2   : > { %v4246_v54 = vpack.c.bf16 %v4230_v17, %v4228_v44  ;;  %v4231_v22 = vmul.f32 %v5379_v63, %v4006_v48 }
 0x3a4   : > { %4262 = vst [vmem:[#allocation2 + $0x70] sm:$0xff] %v4246_v54  ;;  %v4247_v15 = vpack.c.bf16 %v4231_v22, %v4229_v16 }
 0x3a6   : > { %4263 = vst [vmem:[#allocation2 + $0x78] sm:$0xff] %v4247_v15 }
 0x3a7 PF: > { %v5381_v62 = vld [vmem:[%s5757_s20 + $0x40] sm:$0xff]   ;;  %v5383_v28 = vld [vmem:[%s5757_s20 + $0x48] sm:$0xff]   ;;  %v5385_v10 = vld [vmem:[%s5757_s20 + $0x50] sm:$0xff]   ;;  %s4855_s29 = sshll.u32 %s5533_s24, 7  ;;  %s4529_s19 = scalar_lea.sflag [#allocation5], %s5753_s27 }
 0x3a8   : > { %v5382_v21 = vld [vmem:[%s5757_s20] sm:$0xff]   ;;  %4858 = vmatprep.subr.bf16.mxu0 %v5381_v62  ;;  %5018 = vmatprep.subr.bf16.mxu1 %v5381_v62  ;;  %v5384_v46 = vld [vmem:[%s5757_s20 + $0x8] sm:$0xff]   ;;  %v5386_v19 = vld [vmem:[%s5757_s20 + $0x10] sm:$0xff]   ;;  %s7736_s24 = scalar_lea.hbm %s7799_s6, %s4855_s29  ;;  %p8062_p4 = scmp.ne.s32.totalorder %s7895_s8, 0 }
 0x3a9   : > { %4859 = vmatpush3.bf16.msra.mxu0 %v5382_v21  ;;  %5026 = vmatpush3.bf16.msra.mxu1 %v5382_v21  ;;  %v5387_v42 = vld [vmem:[%s5757_s20 + $0x58] sm:$0xff]   ;;  %v5389_v31 = vld [vmem:[%s5757_s20 + $0x60] sm:$0xff]   ;;  %v5391_v49 = vld [vmem:[%s5757_s20 + $0x68] sm:$0xff]   ;;  %s5557_s14 = smov [#allocation8]  }
 0x3aa   : > { %4860 = vmatprep.subr.bf16.mxu0 %v5383_v28  ;;  %5019 = vmatprep.subr.bf16.mxu1 %v5383_v28  ;;  %v5388_v35 = vld [vmem:[%s5757_s20 + $0x18] sm:$0xff]   ;;  %v5390_v8 = vld [vmem:[%s5757_s20 + $0x20] sm:$0xff]   ;;  %v4265_v39 = vld [vmem:[#allocation2 + $0x8] sm:$0xff]  ;;  %s5459_s17 = sshll.u32 %s5557_s14, 4  ;;  %s5460_s17 = int_to_ptr.vmem [resolvable:$false] %s5459_s17 }
 0x3ab   : > { %v4273_v5 = vld [vmem:[#allocation2 + $0x48] sm:$0xff]  ;;  %4447 = vmatprep.mubr.bf16.mxu0 %v4265_v39  ;;  %v5393_v13 = vld [vmem:[%s5757_s20 + $0x70] sm:$0xff]   ;;  %v5395_v18 = vld [vmem:[%s5757_s20 + $0x78] sm:$0xff]   ;;  %s5461_s12 = scalar_lea.vmem %s5460_s17, 4096 }
 0x3ac   : > { %4479 = vmatprep.mubr.bf16.mxu1 %v4273_v5  ;;  %v5392_v33 = vld [vmem:[%s5757_s20 + $0x28] sm:$0xff]   ;;  %v5394_v34 = vld [vmem:[%s5757_s20 + $0x30] sm:$0xff]   ;;  %v5396_v52 = vld [vmem:[%s5757_s20 + $0x38] sm:$0xff]  }
 0x3ad   : > { %4861 = vmatpush3.bf16.msra.mxu0 %v5384_v46  ;;  %5027 = vmatpush3.bf16.msra.mxu1 %v5384_v46  ;;  %v4264_v23 = vld [vmem:[#allocation2] sm:$0xff]  ;;  %v4267_v1 = vld [vmem:[#allocation2 + $0x18] sm:$0xff]  ;;  %v4266_v48 = vld [vmem:[#allocation2 + $0x10] sm:$0xff] }
 0x3ae   : > { %4862 = vmatprep.subr.bf16.mxu0 %v5385_v10  ;;  %5020 = vmatprep.subr.bf16.mxu1 %v5385_v10  ;;  %v4272_v51 = vld [vmem:[#allocation2 + $0x40] sm:$0xff]  ;;  %v4275_v4 = vld [vmem:[#allocation2 + $0x58] sm:$0xff]  ;;  %v4274_v40 = vld [vmem:[#allocation2 + $0x50] sm:$0xff] }
 0x3af   : > { %v4269_v55 = vld [vmem:[#allocation2 + $0x28] sm:$0xff]  ;;  %v4268_v53 = vld [vmem:[#allocation2 + $0x20] sm:$0xff]  ;;  %v4271_v41 = vld [vmem:[#allocation2 + $0x38] sm:$0xff] }
 0x3b0   : > { %v4277_v57 = vld [vmem:[#allocation2 + $0x68] sm:$0xff]  ;;  %v4276_v14 = vld [vmem:[#allocation2 + $0x60] sm:$0xff]  ;;  %v4279_v3 = vld [vmem:[#allocation2 + $0x78] sm:$0xff] }
 0x3b1   : > { %4863 = vmatpush3.bf16.msra.mxu0 %v5386_v19  ;;  %5028 = vmatpush3.bf16.msra.mxu1 %v5386_v19  ;;  %v4270_v59 = vld [vmem:[#allocation2 + $0x30] sm:$0xff]  ;;  %v7703_v2 = vld [vmem:[%s333_s13] ss:$0 sm:$0xff]  ;;  %s4544_s13 = sshll.u32 %s5771_s11, 4  ;;  %s7738_s13 = int_to_ptr.vmem [resolvable:$true] %s4544_s13 }
 0x3b2   : > { %4864 = vmatprep.subr.bf16.mxu0 %v5387_v42  ;;  %5021 = vmatprep.subr.bf16.mxu1 %v5387_v42  ;;  %v4278_v27 = vld [vmem:[#allocation2 + $0x70] sm:$0xff]  ;;  %s5455_s10 = scalar_lea.vmem %s7738_s13, 2048  ;;  %p5462_p3 = scmp.lt.s32.totalorder %s7738_s13, %s5460_s17 }
 0x3b3   : > { %p5456_p13 = scmp.ne.s32.totalorder %s7738_s13, %s5455_s10  ;;  %p5463_p6 = scmp.lt.s32.totalorder %s5461_s12, %s5455_s10 }
 0x3b5   : > { %4865 = vmatpush3.bf16.msra.mxu0 %v5388_v35  ;;  %5029 = vmatpush3.bf16.msra.mxu1 %v5388_v35  ;;  %p5457_p1 = pnand %p5456_p13, %p8062_p4  ;;  %p5464_p0 = por %p5463_p6, %p5462_p3 }
 0x3b6   : > { %4866 = vmatprep.subr.bf16.mxu0 %v5389_v31  ;;  %5022 = vmatprep.subr.bf16.mxu1 %v5389_v31 }
 0x3b7   : > { %p5458_p10 = pneg %p5457_p1 }
 0x3b9   : > { %4867 = vmatpush3.bf16.msra.mxu0 %v5390_v8  ;;  %5030 = vmatpush3.bf16.msra.mxu1 %v5390_v8  ;;  %p5465_p2 = pnand %p5464_p0, %p5458_p10 }
 0x3ba   : > { %4868 = vmatprep.subr.bf16.mxu0 %v5391_v49  ;;  %5023 = vmatprep.subr.bf16.mxu1 %v5391_v49 }
 0x3bd   : > { %4869 = vmatpush3.bf16.msra.mxu0 %v5392_v33  ;;  %5031 = vmatpush3.bf16.msra.mxu1 %v5392_v33 }
 0x3be   : > { %4870 = vmatprep.subr.bf16.mxu0 %v5393_v13  ;;  %5024 = vmatprep.subr.bf16.mxu1 %v5393_v13 }
 0x3c1   : > { %4871 = vmatpush3.bf16.msra.mxu0 %v5394_v34  ;;  %5032 = vmatpush3.bf16.msra.mxu1 %v5394_v34 }
 0x3c2   : > { %4872 = vmatprep.subr.bf16.mxu0 %v5395_v18  ;;  %5025 = vmatprep.subr.bf16.mxu1 %v5395_v18 }
 0x3c5   : > { %4873 = vmatpush3.bf16.msra.mxu0 %v5396_v52  ;;  %5033 = vmatpush3.bf16.msra.mxu1 %v5396_v52 }
 0x3c8   : > { %4448 = vmatmul.mubr.bf16.vlgmr.msra.gmra.mrb[0].mxu0 %v4264_v23  ;;  %4480 = vmatmul.mubr.bf16.vlgmr.msra.gmra.mrb[0].mxu1 %v4272_v51 }
 0x3c9   : > { %4455 = vmatprep.mubr.bf16.mxu0 %v4267_v1  ;;  %4487 = vmatprep.mubr.bf16.mxu1 %v4275_v4 }
 0x3d0   : > { %4456 = vmatmul.mubr.bf16.gmra.mrb[4].mxu0 %v4266_v48  ;;  %4488 = vmatmul.mubr.bf16.gmra.mrb[4].mxu1 %v4274_v40 }
 0x3d1   : > { %4463 = vmatprep.mubr.bf16.mxu0 %v4269_v55  ;;  %4495 = vmatprep.mubr.bf16.mxu1 %v4277_v57 }
 0x3d8   : > { %4464 = vmatmul.mubr.bf16.gmra.mrb[8].mxu0 %v4268_v53  ;;  %4496 = vmatmul.mubr.bf16.gmra.mrb[8].mxu1 %v4276_v14 }
 0x3d9   : > { %4471 = vmatprep.mubr.bf16.mxu0 %v4271_v41  ;;  %4503 = vmatprep.mubr.bf16.mxu1 %v4279_v3 }
 0x3e0   : > { %4472 = vmatmul.mubr.bf16.gmra.mrb[12].mxu0 %v4270_v59  ;;  %4504 = vmatmul.mubr.bf16.gmra.mrb[12].mxu1 %v4278_v27 }
 0x49b   : > { %v4874_v7 = vpop.f32.mrb[0].mxu0  ;;  %v4898_v11 = vpop.f32.mrb[0].mxu1 }
 0x49c   : > { %v4875_v36 = vpop.f32.mrb[1].mxu0  ;;  %v4899_v47 = vpop.f32.mrb[1].mxu1 }
 0x49d   : > { %v4876_v6 = vadd.f32 %v4875_v36, %v4874_v7  ;;  %v4900_v26 = vadd.f32 %v4899_v47, %v4898_v11  ;;  %v4877_v32 = vpop.f32.mrb[2].mxu0  ;;  %v4901_v43 = vpop.f32.mrb[2].mxu1 }
 0x49e   : > { %v4878_v61 = vpop.f32.mrb[3].mxu0  ;;  %v4902_v38 = vpop.f32.mrb[3].mxu1 }
 0x49f   : > { %v4450_v20 = vadd.f32 %v4876_v6, %v7703_v2  ;;  %v4482_v24 = vadd.f32 %v4900_v26, %v7703_v2  ;;  %v4879_v58 = vadd.f32 %v4878_v61, %v4877_v32  ;;  %v4903_v60 = vadd.f32 %v4902_v38, %v4901_v43 }
 0x4a1   : > { %4512 = vst [vmem:[%s5771_s11] sm:$0xff] %v4450_v20  ;;  %4520 = vst [vmem:[%s5771_s11 + $0x40] sm:$0xff] %v4482_v24  ;;  %v4453_v25 = vadd.f32 %v4879_v58, %v7703_v2  ;;  %v4485_v9 = vadd.f32 %v4903_v60, %v7703_v2 }
 0x4a3   : > { %4513 = vst [vmem:[%s5771_s11 + $0x8] sm:$0xff] %v4453_v25  ;;  %4521 = vst [vmem:[%s5771_s11 + $0x48] sm:$0xff] %v4485_v9  ;;  %v4880_v12 = vpop.f32.mrb[4].mxu0  ;;  %v4904_v0 = vpop.f32.mrb[4].mxu1 }
 0x4a4   : > { %v4881_v29 = vpop.f32.mrb[5].mxu0  ;;  %v4905_v30 = vpop.f32.mrb[5].mxu1 }
 0x4a5   : > { %v4882_v50 = vadd.f32 %v4881_v29, %v4880_v12  ;;  %v4906_v37 = vadd.f32 %v4905_v30, %v4904_v0  ;;  %v4883_v56 = vpop.f32.mrb[6].mxu0  ;;  %v4907_v45 = vpop.f32.mrb[6].mxu1 }
 0x4a6   : > { %v4884_v44 = vpop.f32.mrb[7].mxu0  ;;  %v4908_v17 = vpop.f32.mrb[7].mxu1 }
 0x4a7   : > { %v4458_v63 = vadd.f32 %v4882_v50, %v7703_v2  ;;  %v4490_v54 = vadd.f32 %v4906_v37, %v7703_v2  ;;  %v4885_v16 = vadd.f32 %v4884_v44, %v4883_v56  ;;  %v4909_v22 = vadd.f32 %v4908_v17, %v4907_v45 }
 0x4a9   : > { %4514 = vst [vmem:[%s5771_s11 + $0x10] sm:$0xff] %v4458_v63  ;;  %4522 = vst [vmem:[%s5771_s11 + $0x50] sm:$0xff] %v4490_v54  ;;  %v4461_v15 = vadd.f32 %v4885_v16, %v7703_v2  ;;  %v4493_v62 = vadd.f32 %v4909_v22, %v7703_v2 }
 0x4ab   : > { %4515 = vst [vmem:[%s5771_s11 + $0x18] sm:$0xff] %v4461_v15  ;;  %4523 = vst [vmem:[%s5771_s11 + $0x58] sm:$0xff] %v4493_v62  ;;  %v4886_v21 = vpop.f32.mrb[8].mxu0  ;;  %v4910_v28 = vpop.f32.mrb[8].mxu1 }
 0x4ac   : > { %v4887_v46 = vpop.f32.mrb[9].mxu0  ;;  %v4911_v10 = vpop.f32.mrb[9].mxu1 }
 0x4ad   : > { %v4888_v19 = vadd.f32 %v4887_v46, %v4886_v21  ;;  %v4912_v42 = vadd.f32 %v4911_v10, %v4910_v28  ;;  %v4889_v35 = vpop.f32.mrb[10].mxu0  ;;  %v4913_v31 = vpop.f32.mrb[10].mxu1 }
 0x4ae   : > { %v4890_v8 = vpop.f32.mrb[11].mxu0  ;;  %v4914_v49 = vpop.f32.mrb[11].mxu1 }
 0x4af   : > { %v4466_v39 = vadd.f32 %v4888_v19, %v7703_v2  ;;  %v4498_v5 = vadd.f32 %v4912_v42, %v7703_v2  ;;  %v4891_v33 = vadd.f32 %v4890_v8, %v4889_v35  ;;  %v4915_v13 = vadd.f32 %v4914_v49, %v4913_v31 }
 0x4b1   : > { %4516 = vst [vmem:[%s5771_s11 + $0x20] sm:$0xff] %v4466_v39  ;;  %4524 = vst [vmem:[%s5771_s11 + $0x60] sm:$0xff] %v4498_v5  ;;  %v4469_v34 = vadd.f32 %v4891_v33, %v7703_v2  ;;  %v4501_v18 = vadd.f32 %v4915_v13, %v7703_v2 }
 0x4b3   : > { %4517 = vst [vmem:[%s5771_s11 + $0x28] sm:$0xff] %v4469_v34  ;;  %4525 = vst [vmem:[%s5771_s11 + $0x68] sm:$0xff] %v4501_v18  ;;  %v4892_v52 = vpop.f32.mrb[12].mxu0  ;;  %v4916_v23 = vpop.f32.mrb[12].mxu1 }
 0x4b4   : > { %v4893_v51 = vpop.f32.mrb[13].mxu0  ;;  %v4917_v1 = vpop.f32.mrb[13].mxu1 }
 0x4b5   : > { %v4894_v4 = vadd.f32 %v4893_v51, %v4892_v52  ;;  %v4918_v48 = vadd.f32 %v4917_v1, %v4916_v23  ;;  %v4895_v40 = vpop.f32.mrb[14].mxu0  ;;  %v4919_v55 = vpop.f32.mrb[14].mxu1 }
 0x4b6   : > { %v4896_v57 = vpop.f32.mrb[15].mxu0  ;;  %v4920_v53 = vpop.f32.mrb[15].mxu1 }
 0x4b7   : > { %v4474_v14 = vadd.f32 %v4894_v4, %v7703_v2  ;;  %v4506_v41 = vadd.f32 %v4918_v48, %v7703_v2  ;;  %v4897_v3 = vadd.f32 %v4896_v57, %v4895_v40  ;;  %v4921_v59 = vadd.f32 %v4920_v53, %v4919_v55 }
 0x4b9   : > { %4518 = vst [vmem:[%s5771_s11 + $0x30] sm:$0xff] %v4474_v14  ;;  %4526 = vst [vmem:[%s5771_s11 + $0x70] sm:$0xff] %v4506_v41  ;;  %v4477_v27 = vadd.f32 %v4897_v3, %v7703_v2  ;;  %v4509_v7 = vadd.f32 %v4921_v59, %v7703_v2 }
 0x4bb   : > { %4519 = vst [vmem:[%s5771_s11 + $0x38] sm:$0xff] %v4477_v27  ;;  %4527 = vst [vmem:[%s5771_s11 + $0x78] sm:$0xff] %v4509_v7 }
 0x4bc   : > { %5468 = shalt.err (!%p5465_p2)
}
 0x4bd   : > { %s5469_s11 = scalar_lea.hbm %s7736_s24, 2048  ;;  %s5473_s18 = scalar_lea.hbm %s7799_s6, 4096 }
 0x4be   : > { %p5470_p7 = scmp.ne.s32.totalorder %s7736_s24, %s5469_s11  ;;  %p5474_p8 = scmp.lt.u32.totalorder %s7736_s24, %s7799_s6 }
 0x4bf   : > { %p5475_p9 = scmp.lt.u32.totalorder %s5473_s18, %s5469_s11  ;;  %p5477_p13 = scmp.lt.u32.totalorder %s5469_s11, %s7736_s24 }
 0x4c0   : > { %p5471_p12 = pnand %p5470_p7, %p8062_p4 }
 0x4c1   : > { %p5476_p11 = por %p5475_p9, %p5474_p8 }
 0x4c2   : > { %p5472_p5 = pneg %p5471_p12 }
 0x4c3   : > { %p5478_p1 = por %p5477_p13, %p5476_p11 }
 0x4c5   : > { %p5479_p10 = pnand %p5478_p1, %p5472_p5 }
 0x4c7   : > { %5482 = shalt.err (!%p5479_p10)
}
 0x4c8   : > { %s5558_s29 = smov 128   ;;  %s5559_s28 = smov 256  }
 0x4c9   : > { %s5560_s30 = smov 8  }
 0x4ca   : > { %5104 = dma.vmem_to_hbm [thread:$0]  (%p8062_p4), %s7738_s13, 2048, %s7736_s24, %s4529_s19, %s5558_s29, %s5559_s28, %s5560_s30  }
 0x4cb PF: > { %s8063_s10 = sld [smem:[#allocation13_spill]]  ;;  %s8064_s14 = sld [smem:[#allocation12_spill]] }
 0x4cc   : > { %s4559_s17 = sand.u32 1, %s5521_s21  }
 0x4cd   : > { %s4560_s12 = scalar_lea.sflag [#allocation5], %s4559_s17 }
 0x4d1   : > { %p8065_p3 = scmp.ne.s32.totalorder %s8063_s10, 0  ;;  %p8066_p6 = scmp.ge.s32.totalorder %s8064_s14, 2 }
 0x4d3   : > { %p5115_p0 = pnand %p8066_p6, %p8065_p3 }
 0x4d5   : > { %5516 = dma.done.wait (!%p5115_p0), %s4560_s12, 2048  }
 0x4d6   : > { %5518 = vsyncadd (!%p5115_p0), %s4560_s12, 4294965248  ;;  %s23_s26 = sadd.s32 1, %s8064_s14   ;;  %s8067_s21 = smov %s5525_s22 }
 0x4d7   : > { %p20_p2 = scmp.ge.s32.totalorder %s23_s26, 4   ;;  %s8068_s22 = smov %s5529_s23 }
 0x4d8   : > { %s8069_s23 = smov %s5714_s16  ;;  %s8070_s24 = smov %s5537_s25 }
 0x4d9   : > { %s8071_s25 = smov %s8073_s15  ;;  %22 = sbr.rel (!%p20_p2) target bundleno = 7 (0x7), region = 104 }
 0x4e0   :  { %4565 = vsyncpa [#allocation4], 1 }
 0x4e1   :  { %4567 = vsyncpa [#allocation4 + $0x1], 1 }
 0x4e2   :  { %4568 = vsyncpa [#allocation7], 1 }
 0x4e3   :  { %4570 = vsyncpa [#allocation7 + $0x1], 1 }
 0x4e4   :  { %4571 = vsyncpa [#allocation5], 1 }
 0x4e5   :  { %4573 = vsyncpa [#allocation5 + $0x1], 1 }

</bundles_post_ra>
